<compile_context>
chip_gen: v6e
topology: v6e:2x2x1
jax: 0.10.0
libtpu: 0.0.40
codegen_flags: <defaults>
</compile_context>

<pallas_src>
import jax
import jax.numpy as jnp
from jax import lax
from jax.experimental import pallas as pl
from jax.experimental.pallas import tpu as pltpu


def _round_up(x, m):
    return (x + m - 1) // m * m


def basic_block_kernel(x_ref, w1_ref, s1_ref, b1_ref, w2_ref, s2_ref, b2_ref,
                       out_ref, pad_scr):
    """One image per grid step: conv3x3 -> BN -> ReLU -> conv3x3 -> BN -> +x -> ReLU."""
    _, H, W, Cp = x_ref.shape

    # Zero the padded scratch every step (cheap vs. the two matmuls); keeps the
    # 1-pixel halo at 0 and stays correct when the "parallel" batch axis is
    # split across cores (each core owns its own scratch instance).
    pad_scr[...] = jnp.zeros_like(pad_scr)

    x = x_ref[0]                                   # (H, W, Cp) bf16

    def conv3x3(w_ref):
        # im2col: concatenate the 9 shifted taps along the contraction axis and
        # run a single K = 9*Cp matmul on the MXU (f32 accumulation).
        taps = [pad_scr[kh:kh + H, kw:kw + W, :]
                for kh in range(3) for kw in range(3)]
        patches = jnp.concatenate(taps, axis=-1)   # (H, W, 9*Cp) bf16
        return jnp.einsum('hwk,ko->hwo', patches, w_ref[...],
                          preferred_element_type=jnp.float32)  # (H, W, Cp) f32

    # ---- conv1 -> bn1 -> relu ----
    pad_scr[1:H + 1, 1:W + 1, :] = x
    out1 = jnp.maximum(conv3x3(w1_ref) * s1_ref[...] + b1_ref[...], 0.0)

    # ---- conv2 -> bn2 -> + residual -> relu ----
    pad_scr[1:H + 1, 1:W + 1, :] = out1.astype(pad_scr.dtype)
    out2 = conv3x3(w2_ref) * s2_ref[...] + b2_ref[...]
    residual = x.astype(jnp.float32)               # identity shortcut (f32 add)
    out_ref[0] = jnp.maximum(out2 + residual, 0.0).astype(out_ref.dtype)


def basic_block(x_nchw, w1_oihw, gamma1, beta1, mean1, var1,
                w2_oihw, gamma2, beta2, mean2, var2, eps=1e-5):
    N, Cin, H, W = x_nchw.shape
    Cout = w1_oihw.shape[0]
    assert Cin == Cout, "default BasicBlock (stride=1, no downsample) needs Cin == Cout"
    C = Cin
    Cp = _round_up(max(C, 128), 128)               # lane-dense channel dim

    # ---- glue: layout / dtype / channel padding (plain JAX) ----
    x = jnp.transpose(x_nchw, (0, 2, 3, 1)).astype(jnp.bfloat16)   # NHWC, bf16
    x = jnp.pad(x, ((0, 0), (0, 0), (0, 0), (0, Cp - C)))

    def im2col_weight(w_oihw):
        w = jnp.transpose(w_oihw, (2, 3, 1, 0)).astype(jnp.bfloat16)   # HWIO
        w = jnp.pad(w, ((0, 0), (0, 0), (0, Cp - C), (0, Cp - C)))
        return w.reshape(9 * Cp, Cp)               # rows ordered (kh, kw, cin)

    w1 = im2col_weight(w1_oihw)
    w2 = im2col_weight(w2_oihw)

    def fold_bn(gamma, beta, mean, var):
        rstd = 1.0 / jnp.sqrt(var + eps)
        s = (gamma * rstd).astype(jnp.float32)
        b = (beta - mean * gamma * rstd).astype(jnp.float32)
        s = jnp.pad(s, (0, Cp - C)).reshape(1, Cp)
        b = jnp.pad(b, (0, Cp - C)).reshape(1, Cp)
        return s, b

    s1, b1 = fold_bn(gamma1, beta1, mean1, var1)
    s2, b2 = fold_bn(gamma2, beta2, mean2, var2)

    img_spec = pl.BlockSpec((1, H, W, Cp), lambda n: (n, 0, 0, 0))
    w_spec = pl.BlockSpec((9 * Cp, Cp), lambda n: (0, 0))        # fetched once
    chan_spec = pl.BlockSpec((1, Cp), lambda n: (0, 0))

    out_nhwc = pl.pallas_call(
        basic_block_kernel,
        out_shape=jax.ShapeDtypeStruct((N, H, W, Cp), jnp.float32),
        grid_spec=pltpu.PrefetchScalarGridSpec(
            num_scalar_prefetch=0,
            grid=(N,),
            in_specs=[img_spec, w_spec, chan_spec, chan_spec,
                      w_spec, chan_spec, chan_spec],
            out_specs=img_spec,
            scratch_shapes=[pltpu.VMEM((H + 2, W + 2, Cp), jnp.bfloat16)],
        ),
        compiler_params=pltpu.CompilerParams(
            dimension_semantics=("parallel",)),
    )(x, w1, s1, b1, w2, s2, b2)

    out_nhwc = out_nhwc[..., :C]                   # drop channel padding
    return jnp.transpose(out_nhwc, (0, 3, 1, 2))   # back to NCHW (f32)


def basic_block_ref(x, w1, gamma1, beta1, mean1, var1,
                    w2, gamma2, beta2, mean2, var2, eps=1e-5):
    """Pure-JAX NCHW reference (matches PyTorch eval-mode semantics, f32)."""
    def conv(a, w):
        return lax.conv_general_dilated(a, w, window_strides=(1, 1),
                                        padding=((1, 1), (1, 1)),
                                        dimension_numbers=('NCHW', 'OIHW', 'NCHW'),
                                        precision=lax.Precision.HIGHEST)

    def bn(a, g, b, m, v):
        g, b, m, v = (t.reshape(1, -1, 1, 1) for t in (g, b, m, v))
        return (a - m) / jnp.sqrt(v + eps) * g + b

    out = jnp.maximum(bn(conv(x, w1), gamma1, beta1, mean1, var1), 0.0)
    out = bn(conv(out, w2), gamma2, beta2, mean2, var2)
    return jnp.maximum(out + x, 0.0)


if __name__ == "__main__":
    N, C, H, W = 2, 4, 16, 16

    key = jax.random.PRNGKey(0)
    keys = jax.random.split(key, 8)
    x = jax.random.normal(keys[0], (N, C, H, W), jnp.float32)

    w1 = jax.random.normal(keys[1], (C, C, 3, 3), jnp.float32) * 0.2
    w2 = jax.random.normal(keys[2], (C, C, 3, 3), jnp.float32) * 0.2

    gamma1 = 1.0 + 0.1 * jax.random.normal(keys[3], (C,), jnp.float32)
    beta1 = 0.1 * jax.random.normal(keys[4], (C,), jnp.float32)
    mean1 = 0.05 * jnp.arange(C, dtype=jnp.float32)
    var1 = 1.0 + 0.1 * jnp.arange(C, dtype=jnp.float32)

    gamma2 = 1.0 + 0.1 * jax.random.normal(keys[5], (C,), jnp.float32)
    beta2 = 0.1 * jax.random.normal(keys[6], (C,), jnp.float32)
    mean2 = -0.05 * jnp.arange(C, dtype=jnp.float32)
    var2 = 1.0 + 0.05 * jnp.arange(C, dtype=jnp.float32)

    out = basic_block(x, w1, gamma1, beta1, mean1, var1,
                      w2, gamma2, beta2, mean2, var2)
    out = jax.block_until_ready(out)

    ref = basic_block_ref(x, w1, gamma1, beta1, mean1, var1,
                          w2, gamma2, beta2, mean2, var2)
    assert out.shape == (N, C, H, W)
    err = float(jnp.max(jnp.abs(out - ref)))
    # Matmul operands are bf16 (f32 accumulation) -> tolerance sized accordingly.
    assert jnp.allclose(out, ref, atol=5e-2, rtol=5e-2), f"max abs err = {err}"

    print("KERNEL_OK")
</pallas_src>

<mosaic_0001>
module attributes {stable_mosaic.version = 11 : i64} {
  func.func @basic_block_kernel(%arg0: i32, %arg1: memref<1x16x16x128xbf16, #tpu.memory_space<vmem>>, %arg2: memref<1152x128xbf16, #tpu.memory_space<vmem>>, %arg3: memref<1x128xf32, #tpu.memory_space<vmem>>, %arg4: memref<1x128xf32, #tpu.memory_space<vmem>>, %arg5: memref<1152x128xbf16, #tpu.memory_space<vmem>>, %arg6: memref<1x128xf32, #tpu.memory_space<vmem>>, %arg7: memref<1x128xf32, #tpu.memory_space<vmem>>, %arg8: memref<1x16x16x128xf32, #tpu.memory_space<vmem>>, %arg9: memref<18x18x128xbf16, #tpu.memory_space<vmem>>) attributes {dimension_semantics = [#tpu.dimension_semantics<parallel>], iteration_bounds = array<i64: 2>, scalar_prefetch = 0 : i64, scratch_operands = 1 : i64, tpu.core_type = #tpu.core_type<tc>, window_params = [{transform_indices = @transform_0, window_bounds = array<i64: 1, 16, 16, 128>}, {pipeline_mode = #tpu.pipeline_mode<synchronous>, transform_indices = @transform_1, window_bounds = array<i64: 1152, 128>}, {pipeline_mode = #tpu.pipeline_mode<synchronous>, transform_indices = @transform_2, window_bounds = array<i64: 1, 128>}, {pipeline_mode = #tpu.pipeline_mode<synchronous>, transform_indices = @transform_3, window_bounds = array<i64: 1, 128>}, {pipeline_mode = #tpu.pipeline_mode<synchronous>, transform_indices = @transform_4, window_bounds = array<i64: 1152, 128>}, {pipeline_mode = #tpu.pipeline_mode<synchronous>, transform_indices = @transform_5, window_bounds = array<i64: 1, 128>}, {pipeline_mode = #tpu.pipeline_mode<synchronous>, transform_indices = @transform_6, window_bounds = array<i64: 1, 128>}, {transform_indices = @transform_7, window_bounds = array<i64: 1, 16, 16, 128>}]} {
    %cst = arith.constant 0.000000e+00 : bf16
    %0 = vector.broadcast %cst : bf16 to vector<18x18x128xbf16>
    %c0 = arith.constant 0 : index
    %c0_0 = arith.constant 0 : index
    %c0_1 = arith.constant 0 : index
    %1 = vector.load %arg9[%c0, %c0_0, %c0_1] : memref<18x18x128xbf16, #tpu.memory_space<vmem>>, vector<18x18x128xbf16>
    tpu.vector_store %arg9[%c0, %c0_0, %c0_1], %0 {strides = array<i32>} : memref<18x18x128xbf16, #tpu.memory_space<vmem>>, vector<18x18x128xbf16>,
    %c0_2 = arith.constant 0 : index
    %c0_3 = arith.constant 0 : index
    %c0_4 = arith.constant 0 : index
    %c0_5 = arith.constant 0 : index
    %2 = vector.load %arg1[%c0_2, %c0_3, %c0_4, %c0_5] : memref<1x16x16x128xbf16, #tpu.memory_space<vmem>>, vector<1x16x16x128xbf16>
    %3 = vector.shape_cast %2 : vector<1x16x16x128xbf16> to vector<16x16x128xbf16>
    %c1 = arith.constant 1 : index
    %c1_6 = arith.constant 1 : index
    %c0_7 = arith.constant 0 : index
    %4 = vector.load %arg9[%c1, %c1_6, %c0_7] : memref<18x18x128xbf16, #tpu.memory_space<vmem>>, vector<16x16x128xbf16>
    tpu.vector_store %arg9[%c1, %c1_6, %c0_7], %3 {strides = array<i32>} : memref<18x18x128xbf16, #tpu.memory_space<vmem>>, vector<16x16x128xbf16>,
    %c0_8 = arith.constant 0 : index
    %c0_9 = arith.constant 0 : index
    %c0_10 = arith.constant 0 : index
    %5 = vector.load %arg9[%c0_8, %c0_9, %c0_10] : memref<18x18x128xbf16, #tpu.memory_space<vmem>>, vector<16x16x128xbf16>
    %c0_11 = arith.constant 0 : index
    %c1_12 = arith.constant 1 : index
    %c0_13 = arith.constant 0 : index
    %6 = vector.load %arg9[%c0_11, %c1_12, %c0_13] : memref<18x18x128xbf16, #tpu.memory_space<vmem>>, vector<16x16x128xbf16>
    %c0_14 = arith.constant 0 : index
    %c2 = arith.constant 2 : index
    %c0_15 = arith.constant 0 : index
    %7 = vector.load %arg9[%c0_14, %c2, %c0_15] : memref<18x18x128xbf16, #tpu.memory_space<vmem>>, vector<16x16x128xbf16>
    %c1_16 = arith.constant 1 : index
    %c0_17 = arith.constant 0 : index
    %c0_18 = arith.constant 0 : index
    %8 = vector.load %arg9[%c1_16, %c0_17, %c0_18] : memref<18x18x128xbf16, #tpu.memory_space<vmem>>, vector<16x16x128xbf16>
    %c1_19 = arith.constant 1 : index
    %c1_20 = arith.constant 1 : index
    %c0_21 = arith.constant 0 : index
    %9 = vector.load %arg9[%c1_19, %c1_20, %c0_21] : memref<18x18x128xbf16, #tpu.memory_space<vmem>>, vector<16x16x128xbf16>
    %c1_22 = arith.constant 1 : index
    %c2_23 = arith.constant 2 : index
    %c0_24 = arith.constant 0 : index
    %10 = vector.load %arg9[%c1_22, %c2_23, %c0_24] : memref<18x18x128xbf16, #tpu.memory_space<vmem>>, vector<16x16x128xbf16>
    %c2_25 = arith.constant 2 : index
    %c0_26 = arith.constant 0 : index
    %c0_27 = arith.constant 0 : index
    %11 = vector.load %arg9[%c2_25, %c0_26, %c0_27] : memref<18x18x128xbf16, #tpu.memory_space<vmem>>, vector<16x16x128xbf16>
    %c2_28 = arith.constant 2 : index
    %c1_29 = arith.constant 1 : index
    %c0_30 = arith.constant 0 : index
    %12 = vector.load %arg9[%c2_28, %c1_29, %c0_30] : memref<18x18x128xbf16, #tpu.memory_space<vmem>>, vector<16x16x128xbf16>
    %c2_31 = arith.constant 2 : index
    %c2_32 = arith.constant 2 : index
    %c0_33 = arith.constant 0 : index
    %13 = vector.load %arg9[%c2_31, %c2_32, %c0_33] : memref<18x18x128xbf16, #tpu.memory_space<vmem>>, vector<16x16x128xbf16>
    %14 = tpu.concatenate %5, %6, %7, %8, %9, %10, %11, %12, %13 in 2 : vector<16x16x128xbf16>, vector<16x16x128xbf16>, vector<16x16x128xbf16>, vector<16x16x128xbf16>, vector<16x16x128xbf16>, vector<16x16x128xbf16>, vector<16x16x128xbf16>, vector<16x16x128xbf16>, vector<16x16x128xbf16> -> vector<16x16x1152xbf16>
    %c0_34 = arith.constant 0 : index
    %c0_35 = arith.constant 0 : index
    %15 = vector.load %arg2[%c0_34, %c0_35] : memref<1152x128xbf16, #tpu.memory_space<vmem>>, vector<1152x128xbf16>
    "tpu.trace_start"() <{level = 10 : i32, message = "hwk,ko->hwo"}> : () -> ()
    %cst_36 = arith.constant dense<0.000000e+00> : vector<16x16x128xf32>
    %16 = tpu.matmul %14, %15, %cst_36 {dimension_numbers = #tpu.dot_dimension_numbers<[2], [0], [0, 1], [1], [0, 0, 0, 1, 1, 1], [], []>} : vector<16x16x1152xbf16>, vector<1152x128xbf16>, vector<16x16x128xf32> -> vector<16x16x128xf32>
    "tpu.trace_stop"() : () -> ()
    %c0_37 = arith.constant 0 : index
    %c0_38 = arith.constant 0 : index
    %17 = vector.load %arg3[%c0_37, %c0_38] : memref<1x128xf32, #tpu.memory_space<vmem>>, vector<1x128xf32>
    %18 = vector.shape_cast %17 : vector<1x128xf32> to vector<1x1x128xf32>
    %19 = vector.broadcast %18 : vector<1x1x128xf32> to vector<16x16x128xf32>
    %20 = arith.mulf %16, %19 : vector<16x16x128xf32>
    %c0_39 = arith.constant 0 : index
    %c0_40 = arith.constant 0 : index
    %21 = vector.load %arg4[%c0_39, %c0_40] : memref<1x128xf32, #tpu.memory_space<vmem>>, vector<1x128xf32>
    %22 = vector.shape_cast %21 : vector<1x128xf32> to vector<1x1x128xf32>
    %23 = vector.broadcast %22 : vector<1x1x128xf32> to vector<16x16x128xf32>
    %24 = arith.addf %20, %23 : vector<16x16x128xf32>
    %cst_41 = arith.constant 0.000000e+00 : f32
    %25 = vector.broadcast %cst_41 : f32 to vector<16x16x128xf32>
    %26 = arith.maximumf %24, %25 : vector<16x16x128xf32>
    %27 = arith.truncf %26 : vector<16x16x128xf32> to vector<16x16x128xbf16>
    %c1_42 = arith.constant 1 : index
    %c1_43 = arith.constant 1 : index
    %c0_44 = arith.constant 0 : index
    %28 = vector.load %arg9[%c1_42, %c1_43, %c0_44] : memref<18x18x128xbf16, #tpu.memory_space<vmem>>, vector<16x16x128xbf16>
    tpu.vector_store %arg9[%c1_42, %c1_43, %c0_44], %27 {strides = array<i32>} : memref<18x18x128xbf16, #tpu.memory_space<vmem>>, vector<16x16x128xbf16>,
    %c0_45 = arith.constant 0 : index
    %c0_46 = arith.constant 0 : index
    %c0_47 = arith.constant 0 : index
    %29 = vector.load %arg9[%c0_45, %c0_46, %c0_47] : memref<18x18x128xbf16, #tpu.memory_space<vmem>>, vector<16x16x128xbf16>
    %c0_48 = arith.constant 0 : index
    %c1_49 = arith.constant 1 : index
    %c0_50 = arith.constant 0 : index
    %30 = vector.load %arg9[%c0_48, %c1_49, %c0_50] : memref<18x18x128xbf16, #tpu.memory_space<vmem>>, vector<16x16x128xbf16>
    %c0_51 = arith.constant 0 : index
    %c2_52 = arith.constant 2 : index
    %c0_53 = arith.constant 0 : index
    %31 = vector.load %arg9[%c0_51, %c2_52, %c0_53] : memref<18x18x128xbf16, #tpu.memory_space<vmem>>, vector<16x16x128xbf16>
    %c1_54 = arith.constant 1 : index
    %c0_55 = arith.constant 0 : index
    %c0_56 = arith.constant 0 : index
    %32 = vector.load %arg9[%c1_54, %c0_55, %c0_56] : memref<18x18x128xbf16, #tpu.memory_space<vmem>>, vector<16x16x128xbf16>
    %c1_57 = arith.constant 1 : index
    %c1_58 = arith.constant 1 : index
    %c0_59 = arith.constant 0 : index
    %33 = vector.load %arg9[%c1_57, %c1_58, %c0_59] : memref<18x18x128xbf16, #tpu.memory_space<vmem>>, vector<16x16x128xbf16>
    %c1_60 = arith.constant 1 : index
    %c2_61 = arith.constant 2 : index
    %c0_62 = arith.constant 0 : index
    %34 = vector.load %arg9[%c1_60, %c2_61, %c0_62] : memref<18x18x128xbf16, #tpu.memory_space<vmem>>, vector<16x16x128xbf16>
    %c2_63 = arith.constant 2 : index
    %c0_64 = arith.constant 0 : index
    %c0_65 = arith.constant 0 : index
    %35 = vector.load %arg9[%c2_63, %c0_64, %c0_65] : memref<18x18x128xbf16, #tpu.memory_space<vmem>>, vector<16x16x128xbf16>
    %c2_66 = arith.constant 2 : index
    %c1_67 = arith.constant 1 : index
    %c0_68 = arith.constant 0 : index
    %36 = vector.load %arg9[%c2_66, %c1_67, %c0_68] : memref<18x18x128xbf16, #tpu.memory_space<vmem>>, vector<16x16x128xbf16>
    %c2_69 = arith.constant 2 : index
    %c2_70 = arith.constant 2 : index
    %c0_71 = arith.constant 0 : index
    %37 = vector.load %arg9[%c2_69, %c2_70, %c0_71] : memref<18x18x128xbf16, #tpu.memory_space<vmem>>, vector<16x16x128xbf16>
    %38 = tpu.concatenate %29, %30, %31, %32, %33, %34, %35, %36, %37 in 2 : vector<16x16x128xbf16>, vector<16x16x128xbf16>, vector<16x16x128xbf16>, vector<16x16x128xbf16>, vector<16x16x128xbf16>, vector<16x16x128xbf16>, vector<16x16x128xbf16>, vector<16x16x128xbf16>, vector<16x16x128xbf16> -> vector<16x16x1152xbf16>
    %c0_72 = arith.constant 0 : index
    %c0_73 = arith.constant 0 : index
    %39 = vector.load %arg5[%c0_72, %c0_73] : memref<1152x128xbf16, #tpu.memory_space<vmem>>, vector<1152x128xbf16>
    "tpu.trace_start"() <{level = 10 : i32, message = "hwk,ko->hwo"}> : () -> ()
    %cst_74 = arith.constant dense<0.000000e+00> : vector<16x16x128xf32>
    %40 = tpu.matmul %38, %39, %cst_74 {dimension_numbers = #tpu.dot_dimension_numbers<[2], [0], [0, 1], [1], [0, 0, 0, 1, 1, 1], [], []>} : vector<16x16x1152xbf16>, vector<1152x128xbf16>, vector<16x16x128xf32> -> vector<16x16x128xf32>
    "tpu.trace_stop"() : () -> ()
    %c0_75 = arith.constant 0 : index
    %c0_76 = arith.constant 0 : index
    %41 = vector.load %arg6[%c0_75, %c0_76] : memref<1x128xf32, #tpu.memory_space<vmem>>, vector<1x128xf32>
    %42 = vector.shape_cast %41 : vector<1x128xf32> to vector<1x1x128xf32>
    %43 = vector.broadcast %42 : vector<1x1x128xf32> to vector<16x16x128xf32>
    %44 = arith.mulf %40, %43 : vector<16x16x128xf32>
    %c0_77 = arith.constant 0 : index
    %c0_78 = arith.constant 0 : index
    %45 = vector.load %arg7[%c0_77, %c0_78] : memref<1x128xf32, #tpu.memory_space<vmem>>, vector<1x128xf32>
    %46 = vector.shape_cast %45 : vector<1x128xf32> to vector<1x1x128xf32>
    %47 = vector.broadcast %46 : vector<1x1x128xf32> to vector<16x16x128xf32>
    %48 = arith.addf %44, %47 : vector<16x16x128xf32>
    %49 = arith.extf %3 : vector<16x16x128xbf16> to vector<16x16x128xf32>
    %50 = arith.addf %48, %49 : vector<16x16x128xf32>
    %cst_79 = arith.constant 0.000000e+00 : f32
    %51 = vector.broadcast %cst_79 : f32 to vector<16x16x128xf32>
    %52 = arith.maximumf %50, %51 : vector<16x16x128xf32>
    %c0_80 = arith.constant 0 : index
    %c0_81 = arith.constant 0 : index
    %c0_82 = arith.constant 0 : index
    %c0_83 = arith.constant 0 : index
    %53 = vector.load %arg8[%c0_80, %c0_81, %c0_82, %c0_83] : memref<1x16x16x128xf32, #tpu.memory_space<vmem>>, vector<1x16x16x128xf32>
    %54 = vector.shape_cast %53 : vector<1x16x16x128xf32> to vector<16x16x128xf32>
    %55 = vector.shape_cast %52 : vector<16x16x128xf32> to vector<1x16x16x128xf32>
    tpu.vector_store %arg8[%c0_80, %c0_81, %c0_82, %c0_83], %55 {strides = array<i32>} : memref<1x16x16x128xf32, #tpu.memory_space<vmem>>, vector<1x16x16x128xf32>,
    return
  }
  func.func @transform_0(%arg0: i32) -> (i32, i32, i32, i32) {
    %c0_i32 = arith.constant 0 : i32
    %c0_i32_0 = arith.constant 0 : i32
    %c0_i32_1 = arith.constant 0 : i32
    %c0_i32_2 = arith.constant 0 : i32
    return %arg0, %c0_i32, %c0_i32_0, %c0_i32_1 : i32, i32, i32, i32
  }
  func.func @transform_1(%arg0: i32) -> (i32, i32) {
    %c0_i32 = arith.constant 0 : i32
    %c0_i32_0 = arith.constant 0 : i32
    %c0_i32_1 = arith.constant 0 : i32
    return %c0_i32, %c0_i32_0 : i32, i32
  }
  func.func @transform_2(%arg0: i32) -> (i32, i32) {
    %c0_i32 = arith.constant 0 : i32
    %c0_i32_0 = arith.constant 0 : i32
    %c0_i32_1 = arith.constant 0 : i32
    return %c0_i32, %c0_i32_0 : i32, i32
  }
  func.func @transform_3(%arg0: i32) -> (i32, i32) {
    %c0_i32 = arith.constant 0 : i32
    %c0_i32_0 = arith.constant 0 : i32
    %c0_i32_1 = arith.constant 0 : i32
    return %c0_i32, %c0_i32_0 : i32, i32
  }
  func.func @transform_4(%arg0: i32) -> (i32, i32) {
    %c0_i32 = arith.constant 0 : i32
    %c0_i32_0 = arith.constant 0 : i32
    %c0_i32_1 = arith.constant 0 : i32
    return %c0_i32, %c0_i32_0 : i32, i32
  }
  func.func @transform_5(%arg0: i32) -> (i32, i32) {
    %c0_i32 = arith.constant 0 : i32
    %c0_i32_0 = arith.constant 0 : i32
    %c0_i32_1 = arith.constant 0 : i32
    return %c0_i32, %c0_i32_0 : i32, i32
  }
  func.func @transform_6(%arg0: i32) -> (i32, i32) {
    %c0_i32 = arith.constant 0 : i32
    %c0_i32_0 = arith.constant 0 : i32
    %c0_i32_1 = arith.constant 0 : i32
    return %c0_i32, %c0_i32_0 : i32, i32
  }
  func.func @transform_7(%arg0: i32) -> (i32, i32, i32, i32) {
    %c0_i32 = arith.constant 0 : i32
    %c0_i32_0 = arith.constant 0 : i32
    %c0_i32_1 = arith.constant 0 : i32
    %c0_i32_2 = arith.constant 0 : i32
    return %arg0, %c0_i32, %c0_i32_0, %c0_i32_1 : i32, i32, i32, i32
  }
}

</mosaic_0001>

<bundles_post_ra>
// kernel: tpu_custom_call.1
= control target key start
LH: loop header
LB: loop body
LE: loop exit
PB: predicated region body
PF: predicated region fallthrough
CT: control target
= control target key end

     0   :  { %s13008_s0 = inlined_call_operand.hbm [shape: bf16[2,16,16,128], index: 0, kind: input, shape index: {}]   ;;  %s13009_s1 = inlined_call_operand.hbm [shape: bf16[1152,128], index: 1, kind: input, shape index: {}]   ;;  %s13010_s2 = inlined_call_operand.vmem [shape: f32[1,128], index: 2, kind: input, shape index: {}]   ;;  %s13011_s3 = inlined_call_operand.vmem [shape: f32[1,128], index: 3, kind: input, shape index: {}]   ;;  %s13012_s4 = inlined_call_operand.hbm [shape: bf16[1152,128], index: 4, kind: input, shape index: {}]   ;;  %s13013_s5 = inlined_call_operand.vmem [shape: f32[1,128], index: 5, kind: input, shape index: {}]   ;;  %s13014_s6 = inlined_call_operand.vmem [shape: f32[1,128], index: 6, kind: input, shape index: {}]   ;;  %s13015_s7 = inlined_call_operand.hbm [shape: f32[2,16,16,128], index: 7, kind: output, shape index: {}]  }
   0x1   :  { %13029 = sst [smem:[#allocation47_spill]] %s13009_s1 }
   0x2   :  { %12 = vsyncpa [#allocation4], 0 }
   0x3   :  { %14 = vsyncpa [#allocation4 + $0x1], 0 }
   0x4   :  { %15 = vsyncpa [#allocation7], 0 }
   0x5   :  { %16 = vsyncpa [#allocation5], 0 }
   0x6   :  { %18 = vsyncpa [#allocation5 + $0x1], 0  ;;  %s10079_s24 = smov 0   ;;  %s10081_s25 = smov 0  }
   0x7   :  { %s10083_s26 = smov 0   ;;  %s10085_s27 = smov 0  }
   0x8 LB: > { %s10100_s28 = sadd.s32 4294967295, %s10028_s27   ;;  %s7737_s29 = sadd.s32 4294967294, %s10028_s27   ;;  %s10028_s27 = sphi %s10085_s27, %s13222_s27   ;;  %s10024_s26 = sphi %s10083_s26, %s13221_s26   ;;  %s10020_s25 = sphi %s10081_s25, %s13220_s25   ;;  %s10016_s24 = sphi %s10079_s24, %s13219_s24  }
   0x9   : > { %p44_p0 = scmp.ne.s32.totalorder %s10020_s25, %s10016_s24  ;;  %p13017_p1 = scmp.eq.s32.totalorder %s10100_s28, 0 }
   0xa   : > { %p194_p2 = scmp.eq.s32.totalorder %s10100_s28, 1  ;;  %p200_p3 = scmp.eq.s32.totalorder %s7737_s29, 1 }
   0xb   : > { %p10109_p4 = por %p13017_p1, %p44_p0  ;;  %p7738_p5 = scmp.ge.s32.totalorder %s10028_s27, 1 }
   0xc   : > { %p10114_p6 = por %p200_p3, %p44_p0  ;;  %p207_p7 = scmp.lt.s32.totalorder %s10028_s27, 3 }
   0xd   : > { %s13030_s30 = scalar_select %p10109_p4, 1, 0 }
   0xe   : > { %s13031_s8 = scalar_select %p10114_p6, 1, 0 }
   0xf   : > { %p10119_p8 = pnand %p7738_p5, %p207_p7  ;;  %s10030_s10 = smov [#allocation6]  }
  0x10   : > { %s219_s11 = sshll.u32 %s10030_s10, 4  ;;  %s10031_s13 = smov [#allocation8]   ;;  %s220_s11 = int_to_ptr.vmem [resolvable:$true] %s219_s11 }
  0x11   : > { %s13032_s9 = scalar_select %p10119_p8, 1, 0 }
  0x12   : > { %p9309_p9 = pneg %p10119_p8  ;;  %s238_s14 = sshll.u32 %s10031_s13, 4  ;;  %s239_s14 = int_to_ptr.vmem [resolvable:$true] %s238_s14 }
  0x13   : > { %s9891_s15 = scalar_lea.vmem %s220_s11, 9216  ;;  %p9899_p5 = scmp.lt.s32.totalorder %s220_s11, %s220_s11 }
  0x14   : > { %p10128_p11 = pnand %p9309_p9, %p13017_p1  ;;  %p9892_p13 = scmp.ne.s32.totalorder %s220_s11, %s9891_s15 }
  0x15   : > { %p9900_p7 = scmp.lt.s32.totalorder %s9891_s15, %s9891_s15 }
  0x16   : > { %p9882_p12 = pneg %p10128_p11 }
  0x17   : > { %p9901_p10 = por %p9900_p7, %p9899_p5 }
  0x18   : > { %p9894_p0 = pnand %p9892_p13, %p9882_p12 }
  0x1a   : > { %p9895_p3 = pneg %p9894_p0 }
  0x1c   : > { %p9902_p9 = pnand %p9901_p10, %p9895_p3 }
  0x1e   : > { %9905 = shalt.err (!%p9902_p9)
}
  0x1f   : > { %s13016_s16 = smov 64   ;;  %s13018_s17 = smov 4  }
  0x20   : > { %s13034_s1 = sld [smem:[#allocation47_spill]]  ;;  %s9917_s20 = scalar_lea.vmem %s239_s14, 9216 }
  0x21   : > { %p9918_p13 = scmp.ne.s32.totalorder %s239_s14, %s9917_s20  ;;  %p9925_p10 = scmp.lt.s32.totalorder %s239_s14, %s239_s14 }
  0x22   : > { %p9926_p3 = scmp.lt.s32.totalorder %s9917_s20, %s9917_s20 }
  0x23   : > { %p9920_p0 = pnand %p9918_p13, %p9882_p12 }
  0x24   : > { %p9927_p7 = por %p9926_p3, %p9925_p10 }
  0x25   : > { %p9921_p5 = pneg %p9920_p0 }
  0x26   : > { %9312 = dma.hbm_to_vmem [thread:$0]  (!%p10128_p11), %s13034_s1, 9216, %s220_s11, [#allocation7], %s13016_s16, %s13016_s16, %s13018_s17  }
  0x27   : > { %p9928_p9 = pnand %p9927_p7, %p9921_p5 }
  0x29   : > { %9931 = shalt.err (!%p9928_p9)
}
  0x2a   : > { %9315 = dma.hbm_to_vmem [thread:$0]  (!%p10128_p11), %s13012_s4, 9216, %s239_s14, [#allocation7], %s13016_s16, %s13016_s16, %s13018_s17  }
  0x2b   : > { %s10157_s23 = sadd.s32 1, %s10028_s27   ;;  %s31_s29 = sadd.s32 1, %s10024_s26 }
  0x2c   : > { %s28_s10 = ssub.s32 %s10028_s27, %s10157_s23  ;;  %p38_p12 = scmp.ne.s32.totalorder %s10024_s26, %s10020_s25 }
  0x2d   : > { %p29_p13 = scmp.eq.s32.totalorder %s28_s10, 0  ;;  %p39_p0 = scmp.eq.s32.totalorder %s10028_s27, 0 }
  0x2e   : > { %p10167_p5 = por %p194_p2, %p38_p12  ;;  %p9326_p10 = scmp.lt.s32.totalorder %s10028_s27, 2 }
  0x2f   : > { %s10173_s12 = scalar_select %p29_p13, %s10024_s26, %s31_s29  }
  0x30   : > { %s13035_s11 = scalar_select %p10167_p5, 1, 0 }
  0x31   : > { %p40_p3 = por %p39_p0, %p38_p12  ;;  %s258_s13 = sand.u32 1, %s10024_s26  }
  0x32   : > { %s7742_s15 = sshll.u32 %s258_s13, 7  ;;  %s8223_s14 = sshll.u32 %s10028_s27, 11 }
  0x33   : > { %s10180_s20 = scalar_lea.hbm %s13008_s0, %s8223_s14  ;;  %s262_s21 = scalar_lea.vmem [#allocation3], %s7742_s15 }
  0x34   : > { %s269_s22 = sshll.u32 %s262_s21, 4  ;;  %p10184_p2 = pnand %p9326_p10, %p40_p3  ;;  %s10182_s22 = int_to_ptr.vmem [resolvable:$true] %s269_s22 }
  0x35   : > { %s10188_s29 = scalar_lea.sflag [#allocation4], %s258_s13  ;;  %s9932_s16 = scalar_lea.hbm %s10180_s20, 2048 }
  0x36   : > { %p9933_p11 = scmp.ne.s32.totalorder %s10180_s20, %s9932_s16  ;;  %p9934_p7 = pneg %p10184_p2 }
  0x37   : > { %s9937_s15 = scalar_lea.hbm %s13008_s0, 4096  ;;  %p9938_p13 = scmp.lt.s32.totalorder %s10180_s20, %s13008_s0 }
  0x38   : > { %p9935_p9 = pnand %p9934_p7, %p9933_p11  ;;  %p9939_p0 = scmp.lt.s32.totalorder %s9937_s15, %s9932_s16 }
  0x3a   : > { %p9936_p12 = pneg %p9935_p9  ;;  %p9940_p10 = por %p9939_p0, %p9938_p13 }
  0x3c   : > { %p9941_p3 = pnand %p9940_p10, %p9936_p12 }
  0x3e   : > { %9944 = shalt.err (!%p9941_p3)
}
  0x3f   : > { %s9945_s13 = scalar_lea.vmem %s10182_s22, 2048  ;;  %s10034_s17 = smov [#allocation3]  }
  0x40   : > { %p9946_p1 = scmp.ne.s32.totalorder %s10182_s22, %s9945_s13  ;;  %s9950_s1 = sshll.u32 %s10034_s17, 4  ;;  %s9951_s1 = int_to_ptr.vmem [resolvable:$false] %s9950_s1 }
  0x41   : > { %s9952_s14 = scalar_lea.vmem %s9951_s1, 4096  ;;  %p9953_p9 = scmp.lt.s32.totalorder %s10182_s22, %s9951_s1 }
  0x42   : > { %p9948_p6 = pnand %p9946_p1, %p9934_p7  ;;  %p9954_p5 = scmp.lt.s32.totalorder %s9952_s14, %s9945_s13 }
  0x44   : > { %p9949_p11 = pneg %p9948_p6  ;;  %p9955_p4 = por %p9954_p5, %p9953_p9 }
  0x46   : > { %p9956_p8 = pnand %p9955_p4, %p9949_p11 }
  0x48   : > { %9959 = shalt.err (!%p9956_p8)
}
  0x49   : > { %s13037_s16 = smov 4   ;;  %s13038_s18 = smov 64  }
  0x4a   : > { %9319 = dma.hbm_to_vmem [thread:$0]  (!%p10184_p2), %s10180_s20, 2048, %s10182_s22, %s10188_s29, %s13038_s18, %s13038_s18, %s13037_s16  }
  0x4b   : > { %p13039_p1 = scmp.ne.s32.totalorder %s13032_s9, 0 }
  0x4d   : > { %281 = sbr.rel (%p13039_p1) target bundleno = 1200 (0x4b0), region = 48 }
  0x52   : > { %s10215_s17 = sand.u32 1, %s10020_s25   ;;  %p13040_p4 = scmp.ne.s32.totalorder %s13030_s30, 0 }
  0x53   : > { %s7746_s1 = sshll.u32 %s10215_s17, 7  ;;  %s284_s15 = scalar_lea.sflag [#allocation4], %s10215_s17 }
  0x54   : > { %s10219_s19 = scalar_lea.vmem [#allocation3], %s7746_s1 }
  0x55   : > { %10003 = dma.done.wait (%p13040_p4), %s284_s15, 2048  }
  0x56   : > { %10005 = vsyncadd (%p13040_p4), %s284_s15, 4294965248  ;;  %p13041_p6 = scmp.eq.s32.totalorder %s10100_s28, 0 }
  0x58   : > { %10007 = dma.done.wait (%p13041_p6), [#allocation7], 18432   ;;  %p13042_p8 = pmov %p13041_p6 }
  0x59   : > { %v10035_v0 = vmov 0   ;;  %v9369_v1 = vld [vmem:[#allocation6 + $0x78] sm:$0xff]   ;;  %v9373_v5 = vld [vmem:[#allocation6 + $0x70] sm:$0xff]   ;;  %v9377_v9 = vld [vmem:[#allocation6 + $0x68] sm:$0xff]   ;;  %vm413_vm0 = vsmask.f32 256 }
  0x5a   : > { %10009 = vsyncadd (%p13042_p8), [#allocation7], 4294948864  ;;  %327 = vst [vmem:[#allocation2] sm:$0xf] %v10035_v0  ;;  %v9370_v2 = vld [vmem:[#allocation6 + $0xf8] sm:$0xff]   ;;  %8257 = vmatprep.subr.bf16.mxu0 %v9369_v1  ;;  %v9374_v6 = vld [vmem:[#allocation6 + $0xf0] sm:$0xff]  }
  0x5b   : > { %328 = vst [vmem:[#allocation2 + $0x4] sm:$0xf] %v10035_v0  ;;  %329 = vst [vmem:[#allocation2 + $0x8] sm:$0x1] %v10035_v0  ;;  %v9371_v3 = vld [vmem:[#allocation6 + $0x38] sm:$0xff]   ;;  %8369 = vmatprep.subr.bf16.mxu1 %v9370_v2  ;;  %v9375_v7 = vld [vmem:[#allocation6 + $0x30] sm:$0xff]  }
  0x5c   : > { %330 = vst [vmem:[#allocation2 + $0xc] sm:$0xf] %v10035_v0  ;;  %331 = vst [vmem:[#allocation2 + $0x10] sm:$0xf] %v10035_v0  ;;  %v9372_v4 = vld [vmem:[#allocation6 + $0xb8] sm:$0xff]   ;;  %8258 = vmatpush3.bf16.msra.mxu0 %v9371_v3  ;;  %v9376_v8 = vld [vmem:[#allocation6 + $0xb0] sm:$0xff]  }
  0x5d   : > { %332 = vst [vmem:[#allocation2 + $0x14] sm:$0x1] %v10035_v0  ;;  %333 = vst [vmem:[#allocation2 + $0x18] sm:$0xf] %v10035_v0  ;;  %8370 = vmatpush3.bf16.msra.mxu1 %v9372_v4  ;;  %8259 = vmatprep.subr.bf16.mxu0 %v9373_v5  ;;  %v9378_v10 = vld [vmem:[#allocation6 + $0xe8] sm:$0xff]   ;;  %v9381_v13 = vld [vmem:[#allocation6 + $0x60] sm:$0xff]  }
  0x5e   : > { %334 = vst [vmem:[#allocation2 + $0x1c] sm:$0xf] %v10035_v0  ;;  %335 = vst [vmem:[#allocation2 + $0x20] sm:$0x1] %v10035_v0  ;;  %8371 = vmatprep.subr.bf16.mxu1 %v9374_v6  ;;  %v9379_v11 = vld [vmem:[#allocation6 + $0x28] sm:$0xff]   ;;  %v9382_v14 = vld [vmem:[#allocation6 + $0xe0] sm:$0xff]  }
  0x5f   : > { %336 = vst [vmem:[#allocation2 + $0x24] sm:$0xf] %v10035_v0  ;;  %337 = vst [vmem:[#allocation2 + $0x28] sm:$0xf] %v10035_v0  ;;  %v9380_v12 = vld [vmem:[#allocation6 + $0xa8] sm:$0xff]   ;;  %v9383_v15 = vld [vmem:[#allocation6 + $0x20] sm:$0xff]  }
  0x60   : > { %338 = vst [vmem:[#allocation2 + $0x2c] sm:$0x1] %v10035_v0  ;;  %339 = vst [vmem:[#allocation2 + $0x30] sm:$0xf] %v10035_v0  ;;  %8260 = vmatpush3.bf16.msra.mxu0 %v9375_v7  ;;  %v9384_v16 = vld [vmem:[#allocation6 + $0xa0] sm:$0xff]   ;;  %v9385_v17 = vld [vmem:[#allocation6 + $0x58] sm:$0xff]  }
  0x61   : > { %340 = vst [vmem:[#allocation2 + $0x34] sm:$0xf] %v10035_v0  ;;  %341 = vst [vmem:[#allocation2 + $0x38] sm:$0x1] %v10035_v0  ;;  %8372 = vmatpush3.bf16.msra.mxu1 %v9376_v8  ;;  %8261 = vmatprep.subr.bf16.mxu0 %v9377_v9  ;;  %v9386_v18 = vld [vmem:[#allocation6 + $0xd8] sm:$0xff]   ;;  %v9389_v21 = vld [vmem:[#allocation6 + $0x50] sm:$0xff]  }
  0x62   : > { %342 = vst [vmem:[#allocation2 + $0x3c] sm:$0xf] %v10035_v0  ;;  %343 = vst [vmem:[#allocation2 + $0x40] sm:$0xf] %v10035_v0  ;;  %8373 = vmatprep.subr.bf16.mxu1 %v9378_v10  ;;  %v9387_v19 = vld [vmem:[#allocation6 + $0x18] sm:$0xff]   ;;  %v9390_v22 = vld [vmem:[#allocation6 + $0xd0] sm:$0xff]  }
  0x63   : > { %344 = vst [vmem:[#allocation2 + $0x44] sm:$0x1] %v10035_v0  ;;  %345 = vst [vmem:[#allocation2 + $0x48] sm:$0xf] %v10035_v0  ;;  %v9388_v20 = vld [vmem:[#allocation6 + $0x98] sm:$0xff]   ;;  %v9391_v23 = vld [vmem:[#allocation6 + $0x10] sm:$0xff]  }
  0x64   : > { %346 = vst [vmem:[#allocation2 + $0x4c] sm:$0xf] %v10035_v0  ;;  %347 = vst [vmem:[#allocation2 + $0x50] sm:$0x1] %v10035_v0  ;;  %8262 = vmatpush3.bf16.msra.mxu0 %v9379_v11  ;;  %v9392_v24 = vld [vmem:[#allocation6 + $0x90] sm:$0xff]   ;;  %v9393_v25 = vld [vmem:[#allocation6 + $0x48] sm:$0xff]  }
  0x65   : > { %348 = vst [vmem:[#allocation2 + $0x54] sm:$0xf] %v10035_v0  ;;  %349 = vst [vmem:[#allocation2 + $0x58] sm:$0xf] %v10035_v0  ;;  %8374 = vmatpush3.bf16.msra.mxu1 %v9380_v12  ;;  %8263 = vmatprep.subr.bf16.mxu0 %v9381_v13  ;;  %v9394_v26 = vld [vmem:[#allocation6 + $0xc8] sm:$0xff]   ;;  %v9397_v29 = vld [vmem:[#allocation6 + $0x40] sm:$0xff]  }
  0x66   : > { %350 = vst [vmem:[#allocation2 + $0x5c] sm:$0x1] %v10035_v0  ;;  %351 = vst [vmem:[#allocation2 + $0x60] sm:$0xf] %v10035_v0  ;;  %8375 = vmatprep.subr.bf16.mxu1 %v9382_v14  ;;  %vm414_vm1 = vsmask.f32 4368 }
  0x67   : > { %352 = vst [vmem:[#allocation2 + $0x64] sm:$0xf] %v10035_v0  ;;  %353 = vst [vmem:[#allocation2 + $0x68] sm:$0x1] %v10035_v0  ;;  %v9395_v27 = vld [vmem:[#allocation6 + $0x8] sm:$0xff]   ;;  %v9398_v30 = vld [vmem:[#allocation6 + $0xc0] sm:$0xff]  }
  0x68   : > { %354 = vst [vmem:[#allocation2 + $0x6c] sm:$0xf] %v10035_v0  ;;  %355 = vst [vmem:[#allocation2 + $0x70] sm:$0xf] %v10035_v0  ;;  %8264 = vmatpush3.bf16.msra.mxu0 %v9383_v15  ;;  %vm738_vm2 = vsmask.f32 7938 }
  0x69   : > { %356 = vst [vmem:[#allocation2 + $0x74] sm:$0x1] %v10035_v0  ;;  %357 = vst [vmem:[#allocation2 + $0x78] sm:$0xf] %v10035_v0  ;;  %8376 = vmatpush3.bf16.msra.mxu1 %v9384_v16  ;;  %8265 = vmatprep.subr.bf16.mxu0 %v9385_v17  ;;  %v9396_v28 = vld [vmem:[#allocation6 + $0x88] sm:$0xff]   ;;  %v9399_v31 = vld [vmem:[#allocation6] sm:$0xff]  }
  0x6a   : > { %358 = vst [vmem:[#allocation2 + $0x7c] sm:$0xf] %v10035_v0  ;;  %359 = vst [vmem:[#allocation2 + $0x80] sm:$0x1] %v10035_v0  ;;  %8377 = vmatprep.subr.bf16.mxu1 %v9386_v18  ;;  %vm1191_vm3 = vsmask.f32 7424 }
  0x6b   : > { %360 = vst [vmem:[#allocation2 + $0x84] sm:$0xf] %v10035_v0  ;;  %361 = vst [vmem:[#allocation2 + $0x88] sm:$0xf] %v10035_v0  ;;  %v9400_v32 = vld [vmem:[#allocation6 + $0x80] sm:$0xff]   ;;  %v9405_v38 = vld [vmem:[#allocation6 + $0x178] sm:$0xff]  }
  0x6c   : > { %362 = vst [vmem:[#allocation2 + $0x8c] sm:$0x1] %v10035_v0  ;;  %363 = vst [vmem:[#allocation2 + $0x90] sm:$0xf] %v10035_v0  ;;  %8266 = vmatpush3.bf16.msra.mxu0 %v9387_v19  ;;  %v854_v33 = vld [vmem:[#allocation2] sm:$0xf] }
  0x6d   : > { %364 = vst [vmem:[#allocation2 + $0x94] sm:$0xf] %v10035_v0  ;;  %365 = vst [vmem:[#allocation2 + $0x98] sm:$0x1] %v10035_v0  ;;  %8378 = vmatpush3.bf16.msra.mxu1 %v9388_v20  ;;  %8267 = vmatprep.subr.bf16.mxu0 %v9389_v21  ;;  %v855_v34 = vld [vmem:[#allocation2 + $0x4] sm:$0xf] }
  0x6e   : > { %366 = vst [vmem:[#allocation2 + $0x9c] sm:$0xf] %v10035_v0  ;;  %367 = vst [vmem:[#allocation2 + $0xa0] sm:$0xf] %v10035_v0  ;;  %8379 = vmatprep.subr.bf16.mxu1 %v9390_v22  ;;  %v7750_v35 = vcombine.low %v854_v33, %v855_v34  ;;  %v381_v37 = vld [vmem:[%s10219_s19] sm:$0xf] }
  0x6f   : > { %368 = vst [vmem:[#allocation2 + $0xa4] sm:$0x1] %v10035_v0  ;;  %369 = vst [vmem:[#allocation2 + $0xa8] sm:$0xf] %v10035_v0  ;;  %v382_v39 = vld [vmem:[%s10219_s19 + $0x4] sm:$0xf] }
  0x70   : > { %370 = vst [vmem:[#allocation2 + $0xac] sm:$0xf] %v10035_v0  ;;  %371 = vst [vmem:[#allocation2 + $0xb0] sm:$0x1] %v10035_v0  ;;  %8268 = vmatpush3.bf16.msra.mxu0 %v9391_v23  ;;  %v417_v40 = vshrl.u32 %v381_v37, 16  ;;  %v420_v41 = vshll.u32 %v381_v37, 16 }
  0x71   : > { %372 = vst [vmem:[#allocation2 + $0xb4] sm:$0xf] %v10035_v0  ;;  %373 = vst [vmem:[#allocation2 + $0xb8] sm:$0xf] %v10035_v0  ;;  %8380 = vmatpush3.bf16.msra.mxu1 %v9392_v24  ;;  %8269 = vmatprep.subr.bf16.mxu0 %v9393_v25  ;;  %vm737_vm4 = vcmask 1043456   ;;  %vm744_vm5 = vcmask 1040384  }
  0x72   : > { %374 = vst [vmem:[#allocation2 + $0xbc] sm:$0x1] %v10035_v0  ;;  %375 = vst [vmem:[#allocation2 + $0xc0] sm:$0xf] %v10035_v0  ;;  %8381 = vmatprep.subr.bf16.mxu1 %v9394_v26  ;;  %v1193_v42 = vshrl.u32 %v7750_v35, 16  ;;  %v1195_v43 = vshll.u32 %v7750_v35, 16 }
  0x73   : > { %376 = vst [vmem:[#allocation2 + $0xc4] sm:$0xf] %v10035_v0  ;;  %377 = vst [vmem:[#allocation2 + $0xc8] sm:$0x1] %v10035_v0  ;;  %v425_v45 = vshrl.u32 %v382_v39, 16  ;;  %v13043_v47 = vmov 0 }
  0x74   : > { %378 = vst [vmem:[#allocation2 + $0xcc] sm:$0xf] %v10035_v0  ;;  %379 = vst [vmem:[#allocation2 + $0xd0] sm:$0xf] %v10035_v0  ;;  %8270 = vmatpush3.bf16.msra.mxu0 %v9395_v27  ;;  %v902_v46 = vld [vmem:[#allocation2] sm:$0xe] }
  0x75   : > { %380 = vst [vmem:[#allocation2 + $0xd4] sm:$0x1] %v10035_v0  ;;  %8382 = vmatpush3.bf16.msra.mxu1 %v9396_v28  ;;  %8271 = vmatprep.subr.bf16.mxu0 %v9397_v29  ;;  %v10229_v36 = vld [vmem:[#allocation2 + $0x8] ss:$0 sps:$4 sm:$0x11]   ;;  %vm10236_vm6 = vmor %vm413_vm0, %vm414_vm1  ;;  %v419_v48 = vrot.slane %v417_v40, 7  ;;  %v7782_v51 = vcombine.low %v902_v46, %v855_v34 }
  0x76   : > { %8383 = vmatprep.subr.bf16.mxu1 %v9398_v30  ;;  %v1200_v44 = vshll.u32 %v10229_v36, 16  ;;  %v13044_v47 = vsel %vm10236_vm6, 4294967295, %v13043_v47  ;;  %v428_v49 = vshll.u32 %v382_v39, 16  ;;  %v740_v50 = vld [vmem:[#allocation2 + $0xc] sm:$0xf]  ;;  %v1197_v52 = vrot.slane %v1195_v43, 1  ;;  %vm10242_vm7 = vmand %vm737_vm4, %vm738_vm2 }
  0x77   : > { %13045 = vst [vmem:[#allocation13_spill] sm:$0xff] %v13044_v47  ;;  %v427_v54 = vrot.slane %v425_v45, 7  ;;  %v13046_v55 = vmov 0  ;;  %v422_v56 = vor.u32 %v420_v41, %v419_v48  ;;  %v423_v57 = vrot.slane %v419_v48, 4  ;;  %vm10248_vm8 = vmand %vm744_vm5, %vm413_vm0  ;;  %v746_v63 = vld [vmem:[#allocation2 + $0x14] sm:$0x1] }
  0x78   : > { %8272 = vmatpush3.bf16.msra.mxu0 %v9399_v31  ;;  %v1202_v53 = vrot.slane %v1200_v44, 1  ;;  %v13047_v55 = vsel %vm10242_vm7, 4294967295, %v13046_v55  ;;  %v13049_v58 = vmov 0  ;;  %v1198_v59 = vor.u32 %v1197_v52, %v1193_v42  ;;  %v383_v0 = vld [vmem:[%s10219_s19 + $0x8] sm:$0xf]  ;;  %v9406_v3 = vld [vmem:[#allocation6 + $0x138] sm:$0xff]  }
  0x79   : > { %8384 = vmatpush3.bf16.msra.mxu1 %v9400_v32  ;;  %8481 = vmatprep.subr.bf16.mxu0 %v9405_v38  ;;  %13048 = vst [vmem:[#allocation14_spill] sm:$0xff] %v13047_v55  ;;  %v13050_v58 = vsel %vm10248_vm8, 4294967295, %v13049_v58  ;;  %v430_v60 = vor.u32 %v428_v49, %v427_v54  ;;  %v432_v61 = vrot.slane %v427_v54, 4  ;;  %v1450_v62 = vrot.slane %v10229_v36, 1  ;;  %v384_v4 = vld [vmem:[%s10219_s19 + $0xc] sm:$0xf] }
  0x7a   : > { %13051 = vst [vmem:[#allocation15_spill] sm:$0xff] %v13050_v58  ;;  %v741_v1 = vsel %vm10242_vm7, %v422_v56, %v740_v50  ;;  %v1449_v2 = vrot.slane %v7782_v51, 1  ;;  %v434_v5 = vshrl.u32 %v383_v0, 16  ;;  %v437_v6 = vshll.u32 %v383_v0, 16  ;;  %v749_v11 = vld [vmem:[#allocation2 + $0x18] sm:$0xf] }
  0x7b   : > { %v1203_v7 = vsel %vm1191_vm3, %v1198_v59, %v1202_v53  ;;  %v431_v8 = vsel %vm10236_vm6, %v423_v57, %v430_v60  ;;  %742 = vst [vmem:[#allocation2 + $0xc] sm:$0xf] %v741_v1  ;;  %v747_v9 = vsel %vm10248_vm8, %v432_v61, %v746_v63  ;;  %v442_v10 = vshrl.u32 %v384_v4, 16  ;;  %v385_v12 = vld [vmem:[%s10219_s19 + $0x10] sm:$0xf]  ;;  %v9425_v25 = vld [vmem:[#allocation6 + $0x168] sm:$0xff]  }
  0x7c   : > { %v9415_v13 = vld [vmem:[#allocation6 + $0x170] sm:$0xff]   ;;  %3049 = vmatprep.mubr.bf16.mxu0 %v1203_v7  ;;  %743 = vst [vmem:[#allocation2 + $0x10] sm:$0xf] %v431_v8  ;;  %748 = vst [vmem:[#allocation2 + $0x14] sm:$0x1] %v747_v9  ;;  %v436_v14 = vrot.slane %v434_v5, 7 }
  0x7d   : > { %v445_v15 = vshll.u32 %v384_v4, 16  ;;  %v753_v16 = vld [vmem:[#allocation2 + $0x20] sm:$0x1]  ;;  %v386_v17 = vld [vmem:[%s10219_s19 + $0x14] sm:$0xf]  ;;  %v451_v18 = vshrl.u32 %v385_v12, 16  ;;  %3050 = vmatmul.mubr.bf16.vlgmr.msra.gmra.mxu0 %v7750_v35 }
  0x7e   : > { %v454_v19 = vshll.u32 %v385_v12, 16  ;;  %v9416_v20 = vld [vmem:[#allocation6 + $0x130] sm:$0xff]   ;;  %v444_v21 = vrot.slane %v442_v10, 7  ;;  %v459_v22 = vshrl.u32 %v386_v17, 16  ;;  %v462_v23 = vshll.u32 %v386_v17, 16  ;;  %8482 = vmatpush3.bf16.msra.mxu0 %v9406_v3  ;;  %v9426_v37 = vld [vmem:[#allocation6 + $0x128] sm:$0xff]  }
  0x7f   : > { %v756_v24 = vld [vmem:[#allocation2 + $0x24] sm:$0xf]  ;;  %v439_v26 = vor.u32 %v437_v6, %v436_v14  ;;  %v440_v27 = vrot.slane %v436_v14, 4  ;;  %v453_v28 = vrot.slane %v451_v18, 7  ;;  %8483 = vmatprep.subr.bf16.mxu0 %v9415_v13  ;;  %vm1448_vm9 = vcmask 1046528   ;;  %v9435_v44 = vld [vmem:[#allocation6 + $0x160] sm:$0xff]  }
  0x80   : > { %v447_v29 = vor.u32 %v445_v15, %v444_v21  ;;  %v449_v30 = vrot.slane %v444_v21, 4  ;;  %v461_v31 = vrot.slane %v459_v22, 7  ;;  %v760_v35 = vld [vmem:[#allocation2 + $0x2c] sm:$0x1]  ;;  %v387_v42 = vld [vmem:[%s10219_s19 + $0x18] sm:$0xf]  ;;  %v1451_v51 = vsel %vm1448_vm9, %v1449_v2, %v1450_v62 }
  0x81   : > { %v750_v32 = vsel %vm10242_vm7, %v439_v26, %v749_v11  ;;  %v456_v33 = vor.u32 %v454_v19, %v453_v28  ;;  %v457_v34 = vrot.slane %v453_v28, 4  ;;  %v10272_v43 = vld [vmem:[%s10219_s19 + $0x1c] sm:$0xf]  ;;  %v468_v61 = vshrl.u32 %v387_v42, 16  ;;  %v9436_v1 = vld [vmem:[#allocation6 + $0x120] sm:$0xff]   ;;  %s7749_s15 = sshll.u32 %s10215_s17, 8 }
  0x82   : > { %v448_v38 = vsel %vm10236_vm6, %v440_v27, %v447_v29  ;;  %751 = vst [vmem:[#allocation2 + $0x18] sm:$0xf] %v750_v32  ;;  %v754_v39 = vsel %vm10248_vm8, %v449_v30, %v753_v16  ;;  %v464_v40 = vor.u32 %v462_v23, %v461_v31  ;;  %v466_v41 = vrot.slane %v461_v31, 4  ;;  %v918_v45 = vld [vmem:[#allocation2 + $0xc] sm:$0xf]  ;;  %8484 = vmatpush3.bf16.msra.mxu0 %v9416_v20  ;;  %v9445_v6 = vld [vmem:[#allocation6 + $0x158] sm:$0xff]  }
  0x83   : > { %v856_v46 = vld [vmem:[#allocation2 + $0xc] sm:$0xf]  ;;  %752 = vst [vmem:[#allocation2 + $0x1c] sm:$0xf] %v448_v38  ;;  %755 = vst [vmem:[#allocation2 + $0x20] sm:$0x1] %v754_v39  ;;  %v757_v49 = vsel %vm10242_vm7, %v456_v33, %v756_v24  ;;  %8485 = vmatprep.subr.bf16.mxu0 %v9425_v25 }
  0x84   : > { %v903_v48 = vld [vmem:[#allocation2 + $0xc] sm:$0xe]  ;;  %v919_v50 = vld [vmem:[#allocation2 + $0x10] sm:$0xf]  ;;  %v465_v53 = vsel %vm10236_vm6, %v457_v34, %v464_v40  ;;  %758 = vst [vmem:[#allocation2 + $0x24] sm:$0xf] %v757_v49  ;;  %v761_v54 = vsel %vm10248_vm8, %v466_v41, %v760_v35 }
  0x85   : > { %v857_v52 = vld [vmem:[#allocation2 + $0x10] sm:$0xf]  ;;  %v10283_v56 = vcombine.low %v918_v45, %v919_v50  ;;  %v9408_v59 = vld [vmem:[#allocation2 + $0x14] ss:$0 sps:$4 sm:$0x11]   ;;  %v471_v36 = vshll.u32 %v387_v42, 16 }
  0x86   : > { %v7751_v57 = vcombine.low %v856_v46, %v857_v52  ;;  %v7783_v60 = vcombine.low %v903_v48, %v857_v52  ;;  %759 = vst [vmem:[#allocation2 + $0x28] sm:$0xf] %v465_v53  ;;  %762 = vst [vmem:[#allocation2 + $0x2c] sm:$0x1] %v761_v54  ;;  %v476_v0 = vshrl.u32 %v10272_v43, 16  ;;  %8486 = vmatpush3.bf16.msra.mxu0 %v9426_v37  ;;  %v1212_v2 = vshll.u32 %v9408_v59, 16 }
  0x87   : > { %3210 = vmatprep.mubr.bf16.mxu1 %v10283_v56  ;;  %v10287_v4 = vrot.slane %v468_v61, 7  ;;  %v763_v5 = vld [vmem:[#allocation2 + $0x30] sm:$0xf]  ;;  %8487 = vmatprep.subr.bf16.mxu0 %v9435_v44  ;;  %v1453_v9 = vrot.slane %v9408_v59, 1  ;;  %v479_v15 = vshll.u32 %v10272_v43, 16  ;;  %v9455_v44 = vld [vmem:[#allocation6 + $0x150] sm:$0xff]  }
  0x88   : > { %v1205_v62 = vshrl.u32 %v7751_v57, 16  ;;  %v1207_v63 = vshll.u32 %v7751_v57, 16  ;;  %3211 = vmatmul.mubr.bf16.vlgmr.msra.gmra.mxu1 %v1451_v51  ;;  %v1452_v3 = vrot.slane %v7783_v60, 1  ;;  %v1214_v11 = vrot.slane %v1212_v2, 1  ;;  %v10296_v21 = vld [vmem:[%s10219_s19 + $0x20] sm:$0xf] }
  0x89   : > { %v920_v8 = vld [vmem:[#allocation2 + $0x18] sm:$0xf]  ;;  %v473_v14 = vor.u32 %v471_v36, %v10287_v4  ;;  %v478_v20 = vrot.slane %v476_v0, 7  ;;  %v9446_v31 = vld [vmem:[#allocation6 + $0x118] sm:$0xff]   ;;  %v474_v37 = vrot.slane %v10287_v4, 4  ;;  %v485_v51 = vshrl.u32 %v10296_v21, 16 }
  0x8a   : > { %v1209_v7 = vrot.slane %v1207_v63, 1  ;;  %v858_v10 = vld [vmem:[#allocation2 + $0x18] sm:$0xf]  ;;  %v921_v12 = vld [vmem:[#allocation2 + $0x1c] sm:$0xf]  ;;  %8488 = vmatpush3.bf16.msra.mxu0 %v9436_v1  ;;  %v1454_v27 = vsel %vm1448_vm9, %v1452_v3, %v1453_v9  ;;  %v9456_v59 = vld [vmem:[#allocation6 + $0x110] sm:$0xff]  }
  0x8b   : > { %v859_v13 = vld [vmem:[#allocation2 + $0x1c] sm:$0xf]  ;;  %v10291_v17 = vcombine.low %v920_v8, %v921_v12  ;;  %v9412_v19 = vld [vmem:[#allocation2 + $0x20] ss:$0 sps:$4 sm:$0x11]   ;;  %v764_v25 = vsel %vm10242_vm7, %v473_v14, %v763_v5  ;;  %8489 = vmatprep.subr.bf16.mxu0 %v9445_v6  ;;  %v481_v42 = vor.u32 %v479_v15, %v478_v20  ;;  %v483_v43 = vrot.slane %v478_v20, 4 }
  0x8c   : > { %v1210_v16 = vor.u32 %v1209_v7, %v1205_v62  ;;  %v10293_v18 = vcombine.low %v858_v10, %v859_v13  ;;  %v922_v22 = vld [vmem:[#allocation2 + $0x24] sm:$0xf]  ;;  %v904_v24 = vld [vmem:[#allocation2 + $0x18] sm:$0xe]  ;;  %765 = vst [vmem:[#allocation2 + $0x30] sm:$0xf] %v764_v25 }
  0x8d   : > { %v923_v23 = vld [vmem:[#allocation2 + $0x28] sm:$0xf]  ;;  %3218 = vmatprep.mubr.bf16.mxu1 %v10291_v17  ;;  %v860_v30 = vld [vmem:[#allocation2 + $0x24] sm:$0xf]  ;;  %v1224_v32 = vshll.u32 %v9412_v19, 16  ;;  %v7784_v34 = vcombine.low %v904_v24, %v859_v13  ;;  %v1456_v48 = vrot.slane %v9412_v19, 1  ;;  %v482_v60 = vsel %vm10236_vm6, %v474_v37, %v481_v42 }
  0x8e   : > { %v1215_v26 = vsel %vm1191_vm3, %v1210_v16, %v1214_v11  ;;  %v1217_v28 = vshrl.u32 %v10293_v18, 16  ;;  %v1219_v29 = vshll.u32 %v10293_v18, 16  ;;  %v10305_v33 = vcombine.low %v922_v22, %v923_v23  ;;  %v861_v35 = vld [vmem:[#allocation2 + $0x28] sm:$0xf]  ;;  %v767_v38 = vld [vmem:[#allocation2 + $0x38] sm:$0x1]  ;;  %8490 = vmatpush3.bf16.msra.mxu0 %v9446_v31 }
  0x8f   : > { %3057 = vmatprep.mubr.bf16.mxu0 %v1215_v26  ;;  %v10308_v40 = vcombine.low %v860_v30, %v861_v35  ;;  %v10310_v41 = vld [vmem:[#allocation2 + $0x2c] ss:$0 sps:$4 sm:$0x11]   ;;  %v1226_v45 = vrot.slane %v1224_v32, 1  ;;  %v1455_v46 = vrot.slane %v7784_v34, 1  ;;  %8491 = vmatprep.subr.bf16.mxu0 %v9455_v44  ;;  %v9465_v36 = vld [vmem:[#allocation6 + $0x148] sm:$0xff]   ;;  %v768_v1 = vsel %vm10248_vm8, %v483_v43, %v767_v38 }
  0x90   : > { %3058 = vmatmul.mubr.bf16.gmra.mxu0 %v7751_v57  ;;  %v1221_v39 = vrot.slane %v1219_v29, 1  ;;  %3219 = vmatmul.mubr.bf16.gmra.mxu1 %v1454_v27  ;;  %v905_v49 = vld [vmem:[#allocation2 + $0x24] sm:$0xe]  ;;  %v390_v50 = vld [vmem:[%s10219_s19 + $0x24] sm:$0xf]  ;;  %v1236_v57 = vshll.u32 %v10310_v41, 16 }
  0x91   : > { %3226 = vmatprep.mubr.bf16.mxu1 %v10305_v33  ;;  %v1229_v53 = vshrl.u32 %v10308_v40, 16  ;;  %v1231_v54 = vshll.u32 %v10308_v40, 16  ;;  %v7785_v61 = vcombine.low %v905_v49, %v861_v35  ;;  %766 = vst [vmem:[#allocation2 + $0x34] sm:$0xf] %v482_v60  ;;  %v1457_v2 = vsel %vm1448_vm9, %v1455_v46, %v1456_v48  ;;  %769 = vst [vmem:[#allocation2 + $0x38] sm:$0x1] %v768_v1 }
  0x92   : > { %v1222_v52 = vor.u32 %v1221_v39, %v1217_v28  ;;  %v1238_v0 = vrot.slane %v1236_v57, 1  ;;  %v1459_v4 = vrot.slane %v10310_v41, 1  ;;  %v487_v5 = vrot.slane %v485_v51, 7  ;;  %8492 = vmatpush3.bf16.msra.mxu0 %v9456_v59  ;;  %v770_v10 = vld [vmem:[#allocation2 + $0x3c] sm:$0xf]  ;;  %v9466_v11 = vld [vmem:[#allocation6 + $0x108] sm:$0xff]  }
  0x93   : > { %v1233_v63 = vrot.slane %v1231_v54, 1  ;;  %v1458_v3 = vrot.slane %v7785_v61, 1  ;;  %v488_v7 = vshll.u32 %v10296_v21, 16  ;;  %v493_v8 = vshrl.u32 %v390_v50, 16  ;;  %8493 = vmatprep.subr.bf16.mxu0 %v9465_v36  ;;  %v924_v12 = vld [vmem:[#allocation2 + $0x30] sm:$0xf] }
  0x94   : > { %v1227_v62 = vsel %vm1191_vm3, %v1222_v52, %v1226_v45  ;;  %v496_v9 = vshll.u32 %v390_v50, 16  ;;  %v491_v13 = vrot.slane %v487_v5, 4  ;;  %v391_v14 = vld [vmem:[%s10219_s19 + $0x28] sm:$0xf]  ;;  %v392_v15 = vld [vmem:[%s10219_s19 + $0x2c] sm:$0xf] }
  0x95   : > { %3065 = vmatprep.mubr.bf16.mxu0 %v1227_v62  ;;  %v1234_v6 = vor.u32 %v1233_v63, %v1229_v53  ;;  %v9467_v16 = vld [vmem:[#allocation6 + $0x1f8] sm:$0xff]   ;;  %v490_v22 = vor.u32 %v488_v7, %v487_v5  ;;  %v495_v23 = vrot.slane %v493_v8, 7  ;;  %v502_v21 = vshrl.u32 %v391_v14, 16  ;;  %v10331_v28 = vld [vmem:[%s10219_s19 + $0x30] sm:$0xf]  ;;  %v9476_v7 = vld [vmem:[#allocation6 + $0x1a8] sm:$0xff]  }
  0x96   : > { %v862_v20 = vld [vmem:[#allocation2 + $0x30] sm:$0xf]  ;;  %v505_v25 = vshll.u32 %v391_v14, 16  ;;  %v510_v26 = vshrl.u32 %v392_v15, 16  ;;  %v513_v27 = vshll.u32 %v392_v15, 16  ;;  %8494 = vmatpush3.bf16.msra.mxu0 %v9466_v11  ;;  %8593 = vmatprep.subr.bf16.mxu1 %v9467_v16  ;;  %v519_v41 = vshrl.u32 %v10331_v28, 16 }
  0x97   : > { %v1239_v19 = vsel %vm1191_vm3, %v1234_v6, %v1238_v0  ;;  %v906_v24 = vld [vmem:[#allocation2 + $0x30] sm:$0xe]  ;;  %v498_v30 = vor.u32 %v496_v9, %v495_v23  ;;  %v500_v31 = vrot.slane %v495_v23, 4  ;;  %v774_v32 = vld [vmem:[#allocation2 + $0x44] sm:$0x1]  ;;  %v504_v34 = vrot.slane %v502_v21, 7 }
  0x98   : > { %3066 = vmatmul.mubr.bf16.gmra.mxu0 %v10293_v18  ;;  %3227 = vmatmul.mubr.bf16.gmra.mxu1 %v1457_v2  ;;  %v9468_v29 = vld [vmem:[#allocation6 + $0x1b8] sm:$0xff]   ;;  %v771_v18 = vsel %vm10242_vm7, %v490_v22, %v770_v10  ;;  %v512_v38 = vrot.slane %v510_v26, 7  ;;  %v777_v39 = vld [vmem:[#allocation2 + $0x48] sm:$0xf]  ;;  %v394_v49 = vld [vmem:[%s10219_s19 + $0x34] sm:$0xf]  ;;  %v1460_v59 = vsel %vm1448_vm9, %v1458_v3, %v1459_v4 }
  0x99   : > { %3073 = vmatprep.mubr.bf16.mxu0 %v1239_v19  ;;  %v925_v35 = vld [vmem:[#allocation2 + $0x34] sm:$0xf]  ;;  %772 = vst [vmem:[#allocation2 + $0x3c] sm:$0xf] %v771_v18  ;;  %8594 = vmatpush3.bf16.msra.mxu1 %v9468_v29  ;;  %v499_v45 = vsel %vm10236_vm6, %v491_v13, %v498_v30  ;;  %v781_v48 = vld [vmem:[#allocation2 + $0x50] sm:$0x1]  ;;  %v775_v51 = vsel %vm10248_vm8, %v500_v31, %v774_v32 }
  0x9a   : > { %v863_v37 = vld [vmem:[#allocation2 + $0x34] sm:$0xf]  ;;  %v10336_v42 = vcombine.low %v924_v12, %v925_v35  ;;  %v9422_v44 = vld [vmem:[#allocation2 + $0x38] ss:$0 sps:$4 sm:$0x11]   ;;  %v9469_v50 = vld [vmem:[#allocation6 + $0x1f0] sm:$0xff]   ;;  %v507_v52 = vor.u32 %v505_v25, %v504_v34  ;;  %v515_v54 = vor.u32 %v513_v27, %v512_v38 }
  0x9b   : > { %v10338_v43 = vcombine.low %v862_v20, %v863_v37  ;;  %v7786_v46 = vcombine.low %v906_v24, %v863_v37  ;;  %773 = vst [vmem:[#allocation2 + $0x40] sm:$0xf] %v499_v45  ;;  %v508_v53 = vrot.slane %v504_v34, 4  ;;  %v9473_v57 = vld [vmem:[#allocation6 + $0x1b0] sm:$0xff]   ;;  %v1248_v36 = vshll.u32 %v9422_v44, 16  ;;  %8595 = vmatprep.subr.bf16.mxu1 %v9469_v50  ;;  %v9475_v2 = vld [vmem:[#allocation6 + $0x1e8] sm:$0xff]  }
  0x9c   : > { %3234 = vmatprep.mubr.bf16.mxu1 %v10336_v42  ;;  %776 = vst [vmem:[#allocation2 + $0x44] sm:$0x1] %v775_v51  ;;  %v1462_v63 = vrot.slane %v9422_v44, 1  ;;  %v517_v1 = vrot.slane %v512_v38, 4  ;;  %v778_v4 = vsel %vm10242_vm7, %v507_v52, %v777_v39  ;;  %v521_v6 = vrot.slane %v519_v41, 7  ;;  %v9477_v24 = vld [vmem:[#allocation6 + $0x1e0] sm:$0xff]  }
  0x9d   : > { %v1241_v60 = vshrl.u32 %v10338_v43, 16  ;;  %v1243_v61 = vshll.u32 %v10338_v43, 16  ;;  %v1461_v62 = vrot.slane %v7786_v46, 1  ;;  %v516_v0 = vsel %vm10236_vm6, %v508_v53, %v515_v54  ;;  %8596 = vmatpush3.bf16.msra.mxu1 %v9473_v57  ;;  %779 = vst [vmem:[#allocation2 + $0x48] sm:$0xf] %v778_v4  ;;  %v9481_v35 = vld [vmem:[#allocation6 + $0x1a0] sm:$0xff]  }
  0x9e   : > { %v1250_v3 = vrot.slane %v1248_v36, 1  ;;  %780 = vst [vmem:[#allocation2 + $0x4c] sm:$0xf] %v516_v0  ;;  %v782_v8 = vsel %vm10248_vm8, %v517_v1, %v781_v48  ;;  %v522_v9 = vshll.u32 %v10331_v28, 16  ;;  %v527_v10 = vshrl.u32 %v394_v49, 16  ;;  %8597 = vmatprep.subr.bf16.mxu1 %v9475_v2  ;;  %v9483_v44 = vld [vmem:[#allocation6 + $0x140] sm:$0xff]  }
  0x9f   : > { %v1245_v5 = vrot.slane %v1243_v61, 1  ;;  %v784_v11 = vld [vmem:[#allocation2 + $0x54] sm:$0xf]  ;;  %v395_v12 = vld [vmem:[%s10219_s19 + $0x38] sm:$0xf]  ;;  %v530_v20 = vshll.u32 %v394_v49, 16  ;;  %v1463_v26 = vsel %vm1448_vm9, %v1461_v62, %v1462_v63  ;;  %8495 = vmatprep.subr.bf16.mxu0 %v9483_v44 }
  0xa0   : > { %3074 = vmatmul.mubr.bf16.gmra.mxu0 %v10308_v40  ;;  %3235 = vmatmul.mubr.bf16.gmra.mxu1 %v1460_v59  ;;  %v926_v13 = vld [vmem:[#allocation2 + $0x3c] sm:$0xf]  ;;  %783 = vst [vmem:[#allocation2 + $0x50] sm:$0x1] %v782_v8  ;;  %v524_v16 = vor.u32 %v522_v9, %v521_v6  ;;  %v529_v19 = vrot.slane %v527_v10, 7  ;;  %v525_v28 = vrot.slane %v521_v6, 4 }
  0xa1   : > { %v1246_v40 = vor.u32 %v1245_v5, %v1241_v60  ;;  %v864_v14 = vld [vmem:[#allocation2 + $0x3c] sm:$0xf]  ;;  %v10359_v23 = vld [vmem:[%s10219_s19 + $0x3c] sm:$0xf]  ;;  %8598 = vmatpush3.bf16.msra.mxu1 %v9476_v7  ;;  %v536_v29 = vshrl.u32 %v395_v12, 16  ;;  %v539_v41 = vshll.u32 %v395_v12, 16 }
  0xa2   : > { %v907_v15 = vld [vmem:[#allocation2 + $0x3c] sm:$0xe]  ;;  %v788_v22 = vld [vmem:[#allocation2 + $0x5c] sm:$0x1]  ;;  %v927_v25 = vld [vmem:[#allocation2 + $0x40] sm:$0xf]  ;;  %v532_v34 = vor.u32 %v530_v20, %v529_v19  ;;  %v785_v38 = vsel %vm10242_vm7, %v524_v16, %v784_v11  ;;  %8599 = vmatprep.subr.bf16.mxu1 %v9477_v24 }
  0xa3   : > { %v1251_v21 = vsel %vm1191_vm3, %v1246_v40, %v1250_v3  ;;  %v865_v27 = vld [vmem:[#allocation2 + $0x40] sm:$0xf]  ;;  %v10363_v30 = vcombine.low %v926_v13, %v927_v25  ;;  %v9428_v18 = vld [vmem:[#allocation2 + $0x44] ss:$0 sps:$4 sm:$0x11]   ;;  %v534_v37 = vrot.slane %v529_v19, 4 }
  0xa4   : > { %3081 = vmatprep.mubr.bf16.mxu0 %v1251_v21  ;;  %v10365_v31 = vcombine.low %v864_v14, %v865_v27  ;;  %v7787_v32 = vcombine.low %v907_v15, %v865_v27  ;;  %v10369_v39 = vrot.slane %v536_v29, 7  ;;  %v1260_v48 = vshll.u32 %v9428_v18, 16  ;;  %786 = vst [vmem:[#allocation2 + $0x54] sm:$0xf] %v785_v38  ;;  %v928_v51 = vld [vmem:[#allocation2 + $0x48] sm:$0xf] }
  0xa5   : > { %3242 = vmatprep.mubr.bf16.mxu1 %v10363_v30  ;;  %v929_v49 = vld [vmem:[#allocation2 + $0x4c] sm:$0xf]  ;;  %v544_v50 = vshrl.u32 %v10359_v23, 16  ;;  %8600 = vmatpush3.bf16.msra.mxu1 %v9481_v35  ;;  %v866_v53 = vld [vmem:[#allocation2 + $0x48] sm:$0xf]  ;;  %v533_v54 = vsel %vm10236_vm6, %v525_v28, %v532_v34  ;;  %v789_v57 = vsel %vm10248_vm8, %v534_v37, %v788_v22  ;;  %v1465_v62 = vrot.slane %v9428_v18, 1 }
  0xa6   : > { %v1253_v45 = vshrl.u32 %v10365_v31, 16  ;;  %v1255_v46 = vshll.u32 %v10365_v31, 16  ;;  %v1464_v52 = vrot.slane %v7787_v32, 1  ;;  %v1262_v60 = vrot.slane %v1260_v48, 1  ;;  %v867_v36 = vld [vmem:[#allocation2 + $0x4c] sm:$0xf] }
  0xa7   : > { %v10380_v61 = vcombine.low %v928_v51, %v929_v49  ;;  %787 = vst [vmem:[#allocation2 + $0x58] sm:$0xf] %v533_v54  ;;  %790 = vst [vmem:[#allocation2 + $0x5c] sm:$0x1] %v789_v57  ;;  %v908_v0 = vld [vmem:[#allocation2 + $0x48] sm:$0xe]  ;;  %v541_v1 = vor.u32 %v539_v41, %v10369_v39 }
  0xa8   : > { %3082 = vmatmul.mubr.bf16.gmra.mxu0 %v10338_v43  ;;  %3243 = vmatmul.mubr.bf16.gmra.mxu1 %v1463_v26  ;;  %v1257_v59 = vrot.slane %v1255_v46, 1  ;;  %v10382_v43 = vcombine.low %v866_v53, %v867_v36  ;;  %v10384_v63 = vld [vmem:[#allocation2 + $0x50] ss:$0 sps:$4 sm:$0x11]   ;;  %v7788_v5 = vcombine.low %v908_v0, %v867_v36  ;;  %v542_v3 = vrot.slane %v10369_v39, 4  ;;  %v9484_v19 = vld [vmem:[#allocation6 + $0x100] sm:$0xff]  }
  0xa9   : > { %3250 = vmatprep.mubr.bf16.mxu1 %v10380_v61  ;;  %v546_v4 = vrot.slane %v544_v50, 7  ;;  %v791_v6 = vld [vmem:[#allocation2 + $0x60] sm:$0xf]  ;;  %v795_v7 = vld [vmem:[#allocation2 + $0x68] sm:$0x1]  ;;  %v1272_v10 = vshll.u32 %v10384_v63, 16  ;;  %v1466_v20 = vsel %vm1448_vm9, %v1464_v52, %v1465_v62  ;;  %8496 = vmatpush3.bf16.msra.mxu0 %v9484_v19 }
  0xaa   : > { %v1258_v2 = vor.u32 %v1257_v59, %v1253_v45  ;;  %v1265_v8 = vshrl.u32 %v10382_v43, 16  ;;  %v1267_v9 = vshll.u32 %v10382_v43, 16  ;;  %v1468_v11 = vrot.slane %v10384_v63, 1  ;;  %v397_v12 = vld [vmem:[%s10219_s19 + $0x40] sm:$0xf]  ;;  %v9485_v18 = vld [vmem:[#allocation6 + $0x1d8] sm:$0xff]  }
  0xab   : > { %v1467_v13 = vrot.slane %v7788_v5, 1  ;;  %v547_v14 = vshll.u32 %v10359_v23, 16  ;;  %v551_v15 = vrot.slane %v546_v4, 4  ;;  %v398_v16 = vld [vmem:[%s10219_s19 + $0x44] sm:$0xf]  ;;  %v1274_v24 = vrot.slane %v1272_v10, 1  ;;  %8601 = vmatprep.subr.bf16.mxu1 %v9485_v18 }
  0xac   : > { %v1263_v40 = vsel %vm1191_vm3, %v1258_v2, %v1262_v60  ;;  %v1269_v22 = vrot.slane %v1267_v9, 1  ;;  %v930_v21 = vld [vmem:[#allocation2 + $0x54] sm:$0xf]  ;;  %v792_v26 = vsel %vm10242_vm7, %v541_v1, %v791_v6  ;;  %v553_v23 = vshrl.u32 %v397_v12, 16  ;;  %v9487_v50 = vld [vmem:[#allocation6 + $0x1d0] sm:$0xff]   ;;  %s12675_s30 = scalar_lea.vmem [#allocation9], %s7749_s15 }
  0xad   : > { %3089 = vmatprep.mubr.bf16.mxu0 %v1263_v40  ;;  %v868_v25 = vld [vmem:[#allocation2 + $0x54] sm:$0xf]  ;;  %v549_v27 = vor.u32 %v547_v14, %v546_v4  ;;  %793 = vst [vmem:[#allocation2 + $0x60] sm:$0xf] %v792_v26  ;;  %v796_v29 = vsel %vm10248_vm8, %v551_v15, %v795_v7  ;;  %v556_v48 = vshll.u32 %v397_v12, 16  ;;  %v561_v49 = vshrl.u32 %v398_v16, 16 }
  0xae   : > { %v909_v28 = vld [vmem:[#allocation2 + $0x54] sm:$0xe]  ;;  %v1270_v32 = vor.u32 %v1269_v22, %v1265_v8  ;;  %v931_v34 = vld [vmem:[#allocation2 + $0x58] sm:$0xf]  ;;  %797 = vst [vmem:[#allocation2 + $0x68] sm:$0x1] %v796_v29  ;;  %v1469_v4 = vsel %vm1448_vm9, %v1467_v13, %v1468_v11 }
  0xaf   : > { %v869_v35 = vld [vmem:[#allocation2 + $0x58] sm:$0xf]  ;;  %v10403_v37 = vcombine.low %v930_v21, %v931_v34  ;;  %v10407_v39 = vld [vmem:[#allocation2 + $0x5c] ss:$0 sps:$4 sm:$0x11]   ;;  %v550_v41 = vsel %vm10236_vm6, %v542_v3, %v549_v27  ;;  %v9486_v45 = vld [vmem:[#allocation6 + $0x198] sm:$0xff]  }
  0xb0   : > { %3090 = vmatmul.mubr.bf16.gmra.mxu0 %v10365_v31  ;;  %3251 = vmatmul.mubr.bf16.gmra.mxu1 %v1466_v20  ;;  %v10405_v38 = vcombine.low %v868_v25, %v869_v35  ;;  %v7789_v44 = vcombine.low %v909_v28, %v869_v35  ;;  %v1275_v46 = vsel %vm1191_vm3, %v1270_v32, %v1274_v24  ;;  %v555_v31 = vrot.slane %v553_v23, 7  ;;  %v798_v54 = vld [vmem:[#allocation2 + $0x6c] sm:$0xf]  ;;  %v399_v36 = vld [vmem:[%s10219_s19 + $0x48] sm:$0xf]  ;;  %s8256_s9 = sshll.u32 %s10100_s28, 12 }
  0xb1   : > { %794 = vst [vmem:[#allocation2 + $0x64] sm:$0xf] %v550_v41  ;;  %3097 = vmatprep.mubr.bf16.mxu0 %v1275_v46  ;;  %3258 = vmatprep.mubr.bf16.mxu1 %v10403_v37  ;;  %v1284_v53 = vshll.u32 %v10407_v39, 16  ;;  %v9491_v62 = vld [vmem:[#allocation6 + $0x190] sm:$0xff]   ;;  %v563_v1 = vrot.slane %v561_v49, 7  ;;  %v564_v2 = vshll.u32 %v398_v16, 16  ;;  %s12961_s29 = scalar_lea.hbm %s13015_s7, %s8256_s9 }
  0xb2   : > { %v1277_v51 = vshrl.u32 %v10405_v38, 16  ;;  %v1279_v52 = vshll.u32 %v10405_v38, 16  ;;  %v1470_v57 = vrot.slane %v7789_v44, 1  ;;  %v558_v59 = vor.u32 %v556_v48, %v555_v31  ;;  %8602 = vmatpush3.bf16.msra.mxu1 %v9486_v45  ;;  %v802_v5 = vld [vmem:[#allocation2 + $0x74] sm:$0x1]  ;;  %s7645_s20 = sshll.u32 %s12675_s30, 4  ;;  %s12963_s20 = int_to_ptr.vmem [resolvable:$true] %s7645_s20 }
  0xb3   : > { %v559_v60 = vrot.slane %v555_v31, 4  ;;  %v1286_v0 = vrot.slane %v1284_v53, 1  ;;  %v400_v3 = vld [vmem:[%s10219_s19 + $0x4c] sm:$0xf]  ;;  %8603 = vmatprep.subr.bf16.mxu1 %v9487_v50  ;;  %v566_v40 = vor.u32 %v564_v2, %v563_v1  ;;  %v568_v14 = vrot.slane %v563_v1, 4  ;;  %s9960_s28 = scalar_lea.vmem %s12963_s20, 4096 }
  0xb4   : > { %v1281_v63 = vrot.slane %v1279_v52, 1  ;;  %v932_v6 = vld [vmem:[#allocation2 + $0x60] sm:$0xf]  ;;  %v799_v8 = vsel %vm10242_vm7, %v558_v59, %v798_v54  ;;  %v1471_v15 = vrot.slane %v10407_v39, 1  ;;  %v570_v16 = vshrl.u32 %v399_v36, 16  ;;  %p9961_p5 = scmp.ne.s32.totalorder %s12963_s20, %s9960_s28  ;;  %p13216_p2 = scmp.ne.s32.totalorder %s13035_s11, 0 }
  0xb5   : > { %v870_v7 = vld [vmem:[#allocation2 + $0x60] sm:$0xf]  ;;  %v10421_v12 = vld [vmem:[#allocation2 + $0x68] ss:$0 sps:$4 sm:$0x11]   ;;  %v573_v19 = vshll.u32 %v399_v36, 16  ;;  %v567_v21 = vsel %vm10236_vm6, %v559_v60, %v566_v40  ;;  %v803_v28 = vsel %vm10248_vm8, %v568_v14, %v802_v5 }
  0xb6   : > { %v910_v9 = vld [vmem:[#allocation2 + $0x60] sm:$0xe]  ;;  %v1282_v10 = vor.u32 %v1281_v63, %v1277_v51  ;;  %800 = vst [vmem:[#allocation2 + $0x6c] sm:$0xf] %v799_v8  ;;  %v578_v20 = vshrl.u32 %v400_v3, 16  ;;  %8604 = vmatpush3.bf16.msra.mxu1 %v9491_v62  ;;  %v1296_v24 = vshll.u32 %v10421_v12, 16  ;;  %v1472_v52 = vsel %vm1448_vm9, %v1470_v57, %v1471_v15  ;;  %p9962_p7 = pnand %p9961_p5, %p13216_p2 }
  0xb7   : > { %v581_v25 = vshll.u32 %v400_v3, 16  ;;  %801 = vst [vmem:[#allocation2 + $0x70] sm:$0xf] %v567_v21  ;;  %v805_v29 = vld [vmem:[#allocation2 + $0x78] sm:$0xf]  ;;  %v1474_v32 = vrot.slane %v10421_v12, 1 }
  0xb8   : > { %3098 = vmatmul.mubr.bf16.gmra.mxu0 %v10382_v43  ;;  %3259 = vmatmul.mubr.bf16.gmra.mxu1 %v1469_v4  ;;  %v1287_v11 = vsel %vm1191_vm3, %v1282_v10, %v1286_v0  ;;  %v933_v13 = vld [vmem:[#allocation2 + $0x64] sm:$0xf]  ;;  %v809_v23 = vld [vmem:[#allocation2 + $0x80] sm:$0x1]  ;;  %v401_v18 = vld [vmem:[%s10219_s19 + $0x50] sm:$0xf]  ;;  %p9963_p12 = pneg %p9962_p7 }
  0xb9   : > { %v871_v22 = vld [vmem:[#allocation2 + $0x64] sm:$0xf]  ;;  %3105 = vmatprep.mubr.bf16.mxu0 %v1287_v11  ;;  %v10429_v43 = vcombine.low %v932_v6, %v933_v13  ;;  %804 = vst [vmem:[#allocation2 + $0x74] sm:$0x1] %v803_v28  ;;  %v572_v34 = vrot.slane %v570_v16, 7  ;;  %v580_v35 = vrot.slane %v578_v20, 7 }
  0xba   : > { %v10431_v26 = vcombine.low %v870_v7, %v871_v22  ;;  %v7790_v27 = vcombine.low %v910_v9, %v871_v22  ;;  %v10438_v39 = vld [vmem:[%s10219_s19 + $0x54] sm:$0xf]  ;;  %v587_v41 = vshrl.u32 %v401_v18, 16  ;;  %v1298_v46 = vrot.slane %v1296_v24, 1  ;;  %v9493_v2 = vld [vmem:[#allocation6 + $0x1c8] sm:$0xff]   ;;  %v9497_v21 = vld [vmem:[#allocation6 + $0x180] sm:$0xff]  }
  0xbb   : > { %3266 = vmatprep.mubr.bf16.mxu1 %v10429_v43  ;;  %v575_v48 = vor.u32 %v573_v19, %v572_v34  ;;  %v576_v49 = vrot.slane %v572_v34, 4  ;;  %v583_v50 = vor.u32 %v581_v25, %v580_v35  ;;  %v585_v51 = vrot.slane %v580_v35, 4  ;;  %v812_v4 = vld [vmem:[#allocation2 + $0x84] sm:$0xf]  ;;  %v403_v12 = vld [vmem:[%s10219_s19 + $0x58] sm:$0xf]  ;;  %8605 = vmatprep.subr.bf16.mxu1 %v9493_v2 }
  0xbc   : > { %v1289_v44 = vshrl.u32 %v10431_v26, 16  ;;  %v1291_v45 = vshll.u32 %v10431_v26, 16  ;;  %v1473_v31 = vrot.slane %v7790_v27, 1  ;;  %v589_v60 = vrot.slane %v587_v41, 7  ;;  %v9494_v6 = vld [vmem:[#allocation6 + $0x188] sm:$0xff]   ;;  %v9495_v19 = vld [vmem:[#allocation6 + $0x1c0] sm:$0xff]  }
  0xbd   : > { %v934_v54 = vld [vmem:[#allocation2 + $0x6c] sm:$0xf]  ;;  %v584_v36 = vsel %vm10236_vm6, %v576_v49, %v583_v50  ;;  %v806_v62 = vsel %vm10242_vm7, %v575_v48, %v805_v29  ;;  %v810_v0 = vsel %vm10248_vm8, %v585_v51, %v809_v23  ;;  %v590_v1 = vshll.u32 %v401_v18, 16  ;;  %8606 = vmatpush3.bf16.msra.mxu1 %v9494_v6  ;;  %v404_v22 = vld [vmem:[%s10219_s19 + $0x5c] sm:$0xf]  ;;  %s10036_s21 = smov [#allocation9]  }
  0xbe   : > { %v1293_v53 = vrot.slane %v1291_v45, 1  ;;  %v872_v59 = vld [vmem:[#allocation2 + $0x6c] sm:$0xf]  ;;  %807 = vst [vmem:[#allocation2 + $0x78] sm:$0xf] %v806_v62  ;;  %v595_v5 = vshrl.u32 %v10438_v39, 16  ;;  %v1475_v8 = vsel %vm1448_vm9, %v1473_v31, %v1474_v32  ;;  %8607 = vmatprep.subr.bf16.mxu1 %v9495_v19 }
  0xbf   : > { %v911_v63 = vld [vmem:[#allocation2 + $0x6c] sm:$0xe]  ;;  %808 = vst [vmem:[#allocation2 + $0x7c] sm:$0xf] %v584_v36  ;;  %811 = vst [vmem:[#allocation2 + $0x80] sm:$0x1] %v810_v0  ;;  %v592_v10 = vor.u32 %v590_v1, %v589_v60 }
  0xc0   : > { %3106 = vmatmul.mubr.bf16.gmra.mxu0 %v10405_v38  ;;  %v1294_v57 = vor.u32 %v1293_v53, %v1289_v44  ;;  %v598_v3 = vshll.u32 %v10438_v39, 16  ;;  %3267 = vmatmul.mubr.bf16.gmra.mxu1 %v1472_v52  ;;  %v935_v7 = vld [vmem:[#allocation2 + $0x70] sm:$0xf]  ;;  %v10460_v15 = vld [vmem:[#allocation2 + $0x74] ss:$0 sps:$4 sm:$0x11]  }
  0xc1   : > { %v873_v9 = vld [vmem:[#allocation2 + $0x70] sm:$0xf]  ;;  %v10456_v40 = vcombine.low %v934_v54, %v935_v7  ;;  %v593_v20 = vrot.slane %v589_v60, 4  ;;  %v597_v11 = vrot.slane %v595_v5, 7  ;;  %v813_v13 = vsel %vm10242_vm7, %v592_v10, %v812_v4  ;;  %v816_v29 = vld [vmem:[#allocation2 + $0x8c] sm:$0x1]  ;;  %8608 = vmatpush3.bf16.msra.mxu1 %v9497_v21 }
  0xc2   : > { %v1299_v38 = vsel %vm1191_vm3, %v1294_v57, %v1298_v46  ;;  %v10458_v14 = vcombine.low %v872_v59, %v873_v9  ;;  %v7791_v16 = vcombine.low %v911_v63, %v873_v9  ;;  %v604_v24 = vshrl.u32 %v403_v12, 16  ;;  %814 = vst [vmem:[#allocation2 + $0x84] sm:$0xf] %v813_v13  ;;  %v10470_v39 = vld [vmem:[#allocation6 + $0x238] sm:$0xff]   ;;  %v405_v4 = vld [vmem:[%s10219_s19 + $0x60] sm:$0xf] }
  0xc3   : > { %3113 = vmatprep.mubr.bf16.mxu0 %v1299_v38  ;;  %3274 = vmatprep.mubr.bf16.mxu1 %v10456_v40  ;;  %v1308_v28 = vshll.u32 %v10460_v15, 16  ;;  %v607_v23 = vshll.u32 %v403_v12, 16  ;;  %v1477_v32 = vrot.slane %v10460_v15, 1  ;;  %v600_v34 = vor.u32 %v598_v3, %v597_v11  ;;  %v819_v31 = vld [vmem:[#allocation2 + $0x90] sm:$0xf]  ;;  %s9964_s13 = sshll.u32 %s10036_s21, 4  ;;  %s9965_s13 = int_to_ptr.vmem [resolvable:$false] %s9964_s13 }
  0xc4   : > { %v1301_v25 = vshrl.u32 %v10458_v14, 16  ;;  %v1303_v27 = vshll.u32 %v10458_v14, 16  ;;  %v1476_v18 = vrot.slane %v7791_v16, 1  ;;  %v602_v35 = vrot.slane %v597_v11, 4  ;;  %9201 = vmatprep.subr.bf16.mxu0 %v10470_v39  ;;  %v823_v3 = vld [vmem:[#allocation2 + $0x98] sm:$0x1]  ;;  %p9967_p13 = scmp.lt.s32.totalorder %s12963_s20, %s9965_s13 }
  0xc5   : > { %v1310_v44 = vrot.slane %v1308_v28, 1  ;;  %v606_v45 = vrot.slane %v604_v24, 7  ;;  %v612_v46 = vshrl.u32 %v404_v22, 16  ;;  %v936_v48 = vld [vmem:[#allocation2 + $0x78] sm:$0xf]  ;;  %v601_v51 = vsel %vm10236_vm6, %v593_v20, %v600_v34  ;;  %s9966_s14 = scalar_lea.vmem %s9965_s13, 8192 }
  0xc6   : > { %v1305_v41 = vrot.slane %v1303_v27, 1  ;;  %v937_v49 = vld [vmem:[#allocation2 + $0x7c] sm:$0xf]  ;;  %v874_v50 = vld [vmem:[#allocation2 + $0x78] sm:$0xf]  ;;  %v817_v52 = vsel %vm10248_vm8, %v602_v35, %v816_v29  ;;  %v615_v57 = vshll.u32 %v404_v22, 16  ;;  %v1478_v10 = vsel %vm1448_vm9, %v1476_v18, %v1477_v32  ;;  %p9968_p0 = scmp.lt.s32.totalorder %s9966_s14, %s9960_s28 }
  0xc7   : > { %v10478_v54 = vcombine.low %v936_v48, %v937_v49  ;;  %v875_v59 = vld [vmem:[#allocation2 + $0x7c] sm:$0xf]  ;;  %815 = vst [vmem:[#allocation2 + $0x88] sm:$0xf] %v601_v51  ;;  %v912_v60 = vld [vmem:[#allocation2 + $0x78] sm:$0xe]  ;;  %v609_v36 = vor.u32 %v607_v23, %v606_v45 }
  0xc8   : > { %3114 = vmatmul.mubr.bf16.gmra.mxu0 %v10431_v26  ;;  %v1306_v53 = vor.u32 %v1305_v41, %v1301_v25  ;;  %818 = vst [vmem:[#allocation2 + $0x8c] sm:$0x1] %v817_v52  ;;  %3275 = vmatmul.mubr.bf16.gmra.mxu1 %v1475_v8  ;;  %v10480_v62 = vcombine.low %v874_v50, %v875_v59  ;;  %v9452_v63 = vld [vmem:[#allocation2 + $0x80] ss:$0 sps:$4 sm:$0x11]   ;;  %v614_v1 = vrot.slane %v612_v46, 7  ;;  %p9969_p10 = por %p9968_p0, %p9967_p13 }
  0xc9   : > { %v7792_v0 = vcombine.low %v912_v60, %v875_v59  ;;  %3282 = vmatprep.mubr.bf16.mxu1 %v10478_v54  ;;  %v610_v26 = vrot.slane %v606_v45, 4  ;;  %v820_v5 = vsel %vm10242_vm7, %v609_v36, %v819_v31  ;;  %v1320_v8 = vshll.u32 %v9452_v63, 16  ;;  %v406_v9 = vld [vmem:[%s10219_s19 + $0x64] sm:$0xf]  ;;  %v938_v12 = vld [vmem:[#allocation2 + $0x84] sm:$0xf] }
  0xca   : > { %v1311_v2 = vsel %vm1191_vm3, %v1306_v53, %v1310_v44  ;;  %v1313_v6 = vshrl.u32 %v10480_v62, 16  ;;  %v1315_v7 = vshll.u32 %v10480_v62, 16  ;;  %821 = vst [vmem:[#allocation2 + $0x90] sm:$0xf] %v820_v5  ;;  %v876_v38 = vld [vmem:[#allocation2 + $0x84] sm:$0xf]  ;;  %v617_v15 = vor.u32 %v615_v57, %v614_v1  ;;  %p9970_p3 = pnand %p9969_p10, %p9963_p12 }
  0xcb   : > { %3121 = vmatprep.mubr.bf16.mxu0 %v1311_v2  ;;  %v619_v16 = vrot.slane %v614_v1, 4  ;;  %v1322_v20 = vrot.slane %v1320_v8, 1  ;;  %v1479_v11 = vrot.slane %v7792_v0, 1  ;;  %v621_v13 = vshrl.u32 %v405_v4, 16  ;;  %v826_v48 = vld [vmem:[#allocation2 + $0x9c] sm:$0xf] }
  0xcc   : > { %v1317_v19 = vrot.slane %v1315_v7, 1  ;;  %v618_v22 = vsel %vm10236_vm6, %v610_v26, %v617_v15  ;;  %v624_v21 = vshll.u32 %v405_v4, 16  ;;  %v629_v25 = vshrl.u32 %v406_v9, 16  ;;  %v913_v50 = vld [vmem:[#allocation2 + $0x84] sm:$0xe] }
  0xcd   : > { %v824_v24 = vsel %vm10248_vm8, %v619_v16, %v823_v3  ;;  %822 = vst [vmem:[#allocation2 + $0x94] sm:$0xf] %v618_v22  ;;  %v623_v34 = vrot.slane %v621_v13, 7  ;;  %v632_v44 = vshll.u32 %v406_v9, 16  ;;  %v1480_v45 = vrot.slane %v9452_v63, 1 }
  0xce   : > { %v1318_v27 = vor.u32 %v1317_v19, %v1313_v6  ;;  %v939_v28 = vld [vmem:[#allocation2 + $0x88] sm:$0xf]  ;;  %825 = vst [vmem:[#allocation2 + $0x98] sm:$0x1] %v824_v24  ;;  %v631_v41 = vrot.slane %v629_v25, 7 }
  0xcf   : > { %v877_v29 = vld [vmem:[#allocation2 + $0x88] sm:$0xf]  ;;  %v10496_v23 = vcombine.low %v938_v12, %v939_v28  ;;  %v10500_v32 = vld [vmem:[#allocation2 + $0x8c] ss:$0 sps:$4 sm:$0x11]   ;;  %v626_v51 = vor.u32 %v624_v21, %v623_v34  ;;  %v627_v52 = vrot.slane %v623_v34, 4  ;;  %v1481_v1 = vsel %vm1448_vm9, %v1479_v11, %v1480_v45 }
  0xd0   : > { %3122 = vmatmul.mubr.bf16.gmra.mxu0 %v10458_v14  ;;  %v10498_v18 = vcombine.low %v876_v38, %v877_v29  ;;  %3283 = vmatmul.mubr.bf16.gmra.mxu1 %v1478_v10  ;;  %v1323_v35 = vsel %vm1191_vm3, %v1318_v27, %v1322_v20  ;;  %v1332_v31 = vshll.u32 %v10500_v32, 16  ;;  %v634_v36 = vor.u32 %v632_v44, %v631_v41  ;;  %v830_v9 = vld [vmem:[#allocation2 + $0xa4] sm:$0x1]  ;;  %v407_v10 = vld [vmem:[%s10219_s19 + $0x68] sm:$0xf] }
  0xd1   : > { %3129 = vmatprep.mubr.bf16.mxu0 %v1323_v35  ;;  %3290 = vmatprep.mubr.bf16.mxu1 %v10496_v23  ;;  %v940_v49 = vld [vmem:[#allocation2 + $0x90] sm:$0xf]  ;;  %v636_v0 = vrot.slane %v631_v41, 4  ;;  %v827_v63 = vsel %vm10242_vm7, %v626_v51, %v826_v48  ;;  %v7793_v57 = vcombine.low %v913_v50, %v877_v29  ;;  %v408_v12 = vld [vmem:[%s10219_s19 + $0x6c] sm:$0xf]  ;;  %v1483_v11 = vrot.slane %v10500_v32, 1 }
  0xd2   : > { %v1325_v46 = vshrl.u32 %v10498_v18, 16  ;;  %v1327_v14 = vshll.u32 %v10498_v18, 16  ;;  %v1334_v59 = vrot.slane %v1332_v31, 1  ;;  %v878_v60 = vld [vmem:[#allocation2 + $0x90] sm:$0xf]  ;;  %v635_v3 = vsel %vm10236_vm6, %v627_v52, %v634_v36 }
  0xd3   : > { %828 = vst [vmem:[#allocation2 + $0x9c] sm:$0xf] %v827_v63  ;;  %829 = vst [vmem:[#allocation2 + $0xa0] sm:$0xf] %v635_v3  ;;  %v914_v19 = vld [vmem:[#allocation2 + $0x90] sm:$0xe] }
  0xd4   : > { %v1329_v53 = vrot.slane %v1327_v14, 1  ;;  %v941_v26 = vld [vmem:[#allocation2 + $0x94] sm:$0xf]  ;;  %v1482_v20 = vrot.slane %v7793_v57, 1  ;;  %v638_v13 = vshrl.u32 %v407_v10, 16  ;;  %v641_v21 = vshll.u32 %v407_v10, 16 }
  0xd5   : > { %v879_v5 = vld [vmem:[#allocation2 + $0x94] sm:$0xf]  ;;  %v10512_v4 = vcombine.low %v940_v49, %v941_v26  ;;  %v10516_v7 = vld [vmem:[#allocation2 + $0x98] ss:$0 sps:$4 sm:$0x11]   ;;  %v646_v25 = vshrl.u32 %v408_v12, 16 }
  0xd6   : > { %v1330_v2 = vor.u32 %v1329_v53, %v1325_v46  ;;  %v10514_v6 = vcombine.low %v878_v60, %v879_v5  ;;  %v1344_v16 = vshll.u32 %v10516_v7, 16  ;;  %v833_v27 = vld [vmem:[#allocation2 + $0xa8] sm:$0xf]  ;;  %v7794_v28 = vcombine.low %v914_v19, %v879_v5  ;;  %v10832_v55 = vld [vmem:[#allocation2 + $0xd0] sm:$0xf] }
  0xd7   : > { %v640_v29 = vrot.slane %v638_v13, 7  ;;  %v649_v34 = vshll.u32 %v408_v12, 16  ;;  %v648_v45 = vrot.slane %v646_v25, 7  ;;  %v1484_v46 = vsel %vm1448_vm9, %v1482_v20, %v1483_v11  ;;  %v409_v3 = vld [vmem:[%s10219_s19 + $0x70] sm:$0xf] }
  0xd8   : > { %3130 = vmatmul.mubr.bf16.gmra.mxu0 %v10480_v62  ;;  %v1335_v8 = vsel %vm1191_vm3, %v1330_v2, %v1334_v59  ;;  %3291 = vmatmul.mubr.bf16.gmra.mxu1 %v1481_v1  ;;  %v1337_v38 = vshrl.u32 %v10514_v6, 16  ;;  %v1339_v15 = vshll.u32 %v10514_v6, 16  ;;  %v831_v62 = vsel %vm10248_vm8, %v636_v0, %v830_v9  ;;  %v837_v1 = vld [vmem:[#allocation2 + $0xb0] sm:$0x1] }
  0xd9   : > { %3137 = vmatprep.mubr.bf16.mxu0 %v1335_v8  ;;  %3298 = vmatprep.mubr.bf16.mxu1 %v10512_v4  ;;  %v1346_v24 = vrot.slane %v1344_v16, 1  ;;  %832 = vst [vmem:[#allocation2 + $0xa4] sm:$0x1] %v831_v62  ;;  %v643_v31 = vor.u32 %v641_v21, %v640_v29  ;;  %v644_v48 = vrot.slane %v640_v29, 4  ;;  %v651_v52 = vor.u32 %v649_v34, %v648_v45  ;;  %v410_v8 = vld [vmem:[%s10219_s19 + $0x74] sm:$0xf] }
  0xda   : > { %v1341_v22 = vrot.slane %v1339_v15, 1  ;;  %v942_v41 = vld [vmem:[#allocation2 + $0x9c] sm:$0xf]  ;;  %v943_v32 = vld [vmem:[#allocation2 + $0xa0] sm:$0xf]  ;;  %v1485_v53 = vrot.slane %v7794_v28, 1 }
  0xdb   : > { %v880_v44 = vld [vmem:[#allocation2 + $0x9c] sm:$0xf]  ;;  %v881_v14 = vld [vmem:[#allocation2 + $0xa0] sm:$0xf]  ;;  %v10531_v50 = vcombine.low %v942_v41, %v943_v32  ;;  %v653_v59 = vrot.slane %v648_v45, 4  ;;  %v834_v60 = vsel %vm10242_vm7, %v643_v31, %v833_v27  ;;  %v652_v26 = vsel %vm10236_vm6, %v644_v48, %v651_v52 }
  0xdc   : > { %v1342_v35 = vor.u32 %v1341_v22, %v1337_v38  ;;  %v10533_v51 = vcombine.low %v880_v44, %v881_v14  ;;  %835 = vst [vmem:[#allocation2 + $0xa8] sm:$0xf] %v834_v60  ;;  %v915_v63 = vld [vmem:[#allocation2 + $0x9c] sm:$0xe]  ;;  %836 = vst [vmem:[#allocation2 + $0xac] sm:$0xf] %v652_v26 }
  0xdd   : > { %v838_v57 = vsel %vm10248_vm8, %v653_v59, %v837_v1  ;;  %v655_v10 = vshrl.u32 %v409_v3, 16  ;;  %v658_v12 = vshll.u32 %v409_v3, 16  ;;  %v7795_v15 = vcombine.low %v915_v63, %v881_v14  ;;  %v844_v60 = vld [vmem:[#allocation2 + $0xbc] sm:$0x1]  ;;  %v411_v63 = vld [vmem:[%s10219_s19 + $0x78] sm:$0xf] }
  0xde   : > { %v1347_v49 = vsel %vm1191_vm3, %v1342_v35, %v1346_v24  ;;  %v1349_v36 = vshrl.u32 %v10533_v51, 16  ;;  %v1351_v0 = vshll.u32 %v10533_v51, 16  ;;  %839 = vst [vmem:[#allocation2 + $0xb0] sm:$0x1] %v838_v57  ;;  %v663_v16 = vshrl.u32 %v410_v8, 16 }
  0xdf   : > { %v666_v19 = vshll.u32 %v410_v8, 16  ;;  %v657_v62 = vrot.slane %v655_v10, 7  ;;  %v1488_v28 = vrot.slane %v7795_v15, 1  ;;  %v412_v1 = vld [vmem:[%s10219_s19 + $0x7c] sm:$0xf]  ;;  %v672_v26 = vshrl.u32 %v411_v63, 16 }
  0xe0   : > { %3138 = vmatmul.mubr.bf16.gmra.mxu0 %v10498_v18  ;;  %3299 = vmatmul.mubr.bf16.gmra.mxu1 %v1484_v46  ;;  %v1486_v18 = vrot.slane %v10516_v7, 1  ;;  %v9471_v2 = vld [vmem:[#allocation2 + $0xa4] ss:$0 sps:$4 sm:$0x11]   ;;  %v1353_v5 = vrot.slane %v1351_v0, 1  ;;  %v665_v13 = vrot.slane %v663_v16, 7 }
  0xe1   : > { %3145 = vmatprep.mubr.bf16.mxu0 %v1347_v49  ;;  %3306 = vmatprep.mubr.bf16.mxu1 %v10531_v50  ;;  %v1356_v9 = vshll.u32 %v9471_v2, 16  ;;  %v840_v7 = vld [vmem:[#allocation2 + $0xb4] sm:$0xf]  ;;  %v660_v25 = vor.u32 %v658_v12, %v657_v62  ;;  %v661_v27 = vrot.slane %v657_v62, 4  ;;  %v1489_v29 = vrot.slane %v9471_v2, 1 }
  0xe2   : > { %v1354_v38 = vor.u32 %v1353_v5, %v1349_v36  ;;  %v1487_v20 = vsel %vm1448_vm9, %v1485_v53, %v1486_v18  ;;  %v668_v34 = vor.u32 %v666_v19, %v665_v13  ;;  %v670_v31 = vrot.slane %v665_v13, 4  ;;  %v847_v15 = vld [vmem:[#allocation2 + $0xc0] sm:$0xf] }
  0xe3   : > { %v1358_v11 = vrot.slane %v1356_v9, 1  ;;  %v944_v24 = vld [vmem:[#allocation2 + $0xa8] sm:$0xf]  ;;  %v945_v41 = vld [vmem:[#allocation2 + $0xac] sm:$0xf]  ;;  %v841_v45 = vsel %vm10242_vm7, %v660_v25, %v840_v7  ;;  %v1490_v53 = vsel %vm1448_vm9, %v1488_v28, %v1489_v29  ;;  %v675_v57 = vshll.u32 %v411_v63, 16 }
  0xe4   : > { %v882_v21 = vld [vmem:[#allocation2 + $0xa8] sm:$0xf]  ;;  %v883_v44 = vld [vmem:[#allocation2 + $0xac] sm:$0xf]  ;;  %v10553_v46 = vcombine.low %v944_v24, %v945_v41  ;;  %v669_v14 = vsel %vm10236_vm6, %v661_v27, %v668_v34  ;;  %842 = vst [vmem:[#allocation2 + $0xb4] sm:$0xf] %v841_v45  ;;  %v845_v0 = vsel %vm10248_vm8, %v670_v31, %v844_v60 }
  0xe5   : > { %v1359_v22 = vsel %vm1191_vm3, %v1354_v38, %v1358_v11  ;;  %v916_v35 = vld [vmem:[#allocation2 + $0xa8] sm:$0xe]  ;;  %v9479_v32 = vld [vmem:[#allocation2 + $0xb0] ss:$0 sps:$4 sm:$0x11]   ;;  %v680_v3 = vshrl.u32 %v412_v1, 16 }
  0xe6   : > { %843 = vst [vmem:[#allocation2 + $0xb8] sm:$0xf] %v669_v14  ;;  %v7796_v48 = vcombine.low %v916_v35, %v883_v44  ;;  %v1368_v59 = vshll.u32 %v9479_v32, 16  ;;  %846 = vst [vmem:[#allocation2 + $0xbc] sm:$0x1] %v845_v0  ;;  %v683_v8 = vshll.u32 %v412_v1, 16 }
  0xe7   : > { %v1492_v10 = vrot.slane %v9479_v32, 1  ;;  %v674_v38 = vrot.slane %v672_v26, 7  ;;  %v1658_v45 = vshrl.u32 %v10283_v56, 16  ;;  %v966_v14 = vld [vmem:[#allocation2 + $0xc] sm:$0xe] }
  0xe8   : > { %3146 = vmatmul.mubr.bf16.gmra.mxu0 %v10514_v6  ;;  %3307 = vmatmul.mubr.bf16.gmra.mxu1 %v1487_v20  ;;  %v7764_v6 = vcombine.low %v882_v21, %v883_v44  ;;  %v1370_v18 = vrot.slane %v1368_v59, 1  ;;  %v1491_v2 = vrot.slane %v7796_v48, 1  ;;  %v1660_v21 = vshll.u32 %v10283_v56, 16 }
  0xe9   : > { %3153 = vmatprep.mubr.bf16.mxu0 %v1359_v22  ;;  %3314 = vmatprep.mubr.bf16.mxu1 %v10553_v46  ;;  %v677_v62 = vor.u32 %v675_v57, %v674_v38  ;;  %v678_v13 = vrot.slane %v674_v38, 4  ;;  %v1672_v56 = vshll.u32 %v10291_v17, 16 }
  0xea   : > { %v1361_v49 = vshrl.u32 %v7764_v6, 16  ;;  %v1363_v52 = vshll.u32 %v7764_v6, 16  ;;  %v1493_v25 = vsel %vm1448_vm9, %v1491_v2, %v1492_v10  ;;  %v1662_v31 = vrot.slane %v1660_v21, 1  ;;  %v10582_v2 = vld [vmem:[#allocation2 + $0x1c] sm:$0xf] }
  0xeb   : > { %v946_v9 = vld [vmem:[#allocation2 + $0xb4] sm:$0xf]  ;;  %v848_v35 = vsel %vm10242_vm7, %v677_v62, %v847_v15  ;;  %v985_v21 = vld [vmem:[#allocation2 + $0x24] sm:$0xf] }
  0xec   : > { %v1365_v36 = vrot.slane %v1363_v52, 1  ;;  %v884_v12 = vld [vmem:[#allocation2 + $0xb4] sm:$0xf]  ;;  %849 = vst [vmem:[#allocation2 + $0xc0] sm:$0xf] %v848_v35 }
  0xed   : > { %v10565_v19 = vld [vmem:[#allocation2 + $0xb8] sm:$0xf]  ;;  %v917_v22 = vld [vmem:[#allocation2 + $0xb4] sm:$0xe]  ;;  %v9793_v52 = vld [vmem:[#allocation2 + $0x10] sm:$0xf] }
  0xee   : > { %v1366_v5 = vor.u32 %v1365_v36, %v1361_v49  ;;  %v885_v7 = vld [vmem:[#allocation2 + $0xb8] sm:$0xf]  ;;  %v10570_v20 = vcombine.low %v946_v9, %v10565_v19  ;;  %v9489_v29 = vld [vmem:[#allocation2 + $0xbc] ss:$0 sps:$4 sm:$0x11]  }
  0xef   : > { %v7765_v11 = vcombine.low %v884_v12, %v885_v7  ;;  %v7797_v41 = vcombine.low %v917_v22, %v885_v7  ;;  %v1380_v32 = vshll.u32 %v9489_v29, 16  ;;  %v9496_v49 = vld [vmem:[#allocation2 + $0x14] ss:$0 sps:$4 sm:$0x11]   ;;  %v1495_v36 = vrot.slane %v9489_v29, 1 }
  0xf0   : > { %3154 = vmatmul.mubr.bf16.gmra.mxu0 %v10533_v51  ;;  %3315 = vmatmul.mubr.bf16.gmra.mxu1 %v1490_v53  ;;  %v1371_v16 = vsel %vm1191_vm3, %v1366_v5, %v1370_v18  ;;  %v10567_v51 = vrot.slane %v680_v3, 7  ;;  %v7830_v53 = vcombine.low %v966_v14, %v9793_v52  ;;  %v1665_v0 = vshll.u32 %v9496_v49, 16  ;;  %v983_v18 = vld [vmem:[#allocation2 + $0x18] sm:$0xf]  ;;  %v9794_v22 = vld [vmem:[#allocation2 + $0x1c] sm:$0xf] }
  0xf1   : > { %3161 = vmatprep.mubr.bf16.mxu0 %v1371_v16  ;;  %3322 = vmatprep.mubr.bf16.mxu1 %v10570_v20  ;;  %v1373_v27 = vshrl.u32 %v7765_v11, 16  ;;  %v1375_v28 = vshll.u32 %v7765_v11, 16  ;;  %v1382_v59 = vrot.slane %v1380_v32, 1  ;;  %v1494_v60 = vrot.slane %v7797_v41, 1  ;;  %v967_v9 = vld [vmem:[#allocation2 + $0x18] sm:$0xe] }
  0xf2   : > { %v685_v24 = vor.u32 %v683_v8, %v10567_v51  ;;  %v1913_v63 = vrot.slane %v7830_v53, 1  ;;  %v1914_v1 = vrot.slane %v9496_v49, 1  ;;  %v7846_v57 = vcombine.low %v983_v18, %v10582_v2  ;;  %v10587_v5 = vld [vmem:[#allocation2 + $0x20] ss:$0 sps:$4 sm:$0x11]  }
  0xf3   : > { %v1377_v44 = vrot.slane %v1375_v28, 1  ;;  %v948_v3 = vld [vmem:[#allocation2 + $0xc0] sm:$0xf]  ;;  %v1496_v12 = vsel %vm1448_vm9, %v1494_v60, %v1495_v36  ;;  %v1663_v7 = vor.u32 %v1662_v31, %v1658_v45  ;;  %v1667_v62 = vrot.slane %v1665_v0, 1  ;;  %v968_v32 = vld [vmem:[#allocation2 + $0x24] sm:$0xe] }
  0xf4   : > { %v686_v34 = vsel %vm10236_vm6, %v678_v13, %v685_v24  ;;  %v1915_v26 = vsel %vm1448_vm9, %v1913_v63, %v1914_v1  ;;  %v2122_v38 = vshrl.u32 %v7846_v57, 16  ;;  %v2124_v15 = vshll.u32 %v7846_v57, 16  ;;  %v9501_v16 = vld [vmem:[#allocation2 + $0x20] ss:$0 sps:$4 sm:$0x11]   ;;  %v9506_v63 = vld [vmem:[#allocation6 + $0x230] sm:$0xff]  }
  0xf5   : > { %850 = vst [vmem:[#allocation2 + $0xc4] sm:$0xf] %v686_v34  ;;  %v1378_v48 = vor.u32 %v1377_v44, %v1373_v27  ;;  %v2129_v13 = vshll.u32 %v10587_v5, 16  ;;  %v7831_v24 = vcombine.low %v967_v9, %v9794_v22  ;;  %v1917_v28 = vrot.slane %v9501_v16, 1  ;;  %v9795_v36 = vld [vmem:[#allocation2 + $0x28] sm:$0xf] }
  0xf6   : > { %v2126_v27 = vrot.slane %v2124_v15, 1  ;;  %v10599_v35 = vld [vmem:[#allocation2 + $0x2c] ss:$0 sps:$4 sm:$0x11]   ;;  %v1670_v44 = vshrl.u32 %v10291_v17, 16  ;;  %v1674_v45 = vrot.slane %v1672_v56, 1  ;;  %v1668_v14 = vsel %vm1191_vm3, %v1663_v7, %v1667_v62 }
  0xf7   : > { %v1916_v29 = vrot.slane %v7831_v24, 1  ;;  %v1677_v31 = vshll.u32 %v9501_v16, 16  ;;  %v9505_v52 = vld [vmem:[#allocation2 + $0x2c] ss:$0 sps:$4 sm:$0x11]   ;;  %v2141_v60 = vshll.u32 %v10599_v35, 16  ;;  %v7832_v0 = vcombine.low %v968_v32, %v9795_v36 }
  0xf8   : > { %3162 = vmatmul.mubr.bf16.gmra.mxu0 %v7764_v6  ;;  %3323 = vmatmul.mubr.bf16.gmra.mxu1 %v1493_v25  ;;  %v1383_v6 = vsel %vm1191_vm3, %v1378_v48, %v1382_v59  ;;  %v986_v25 = vld [vmem:[#allocation2 + $0x28] sm:$0xf]  ;;  %v2127_v41 = vor.u32 %v2126_v27, %v2122_v38  ;;  %v987_v1 = vld [vmem:[#allocation2 + $0x30] sm:$0xf]  ;;  %v988_v56 = vld [vmem:[#allocation2 + $0x34] sm:$0xf] }
  0xf9   : > { %3169 = vmatprep.mubr.bf16.mxu0 %v1383_v6  ;;  %v10597_v34 = vcombine.low %v985_v21, %v986_v25  ;;  %v1918_v59 = vsel %vm1448_vm9, %v1916_v29, %v1917_v28  ;;  %v1684_v6 = vshll.u32 %v10305_v33, 16  ;;  %v2143_v18 = vrot.slane %v2141_v60, 1  ;;  %v10612_v38 = vld [vmem:[#allocation2 + $0x38] ss:$0 sps:$4 sm:$0x11]  }
  0xfa   : > { %13052 = vst [vmem:[#allocation16_spill] sm:$0xff] %v10612_v38  ;;  %v1919_v15 = vrot.slane %v7832_v0, 1  ;;  %v1920_v16 = vrot.slane %v9505_v52, 1  ;;  %v1689_v7 = vshll.u32 %v9505_v52, 16  ;;  %v969_v62 = vld [vmem:[#allocation2 + $0x30] sm:$0xe] }
  0xfb   : > { %v2134_v48 = vshrl.u32 %v10597_v34, 16  ;;  %v2136_v49 = vshll.u32 %v10597_v34, 16  ;;  %v989_v21 = vld [vmem:[#allocation2 + $0x3c] sm:$0xf]  ;;  %v990_v25 = vld [vmem:[#allocation2 + $0x40] sm:$0xf] }
  0xfc   : > { %v10589_v8 = vld [vmem:[#allocation2 + $0xc4] sm:$0xf]  ;;  %v1682_v27 = vshrl.u32 %v10305_v33, 16  ;;  %v1686_v28 = vrot.slane %v1684_v6, 1  ;;  %v1696_v33 = vshll.u32 %v10336_v42, 16  ;;  %v1691_v52 = vrot.slane %v1689_v7, 1 }
  0xfd   : > { %v10592_v10 = vcombine.low %v948_v3, %v10589_v8  ;;  %v2138_v17 = vrot.slane %v2136_v49, 1  ;;  %v1679_v3 = vrot.slane %v1677_v31, 1  ;;  %v9796_v31 = vld [vmem:[#allocation2 + $0x34] sm:$0xf]  ;;  %v9522_v49 = vld [vmem:[#allocation6 + $0x220] sm:$0xff]   ;;  %v1744_v7 = vshll.u32 %v10429_v43, 16 }
  0xfe   : > { %v1687_v60 = vor.u32 %v1686_v28, %v1682_v27  ;;  %v991_v36 = vld [vmem:[#allocation2 + $0x48] sm:$0xf]  ;;  %v992_v6 = vld [vmem:[#allocation2 + $0x4c] sm:$0xf] }
  0xff   : > { %3330 = vmatprep.mubr.bf16.mxu1 %v10592_v10  ;;  %v2139_v9 = vor.u32 %v2138_v17, %v2134_v48  ;;  %v7833_v48 = vcombine.low %v969_v62, %v9796_v31  ;;  %v970_v62 = vld [vmem:[#allocation2 + $0x3c] sm:$0xe]  ;;  %v9516_v28 = vld [vmem:[#allocation2 + $0x50] ss:$0 sps:$4 sm:$0x11]   ;;  %v1780_v31 = vshll.u32 %v10496_v23, 16 }
 0x100   : > { %3170 = vmatmul.mubr.bf16.gmra.mxu0 %v7765_v11  ;;  %3331 = vmatmul.mubr.bf16.gmra.mxu1 %v1496_v12  ;;  %v2131_v11 = vrot.slane %v2129_v13, 1  ;;  %v10610_v12 = vcombine.low %v987_v1, %v988_v56  ;;  %v9514_v13 = vld [vmem:[#allocation6 + $0x228] sm:$0xff]  }
 0x101   : > { %3371 = vmatprep.mubr.bf16.mxu0 %v1915_v26  ;;  %v1675_v26 = vor.u32 %v1674_v45, %v1670_v44  ;;  %v2144_v22 = vsel %vm1191_vm3, %v2139_v9, %v2143_v18  ;;  %v10620_v44 = vcombine.low %v989_v21, %v990_v25  ;;  %v1921_v45 = vsel %vm1448_vm9, %v1919_v15, %v1920_v16  ;;  %v9530_v18 = vld [vmem:[#allocation6 + $0x218] sm:$0xff]  }
 0x102   : > { %v2132_v53 = vsel %vm1191_vm3, %v2127_v41, %v2131_v11  ;;  %v2146_v24 = vshrl.u32 %v10610_v12, 16  ;;  %v2153_v11 = vshll.u32 %v10612_v38, 16  ;;  %v1922_v56 = vrot.slane %v7833_v48, 1 }
 0x103   : > { %3532 = vmatprep.mubr.bf16.mxu1 %v2132_v53  ;;  %v1680_v29 = vsel %vm1191_vm3, %v1675_v26, %v1679_v3  ;;  %v10627_v3 = vcombine.low %v991_v36, %v992_v6  ;;  %v1708_v9 = vshll.u32 %v10363_v30, 16  ;;  %v1720_v15 = vshll.u32 %v10380_v61, 16  ;;  %v976_v6 = vld [vmem:[#allocation2 + $0x84] sm:$0xe] }
 0x104   : > { %v2155_v32 = vrot.slane %v2153_v11, 1  ;;  %v1732_v16 = vshll.u32 %v10403_v37, 16  ;;  %v1692_v21 = vsel %vm1191_vm3, %v1687_v60, %v1691_v52  ;;  %v1792_v48 = vshll.u32 %v10512_v4, 16 }
 0x105   : > { %v2172_v11 = vshll.u32 %v10627_v3, 16  ;;  %v2177_v36 = vshll.u32 %v9516_v28, 16 }
 0x107   : > { %v2174_v60 = vrot.slane %v2172_v11, 1 }
 0x108   : > { %3372 = vmatmul.mubr.bf16.vlgmr.msra.gmra.mxu0 %v1668_v14  ;;  %3533 = vmatmul.mubr.bf16.vlgmr.msra.gmra.mxu1 %v7846_v57  ;;  %v9512_v57 = vld [vmem:[#allocation2 + $0x44] ss:$0 sps:$4 sm:$0x11]   ;;  %v9509_v14 = vld [vmem:[#allocation2 + $0x38] ss:$0 sps:$4 sm:$0x11]  }
 0x109   : > { %9202 = vmatpush3.bf16.msra.mxu0 %v10470_v39  ;;  %3379 = vmatprep.mubr.bf16.mxu0 %v1918_v59  ;;  %v2148_v39 = vshll.u32 %v10610_v12, 16  ;;  %v2160_v59 = vshll.u32 %v10620_v44, 16  ;;  %v2165_v1 = vshll.u32 %v9512_v57, 16  ;;  %v1923_v26 = vrot.slane %v9509_v14, 1 }
 0x10a   : > { %9203 = vmatprep.subr.bf16.mxu0 %v9506_v63  ;;  %3540 = vmatprep.mubr.bf16.mxu1 %v2144_v22  ;;  %v1698_v22 = vrot.slane %v1696_v33, 1  ;;  %v1804_v33 = vshll.u32 %v10531_v50, 16 }
 0x10b   : > { %v2150_v41 = vrot.slane %v2148_v39, 1  ;;  %v2162_v17 = vrot.slane %v2160_v59, 1  ;;  %v10635_v39 = vld [vmem:[#allocation2 + $0x44] ss:$0 sps:$4 sm:$0x11]   ;;  %v2167_v27 = vrot.slane %v2165_v1, 1 }
 0x10c   : > { %v1926_v1 = vrot.slane %v10635_v39, 1  ;;  %v10657_v11 = vrot.slane %v1804_v33, 1 }
 0x10d   : > { %9204 = vmatpush3.bf16.msra.mxu0 %v9506_v63  ;;  %v2151_v53 = vor.u32 %v2150_v41, %v2146_v24  ;;  %v2158_v63 = vshrl.u32 %v10620_v44, 16  ;;  %v1701_v24 = vshll.u32 %v9509_v14, 16  ;;  %v1924_v41 = vsel %vm1448_vm9, %v1922_v56, %v1923_v26 }
 0x10e   : > { %9205 = vmatprep.subr.bf16.mxu0 %v9514_v13  ;;  %v1768_v14 = vshll.u32 %v10478_v54, 16  ;;  %v1816_v56 = vshll.u32 %v10553_v46, 16  ;;  %v1706_v26 = vshrl.u32 %v10363_v30, 16 }
 0x10f   : > { %v2156_v0 = vsel %vm1191_vm3, %v2151_v53, %v2155_v32  ;;  %v2163_v25 = vor.u32 %v2162_v17, %v2158_v63  ;;  %v994_v32 = vld [vmem:[#allocation2 + $0x58] sm:$0xf]  ;;  %v1703_v52 = vrot.slane %v1701_v24, 1  ;;  %v2170_v53 = vshrl.u32 %v10627_v3, 16  ;;  %v9546_v63 = vld [vmem:[#allocation6 + $0x208] sm:$0xff]  }
 0x110   : > { %3380 = vmatmul.mubr.bf16.gmra.mxu0 %v1680_v29  ;;  %3541 = vmatmul.mubr.bf16.gmra.mxu1 %v10597_v34  ;;  %v9538_v29 = vld [vmem:[#allocation6 + $0x210] sm:$0xff]   ;;  %v9797_v34 = vld [vmem:[#allocation2 + $0x40] sm:$0xf]  ;;  %v9517_v24 = vld [vmem:[#allocation2 + $0x50] ss:$0 sps:$4 sm:$0x11]  }
 0x111   : > { %3387 = vmatprep.mubr.bf16.mxu0 %v1921_v45  ;;  %9206 = vmatpush3.bf16.msra.mxu0 %v9514_v13  ;;  %v1694_v13 = vshrl.u32 %v10336_v42, 16  ;;  %v7834_v57 = vcombine.low %v970_v62, %v9797_v34  ;;  %v993_v45 = vld [vmem:[#allocation2 + $0x54] sm:$0xf]  ;;  %v1756_v42 = vshll.u32 %v10456_v40, 16  ;;  %v2168_v59 = vsel %vm1191_vm3, %v2163_v25, %v2167_v27  ;;  %v996_v34 = vld [vmem:[#allocation2 + $0x64] sm:$0xf] }
 0x112   : > { %9207 = vmatprep.subr.bf16.mxu0 %v9522_v49  ;;  %3548 = vmatprep.mubr.bf16.mxu1 %v2156_v0  ;;  %v10647_v0 = vcombine.low %v993_v45, %v994_v32  ;;  %v1710_v62 = vrot.slane %v1708_v9, 1  ;;  %v2175_v25 = vor.u32 %v2174_v60, %v2170_v53  ;;  %v2179_v27 = vrot.slane %v2177_v36, 1  ;;  %v995_v9 = vld [vmem:[#allocation2 + $0x60] sm:$0xf] }
 0x113   : > { %v1925_v17 = vrot.slane %v7834_v57, 1  ;;  %v9554_v57 = vld [vmem:[#allocation6 + $0x200] sm:$0xff]   ;;  %v10661_v45 = vrot.slane %v1816_v56, 1  ;;  %v1828_v32 = vshll.u32 %v10570_v20, 16 }
 0x114   : > { %v2184_v28 = vshll.u32 %v10647_v0, 16  ;;  %v1711_v33 = vor.u32 %v1710_v62, %v1706_v26  ;;  %v2182_v60 = vshrl.u32 %v10647_v0, 16  ;;  %v1840_v62 = vshll.u32 %v10592_v10, 16 }
 0x115   : > { %9208 = vmatpush3.bf16.msra.mxu0 %v9522_v49  ;;  %v1699_v49 = vor.u32 %v1698_v22, %v1694_v13  ;;  %v971_v13 = vld [vmem:[#allocation2 + $0x48] sm:$0xe]  ;;  %v1713_v22 = vshll.u32 %v10635_v39, 16  ;;  %v10673_v26 = vrot.slane %v1828_v32, 1  ;;  %v998_v32 = vld [vmem:[#allocation2 + $0x70] sm:$0xf] }
 0x116   : > { %9209 = vmatprep.subr.bf16.mxu0 %v9530_v18  ;;  %v2186_v36 = vrot.slane %v2184_v28, 1  ;;  %v1002_v39 = vld [vmem:[#allocation2 + $0x88] sm:$0xf] }
 0x118   : > { %3388 = vmatmul.mubr.bf16.gmra.mxu0 %v1692_v21  ;;  %3549 = vmatmul.mubr.bf16.gmra.mxu1 %v10610_v12  ;;  %v1704_v21 = vsel %vm1191_vm3, %v1699_v49, %v1703_v52  ;;  %v1927_v12 = vsel %vm1448_vm9, %v1925_v17, %v1926_v1  ;;  %v1718_v49 = vshrl.u32 %v10380_v61, 16  ;;  %v1715_v52 = vrot.slane %v1713_v22, 1  ;;  %v972_v22 = vld [vmem:[#allocation2 + $0x54] sm:$0xe] }
 0x119   : > { %3395 = vmatprep.mubr.bf16.mxu0 %v1924_v41  ;;  %9210 = vmatpush3.bf16.msra.mxu0 %v9530_v18  ;;  %v9520_v18 = vld [vmem:[#allocation2 + $0x5c] ss:$0 sps:$4 sm:$0x11]   ;;  %v9798_v41 = vld [vmem:[#allocation2 + $0x4c] sm:$0xf]  ;;  %v10668_v17 = vcombine.low %v995_v9, %v996_v34  ;;  %v2187_v28 = vor.u32 %v2186_v36, %v2182_v60 }
 0x11a   : > { %9211 = vmatprep.subr.bf16.mxu0 %v9538_v29  ;;  %3556 = vmatprep.mubr.bf16.mxu1 %v2168_v59  ;;  %v7835_v30 = vcombine.low %v971_v13, %v9798_v41  ;;  %v2189_v53 = vshll.u32 %v9520_v18, 16  ;;  %v2180_v59 = vsel %vm1191_vm3, %v2175_v25, %v2179_v27  ;;  %v1929_v13 = vrot.slane %v9517_v24, 1  ;;  %v9521_v25 = vld [vmem:[#allocation2 + $0x5c] ss:$0 sps:$4 sm:$0x11]  }
 0x11b   : > { %v1722_v41 = vrot.slane %v1720_v15, 1  ;;  %v1725_v18 = vshll.u32 %v9517_v24, 16  ;;  %v1716_v27 = vsel %vm1191_vm3, %v1711_v33, %v1715_v52  ;;  %v2196_v61 = vshll.u32 %v10668_v17, 16  ;;  %v9799_v9 = vld [vmem:[#allocation2 + $0x58] sm:$0xf] }
 0x11c   : > { %v1928_v56 = vrot.slane %v7835_v30, 1  ;;  %v7836_v34 = vcombine.low %v972_v22, %v9799_v9  ;;  %v1742_v33 = vshrl.u32 %v10429_v43, 16  ;;  %v2194_v60 = vshrl.u32 %v10668_v17, 16  ;;  %v9528_v9 = vld [vmem:[#allocation2 + $0x74] ss:$0 sps:$4 sm:$0x11]  }
 0x11d   : > { %9212 = vmatpush3.bf16.msra.mxu0 %v9538_v29  ;;  %v1723_v30 = vor.u32 %v1722_v41, %v1718_v49  ;;  %v10691_v49 = vrot.slane %v1744_v7, 1  ;;  %v973_v41 = vld [vmem:[#allocation2 + $0x60] sm:$0xe]  ;;  %v1737_v22 = vshll.u32 %v9521_v25, 16  ;;  %v9800_v52 = vld [vmem:[#allocation2 + $0x64] sm:$0xf] }
 0x11e   : > { %9213 = vmatprep.subr.bf16.mxu0 %v9546_v63  ;;  %v1930_v15 = vsel %vm1448_vm9, %v1928_v56, %v1929_v13  ;;  %v2198_v56 = vrot.slane %v2196_v61, 1  ;;  %v999_v24 = vld [vmem:[#allocation2 + $0x78] sm:$0xf]  ;;  %v2213_v1 = vshll.u32 %v9528_v9, 16  ;;  %v10748_v43 = vrot.slane %v1792_v48, 1 }
 0x11f   : > { %v9804_v29 = vld [vmem:[#allocation2 + $0x94] sm:$0xf] }
 0x120   : > { %3396 = vmatmul.mubr.bf16.gmra.mxu0 %v1704_v21  ;;  %3557 = vmatmul.mubr.bf16.gmra.mxu1 %v10620_v44  ;;  %v2191_v21 = vrot.slane %v2189_v53, 1  ;;  %v997_v44 = vld [vmem:[#allocation2 + $0x6c] sm:$0xf]  ;;  %v10682_v53 = vrot.slane %v1840_v62, 1  ;;  %v1932_v62 = vrot.slane %v9521_v25, 1 }
 0x121   : > { %3403 = vmatprep.mubr.bf16.mxu0 %v1927_v12  ;;  %9214 = vmatpush3.bf16.msra.mxu0 %v9546_v63  ;;  %v1730_v63 = vshrl.u32 %v10403_v37, 16  ;;  %v9524_v12 = vld [vmem:[#allocation2 + $0x68] ss:$0 sps:$4 sm:$0x11]   ;;  %v10694_v37 = vcombine.low %v997_v44, %v998_v32  ;;  %v974_v44 = vld [vmem:[#allocation2 + $0x6c] sm:$0xe] }
 0x122   : > { %9215 = vmatprep.subr.bf16.mxu0 %v9554_v57  ;;  %3564 = vmatprep.mubr.bf16.mxu1 %v2180_v59  ;;  %v1734_v59 = vrot.slane %v1732_v16, 1  ;;  %v2192_v36 = vsel %vm1191_vm3, %v2187_v28, %v2191_v21  ;;  %v2201_v13 = vshll.u32 %v9524_v12, 16  ;;  %v1931_v16 = vrot.slane %v7836_v34, 1  ;;  %v1000_v21 = vld [vmem:[#allocation2 + $0x7c] sm:$0xf] }
 0x123   : > { %v2199_v12 = vor.u32 %v2198_v56, %v2194_v60  ;;  %v2208_v34 = vshll.u32 %v10694_v37, 16  ;;  %v10701_v32 = vld [vmem:[#allocation2 + $0x74] ss:$0 sps:$4 sm:$0x11]  }
 0x124   : > { %v1735_v7 = vor.u32 %v1734_v59, %v1730_v63  ;;  %v2203_v61 = vrot.slane %v2201_v13, 1  ;;  %v1933_v25 = vsel %vm1448_vm9, %v1931_v16, %v1932_v62  ;;  %v10710_v59 = vrot.slane %v1768_v14, 1  ;;  %v1001_v14 = vld [vmem:[#allocation2 + $0x84] sm:$0xf] }
 0x125   : > { %9216 = vmatpush3.bf16.msra.mxu0 %v9554_v57  ;;  %v1727_v57 = vrot.slane %v1725_v18, 1  ;;  %v9525_v18 = vld [vmem:[#allocation2 + $0x68] ss:$0 sps:$4 sm:$0x11]   ;;  %v2206_v13 = vshrl.u32 %v10694_v37, 16  ;;  %v2210_v62 = vrot.slane %v2208_v34, 1  ;;  %v10724_v9 = vcombine.low %v1001_v14, %v1002_v39 }
 0x126   : > { %v1749_v56 = vshll.u32 %v9525_v18, 16  ;;  %v2204_v16 = vsel %vm1191_vm3, %v2199_v12, %v2203_v61  ;;  %v1938_v12 = vrot.slane %v10701_v32, 1  ;;  %v1004_v14 = vld [vmem:[#allocation2 + $0x94] sm:$0xf] }
 0x127   : > { %v1728_v28 = vsel %vm1191_vm3, %v1723_v30, %v1727_v57  ;;  %v1739_v30 = vrot.slane %v1737_v22, 1  ;;  %v10712_v57 = vcombine.low %v999_v24, %v1000_v21  ;;  %v1761_v22 = vshll.u32 %v10701_v32, 16  ;;  %v9532_v24 = vld [vmem:[#allocation2 + $0x80] ss:$0 sps:$4 sm:$0x11]  }
 0x128   : > { %3404 = vmatmul.mubr.bf16.gmra.mxu0 %v1716_v27  ;;  %v1754_v27 = vshrl.u32 %v10456_v40, 16  ;;  %3565 = vmatmul.mubr.bf16.gmra.mxu1 %v10627_v3  ;;  %v10705_v3 = vrot.slane %v1756_v42, 1  ;;  %v975_v21 = vld [vmem:[#allocation2 + $0x78] sm:$0xe]  ;;  %v2211_v34 = vor.u32 %v2210_v62, %v2206_v13  ;;  %v2225_v60 = vshll.u32 %v9532_v24, 16 }
 0x129   : > { %3411 = vmatprep.mubr.bf16.mxu0 %v1930_v15  ;;  %3572 = vmatprep.mubr.bf16.mxu1 %v2192_v36  ;;  %v7837_v15 = vcombine.low %v973_v41, %v9800_v52  ;;  %v1935_v52 = vrot.slane %v9525_v18, 1  ;;  %v9801_v41 = vld [vmem:[#allocation2 + $0x70] sm:$0xf]  ;;  %v2220_v18 = vshll.u32 %v10712_v57, 16  ;;  %v2232_v32 = vshll.u32 %v10724_v9, 16 }
 0x12a   : > { %v7838_v42 = vcombine.low %v974_v44, %v9801_v41  ;;  %v1751_v44 = vrot.slane %v1749_v56, 1  ;;  %v2215_v41 = vrot.slane %v2213_v1, 1  ;;  %v9803_v1 = vld [vmem:[#allocation2 + $0x88] sm:$0xf]  ;;  %v1003_v13 = vld [vmem:[#allocation2 + $0x90] sm:$0xf]  ;;  %v1759_v48 = vor.u32 %v10705_v3, %v1754_v27 }
 0x12b   : > { %v1934_v36 = vrot.slane %v7837_v15, 1  ;;  %v1740_v15 = vsel %vm1191_vm3, %v1735_v7, %v1739_v30  ;;  %v1763_v7 = vrot.slane %v1761_v22, 1  ;;  %v2218_v30 = vshrl.u32 %v10712_v57, 16  ;;  %v851_v27 = vld [vmem:[#allocation2 + $0xc8] sm:$0x1] }
 0x12c   : > { %v2222_v63 = vrot.slane %v2220_v18, 1  ;;  %v2216_v62 = vsel %vm1191_vm3, %v2211_v34, %v2215_v41  ;;  %v2227_v22 = vrot.slane %v2225_v60, 1  ;;  %v9540_v34 = vld [vmem:[#allocation2 + $0x98] ss:$0 sps:$4 sm:$0x11]  }
 0x12d   : > { %v1936_v61 = vsel %vm1448_vm9, %v1934_v36, %v1935_v52  ;;  %v10734_v52 = vld [vmem:[#allocation2 + $0x8c] ss:$0 sps:$4 sm:$0x11]   ;;  %v7840_v36 = vcombine.low %v976_v6, %v9803_v1  ;;  %v2230_v6 = vshrl.u32 %v10724_v9, 16  ;;  %v1005_v1 = vld [vmem:[#allocation2 + $0x9c] sm:$0xf]  ;;  %v1764_v3 = vsel %vm1191_vm3, %v1759_v48, %v1763_v7 }
 0x12e   : > { %v1785_v60 = vshll.u32 %v10734_v52, 16  ;;  %v2223_v41 = vor.u32 %v2222_v63, %v2218_v30  ;;  %v1008_v30 = vld [vmem:[#allocation2 + $0xac] sm:$0xf]  ;;  %v13055_v47 = vrot.slane %v10734_v52, 1 }
 0x130   : > { %3412 = vmatmul.mubr.bf16.gmra.mxu0 %v1728_v28  ;;  %3573 = vmatmul.mubr.bf16.gmra.mxu1 %v10647_v0  ;;  %v10721_v28 = vld [vmem:[#allocation2 + $0x80] ss:$0 sps:$4 sm:$0x11]   ;;  %v10729_v0 = vrot.slane %v1780_v31, 1  ;;  %v1747_v31 = vor.u32 %v10691_v49, %v1742_v33  ;;  %v10750_v33 = vrot.slane %v7840_v36, 1 }
 0x131   : > { %3419 = vmatprep.mubr.bf16.mxu0 %v1933_v25  ;;  %3580 = vmatprep.mubr.bf16.mxu1 %v2204_v16  ;;  %v1937_v25 = vrot.slane %v7838_v42, 1  ;;  %v9802_v16 = vld [vmem:[#allocation2 + $0x7c] sm:$0xf]  ;;  %v9536_v42 = vld [vmem:[#allocation2 + $0x8c] ss:$0 sps:$4 sm:$0x11]  }
 0x132   : > { %v7839_v56 = vcombine.low %v975_v21, %v9802_v16  ;;  %v1773_v39 = vshll.u32 %v10721_v28, 16  ;;  %v1941_v21 = vrot.slane %v10721_v28, 1  ;;  %v10754_v28 = vcombine.low %v1003_v13, %v1004_v14  ;;  %v1006_v36 = vld [vmem:[#allocation2 + $0xa0] sm:$0xf] }
 0x133   : > { %v2234_v16 = vrot.slane %v2232_v32, 1  ;;  %v9544_v13 = vld [vmem:[#allocation2 + $0xa4] ss:$0 sps:$4 sm:$0x11]   ;;  %v10763_v14 = vrot.slane %v1785_v60, 1  ;;  %v10767_v40 = vcombine.low %v1005_v1, %v1006_v36  ;;  %v13053_v1 = vrot.slane %v10567_v51, 4 }
 0x134   : > { %v1940_v24 = vrot.slane %v7839_v56, 1  ;;  %v10743_v18 = vrot.slane %v1773_v39, 1  ;;  %v10757_v56 = vld [vmem:[#allocation2 + $0x98] ss:$0 sps:$4 sm:$0x11]   ;;  %v2244_v63 = vshll.u32 %v10754_v28, 16 }
 0x135   : > { %v977_v39 = vld [vmem:[#allocation2 + $0x90] sm:$0xe]  ;;  %v10772_v60 = vld [vmem:[#allocation2 + $0xa4] ss:$0 sps:$4 sm:$0x11]   ;;  %v852_v7 = vsel %vm10248_vm8, %v13053_v1, %v851_v27  ;;  %v2261_v36 = vshll.u32 %v9544_v13, 16 }
 0x136   : > { %853 = vst [vmem:[#allocation2 + $0xc8] sm:$0x1] %v852_v7  ;;  %v9548_v27 = vld [vmem:[#allocation2 + $0xb0] ss:$0 sps:$4 sm:$0x11]   ;;  %v13054_v13 = vshrl.u32 %v10478_v54, 16 }
 0x138   : > { %3420 = vmatmul.mubr.bf16.gmra.mxu0 %v1740_v15  ;;  %3581 = vmatmul.mubr.bf16.gmra.mxu1 %v10668_v17  ;;  %v1752_v17 = vsel %vm1191_vm3, %v1747_v31, %v1751_v44  ;;  %v1007_v44 = vld [vmem:[#allocation2 + $0xa8] sm:$0xf]  ;;  %v2235_v31 = vor.u32 %v2234_v16, %v2230_v6  ;;  %v2242_v6 = vshrl.u32 %v10754_v28, 16  ;;  %v10809_v16 = vrot.slane %v2261_v36, 1 }
 0x139   : > { %3427 = vmatprep.mubr.bf16.mxu0 %v1936_v61  ;;  %v2237_v61 = vshll.u32 %v9536_v42, 16  ;;  %3588 = vmatprep.mubr.bf16.mxu1 %v2216_v62  ;;  %v1939_v42 = vsel %vm1448_vm9, %v1937_v25, %v1938_v12  ;;  %v2228_v25 = vsel %vm1191_vm3, %v2223_v41, %v2227_v22  ;;  %v1797_v22 = vshll.u32 %v10757_v56, 16 }
 0x13a   : > { %v10776_v41 = vcombine.low %v1007_v44, %v1008_v30  ;;  %v1009_v44 = vld [vmem:[#allocation2 + $0xb4] sm:$0xf]  ;;  %v1010_v30 = vld [vmem:[#allocation2 + $0xb8] sm:$0xf] }
 0x13b   : > { %v2239_v15 = vrot.slane %v2237_v61, 1  ;;  %v2249_v61 = vshll.u32 %v9540_v34, 16  ;;  %v2246_v34 = vrot.slane %v2244_v63, 1  ;;  %v1809_v63 = vshll.u32 %v10772_v60, 16 }
 0x13d   : > { %v8273_v62 = vpop.f32.mrf.mxu0 }
 0x13f   : > { %v8274_v12 = vpop.f32.mrf.mxu0 }
 0x140   : > { %3428 = vmatmul.mubr.bf16.gmra.mxu0 %v1752_v17  ;;  %v10770_v32 = vadd.f32 %v8274_v12, %v8273_v62  ;;  %v978_v17 = vld [vmem:[#allocation2 + $0x9c] sm:$0xe]  ;;  %3589 = vmatmul.mubr.bf16.gmra.mxu1 %v10694_v37  ;;  %v9805_v62 = vld [vmem:[#allocation2 + $0xa0] sm:$0xf]  ;;  %v10795_v37 = vrot.slane %v1797_v22, 1 }
 0x141   : > { %3435 = vmatprep.mubr.bf16.mxu0 %v1939_v42  ;;  %v8276_v49 = vpop.f32.mrf.mxu0  ;;  %v7841_v42 = vcombine.low %v977_v39, %v9804_v29  ;;  %3596 = vmatprep.mubr.bf16.mxu1 %v2228_v25  ;;  %v1942_v29 = vsel %vm1448_vm9, %v1940_v24, %v1941_v21  ;;  %v2256_v39 = vshll.u32 %v10767_v40, 16  ;;  %v7842_v51 = vcombine.low %v978_v17, %v9805_v62  ;;  %v10798_v21 = vld [vmem:[#allocation2 + $0xb0] ss:$0 sps:$4 sm:$0x11]   ;;  %v1011_v17 = vld [vmem:[#allocation2 + $0xc0] sm:$0xf] }
 0x142   : > { %v10789_v25 = vrot.slane %v2249_v61, 1  ;;  %v2268_v24 = vshll.u32 %v10776_v41, 16  ;;  %v2240_v61 = vsel %vm1191_vm3, %v2235_v31, %v2239_v15  ;;  %v10805_v62 = vcombine.low %v1009_v44, %v1010_v30  ;;  %v10817_v31 = vld [vmem:[#allocation2 + $0xbc] ss:$0 sps:$4 sm:$0x11]  }
 0x143   : > { %v8277_v48 = vpop.f32.mrf.mxu0  ;;  %v10793_v7 = vrot.slane %v7841_v42, 1  ;;  %v9552_v42 = vld [vmem:[#allocation2 + $0xbc] ss:$0 sps:$4 sm:$0x11]   ;;  %v10807_v22 = vrot.slane %v2256_v39, 1  ;;  %v10811_v58 = vrot.slane %v7842_v51, 1 }
 0x144   : > { %v10787_v12 = vadd.f32 %v8277_v48, %v8276_v49  ;;  %v1771_v49 = vor.u32 %v10710_v59, %v13054_v13  ;;  %v979_v48 = vld [vmem:[#allocation2 + $0xa8] sm:$0xe]  ;;  %v2273_v15 = vshll.u32 %v9548_v27, 16  ;;  %v10820_v30 = vrot.slane %v2268_v24, 1  ;;  %v980_v51 = vld [vmem:[#allocation2 + $0xb4] sm:$0xe] }
 0x145   : > { %v1821_v36 = vshll.u32 %v10798_v21, 16  ;;  %v2285_v54 = vshll.u32 %v9552_v42, 16  ;;  %v2247_v24 = vor.u32 %v2246_v34, %v2242_v6  ;;  %v7844_v42 = vcombine.low %v980_v51, %v10565_v19  ;;  %v981_v6 = vld [vmem:[#allocation2 + $0xc0] sm:$0xe] }
 0x146   : > { %v1776_v27 = vsel %vm1191_vm3, %v1771_v49, %v10743_v18  ;;  %v1833_v18 = vshll.u32 %v10817_v31, 16  ;;  %v10840_v52 = vrot.slane %v2273_v15, 1  ;;  %v10855_v15 = vld [vmem:[#allocation2 + $0xd4] ss:$0 sps:$4 sm:$0x11]  }
 0x148   : > { %3436 = vmatmul.mubr.bf16.gmra.mxu0 %v1764_v3  ;;  %v8385_v1 = vpop.f32.mrf.mxu1  ;;  %v10814_v3 = vrot.slane %v1809_v63, 1  ;;  %3597 = vmatmul.mubr.bf16.gmra.mxu1 %v10712_v57  ;;  %v2280_v63 = vshll.u32 %v10805_v62, 16  ;;  %v1945_v57 = vsel %vm1448_vm9, %v10750_v33, %v13055_v47  ;;  %v10844_v47 = vrot.slane %v1821_v36, 1 }
 0x149   : > { %3443 = vmatprep.mubr.bf16.mxu0 %v1942_v29  ;;  %v9806_v29 = vld [vmem:[#allocation2 + $0xac] sm:$0xf]  ;;  %3604 = vmatprep.mubr.bf16.mxu1 %v2240_v61  ;;  %v13057_v36 = vshrl.u32 %v10496_v23, 16  ;;  %v10870_v61 = vrot.slane %v1833_v18, 1 }
 0x14a   : > { %v8386_v44 = vpop.f32.mrf.mxu1  ;;  %v7843_v39 = vcombine.low %v979_v48, %v9806_v29  ;;  %v10830_v48 = vld [vmem:[#allocation2 + $0xc4] sm:$0xf]  ;;  %v1013_v29 = vld [vmem:[#allocation2 + $0xcc] sm:$0xf] }
 0x14b   : > { %v8387_v13 = vadd.f32 %v8386_v44, %v8385_v1  ;;  %v10853_v19 = vcombine.low %v1013_v29, %v10832_v55  ;;  %v1783_v51 = vor.u32 %v10729_v0, %v13057_v36  ;;  %v1031_v0 = vld [vmem:[#allocation2 + $0x18] sm:$0xe] }
 0x14c   : > { %v8388_v59 = vpop.f32.mrf.mxu1  ;;  %v10842_v44 = vrot.slane %v7843_v39, 1 }
 0x14d   : > { %v10835_v1 = vadd.f32 %v8387_v13, %v10770_v32  ;;  %v10847_v32 = vrot.slane %v2280_v63, 1  ;;  %v10850_v13 = vcombine.low %v1011_v17, %v10830_v48  ;;  %v1788_v18 = vsel %vm1191_vm3, %v1783_v51, %v10763_v14 }
 0x14e   : > { %v8389_v49 = vpop.f32.mrf.mxu1 }
 0x14f   : > { %13056 = vst [vmem:[#allocation17_spill] sm:$0xff] %v10835_v1  ;;  %v8390_v34 = vadd.f32 %v8389_v49, %v8388_v59  ;;  %v2252_v59 = vsel %vm1191_vm3, %v2247_v24, %v10789_v25  ;;  %v10868_v49 = vrot.slane %v7844_v42, 1  ;;  %v10874_v24 = vld [vmem:[#allocation2 + $0xc8] ss:$0 sps:$4 sm:$0x11]  }
 0x150   : > { %v8279_v38 = vpop.f32.mrf.mxu0  ;;  %3444 = vmatmul.mubr.bf16.gmra.mxu0 %v1776_v27  ;;  %v8391_v39 = vpop.f32.mrf.mxu1  ;;  %v10862_v27 = vrot.slane %v2285_v54, 1  ;;  %3605 = vmatmul.mubr.bf16.gmra.mxu1 %v10724_v9  ;;  %v13060_v9 = vshrl.u32 %v10767_v40, 16 }
 0x151   : > { %3451 = vmatprep.mubr.bf16.mxu0 %v1945_v57  ;;  %v10866_v17 = vadd.f32 %v8390_v34, %v10787_v12  ;;  %v7845_v57 = vcombine.low %v981_v6, %v10589_v8  ;;  %3612 = vmatprep.mubr.bf16.mxu1 %v2252_v59  ;;  %v2292_v12 = vshll.u32 %v10850_v13, 16  ;;  %v2304_v34 = vshll.u32 %v10853_v19, 16  ;;  %v10887_v6 = vld [vmem:[#allocation2 + $0xc8] ss:$0 sps:$4 sm:$0x11]  }
 0x152   : > { %v8280_v29 = vpop.f32.mrf.mxu0  ;;  %v8392_v33 = vpop.f32.mrf.mxu1  ;;  %v13059_v8 = vrot.slane %v10757_v56, 1  ;;  %v7878_v56 = vcombine.low %v1031_v0, %v10582_v2 }
 0x153   : > { %13058 = vst [vmem:[#allocation18_spill] sm:$0xff] %v10866_v17  ;;  %v8281_v23 = vadd.f32 %v8280_v29, %v8279_v38  ;;  %v8393_v25 = vadd.f32 %v8392_v33, %v8391_v39  ;;  %v2259_v33 = vor.u32 %v10807_v22, %v13060_v9  ;;  %v2309_v39 = vshll.u32 %v10855_v15, 16 }
 0x154   : > { %v8282_v54 = vpop.f32.mrf.mxu0  ;;  %v8394_v42 = vpop.f32.mrf.mxu1  ;;  %v1948_v38 = vsel %vm1448_vm9, %v10793_v7, %v13059_v8  ;;  %v2290_v29 = vshrl.u32 %v10850_v13, 16  ;;  %v10893_v63 = vrot.slane %v7845_v57, 1  ;;  %v1046_v7 = vld [vmem:[#allocation2 + $0xcc] sm:$0xe]  ;;  %v10896_v22 = vrot.slane %v2292_v12, 1 }
 0x155   : > { %v10890_v36 = vadd.f32 %v8393_v25, %v8281_v23  ;;  %v2302_v9 = vshrl.u32 %v10853_v19, 16  ;;  %v13061_v23 = vshrl.u32 %v10512_v4, 16  ;;  %v2264_v57 = vsel %vm1191_vm3, %v2259_v33, %v10809_v16 }
 0x156   : > { %v8283_v59 = vpop.f32.mrf.mxu0  ;;  %v8395_v51 = vpop.f32.mrf.mxu1  ;;  %v10904_v2 = vrot.slane %v2304_v34, 1  ;;  %v10906_v0 = vrot.slane %v2309_v39, 1  ;;  %v2297_v12 = vshll.u32 %v10874_v24, 16  ;;  %v2423_v16 = vrot.slane %v10855_v15, 1 }
 0x157   : > { %v8284_v14 = vadd.f32 %v8283_v59, %v8282_v54  ;;  %v8396_v8 = vadd.f32 %v8395_v51, %v8394_v42  ;;  %v1795_v25 = vor.u32 %v10748_v43, %v13061_v23  ;;  %v1959_v43 = vrot.slane %v10887_v6, 1 }
 0x158   : > { %v8285_v17 = vpop.f32.mrf.mxu0  ;;  %3452 = vmatmul.mubr.bf16.gmra.mxu0 %v1788_v18  ;;  %v8397_v1 = vpop.f32.mrf.mxu1  ;;  %v10911_v18 = vrot.slane %v7878_v56, 1  ;;  %3613 = vmatmul.mubr.bf16.gmra.mxu1 %v10754_v28  ;;  %v1845_v39 = vshll.u32 %v10887_v6, 16  ;;  %v9808_v6 = vld [vmem:[#allocation2 + $0x34] sm:$0xf] }
 0x159   : > { %3459 = vmatprep.mubr.bf16.mxu0 %v1948_v38  ;;  %v10908_v54 = vadd.f32 %v8396_v8, %v8284_v14  ;;  %v7893_v38 = vcombine.low %v1046_v7, %v10832_v55  ;;  %3620 = vmatprep.mubr.bf16.mxu1 %v2264_v57  ;;  %v1800_v56 = vsel %vm1191_vm3, %v1795_v25, %v10795_v37  ;;  %v13062_v55 = vshrl.u32 %v10776_v41, 16 }
 0x15a   : > { %v8286_v42 = vpop.f32.mrf.mxu0  ;;  %v8398_v4 = vpop.f32.mrf.mxu1  ;;  %v13063_v8 = vrot.slane %v10772_v60, 1 }
 0x15b   : > { %v8287_v59 = vadd.f32 %v8286_v42, %v8285_v17  ;;  %v8399_v34 = vadd.f32 %v8398_v4, %v8397_v1  ;;  %v2422_v14 = vrot.slane %v7893_v38, 1  ;;  %v2271_v17 = vor.u32 %v10820_v30, %v13062_v55 }
 0x15c   : > { %v8288_v33 = vpop.f32.mrf.mxu0  ;;  %v8400_v51 = vpop.f32.mrf.mxu1  ;;  %v1951_v1 = vsel %vm1448_vm9, %v10811_v58, %v13063_v8  ;;  %v13064_v30 = vshrl.u32 %v10531_v50, 16  ;;  %v13065_v50 = vshrl.u32 %v10805_v62, 16  ;;  %v13066_v55 = vrot.slane %v10798_v21, 1 }
 0x15d   : > { %v10923_v7 = vadd.f32 %v8399_v34, %v8287_v59  ;;  %v10930_v15 = vsel %vm1448_vm9, %v2422_v14, %v2423_v16  ;;  %v2276_v60 = vsel %vm1191_vm3, %v2271_v17, %v10840_v52 }
 0x15e   : > { %v8289_v28 = vpop.f32.mrf.mxu0  ;;  %v8401_v57 = vpop.f32.mrf.mxu1  ;;  %v1807_v25 = vor.u32 %v10657_v11, %v13064_v30  ;;  %v2283_v11 = vor.u32 %v10847_v32, %v13065_v50  ;;  %v1954_v17 = vsel %vm1448_vm9, %v10842_v44, %v13066_v55 }
 0x15f   : > { %v8290_v23 = vadd.f32 %v8289_v28, %v8288_v33  ;;  %v8402_v42 = vadd.f32 %v8401_v57, %v8400_v51 }
 0x160   : > { %v8291_v38 = vpop.f32.mrf.mxu0  ;;  %3460 = vmatmul.mubr.bf16.gmra.mxu0 %v1800_v56  ;;  %v8403_v37 = vpop.f32.mrf.mxu1  ;;  %3621 = vmatmul.mubr.bf16.gmra.mxu1 %v10767_v40  ;;  %v1812_v51 = vsel %vm1191_vm3, %v1807_v25, %v10814_v3  ;;  %v13067_v3 = vshrl.u32 %v10553_v46, 16  ;;  %v2288_v32 = vsel %vm1191_vm3, %v2283_v11, %v10862_v27  ;;  %v2295_v46 = vor.u32 %v10896_v22, %v2290_v29 }
 0x161   : > { %3467 = vmatprep.mubr.bf16.mxu0 %v1951_v1  ;;  %v10937_v59 = vadd.f32 %v8402_v42, %v8290_v23  ;;  %3628 = vmatprep.mubr.bf16.mxu1 %v2276_v60  ;;  %v1847_v27 = vrot.slane %v1845_v39, 1  ;;  %v13069_v22 = vshrl.u32 %v10570_v20, 16 }
 0x162   : > { %v8292_v58 = vpop.f32.mrf.mxu0  ;;  %v8404_v16 = vpop.f32.mrf.mxu1  ;;  %v1819_v57 = vor.u32 %v10661_v45, %v13067_v3  ;;  %v2299_v45 = vrot.slane %v2297_v12, 1 }
 0x163   : > { %v8293_v4 = vadd.f32 %v8292_v58, %v8291_v38  ;;  %v8405_v34 = vadd.f32 %v8404_v16, %v8403_v37  ;;  %v9577_v58 = vld [vmem:[#allocation8 + $0x78] sm:$0xff]   ;;  %v1831_v12 = vor.u32 %v10673_v26, %v13069_v22  ;;  %v2307_v26 = vor.u32 %v10904_v2, %v2302_v9  ;;  %v9807_v2 = vld [vmem:[#allocation2 + $0x28] sm:$0xf]  ;;  %v1034_v22 = vld [vmem:[#allocation2 + $0x3c] sm:$0xe] }
 0x164   : > { %v8294_v33 = vpop.f32.mrf.mxu0  ;;  %v8406_v14 = vpop.f32.mrf.mxu1  ;;  %v1824_v60 = vsel %vm1191_vm3, %v1819_v57, %v10844_v47  ;;  %8729 = vmatprep.subr.bf16.mxu1 %v9577_v58  ;;  %v2300_v39 = vsel %vm1191_vm3, %v2295_v46, %v2299_v45 }
 0x165   : > { %v10945_v56 = vadd.f32 %v8405_v34, %v8293_v4  ;;  %v9578_v4 = vld [vmem:[#allocation8 + $0x38] sm:$0xff]   ;;  %v13068_v34 = vrot.slane %v10817_v31, 1  ;;  %v1836_v20 = vsel %vm1191_vm3, %v1831_v12, %v10870_v61  ;;  %v13070_v61 = vshrl.u32 %v10592_v10, 16  ;;  %v1035_v12 = vld [vmem:[#allocation2 + $0x48] sm:$0xe] }
 0x166   : > { %v8295_v52 = vpop.f32.mrf.mxu0  ;;  %v8407_v28 = vpop.f32.mrf.mxu1  ;;  %8730 = vmatpush3.bf16.msra.mxu1 %v9578_v4  ;;  %v2312_v9 = vsel %vm1191_vm3, %v2307_v26, %v10906_v0  ;;  %v9579_v0 = vld [vmem:[#allocation8 + $0x70] sm:$0xff]  }
 0x167   : > { %v8296_v40 = vadd.f32 %v8295_v52, %v8294_v33  ;;  %v8408_v8 = vadd.f32 %v8407_v28, %v8406_v14  ;;  %v1957_v33 = vsel %vm1448_vm9, %v10868_v49, %v13068_v34  ;;  %v1033_v28 = vld [vmem:[#allocation2 + $0x30] sm:$0xe]  ;;  %8731 = vmatprep.subr.bf16.mxu1 %v9579_v0 }
 0x168   : > { %v8297_v1 = vpop.f32.mrf.mxu0  ;;  %3468 = vmatmul.mubr.bf16.gmra.mxu0 %v1812_v51  ;;  %v8409_v23 = vpop.f32.mrf.mxu1  ;;  %3629 = vmatmul.mubr.bf16.gmra.mxu1 %v10776_v41 }
 0x169   : > { %3475 = vmatprep.mubr.bf16.mxu0 %v1954_v17  ;;  %v10956_v42 = vadd.f32 %v8408_v8, %v8296_v40  ;;  %3636 = vmatprep.mubr.bf16.mxu1 %v2288_v32  ;;  %v1032_v40 = vld [vmem:[#allocation2 + $0x24] sm:$0xe] }
 0x16a   : > { %v8298_v21 = vpop.f32.mrf.mxu0  ;;  %v8410_v37 = vpop.f32.mrf.mxu1 }
 0x16b   : > { %v8299_v38 = vadd.f32 %v8298_v21, %v8297_v1  ;;  %v8411_v44 = vadd.f32 %v8410_v37, %v8409_v23  ;;  %v1843_v37 = vor.u32 %v10682_v53, %v13070_v61 }
 0x16c   : > { %v8300_v30 = vpop.f32.mrf.mxu0  ;;  %v8412_v25 = vpop.f32.mrf.mxu1 }
 0x16d   : > { %v10966_v16 = vadd.f32 %v8411_v44, %v8299_v38  ;;  %v7879_v44 = vcombine.low %v1032_v40, %v9807_v2  ;;  %v1848_v53 = vsel %vm1191_vm3, %v1843_v37, %v1847_v27 }
 0x16e   : > { %v8301_v41 = vpop.f32.mrf.mxu0  ;;  %v8413_v47 = vpop.f32.mrf.mxu1 }
 0x16f   : > { %v8302_v14 = vadd.f32 %v8301_v41, %v8300_v30  ;;  %v8414_v51 = vadd.f32 %v8413_v47, %v8412_v25  ;;  %v7880_v30 = vcombine.low %v1033_v28, %v9808_v6  ;;  %v2380_v58 = vrot.slane %v7879_v44, 1  ;;  %v9580_v41 = vld [vmem:[#allocation8 + $0x30] sm:$0xff]   ;;  %v9809_v28 = vld [vmem:[#allocation2 + $0x40] sm:$0xf] }
 0x170   : > { %v8303_v50 = vpop.f32.mrf.mxu0  ;;  %3476 = vmatmul.mubr.bf16.gmra.mxu0 %v1824_v60  ;;  %v8415_v29 = vpop.f32.mrf.mxu1  ;;  %3637 = vmatmul.mubr.bf16.gmra.mxu1 %v10805_v62  ;;  %v1960_v62 = vsel %vm1448_vm9, %v10893_v63, %v1959_v43 }
 0x171   : > { %3483 = vmatprep.mubr.bf16.mxu0 %v1957_v33  ;;  %v10976_v11 = vadd.f32 %v8414_v51, %v8302_v14  ;;  %3644 = vmatprep.mubr.bf16.mxu1 %v2300_v39  ;;  %v2383_v4 = vrot.slane %v7880_v30, 1  ;;  %v13071_v14 = vrot.slane %v10587_v5, 1 }
 0x172   : > { %v8304_v31 = vpop.f32.mrf.mxu0  ;;  %v8416_v49 = vpop.f32.mrf.mxu1  ;;  %8732 = vmatpush3.bf16.msra.mxu1 %v9580_v41  ;;  %v9813_v41 = vld [vmem:[#allocation2 + $0x58] sm:$0xf] }
 0x173   : > { %v8305_v52 = vadd.f32 %v8304_v31, %v8303_v50  ;;  %v8417_v55 = vadd.f32 %v8416_v49, %v8415_v29  ;;  %v2379_v47 = vsel %vm1448_vm9, %v10911_v18, %v13071_v14  ;;  %v9581_v14 = vld [vmem:[#allocation8 + $0x68] sm:$0xff]  }
 0x174   : > { %v8306_v17 = vpop.f32.mrf.mxu0  ;;  %v8418_v8 = vpop.f32.mrf.mxu1  ;;  %8733 = vmatprep.subr.bf16.mxu1 %v9581_v14 }
 0x175   : > { %v10984_v1 = vadd.f32 %v8417_v55, %v8305_v52 }
 0x176   : > { %v8307_v23 = vpop.f32.mrf.mxu0  ;;  %v8419_v57 = vpop.f32.mrf.mxu1 }
 0x177   : > { %v8308_v3 = vadd.f32 %v8307_v23, %v8306_v17  ;;  %v8420_v32 = vadd.f32 %v8419_v57, %v8418_v8  ;;  %v13072_v17 = vrot.slane %v10599_v35, 1  ;;  %v7881_v8 = vcombine.low %v1034_v22, %v9809_v28  ;;  %v13073_v23 = vld [vmem:[#allocation16_spill] sm:$0xff]  ;;  %v9810_v57 = vld [vmem:[#allocation2 + $0x4c] sm:$0xf] }
 0x178   : > { %v8309_v21 = vpop.f32.mrf.mxu0  ;;  %3484 = vmatmul.mubr.bf16.gmra.mxu0 %v1836_v20  ;;  %v8421_v38 = vpop.f32.mrf.mxu1  ;;  %3645 = vmatmul.mubr.bf16.gmra.mxu1 %v10850_v13 }
 0x179   : > { %3491 = vmatprep.mubr.bf16.mxu0 %v1960_v62  ;;  %v10995_v25 = vadd.f32 %v8420_v32, %v8308_v3  ;;  %3652 = vmatprep.mubr.bf16.mxu1 %v2312_v9  ;;  %v2382_v40 = vsel %vm1448_vm9, %v2380_v58, %v13072_v17  ;;  %v13074_v62 = vrot.slane %v13073_v23, 1  ;;  %v7882_v32 = vcombine.low %v1035_v12, %v9810_v57  ;;  %v9811_v9 = vld [vmem:[#allocation2 + $0x44] ss:$0 sps:$4 sm:$0x11]   ;;  %v1038_v23 = vld [vmem:[#allocation2 + $0x6c] sm:$0xe] }
 0x17a   : > { %v8310_v63 = vpop.f32.mrf.mxu0  ;;  %v8422_v60 = vpop.f32.mrf.mxu1  ;;  %v2386_v35 = vrot.slane %v7881_v8, 1  ;;  %v2387_v2 = vrot.slane %v9811_v9, 1  ;;  %v9816_v8 = vld [vmem:[#allocation2 + $0x68] ss:$0 sps:$4 sm:$0x11]  }
 0x17b   : > { %v8311_v43 = vadd.f32 %v8310_v63, %v8309_v21  ;;  %v8423_v46 = vadd.f32 %v8422_v60, %v8421_v38  ;;  %v2385_v3 = vsel %vm1448_vm9, %v2383_v4, %v13074_v62  ;;  %v2389_v30 = vrot.slane %v7882_v32, 1  ;;  %v9812_v63 = vld [vmem:[#allocation2 + $0x50] ss:$0 sps:$4 sm:$0x11]   ;;  %v1036_v60 = vld [vmem:[#allocation2 + $0x54] sm:$0xe] }
 0x17c   : > { %v8312_v45 = vpop.f32.mrf.mxu0  ;;  %v8424_v10 = vpop.f32.mrf.mxu1  ;;  %v2388_v0 = vsel %vm1448_vm9, %v2386_v35, %v2387_v2  ;;  %v1039_v57 = vld [vmem:[#allocation2 + $0x78] sm:$0xe] }
 0x17d   : > { %v10999_v34 = vadd.f32 %v8423_v46, %v8311_v43  ;;  %v2390_v43 = vrot.slane %v9812_v63, 1 }
 0x17e   : > { %v8313_v33 = vpop.f32.mrf.mxu0  ;;  %v8425_v13 = vpop.f32.mrf.mxu1 }
 0x17f   : > { %v8314_v51 = vadd.f32 %v8313_v33, %v8312_v45  ;;  %v8426_v50 = vadd.f32 %v8425_v13, %v8424_v10  ;;  %v1037_v10 = vld [vmem:[#allocation2 + $0x60] sm:$0xe]  ;;  %v7883_v33 = vcombine.low %v1036_v60, %v9813_v41 }
 0x180   : > { %v8315_v29 = vpop.f32.mrf.mxu0  ;;  %3492 = vmatmul.mubr.bf16.gmra.mxu0 %v1848_v53  ;;  %v8427_v27 = vpop.f32.mrf.mxu1  ;;  %3653 = vmatmul.mubr.bf16.gmra.mxu1 %v10853_v19 }
 0x181   : > { %9217 = vmatprep.mubr.bf16.mxu0 %v2379_v47  ;;  %v11005_v39 = vadd.f32 %v8426_v50, %v8314_v51  ;;  %v9582_v47 = vld [vmem:[#allocation8 + $0x28] sm:$0xff]   ;;  %v2391_v50 = vsel %vm1448_vm9, %v2389_v30, %v2390_v43 }
 0x182   : > { %v8316_v31 = vpop.f32.mrf.mxu0  ;;  %v8428_v49 = vpop.f32.mrf.mxu1  ;;  %8734 = vmatpush3.bf16.msra.mxu1 %v9582_v47  ;;  %v1040_v47 = vld [vmem:[#allocation2 + $0x84] sm:$0xe] }
 0x183   : > { %v8317_v52 = vadd.f32 %v8316_v31, %v8315_v29  ;;  %v8429_v5 = vadd.f32 %v8428_v49, %v8427_v27  ;;  %v9814_v29 = vld [vmem:[#allocation2 + $0x64] sm:$0xf] }
 0x184   : > { %v8318_v18 = vpop.f32.mrf.mxu0  ;;  %v8430_v55 = vpop.f32.mrf.mxu1  ;;  %v7884_v22 = vcombine.low %v1037_v10, %v9814_v29  ;;  %v1041_v29 = vld [vmem:[#allocation2 + $0x90] sm:$0xe] }
 0x185   : > { %v11011_v20 = vadd.f32 %v8429_v5, %v8317_v52  ;;  %v2392_v5 = vrot.slane %v7883_v33, 1  ;;  %v9820_v33 = vld [vmem:[#allocation2 + $0x80] ss:$0 sps:$4 sm:$0x11]  }
 0x186   : > { %v8319_v26 = vpop.f32.mrf.mxu0  ;;  %v8431_v19 = vpop.f32.mrf.mxu1  ;;  %v2395_v28 = vrot.slane %v7884_v22, 1  ;;  %v2402_v14 = vrot.slane %v9820_v33, 1 }
 0x187   : > { %v8320_v21 = vadd.f32 %v8319_v26, %v8318_v18  ;;  %v8432_v38 = vadd.f32 %v8431_v19, %v8430_v55  ;;  %v9815_v18 = vld [vmem:[#allocation2 + $0x5c] ss:$0 sps:$4 sm:$0x11]   ;;  %v2396_v26 = vrot.slane %v9816_v8, 1  ;;  %v9822_v8 = vld [vmem:[#allocation2 + $0x94] sm:$0xf] }
 0x188   : > { %v8321_v61 = vpop.f32.mrf.mxu0  ;;  %9218 = vmatmul.mubr.bf16.vlgmr.msra.gmra.mxu0 %v2382_v40  ;;  %v8433_v37 = vpop.f32.mrf.mxu1  ;;  %v2393_v55 = vrot.slane %v9815_v18, 1  ;;  %v9584_v18 = vld [vmem:[#allocation8 + $0x20] sm:$0xff]  }
 0x189   : > { %9221 = vmatprep.mubr.bf16.mxu0 %v2385_v3  ;;  %v11016_v44 = vadd.f32 %v8432_v38, %v8320_v21  ;;  %v2397_v2 = vsel %vm1448_vm9, %v2395_v28, %v2396_v26  ;;  %v7888_v26 = vcombine.low %v1041_v29, %v9822_v8 }
 0x18a   : > { %v8322_v6 = vpop.f32.mrf.mxu0  ;;  %v8434_v45 = vpop.f32.mrf.mxu1  ;;  %v2394_v38 = vsel %vm1448_vm9, %v2392_v5, %v2393_v55  ;;  %v9583_v5 = vld [vmem:[#allocation8 + $0x60] sm:$0xff]  }
 0x18b   : > { %v8323_v46 = vadd.f32 %v8322_v6, %v8321_v61  ;;  %v8435_v53 = vadd.f32 %v8434_v45, %v8433_v37  ;;  %v9817_v61 = vld [vmem:[#allocation2 + $0x70] sm:$0xf]  ;;  %v9818_v6 = vld [vmem:[#allocation2 + $0x7c] sm:$0xf]  ;;  %8735 = vmatprep.subr.bf16.mxu1 %v9583_v5 }
 0x18c   : > { %v8324_v58 = vpop.f32.mrf.mxu0  ;;  %v8436_v4 = vpop.f32.mrf.mxu1  ;;  %v7885_v37 = vcombine.low %v1038_v23, %v9817_v61  ;;  %v7886_v30 = vcombine.low %v1039_v57, %v9818_v6  ;;  %8736 = vmatpush3.bf16.msra.mxu1 %v9584_v18 }
 0x18d   : > { %v11019_v51 = vadd.f32 %v8435_v53, %v8323_v46  ;;  %v9819_v53 = vld [vmem:[#allocation2 + $0x74] ss:$0 sps:$4 sm:$0x11]  }
 0x18e   : > { %v8325_v13 = vpop.f32.mrf.mxu0  ;;  %v8437_v12 = vpop.f32.mrf.mxu1  ;;  %v2398_v10 = vrot.slane %v7885_v37, 1  ;;  %v2401_v41 = vrot.slane %v7886_v30, 1  ;;  %v1042_v30 = vld [vmem:[#allocation2 + $0x9c] sm:$0xe] }
 0x18f   : > { %v8326_v27 = vadd.f32 %v8325_v13, %v8324_v58  ;;  %v8438_v31 = vadd.f32 %v8437_v12, %v8436_v4  ;;  %v2399_v58 = vrot.slane %v9819_v53, 1 }
 0x190   : > { %v8327_v52 = vpop.f32.mrf.mxu0  ;;  %9222 = vmatmul.mubr.bf16.gmra.mxu0 %v2388_v0  ;;  %v8439_v49 = vpop.f32.mrf.mxu1  ;;  %v2403_v28 = vsel %vm1448_vm9, %v2401_v41, %v2402_v14 }
 0x191   : > { %9225 = vmatprep.mubr.bf16.mxu0 %v2391_v50  ;;  %v11022_v17 = vadd.f32 %v8438_v31, %v8326_v27  ;;  %v2400_v31 = vsel %vm1448_vm9, %v2398_v10, %v2399_v58  ;;  %v9825_v58 = vld [vmem:[#allocation2 + $0xa0] sm:$0xf] }
 0x192   : > { %v8328_v40 = vpop.f32.mrf.mxu0  ;;  %v8440_v3 = vpop.f32.mrf.mxu1 }
 0x193   : > { %v8329_v62 = vadd.f32 %v8328_v40, %v8327_v52  ;;  %v8441_v32 = vadd.f32 %v8440_v3, %v8439_v49  ;;  %v9821_v52 = vld [vmem:[#allocation2 + $0x88] sm:$0xf] }
 0x194   : > { %v8330_v21 = vpop.f32.mrf.mxu0  ;;  %v8442_v19 = vpop.f32.mrf.mxu1  ;;  %v7887_v49 = vcombine.low %v1040_v47, %v9821_v52  ;;  %v9826_v47 = vld [vmem:[#allocation2 + $0xac] sm:$0xf]  ;;  %v9827_v52 = vld [vmem:[#allocation2 + $0xa4] ss:$0 sps:$4 sm:$0x11]  }
 0x195   : > { %v11025_v35 = vadd.f32 %v8441_v32, %v8329_v62 }
 0x196   : > { %v8331_v9 = vpop.f32.mrf.mxu0  ;;  %v8443_v43 = vpop.f32.mrf.mxu1 }
 0x197   : > { %v8332_v63 = vadd.f32 %v8331_v9, %v8330_v21  ;;  %v8444_v60 = vadd.f32 %v8443_v43, %v8442_v19  ;;  %v2404_v21 = vrot.slane %v7887_v49, 1  ;;  %v9823_v19 = vld [vmem:[#allocation2 + $0x8c] ss:$0 sps:$4 sm:$0x11]   ;;  %v2407_v9 = vrot.slane %v7888_v26, 1 }
 0x198   : > { %v8333_v46 = vpop.f32.mrf.mxu0  ;;  %9226 = vmatmul.mubr.bf16.gmra.mxu0 %v2394_v38  ;;  %v8445_v45 = vpop.f32.mrf.mxu1  ;;  %v2405_v38 = vrot.slane %v9823_v19, 1  ;;  %v2411_v49 = vrot.slane %v9827_v52, 1  ;;  %v1044_v26 = vld [vmem:[#allocation2 + $0xb4] sm:$0xe] }
 0x199   : > { %9229 = vmatprep.mubr.bf16.mxu0 %v2397_v2  ;;  %v11028_v4 = vadd.f32 %v8444_v60, %v8332_v63  ;;  %v9824_v2 = vld [vmem:[#allocation2 + $0x98] ss:$0 sps:$4 sm:$0x11]   ;;  %v1043_v60 = vld [vmem:[#allocation2 + $0xa8] sm:$0xe] }
 0x19a   : > { %v8334_v0 = vpop.f32.mrf.mxu0  ;;  %v8446_v50 = vpop.f32.mrf.mxu1  ;;  %v2408_v6 = vrot.slane %v9824_v2, 1  ;;  %v2406_v53 = vsel %vm1448_vm9, %v2404_v21, %v2405_v38  ;;  %v9829_v38 = vld [vmem:[#allocation2 + $0xb8] sm:$0xf]  ;;  %v9586_v2 = vld [vmem:[#allocation8 + $0x18] sm:$0xff]  }
 0x19b   : > { %v8335_v13 = vadd.f32 %v8334_v0, %v8333_v46  ;;  %v8447_v22 = vadd.f32 %v8446_v50, %v8445_v45  ;;  %v7889_v0 = vcombine.low %v1042_v30, %v9825_v58 }
 0x19c   : > { %v8336_v27 = vpop.f32.mrf.mxu0  ;;  %v8448_v12 = vpop.f32.mrf.mxu1  ;;  %v2409_v14 = vsel %vm1448_vm9, %v2407_v9, %v2408_v6  ;;  %v9585_v9 = vld [vmem:[#allocation8 + $0x58] sm:$0xff]  }
 0x19d   : > { %v11031_v55 = vadd.f32 %v8447_v22, %v8335_v13  ;;  %v7890_v13 = vcombine.low %v1043_v60, %v9826_v47  ;;  %8737 = vmatprep.subr.bf16.mxu1 %v9585_v9 }
 0x19e   : > { %v8337_v40 = vpop.f32.mrf.mxu0  ;;  %v8449_v62 = vpop.f32.mrf.mxu1  ;;  %8738 = vmatpush3.bf16.msra.mxu1 %v9586_v2 }
 0x19f   : > { %v8338_v23 = vadd.f32 %v8337_v40, %v8336_v27  ;;  %v8450_v3 = vadd.f32 %v8449_v62, %v8448_v12  ;;  %v2413_v40 = vrot.slane %v7890_v13, 1 }
 0x1a0   : > { %v8339_v57 = vpop.f32.mrf.mxu0  ;;  %9230 = vmatmul.mubr.bf16.gmra.mxu0 %v2400_v31  ;;  %v8451_v32 = vpop.f32.mrf.mxu1  ;;  %v2410_v31 = vrot.slane %v7889_v0, 1  ;;  %v9830_v0 = vld [vmem:[#allocation2 + $0xbc] ss:$0 sps:$4 sm:$0x11]  }
 0x1a1   : > { %9233 = vmatprep.mubr.bf16.mxu0 %v2403_v28  ;;  %v11034_v61 = vadd.f32 %v8450_v3, %v8338_v23  ;;  %v9828_v28 = vld [vmem:[#allocation2 + $0xb0] ss:$0 sps:$4 sm:$0x11]   ;;  %v1045_v3 = vld [vmem:[#allocation2 + $0xc0] sm:$0xe] }
 0x1a2   : > { %v8340_v37 = vpop.f32.mrf.mxu0  ;;  %v8452_v43 = vpop.f32.mrf.mxu1  ;;  %v2414_v8 = vrot.slane %v9828_v28, 1  ;;  %v2412_v19 = vsel %vm1448_vm9, %v2410_v31, %v2411_v49 }
 0x1a3   : > { %v8341_v63 = vadd.f32 %v8340_v37, %v8339_v57  ;;  %v8453_v46 = vadd.f32 %v8452_v43, %v8451_v32  ;;  %v7891_v37 = vcombine.low %v1044_v26, %v9829_v38  ;;  %v7892_v43 = vcombine.low %v1045_v3, %v10830_v48  ;;  %v9587_v38 = vld [vmem:[#allocation8 + $0x50] sm:$0xff]  }
 0x1a4   : > { %v8342_v45 = vpop.f32.mrf.mxu0  ;;  %v8454_v10 = vpop.f32.mrf.mxu1  ;;  %8739 = vmatprep.subr.bf16.mxu1 %v9587_v38 }
 0x1a5   : > { %v11037_v41 = vadd.f32 %v8453_v46, %v8341_v63  ;;  %v2415_v63 = vsel %vm1448_vm9, %v2413_v40, %v2414_v8  ;;  %v2416_v58 = vrot.slane %v7891_v37, 1  ;;  %v2419_v13 = vrot.slane %v7892_v43, 1  ;;  %v9588_v37 = vld [vmem:[#allocation8 + $0x10] sm:$0xff]  }
 0x1a6   : > { %v8343_v33 = vpop.f32.mrf.mxu0  ;;  %v8455_v29 = vpop.f32.mrf.mxu1  ;;  %8740 = vmatpush3.bf16.msra.mxu1 %v9588_v37 }
 0x1a7   : > { %v8344_v50 = vadd.f32 %v8343_v33, %v8342_v45  ;;  %v8456_v22 = vadd.f32 %v8455_v29, %v8454_v10  ;;  %v2417_v33 = vrot.slane %v9830_v0, 1 }
 0x1a8   : > { %v8345_v27 = vpop.f32.mrf.mxu0  ;;  %9234 = vmatmul.mubr.bf16.gmra.mxu0 %v2406_v53  ;;  %v8457_v12 = vpop.f32.mrf.mxu1 }
 0x1a9   : > { %9237 = vmatprep.mubr.bf16.mxu0 %v2409_v14  ;;  %v11040_v5 = vadd.f32 %v8456_v22, %v8344_v50  ;;  %v2420_v50 = vrot.slane %v10874_v24, 1  ;;  %v2418_v31 = vsel %vm1448_vm9, %v2416_v58, %v2417_v33 }
 0x1aa   : > { %v8346_v18 = vpop.f32.mrf.mxu0  ;;  %v8458_v62 = vpop.f32.mrf.mxu1 }
 0x1ab   : > { %v8347_v23 = vadd.f32 %v8346_v18, %v8345_v27  ;;  %v8459_v57 = vadd.f32 %v8458_v62, %v8457_v12  ;;  %v2421_v18 = vsel %vm1448_vm9, %v2419_v13, %v2420_v50 }
 0x1ac   : > { %v8348_v32 = vpop.f32.mrf.mxu0  ;;  %v8460_v21 = vpop.f32.mrf.mxu1 }
 0x1ad   : > { %v11043_v6 = vadd.f32 %v8459_v57, %v8347_v23 }
 0x1ae   : > { %v8349_v30 = vpop.f32.mrf.mxu0  ;;  %v8461_v46 = vpop.f32.mrf.mxu1 }
 0x1af   : > { %v8350_v60 = vadd.f32 %v8349_v30, %v8348_v32  ;;  %v8462_v45 = vadd.f32 %v8461_v46, %v8460_v21 }
 0x1b0   : > { %v8351_v10 = vpop.f32.mrf.mxu0  ;;  %9238 = vmatmul.mubr.bf16.gmra.mxu0 %v2412_v19  ;;  %v8463_v53 = vpop.f32.mrf.mxu1 }
 0x1b1   : > { %9241 = vmatprep.mubr.bf16.mxu0 %v2415_v63  ;;  %v11047_v14 = vadd.f32 %v8462_v45, %v8350_v60 }
 0x1b2   : > { %v8352_v47 = vpop.f32.mrf.mxu0  ;;  %v8464_v48 = vpop.f32.mrf.mxu1 }
 0x1b3   : > { %v8353_v29 = vadd.f32 %v8352_v47, %v8351_v10  ;;  %v8465_v22 = vadd.f32 %v8464_v48, %v8463_v53 }
 0x1b4   : > { %v8354_v27 = vpop.f32.mrf.mxu0  ;;  %v8466_v12 = vpop.f32.mrf.mxu1 }
 0x1b5   : > { %v11051_v52 = vadd.f32 %v8465_v22, %v8353_v29 }
 0x1b6   : > { %v8355_v49 = vpop.f32.mrf.mxu0  ;;  %v8467_v28 = vpop.f32.mrf.mxu1 }
 0x1b7   : > { %v8356_v40 = vadd.f32 %v8355_v49, %v8354_v27  ;;  %v8468_v8 = vadd.f32 %v8467_v28, %v8466_v12  ;;  %v13076_v28 = vld [vmem:[#allocation17_spill] sm:$0xff] }
 0x1b8   : > { %v8357_v26 = vpop.f32.mrf.mxu0  ;;  %9242 = vmatmul.mubr.bf16.gmra.mxu0 %v2418_v31  ;;  %v8469_v23 = vpop.f32.mrf.mxu1 }
 0x1b9   : > { %9245 = vmatprep.mubr.bf16.mxu0 %v2421_v18  ;;  %v11054_v24 = vadd.f32 %v8468_v8, %v8356_v40  ;;  %v9591_v40 = vld [vmem:[#allocation8 + $0xf8] sm:$0xff]  }
 0x1ba   : > { %v8358_v62 = vpop.f32.mrf.mxu0  ;;  %v8470_v57 = vpop.f32.mrf.mxu1  ;;  %8841 = vmatprep.subr.bf16.mxu0 %v9591_v40  ;;  %v9597_v40 = vld [vmem:[#allocation8 + $0xe0] sm:$0xff]  }
 0x1bb   : > { %v8359_v3 = vadd.f32 %v8358_v62, %v8357_v26  ;;  %v8471_v32 = vadd.f32 %v8470_v57, %v8469_v23  ;;  %v9592_v23 = vld [vmem:[#allocation8 + $0xb8] sm:$0xff]  }
 0x1bc   : > { %v8360_v21 = vpop.f32.mrf.mxu0  ;;  %v8472_v19 = vpop.f32.mrf.mxu1  ;;  %8842 = vmatpush3.bf16.msra.mxu0 %v9592_v23 }
 0x1bd   : > { %v11056_v9 = vadd.f32 %v8471_v32, %v8359_v3 }
 0x1be   : > { %v8361_v2 = vpop.f32.mrf.mxu0  ;;  %v8473_v63 = vpop.f32.mrf.mxu1 }
 0x1bf   : > { %v8362_v30 = vadd.f32 %v8361_v2, %v8360_v21  ;;  %v8474_v43 = vadd.f32 %v8473_v63, %v8472_v19  ;;  %v9593_v21 = vld [vmem:[#allocation8 + $0xf0] sm:$0xff]   ;;  %v13077_v19 = vld [vmem:[#allocation18_spill] sm:$0xff] }
 0x1c0   : > { %v8363_v60 = vpop.f32.mrf.mxu0  ;;  %9246 = vmatmul.mubr.bf16.gmra.mxu0 %v10930_v15  ;;  %v8475_v10 = vpop.f32.mrf.mxu1  ;;  %v9594_v2 = vld [vmem:[#allocation8 + $0xb0] sm:$0xff]   ;;  %8843 = vmatprep.subr.bf16.mxu0 %v9593_v21 }
 0x1c1   : > { %v11059_v46 = vadd.f32 %v8474_v43, %v8362_v30  ;;  %8844 = vmatpush3.bf16.msra.mxu0 %v9594_v2 }
 0x1c2   : > { %v8364_v45 = vpop.f32.mrf.mxu0  ;;  %v8476_v0 = vpop.f32.mrf.mxu1 }
 0x1c3   : > { %v8365_v53 = vadd.f32 %v8364_v45, %v8363_v60  ;;  %v8477_v33 = vadd.f32 %v8476_v0, %v8475_v10  ;;  %v9595_v45 = vld [vmem:[#allocation8 + $0xe8] sm:$0xff]  }
 0x1c4   : > { %v8366_v58 = vpop.f32.mrf.mxu0  ;;  %v8478_v13 = vpop.f32.mrf.mxu1  ;;  %8845 = vmatprep.subr.bf16.mxu0 %v9595_v45  ;;  %v9596_v0 = vld [vmem:[#allocation8 + $0xa8] sm:$0xff]  }
 0x1c5   : > { %v11061_v50 = vadd.f32 %v8477_v33, %v8365_v53  ;;  %8846 = vmatpush3.bf16.msra.mxu0 %v9596_v0 }
 0x1c6   : > { %v8367_v47 = vpop.f32.mrf.mxu0  ;;  %v8479_v22 = vpop.f32.mrf.mxu1  ;;  %8847 = vmatprep.subr.bf16.mxu0 %v9597_v40 }
 0x1c7   : > { %v8368_v29 = vadd.f32 %v8367_v47, %v8366_v58  ;;  %v8480_v27 = vadd.f32 %v8479_v22, %v8478_v13 }
 0x1c8   : > { %v8497_v48 = vpop.f32.mrf.mxu0  ;;  %v11063_v15 = vpop.f32.mrf.mxu1 }
 0x1c9   : > { %v11065_v49 = vadd.f32 %v8480_v27, %v8368_v29 }
 0x1ca   : > { %v8498_v12 = vpop.f32.mrf.mxu0  ;;  %v11070_v26 = vpop.f32.mrf.mxu1 }
 0x1cb   : > { %v8499_v31 = vadd.f32 %v8498_v12, %v8497_v48  ;;  %13075 = vst [vmem:[#allocation16_spill] sm:$0xff] %v11065_v49 }
 0x1cc   : > { %v8500_v18 = vpop.f32.mrf.mxu0  ;;  %v11072_v57 = vpop.f32.mrf.mxu1 }
 0x1cd   : > { %v11068_v8 = vadd.f32 %v8499_v31, %v13076_v28  ;;  %v9589_v31 = vld [vmem:[#allocation8 + $0x48] sm:$0xff]  }
 0x1ce   : > { %v8501_v62 = vpop.f32.mrf.mxu0  ;;  %v11077_v37 = vpop.f32.mrf.mxu1  ;;  %8741 = vmatprep.subr.bf16.mxu1 %v9589_v31 }
 0x1cf   : > { %v8502_v3 = vadd.f32 %v8501_v62, %v8500_v18  ;;  %v9590_v18 = vld [vmem:[#allocation8 + $0x8] sm:$0xff]   ;;  %v9598_v62 = vld [vmem:[#allocation8 + $0xa0] sm:$0xff]  }
 0x1d0   : > { %v8503_v32 = vpop.f32.mrf.mxu0  ;;  %v11079_v43 = vpop.f32.mrf.mxu1  ;;  %8742 = vmatpush3.bf16.msra.mxu1 %v9590_v18  ;;  %8848 = vmatpush3.bf16.msra.mxu0 %v9598_v62  ;;  %v9600_v62 = vld [vmem:[#allocation8] sm:$0xff]  }
 0x1d1   : > { %v11075_v38 = vadd.f32 %v8502_v3, %v13077_v19 }
 0x1d2   : > { %v8504_v30 = vpop.f32.mrf.mxu0  ;;  %v11084_v53 = vpop.f32.mrf.mxu1 }
 0x1d3   : > { %v8505_v63 = vadd.f32 %v8504_v30, %v8503_v32  ;;  %v9601_v30 = vld [vmem:[#allocation8 + $0xd8] sm:$0xff]  }
 0x1d4   : > { %v8506_v60 = vpop.f32.mrf.mxu0  ;;  %v11086_v47 = vpop.f32.mrf.mxu1  ;;  %8849 = vmatprep.subr.bf16.mxu0 %v9601_v30 }
 0x1d5   : > { %v11082_v10 = vadd.f32 %v8505_v63, %v10890_v36  ;;  %v9602_v63 = vld [vmem:[#allocation8 + $0x98] sm:$0xff]  }
 0x1d6   : > { %v8507_v58 = vpop.f32.mrf.mxu0  ;;  %v11091_v48 = vpop.f32.mrf.mxu1  ;;  %8850 = vmatpush3.bf16.msra.mxu0 %v9602_v63 }
 0x1d7   : > { %v8508_v33 = vadd.f32 %v8507_v58, %v8506_v60 }
 0x1d8   : > { %v8509_v13 = vpop.f32.mrf.mxu0  ;;  %v11093_v12 = vpop.f32.mrf.mxu1 }
 0x1d9   : > { %v11089_v29 = vadd.f32 %v8508_v33, %v10908_v54 }
 0x1da   : > { %v8510_v22 = vpop.f32.mrf.mxu0  ;;  %v11098_v23 = vpop.f32.mrf.mxu1 }
 0x1db   : > { %13078 = vst [vmem:[#allocation17_spill] sm:$0xff] %v11089_v29  ;;  %v8511_v27 = vadd.f32 %v8510_v22, %v8509_v13  ;;  %v9603_v13 = vld [vmem:[#allocation8 + $0xd0] sm:$0xff]   ;;  %v4460_v22 = vld [vmem:[#allocation2] sm:$0xf] }
 0x1dc   : > { %v8512_v36 = vpop.f32.mrf.mxu0  ;;  %v11100_v32 = vpop.f32.mrf.mxu1  ;;  %8851 = vmatprep.subr.bf16.mxu0 %v9603_v13 }
 0x1dd   : > { %v11096_v28 = vadd.f32 %v8511_v27, %v10923_v7 }
 0x1de   : > { %v8513_v3 = vpop.f32.mrf.mxu0  ;;  %v11105_v2 = vpop.f32.mrf.mxu1 }
 0x1df   : > { %13079 = vst [vmem:[#allocation18_spill] sm:$0xff] %v11096_v28  ;;  %v8514_v54 = vadd.f32 %v8513_v3, %v8512_v36  ;;  %v9599_v36 = vld [vmem:[#allocation8 + $0x40] sm:$0xff]   ;;  %v9604_v3 = vld [vmem:[#allocation8 + $0x90] sm:$0xff]  }
 0x1e0   : > { %v8515_v21 = vpop.f32.mrf.mxu0  ;;  %v11107_v45 = vpop.f32.mrf.mxu1  ;;  %8743 = vmatprep.subr.bf16.mxu1 %v9599_v36  ;;  %8852 = vmatpush3.bf16.msra.mxu0 %v9604_v3  ;;  %v9608_v3 = vld [vmem:[#allocation8 + $0x88] sm:$0xff]  }
 0x1e1   : > { %v11103_v19 = vadd.f32 %v8514_v54, %v10937_v59  ;;  %v4461_v59 = vld [vmem:[#allocation2 + $0x4] sm:$0xf]  ;;  %8744 = vmatpush3.bf16.msra.mxu1 %v9600_v62 }
 0x1e2   : > { %v8516_v7 = vpop.f32.mrf.mxu0  ;;  %v11112_v33 = vpop.f32.mrf.mxu1  ;;  %v8000_v31 = vcombine.low %v4460_v22, %v4461_v59 }
 0x1e3   : > { %13080 = vst [vmem:[#allocation19_spill] sm:$0xff] %v11103_v19  ;;  %v8517_v60 = vadd.f32 %v8516_v7, %v8515_v21  ;;  %v9607_v21 = vld [vmem:[#allocation2 + $0x8] ss:$0 sps:$4 sm:$0x11]  }
 0x1e4   : > { %v8518_v58 = vpop.f32.mrf.mxu0  ;;  %v11114_v40 = vpop.f32.mrf.mxu1  ;;  %v4799_v30 = vshll.u32 %v8000_v31, 16 }
 0x1e5   : > { %v11110_v0 = vadd.f32 %v8517_v60, %v10945_v56  ;;  %v4797_v60 = vshrl.u32 %v8000_v31, 16 }
 0x1e6   : > { %v8519_v27 = vpop.f32.mrf.mxu0  ;;  %v11119_v7 = vpop.f32.mrf.mxu1  ;;  %v4801_v22 = vrot.slane %v4799_v30, 1 }
 0x1e7   : > { %13081 = vst [vmem:[#allocation20_spill] sm:$0xff] %v11110_v0  ;;  %v8520_v18 = vadd.f32 %v8519_v27, %v8518_v58  ;;  %v4804_v58 = vshll.u32 %v9607_v21, 16 }
 0x1e8   : > { %v8521_v54 = vpop.f32.mrf.mxu0  ;;  %v11121_v49 = vpop.f32.mrf.mxu1  ;;  %v4802_v19 = vor.u32 %v4801_v22, %v4797_v60 }
 0x1e9   : > { %v11117_v56 = vadd.f32 %v8520_v18, %v10956_v42  ;;  %v4806_v28 = vrot.slane %v4804_v58, 1  ;;  %v9605_v42 = vld [vmem:[#allocation8 + $0xc8] sm:$0xff]  }
 0x1ea   : > { %v8522_v63 = vpop.f32.mrf.mxu0  ;;  %v11126_v0 = vpop.f32.mrf.mxu1  ;;  %8853 = vmatprep.subr.bf16.mxu0 %v9605_v42  ;;  %v4508_v42 = vld [vmem:[#allocation2] sm:$0xe] }
 0x1eb   : > { %13082 = vst [vmem:[#allocation21_spill] sm:$0xff] %v11117_v56  ;;  %v8523_v27 = vadd.f32 %v8522_v63, %v8521_v54  ;;  %v4807_v62 = vsel %vm1191_vm3, %v4802_v19, %v4806_v28  ;;  %8854 = vmatpush3.bf16.msra.mxu0 %v9608_v3  ;;  %v9609_v28 = vld [vmem:[#allocation8 + $0xc0] sm:$0xff]  }
 0x1ec   : > { %v8524_v13 = vpop.f32.mrf.mxu0  ;;  %v11129_v29 = vpop.f32.mrf.mxu1  ;;  %6652 = vmatprep.mubr.bf16.mxu1 %v4807_v62  ;;  %8855 = vmatprep.subr.bf16.mxu0 %v9609_v28 }
 0x1ed   : > { %v11124_v36 = vadd.f32 %v8523_v27, %v10966_v16  ;;  %6653 = vmatmul.mubr.bf16.vlgmr.msra.gmra.mxu1 %v8000_v31  ;;  %v5053_v31 = vrot.slane %v9607_v21, 1 }
 0x1ee   : > { %v8525_v18 = vpop.f32.mrf.mxu0  ;;  %v11134_v16 = vpop.f32.mrf.mxu1 }
 0x1ef   : > { %13083 = vst [vmem:[#allocation22_spill] sm:$0xff] %v11124_v36  ;;  %v8526_v56 = vadd.f32 %v8525_v18, %v8524_v13  ;;  %v9610_v13 = vld [vmem:[#allocation8 + $0x80] sm:$0xff]  }
 0x1f0   : > { %v8527_v54 = vpop.f32.mrf.mxu0  ;;  %v11136_v22 = vpop.f32.mrf.mxu1  ;;  %8856 = vmatpush3.bf16.msra.mxu0 %v9610_v13 }
 0x1f1   : > { %v11132_v30 = vadd.f32 %v8526_v56, %v10976_v11  ;;  %v8032_v11 = vcombine.low %v4508_v42, %v4461_v59 }
 0x1f2   : > { %v8528_v63 = vpop.f32.mrf.mxu0  ;;  %v11141_v27 = vpop.f32.mrf.mxu1 }
 0x1f3   : > { %13084 = vst [vmem:[#allocation23_spill] sm:$0xff] %v11132_v30  ;;  %v8529_v60 = vadd.f32 %v8528_v63, %v8527_v54  ;;  %v5052_v54 = vrot.slane %v8032_v11, 1 }
 0x1f4   : > { %v8530_v58 = vpop.f32.mrf.mxu0  ;;  %v11143_v62 = vpop.f32.mrf.mxu1 }
 0x1f5   : > { %v11139_v19 = vadd.f32 %v8529_v60, %v10984_v1  ;;  %v11151_v60 = vsel %vm1448_vm9, %v5052_v54, %v5053_v31 }
 0x1f6   : > { %v8531_v18 = vpop.f32.mrf.mxu0  ;;  %v11148_v30 = vpop.f32.mrf.mxu1  ;;  %13086 = vst [vmem:[#allocation25_spill] sm:$0xff] %v11151_v60  ;;  %v9615_v60 = vld [vmem:[#allocation8 + $0x138] sm:$0xff]  }
 0x1f7   : > { %13085 = vst [vmem:[#allocation24_spill] sm:$0xff] %v11139_v19  ;;  %v8532_v56 = vadd.f32 %v8531_v18, %v8530_v58 }
 0x1f8   : > { %v8533_v3 = vpop.f32.mrf.mxu0  ;;  %v11153_v36 = vpop.f32.mrf.mxu1 }
 0x1f9   : > { %v11146_v63 = vadd.f32 %v8532_v56, %v10995_v25 }
 0x1fa   : > { %v8534_v1 = vpop.f32.mrf.mxu0  ;;  %v11158_v58 = vpop.f32.mrf.mxu1 }
 0x1fb   : > { %v8535_v19 = vadd.f32 %v8534_v1, %v8533_v3  ;;  %v9613_v1 = vld [vmem:[#allocation8 + $0x178] sm:$0xff]  }
 0x1fc   : > { %v8536_v21 = vpop.f32.mrf.mxu0  ;;  %v11163_v18 = vpop.f32.mrf.mxu1  ;;  %8953 = vmatprep.subr.bf16.mxu1 %v9613_v1 }
 0x1fd   : > { %v11156_v59 = vadd.f32 %v8535_v19, %v10999_v34  ;;  %8954 = vmatpush3.bf16.msra.mxu1 %v9615_v60 }
 0x1fe   : > { %v8537_v28 = vpop.f32.mrf.mxu0  ;;  %v11168_v54 = vpop.f32.mrf.mxu1 }
 0x1ff   : > { %13087 = vst [vmem:[#allocation26_spill] sm:$0xff] %v11156_v59  ;;  %v8538_v13 = vadd.f32 %v8537_v28, %v8536_v21 }
 0x200   : > { %v8539_v42 = vpop.f32.mrf.mxu0 }
 0x201   : > { %v11161_v25 = vadd.f32 %v8538_v13, %v11005_v39  ;;  %v11173_v39 = vpop.f32.mrf.mxu1 }
 0x202   : > { %v8540_v11 = vpop.f32.mrf.mxu0 }
 0x203   : > { %13088 = vst [vmem:[#allocation27_spill] sm:$0xff] %v11161_v25  ;;  %v8541_v31 = vadd.f32 %v8540_v11, %v8539_v42  ;;  %v11178_v11 = vpop.f32.mrf.mxu1 }
 0x204   : > { %v8542_v56 = vpop.f32.mrf.mxu0 }
 0x205   : > { %v11166_v3 = vadd.f32 %v8541_v31, %v11011_v20 }
 0x206   : > { %v8543_v34 = vpop.f32.mrf.mxu0 }
 0x207   : > { %13089 = vst [vmem:[#allocation28_spill] sm:$0xff] %v11166_v3  ;;  %v8544_v19 = vadd.f32 %v8543_v34, %v8542_v56 }
 0x208   : > { %v8545_v59 = vpop.f32.mrf.mxu0 }
 0x209   : > { %v11171_v21 = vadd.f32 %v8544_v19, %v11016_v44  ;;  %v11183_v44 = vpop.f32.mrf.mxu1 }
 0x20a   : > { %v8546_v28 = vpop.f32.mrf.mxu0 }
 0x20b   : > { %13090 = vst [vmem:[#allocation29_spill] sm:$0xff] %v11171_v21  ;;  %v8547_v13 = vadd.f32 %v8546_v28, %v8545_v59  ;;  %v11188_v59 = vpop.f32.mrf.mxu1 }
 0x20c   : > { %v8548_v42 = vpop.f32.mrf.mxu0 }
 0x20d   : > { %v11176_v20 = vadd.f32 %v8547_v13, %v11019_v51 }
 0x20e   : > { %v8549_v31 = vpop.f32.mrf.mxu0 }
 0x20f   : > { %13091 = vst [vmem:[#allocation30_spill] sm:$0xff] %v11176_v20  ;;  %v8550_v56 = vadd.f32 %v8549_v31, %v8548_v42  ;;  %v11193_v42 = vpop.f32.mrf.mxu1 }
 0x210   : > { %v8551_v34 = vpop.f32.mrf.mxu0 }
 0x211   : > { %v11181_v25 = vadd.f32 %v8550_v56, %v11022_v17 }
 0x212   : > { %v8552_v19 = vpop.f32.mrf.mxu0 }
 0x213   : > { %13092 = vst [vmem:[#allocation31_spill] sm:$0xff] %v11181_v25  ;;  %v8553_v1 = vadd.f32 %v8552_v19, %v8551_v34  ;;  %v11198_v34 = vpop.f32.mrf.mxu1 }
 0x214   : > { %v8554_v21 = vpop.f32.mrf.mxu0 }
 0x215   : > { %v11186_v60 = vadd.f32 %v8553_v1, %v11025_v35 }
 0x216   : > { %v8555_v51 = vpop.f32.mrf.mxu0 }
 0x217   : > { %13093 = vst [vmem:[#allocation32_spill] sm:$0xff] %v11186_v60  ;;  %v8556_v28 = vadd.f32 %v8555_v51, %v8554_v21  ;;  %v11203_v21 = vpop.f32.mrf.mxu1 }
 0x218   : > { %v8557_v13 = vpop.f32.mrf.mxu0 }
 0x219   : > { %v11191_v20 = vadd.f32 %v8556_v28, %v11028_v4 }
 0x21a   : > { %v8558_v17 = vpop.f32.mrf.mxu0 }
 0x21b   : > { %13094 = vst [vmem:[#allocation33_spill] sm:$0xff] %v11191_v20  ;;  %v8559_v31 = vadd.f32 %v8558_v17, %v8557_v13  ;;  %v11208_v13 = vpop.f32.mrf.mxu1 }
 0x21c   : > { %v8560_v56 = vpop.f32.mrf.mxu0 }
 0x21d   : > { %v11196_v25 = vadd.f32 %v8559_v31, %v11031_v55 }
 0x21e   : > { %v8561_v35 = vpop.f32.mrf.mxu0 }
 0x21f   : > { %13095 = vst [vmem:[#allocation34_spill] sm:$0xff] %v11196_v25  ;;  %v8562_v19 = vadd.f32 %v8561_v35, %v8560_v56  ;;  %v9625_v56 = vld [vmem:[#allocation8 + $0x170] sm:$0xff]  }
 0x220   : > { %v8563_v1 = vpop.f32.mrf.mxu0  ;;  %v9629_v35 = vld [vmem:[#allocation8 + $0x130] sm:$0xff]   ;;  %8955 = vmatprep.subr.bf16.mxu1 %v9625_v56 }
 0x221   : > { %v11201_v60 = vadd.f32 %v8562_v19, %v11034_v61  ;;  %v11213_v61 = vpop.f32.mrf.mxu1  ;;  %8956 = vmatpush3.bf16.msra.mxu1 %v9629_v35 }
 0x222   : > { %v8564_v4 = vpop.f32.mrf.mxu0 }
 0x223   : > { %13096 = vst [vmem:[#allocation35_spill] sm:$0xff] %v11201_v60  ;;  %v8565_v51 = vadd.f32 %v8564_v4, %v8563_v1  ;;  %v11218_v4 = vpop.f32.mrf.mxu1 }
 0x224   : > { %v8566_v28 = vpop.f32.mrf.mxu0 }
 0x225   : > { %v11206_v20 = vadd.f32 %v8565_v51, %v11037_v41 }
 0x226   : > { %v8567_v55 = vpop.f32.mrf.mxu0 }
 0x227   : > { %13097 = vst [vmem:[#allocation36_spill] sm:$0xff] %v11206_v20  ;;  %v8568_v17 = vadd.f32 %v8567_v55, %v8566_v28 }
 0x228   : > { %v8569_v31 = vpop.f32.mrf.mxu0 }
 0x229   : > { %v11211_v25 = vadd.f32 %v8568_v17, %v11040_v5  ;;  %v11223_v17 = vpop.f32.mrf.mxu1 }
 0x22a   : > { %v8570_v19 = vpop.f32.mrf.mxu0 }
 0x22b   : > { %13098 = vst [vmem:[#allocation37_spill] sm:$0xff] %v11211_v25  ;;  %v8571_v60 = vadd.f32 %v8570_v19, %v8569_v31  ;;  %v11228_v56 = vpop.f32.mrf.mxu1 }
 0x22c   : > { %v8572_v1 = vpop.f32.mrf.mxu0 }
 0x22d   : > { %v11216_v41 = vadd.f32 %v8571_v60, %v11043_v6 }
 0x22e   : > { %v8573_v51 = vpop.f32.mrf.mxu0 }
 0x22f   : > { %v8574_v28 = vadd.f32 %v8573_v51, %v8572_v1  ;;  %v11233_v1 = vpop.f32.mrf.mxu1 }
 0x230   : > { %v8575_v55 = vpop.f32.mrf.mxu0 }
 0x231   : > { %v11221_v5 = vadd.f32 %v8574_v28, %v11047_v14 }
 0x232   : > { %v8576_v25 = vpop.f32.mrf.mxu0 }
 0x233   : > { %13099 = vst [vmem:[#allocation38_spill] sm:$0xff] %v11221_v5  ;;  %v8577_v20 = vadd.f32 %v8576_v25, %v8575_v55  ;;  %v11238_v25 = vpop.f32.mrf.mxu1 }
 0x234   : > { %v8578_v3 = vpop.f32.mrf.mxu0 }
 0x235   : > { %v11226_v31 = vadd.f32 %v8577_v20, %v11051_v52 }
 0x236   : > { %v8579_v6 = vpop.f32.mrf.mxu0 }
 0x237   : > { %13100 = vst [vmem:[#allocation39_spill] sm:$0xff] %v11226_v31  ;;  %v8580_v60 = vadd.f32 %v8579_v6, %v8578_v3  ;;  %v8614_v3 = vadd.f32 %v11077_v37, %v11072_v57  ;;  %v11247_v6 = vpop.f32.mrf.mxu1  ;;  %v8632_v57 = vadd.f32 %v11119_v7, %v11114_v40 }
 0x238   : > { %v8581_v35 = vpop.f32.mrf.mxu0 }
 0x239   : > { %v11231_v19 = vadd.f32 %v8580_v60, %v11054_v24  ;;  %v8611_v24 = vadd.f32 %v11070_v26, %v11063_v15  ;;  %v8629_v15 = vadd.f32 %v11112_v33, %v11107_v45 }
 0x23a   : > { %v8582_v14 = vpop.f32.mrf.mxu0 }
 0x23b   : > { %v8583_v51 = vadd.f32 %v8582_v14, %v8581_v35  ;;  %v8620_v14 = vadd.f32 %v11091_v48, %v11086_v47  ;;  %v11268_v47 = vpop.f32.mrf.mxu1 }
 0x23c   : > { %v8584_v28 = vpop.f32.mrf.mxu0 }
 0x23d   : > { %v11236_v5 = vadd.f32 %v8583_v51, %v11056_v9  ;;  %v8617_v9 = vadd.f32 %v11084_v53, %v11079_v43  ;;  %v8626_v51 = vadd.f32 %v11105_v2, %v11100_v32  ;;  %v8635_v43 = vadd.f32 %v11126_v0, %v11121_v49  ;;  %v9637_v49 = vld [vmem:[#allocation8 + $0x168] sm:$0xff]  }
 0x23e   : > { %v8585_v52 = vpop.f32.mrf.mxu0  ;;  %v8638_v53 = vadd.f32 %v11134_v16, %v11129_v29  ;;  %v8641_v32 = vadd.f32 %v11141_v27, %v11136_v22  ;;  %v9641_v0 = vld [vmem:[#allocation8 + $0x128] sm:$0xff]   ;;  %v13104_v27 = vld [vmem:[#allocation19_spill] sm:$0xff]  ;;  %8957 = vmatprep.subr.bf16.mxu1 %v9637_v49 }
 0x23f   : > { %v8586_v20 = vadd.f32 %v8585_v52, %v8584_v28  ;;  %v3543_v45 = vadd.f32 %v8617_v9, %v11082_v10  ;;  %v11280_v29 = vld [vmem:[%s13010_s2] ss:$0 sm:$0xff]  ;;  %v8647_v10 = vadd.f32 %v11158_v58, %v11153_v36  ;;  %8958 = vmatpush3.bf16.msra.mxu1 %v9641_v0 }
 0x240   : > { %v8587_v55 = vpop.f32.mrf.mxu0  ;;  %v13103_v16 = vld [vmem:[#allocation18_spill] sm:$0xff] }
 0x241   : > { %v11241_v31 = vadd.f32 %v8586_v20, %v11059_v46  ;;  %v8623_v46 = vadd.f32 %v11098_v23, %v11093_v12  ;;  %v3535_v12 = vadd.f32 %v8611_v24, %v11068_v8  ;;  %v3538_v23 = vadd.f32 %v8614_v3, %v11075_v38  ;;  %v13101_v8 = vld [vmem:[#allocation17_spill] sm:$0xff]  ;;  %v13102_v38 = vld [vmem:[#allocation20_spill] sm:$0xff]  ;;  %v11305_v9 = vld [vmem:[%s13011_s3] ss:$0 sm:$0xff] }
 0x242   : > { %v8588_v60 = vpop.f32.mrf.mxu0  ;;  %v3546_v40 = vadd.f32 %v8620_v14, %v13101_v8  ;;  %v3559_v7 = vadd.f32 %v8629_v15, %v13102_v38  ;;  %v13106_v20 = vld [vmem:[#allocation21_spill] sm:$0xff]  ;;  %v8650_v24 = vadd.f32 %v11168_v54, %v11163_v18  ;;  %v8653_v3 = vadd.f32 %v11178_v11, %v11173_v39  ;;  %v13107_v58 = vld [vmem:[#allocation22_spill] sm:$0xff]  ;;  %v13108_v14 = vld [vmem:[#allocation23_spill] sm:$0xff] }
 0x243   : > { %v8589_v35 = vadd.f32 %v8588_v60, %v8587_v55  ;;  %v11285_v22 = vadd.f32 %v8623_v46, %v13103_v16  ;;  %v11296_v55 = vadd.f32 %v8632_v57, %v13106_v20  ;;  %v8675_v60 = vpop.f32.mrf.mxu1  ;;  %v11311_v46 = vadd.f32 %v8638_v53, %v13108_v14  ;;  %v13109_v15 = vld [vmem:[#allocation24_spill] sm:$0xff]  ;;  %v13115_v38 = vld [vmem:[#allocation30_spill] sm:$0xff]  ;;  %v13117_v14 = vld [vmem:[#allocation33_spill] sm:$0xff] }
 0x244   : > { %v8590_v26 = vpop.f32.mrf.mxu0  ;;  %v11315_v39 = vadd.f32 %v8641_v32, %v13109_v15  ;;  %v8659_v57 = vadd.f32 %v11198_v34, %v11193_v42  ;;  %v8665_v53 = vadd.f32 %v11218_v4, %v11213_v61  ;;  %v13112_v61 = vld [vmem:[#allocation27_spill] sm:$0xff] }
 0x245   : > { %v11262_v37 = vadd.f32 %v8589_v35, %v11061_v50  ;;  %v8644_v50 = vadd.f32 %v11148_v30, %v11143_v62  ;;  %v11288_v30 = vadd.f32 %v8626_v51, %v13104_v27  ;;  %v13105_v62 = vld [vmem:[#allocation16_spill] sm:$0xff]  ;;  %v11308_v35 = vadd.f32 %v8635_v43, %v13107_v58  ;;  %v9649_v51 = vld [vmem:[#allocation8 + $0x160] sm:$0xff]   ;;  %v8676_v42 = vpop.f32.mrf.mxu1  ;;  %v13116_v27 = vld [vmem:[#allocation31_spill] sm:$0xff] }
 0x246   : > { %v8591_v48 = vpop.f32.mrf.mxu0  ;;  %v8662_v43 = vadd.f32 %v11208_v13, %v11203_v21  ;;  %8959 = vmatprep.subr.bf16.mxu1 %v9649_v51  ;;  %v13111_v21 = vld [vmem:[#allocation28_spill] sm:$0xff]  ;;  %v11341_v4 = vadd.f32 %v8650_v24, %v13112_v61  ;;  %v11352_v16 = vadd.f32 %v8659_v57, %v13115_v38  ;;  %v11361_v24 = vadd.f32 %v11268_v47, %v11247_v6 }
 0x247   : > { %v8592_v2 = vadd.f32 %v8591_v48, %v8590_v26  ;;  %v11318_v11 = vadd.f32 %v8644_v50, %v11146_v63  ;;  %v8656_v26 = vadd.f32 %v11188_v59, %v11183_v44  ;;  %v13110_v50 = vld [vmem:[#allocation26_spill] sm:$0xff]  ;;  %v8668_v44 = vadd.f32 %v11228_v56, %v11223_v17  ;;  %v13113_v17 = vld [vmem:[#allocation29_spill] sm:$0xff] }
 0x248   : > { %v9219_v33 = vpop.f32.mrf.mxu0  ;;  %v8671_v59 = vadd.f32 %v11238_v25, %v11233_v1  ;;  %v11338_v13 = vadd.f32 %v8653_v3, %v13111_v21  ;;  %v13114_v1 = vld [vmem:[#allocation32_spill] sm:$0xff]  ;;  %v11363_v3 = vpop.f32.mrf.mxu1  ;;  %v11371_v15 = vadd.f32 %v8676_v42, %v8675_v60 }
 0x249   : > { %v11293_v28 = vadd.f32 %v8592_v2, %v13105_v62  ;;  %v3704_v52 = vadd.f32 %v9219_v33, %v3543_v45  ;;  %v11331_v2 = vadd.f32 %v8647_v10, %v13110_v50  ;;  %v9653_v45 = vld [vmem:[#allocation8 + $0x120] sm:$0xff]   ;;  %v11346_v56 = vadd.f32 %v8656_v26, %v13113_v17 }
 0x24a   : > { %v3695_v36 = vpop.f32.mrf.mxu0  ;;  %v11349_v25 = vadd.f32 %v8665_v53, %v13114_v1  ;;  %v11355_v10 = vadd.f32 %v8662_v43, %v13116_v27  ;;  %8960 = vmatpush3.bf16.msra.mxu1 %v9653_v45  ;;  %v11366_v51 = vadd.f32 %v8668_v44, %v13117_v14  ;;  %v11376_v44 = vpop.f32.mrf.mxu1 }
 0x24b   : > { %v3831_v18 = vmul.f32 %v11280_v29, %v3704_v52  ;;  %v3696_v54 = vadd.f32 %v3695_v36, %v3535_v12 }
 0x24c   : > { %v9220_v48 = vpop.f32.mrf.mxu0 }
 0x24d   : > { %v3870_v12 = vadd.f32 %v11305_v9, %v3831_v18  ;;  %v3829_v32 = vmul.f32 %v11280_v29, %v3696_v54  ;;  %v3707_v63 = vadd.f32 %v9220_v48, %v3546_v40  ;;  %v13118_v18 = vld [vmem:[#allocation34_spill] sm:$0xff] }
 0x24e   : > { %v3698_v34 = vpop.f32.mrf.mxu0  ;;  %v11369_v54 = vadd.f32 %v8671_v59, %v13118_v18  ;;  %v4355_v59 = vld [vmem:[#allocation2 + $0x18] sm:$0xf] }
 0x24f   : > { %v3902_v49 = vmax.f32 %v3870_v12, 0.0  ;;  %v3868_v0 = vadd.f32 %v11305_v9, %v3829_v32  ;;  %v3832_v33 = vmul.f32 %v11280_v29, %v3707_v63  ;;  %v3699_v8 = vadd.f32 %v3698_v34, %v3538_v23 }
 0x250   : > { %v9223_v40 = vpop.f32.mrf.mxu0 }
 0x251   : > { %v8226_v62 = vpack.c.bf16 %v3902_v49, %v3902_v49  ;;  %v3900_v52 = vmax.f32 %v3868_v0, 0.0  ;;  %v3871_v20 = vadd.f32 %v11305_v9, %v3832_v33  ;;  %v3830_v23 = vmul.f32 %v11280_v29, %v3699_v8  ;;  %v9661_v33 = vld [vmem:[#allocation8 + $0x1f8] sm:$0xff]   ;;  %v4348_v8 = vld [vmem:[#allocation2 + $0xc] sm:$0xf] }
 0x252   : > { %v3720_v36 = vadd.f32 %v9223_v40, %v3559_v7  ;;  %v3711_v58 = vpop.f32.mrf.mxu0  ;;  %9065 = vmatprep.subr.bf16.mxu0 %v9661_v33 }
 0x253   : > { %v4046_v26 = vshrl.u32 %v8226_v62, 16  ;;  %v8224_v57 = vpack.c.bf16 %v3900_v52, %v3900_v52  ;;  %v3903_v43 = vmax.f32 %v3871_v20, 0.0  ;;  %v4049_v53 = vshll.u32 %v8226_v62, 16 }
 0x254   : > { %v3869_v48 = vadd.f32 %v11305_v9, %v3830_v23  ;;  %v3835_v6 = vmul.f32 %v11280_v29, %v3720_v36  ;;  %v3712_v47 = vadd.f32 %v3711_v58, %v11285_v22  ;;  %v9224_v7 = vpop.f32.mrf.mxu0  ;;  %v4359_v58 = vld [vmem:[#allocation2 + $0x20] sm:$0x1] }
 0x255   : > { %v4048_v12 = vrot.slane %v4046_v26, 7  ;;  %v4029_v32 = vshrl.u32 %v8224_v57, 16  ;;  %v4032_v63 = vshll.u32 %v8224_v57, 16  ;;  %v8227_v50 = vpack.c.bf16 %v3903_v43, %v3903_v43 }
 0x256   : > { %v3901_v60 = vmax.f32 %v3869_v48, 0.0  ;;  %v3874_v42 = vadd.f32 %v11305_v9, %v3835_v6  ;;  %v3833_v34 = vmul.f32 %v11280_v29, %v3712_v47  ;;  %v3723_v21 = vadd.f32 %v9224_v7, %v11296_v55  ;;  %v3714_v61 = vpop.f32.mrf.mxu0  ;;  %v11384_v55 = vpop.f32.mrf.mxu1 }
 0x257   : > { %v4051_v45 = vor.u32 %v4049_v53, %v4048_v12  ;;  %v4052_v49 = vrot.slane %v4048_v12, 4  ;;  %v4031_v0 = vrot.slane %v4029_v32, 7  ;;  %v4054_v22 = vshrl.u32 %v8227_v50, 16  ;;  %v9663_v53 = vld [vmem:[#allocation8 + $0x158] sm:$0xff]  }
 0x258   : > { %v4057_v40 = vshll.u32 %v8227_v50, 16  ;;  %v8225_v17 = vpack.c.bf16 %v3901_v60, %v3901_v60  ;;  %v3906_v1 = vmax.f32 %v3874_v42, 0.0  ;;  %v3872_v38 = vadd.f32 %v11305_v9, %v3833_v34  ;;  %v9227_v27 = vpop.f32.mrf.mxu0  ;;  %8961 = vmatprep.subr.bf16.mxu1 %v9663_v53 }
 0x259   : > { %v4356_v52 = vsel %vm10242_vm7, %v4051_v45, %v4355_v59  ;;  %v4034_v20 = vor.u32 %v4032_v63, %v4031_v0  ;;  %v4035_v23 = vrot.slane %v4031_v0, 4  ;;  %v4056_v36 = vrot.slane %v4054_v22, 7  ;;  %v4352_v0 = vld [vmem:[#allocation2 + $0x14] sm:$0x1] }
 0x25a   : > { %4357 = vst [vmem:[#allocation2 + $0x18] sm:$0xf] %v4356_v52  ;;  %v4037_v14 = vshrl.u32 %v8225_v17, 16  ;;  %v4040_v18 = vshll.u32 %v8225_v17, 16  ;;  %v8230_v26 = vpack.c.bf16 %v3906_v1, %v3906_v1  ;;  %v3904_v57 = vmax.f32 %v3872_v38, 0.0  ;;  %v3727_v43 = vpop.f32.mrf.mxu0  ;;  %v9667_v52 = vld [vmem:[#allocation8 + $0x118] sm:$0xff]  }
 0x25b   : > { %v4349_v48 = vsel %vm10242_vm7, %v4034_v20, %v4348_v8  ;;  %v4059_v6 = vor.u32 %v4057_v40, %v4056_v36  ;;  %v4061_v47 = vrot.slane %v4056_v36, 4  ;;  %v3836_v7 = vmul.f32 %v11280_v29, %v3723_v21  ;;  %v11395_v8 = vpop.f32.mrf.mxu1  ;;  %v4369_v20 = vld [vmem:[#allocation2 + $0x30] sm:$0xf]  ;;  %8962 = vmatpush3.bf16.msra.mxu1 %v9667_v52 }
 0x25c   : > { %4350 = vst [vmem:[#allocation2 + $0xc] sm:$0xf] %v4349_v48  ;;  %v4039_v12 = vrot.slane %v4037_v14, 7  ;;  %v4080_v32 = vshrl.u32 %v8230_v26, 16  ;;  %v4083_v63 = vshll.u32 %v8230_v26, 16  ;;  %v8228_v50 = vpack.c.bf16 %v3904_v57, %v3904_v57  ;;  %v9228_v59 = vpop.f32.mrf.mxu0 }
 0x25d   : > { %v4060_v42 = vsel %vm10236_vm6, %v4052_v49, %v4059_v6  ;;  %v4360_v45 = vsel %vm10248_vm8, %v4061_v47, %v4359_v58  ;;  %v3875_v22 = vadd.f32 %v11305_v9, %v3836_v7  ;;  %v3715_v33 = vadd.f32 %v3714_v61, %v11288_v30 }
 0x25e   : > { %4358 = vst [vmem:[#allocation2 + $0x1c] sm:$0xf] %v4060_v42  ;;  %4361 = vst [vmem:[#allocation2 + $0x20] sm:$0x1] %v4360_v45  ;;  %v4042_v21 = vor.u32 %v4040_v18, %v4039_v12  ;;  %v4044_v40 = vrot.slane %v4039_v12, 4  ;;  %v4082_v17 = vrot.slane %v4080_v32, 7  ;;  %v3730_v38 = vpop.f32.mrf.mxu0  ;;  %v3736_v14 = vadd.f32 %v9227_v27, %v11315_v39  ;;  %v11407_v39 = vpop.f32.mrf.mxu1 }
 0x25f   : > { %v4063_v1 = vshrl.u32 %v8228_v50, 16  ;;  %v4066_v49 = vshll.u32 %v8228_v50, 16  ;;  %v3907_v36 = vmax.f32 %v3875_v22, 0.0  ;;  %v3834_v58 = vmul.f32 %v11280_v29, %v3715_v33 }
 0x260   : > { %v4043_v30 = vsel %vm10236_vm6, %v4035_v23, %v4042_v21  ;;  %v4353_v61 = vsel %vm10248_vm8, %v4044_v40, %v4352_v0  ;;  %v4085_v26 = vor.u32 %v4083_v63, %v4082_v17  ;;  %v4086_v18 = vrot.slane %v4082_v17, 4  ;;  %v9231_v57 = vpop.f32.mrf.mxu0  ;;  %v4362_v23 = vld [vmem:[#allocation2 + $0x24] sm:$0xf]  ;;  %v4373_v17 = vld [vmem:[#allocation2 + $0x38] sm:$0x1] }
 0x261   : > { %4351 = vst [vmem:[#allocation2 + $0x10] sm:$0xf] %v4043_v30  ;;  %4354 = vst [vmem:[#allocation2 + $0x14] sm:$0x1] %v4353_v61  ;;  %v11403_v53 = vrot.slane %v4063_v1, 7  ;;  %v8231_v48 = vpack.c.bf16 %v3907_v36, %v3907_v36  ;;  %v3873_v6 = vadd.f32 %v11305_v9, %v3834_v58  ;;  %v3839_v47 = vmul.f32 %v11280_v29, %v3736_v14 }
 0x262   : > { %v4370_v27 = vsel %vm10242_vm7, %v4085_v26, %v4369_v20  ;;  %v3728_v7 = vadd.f32 %v3727_v43, %v11308_v35  ;;  %v3739_v12 = vadd.f32 %v9228_v59, %v11318_v11  ;;  %v3731_v32 = vadd.f32 %v3730_v38, %v11311_v46  ;;  %v3743_v0 = vpop.f32.mrf.mxu0  ;;  %v11423_v59 = vpop.f32.mrf.mxu1 }
 0x263   : > { %4371 = vst [vmem:[#allocation2 + $0x30] sm:$0xf] %v4370_v27  ;;  %v4068_v63 = vor.u32 %v4066_v49, %v11403_v53  ;;  %v4069_v50 = vrot.slane %v11403_v53, 4  ;;  %v4088_v42 = vshrl.u32 %v8231_v48, 16  ;;  %v4091_v45 = vshll.u32 %v8231_v48, 16 }
 0x264   : > { %v3905_v22 = vmax.f32 %v3873_v6, 0.0  ;;  %v3878_v33 = vadd.f32 %v11305_v9, %v3839_v47  ;;  %v3837_v21 = vmul.f32 %v11280_v29, %v3728_v7  ;;  %v3840_v40 = vmul.f32 %v11280_v29, %v3739_v12  ;;  %v9232_v30 = vpop.f32.mrf.mxu0  ;;  %v11433_v27 = vpop.f32.mrf.mxu1 }
 0x265   : > { %v4363_v35 = vsel %vm10242_vm7, %v4068_v63, %v4362_v23  ;;  %v4090_v11 = vrot.slane %v4088_v42, 7  ;;  %v3838_v46 = vmul.f32 %v11280_v29, %v3731_v32  ;;  %v3752_v43 = vadd.f32 %v9231_v57, %v11338_v13  ;;  %v4366_v63 = vld [vmem:[#allocation2 + $0x2c] sm:$0x1] }
 0x266   : > { %4364 = vst [vmem:[#allocation2 + $0x24] sm:$0xf] %v4363_v35  ;;  %v8229_v1 = vpack.c.bf16 %v3905_v22, %v3905_v22  ;;  %v3910_v38 = vmax.f32 %v3878_v33, 0.0  ;;  %v3876_v52 = vadd.f32 %v11305_v9, %v3837_v21  ;;  %v3879_v20 = vadd.f32 %v11305_v9, %v3840_v40  ;;  %v3746_v33 = vpop.f32.mrf.mxu0 }
 0x267   : > { %v4093_v49 = vor.u32 %v4091_v45, %v4090_v11  ;;  %v4095_v36 = vrot.slane %v4090_v11, 4  ;;  %v3877_v58 = vadd.f32 %v11305_v9, %v3838_v46  ;;  %v3843_v14 = vmul.f32 %v11280_v29, %v3752_v43  ;;  %v9677_v46 = vld [vmem:[#allocation8 + $0x150] sm:$0xff]  }
 0x268   : > { %v4071_v61 = vshrl.u32 %v8229_v1, 16  ;;  %v4074_v26 = vshll.u32 %v8229_v1, 16  ;;  %v8234_v13 = vpack.c.bf16 %v3910_v38, %v3910_v38  ;;  %v3908_v57 = vmax.f32 %v3876_v52, 0.0  ;;  %v4383_v43 = vld [vmem:[#allocation2 + $0x48] sm:$0xf]  ;;  %8963 = vmatprep.subr.bf16.mxu1 %v9677_v46 }
 0x269   : > { %v4094_v53 = vsel %vm10236_vm6, %v4086_v18, %v4093_v49  ;;  %v4374_v48 = vsel %vm10248_vm8, %v4095_v36, %v4373_v17  ;;  %v3911_v6 = vmax.f32 %v3879_v20, 0.0  ;;  %v3909_v47 = vmax.f32 %v3877_v58, 0.0  ;;  %v11437_v20 = vpop.f32.mrf.mxu1  ;;  %v9681_v58 = vld [vmem:[#allocation8 + $0x110] sm:$0xff]  }
 0x26a   : > { %4372 = vst [vmem:[#allocation2 + $0x34] sm:$0xf] %v4094_v53  ;;  %4375 = vst [vmem:[#allocation2 + $0x38] sm:$0x1] %v4374_v48  ;;  %v4073_v23 = vrot.slane %v4071_v61, 7  ;;  %v4114_v7 = vshrl.u32 %v8234_v13, 16  ;;  %v8232_v32 = vpack.c.bf16 %v3908_v57, %v3908_v57  ;;  %v3882_v22 = vadd.f32 %v11305_v9, %v3843_v14  ;;  %v9235_v53 = vpop.f32.mrf.mxu0  ;;  %8964 = vmatpush3.bf16.msra.mxu1 %v9681_v58 }
 0x26b   : > { %v4117_v12 = vshll.u32 %v8234_v13, 16  ;;  %v8235_v42 = vpack.c.bf16 %v3911_v6, %v3911_v6  ;;  %v8233_v45 = vpack.c.bf16 %v3909_v47, %v3909_v47  ;;  %v3744_v18 = vadd.f32 %v3743_v0, %v11331_v2  ;;  %v4376_v61 = vld [vmem:[#allocation2 + $0x3c] sm:$0xf]  ;;  %v4387_v6 = vld [vmem:[#allocation2 + $0x50] sm:$0x1] }
 0x26c   : > { %v4076_v21 = vor.u32 %v4074_v26, %v4073_v23  ;;  %v4078_v40 = vrot.slane %v4073_v23, 4  ;;  %v4116_v35 = vrot.slane %v4114_v7, 7  ;;  %v4097_v11 = vshrl.u32 %v8232_v32, 16  ;;  %v3759_v46 = vpop.f32.mrf.mxu0 }
 0x26d   : > { %v4100_v17 = vshll.u32 %v8232_v32, 16  ;;  %v4122_v1 = vshrl.u32 %v8235_v42, 16  ;;  %v4125_v38 = vshll.u32 %v8235_v42, 16  ;;  %v4105_v52 = vshrl.u32 %v8233_v45, 16  ;;  %v4380_v42 = vld [vmem:[#allocation2 + $0x44] sm:$0x1] }
 0x26e   : > { %v4077_v49 = vsel %vm10236_vm6, %v4069_v50, %v4076_v21  ;;  %v4367_v36 = vsel %vm10248_vm8, %v4078_v40, %v4366_v63  ;;  %v4119_v2 = vor.u32 %v4117_v12, %v4116_v35  ;;  %v4120_v0 = vrot.slane %v4116_v35, 4  ;;  %v11447_v21 = vpop.f32.mrf.mxu1 }
 0x26f   : > { %4365 = vst [vmem:[#allocation2 + $0x28] sm:$0xf] %v4077_v49  ;;  %4368 = vst [vmem:[#allocation2 + $0x2c] sm:$0x1] %v4367_v36  ;;  %v4099_v14 = vrot.slane %v4097_v11, 7  ;;  %v4124_v26 = vrot.slane %v4122_v1, 7  ;;  %v3841_v47 = vmul.f32 %v11280_v29, %v3744_v18  ;;  %v3755_v23 = vadd.f32 %v9232_v30, %v11346_v56 }
 0x270   : > { %v4107_v13 = vrot.slane %v4105_v52, 7  ;;  %v4108_v57 = vshll.u32 %v8233_v45, 16  ;;  %v4384_v48 = vsel %vm10242_vm7, %v4119_v2, %v4383_v43  ;;  %v3914_v50 = vmax.f32 %v3882_v22, 0.0  ;;  %v4525_v43 = vld [vmem:[#allocation2 + $0x10] sm:$0xf] }
 0x271   : > { %4385 = vst [vmem:[#allocation2 + $0x48] sm:$0xf] %v4384_v48  ;;  %v4102_v7 = vor.u32 %v4100_v17, %v4099_v14  ;;  %v4103_v12 = vrot.slane %v4099_v14, 4  ;;  %v4127_v32 = vor.u32 %v4125_v38, %v4124_v26  ;;  %v4129_v63 = vrot.slane %v4124_v26, 4 }
 0x272   : > { %v4110_v45 = vor.u32 %v4108_v57, %v4107_v13  ;;  %v4112_v40 = vrot.slane %v4107_v13, 4  ;;  %v8238_v35 = vpack.c.bf16 %v3914_v50, %v3914_v50  ;;  %v3880_v11 = vadd.f32 %v11305_v9, %v3841_v47  ;;  %v9662_v13 = vld [vmem:[#allocation8 + $0x1b8] sm:$0xff]   ;;  %v4397_v57 = vld [vmem:[#allocation2 + $0x60] sm:$0xf] }
 0x273   : > { %v4377_v22 = vsel %vm10242_vm7, %v4102_v7, %v4376_v61  ;;  %v4128_v56 = vsel %vm10236_vm6, %v4120_v0, %v4127_v32  ;;  %v4388_v30 = vsel %vm10248_vm8, %v4129_v63, %v4387_v6  ;;  %v3844_v18 = vmul.f32 %v11280_v29, %v3755_v23  ;;  %v13123_v63 = vld [vmem:[#allocation25_spill] sm:$0xff] }
 0x274   : > { %v8680_v17 = vadd.f32 %v11376_v44, %v11363_v3  ;;  %4378 = vst [vmem:[#allocation2 + $0x3c] sm:$0xf] %v4377_v22  ;;  %4386 = vst [vmem:[#allocation2 + $0x4c] sm:$0xf] %v4128_v56  ;;  %v4111_v1 = vsel %vm10236_vm6, %v4103_v12, %v4110_v45  ;;  %v4381_v38 = vsel %vm10248_vm8, %v4112_v40, %v4380_v42  ;;  %v4148_v52 = vshrl.u32 %v8238_v35, 16  ;;  %v11466_v44 = vpop.f32.mrf.mxu1  ;;  %v9236_v42 = vpop.f32.mrf.mxu0  ;;  %v13124_v45 = vld [vmem:[#allocation36_spill] sm:$0xff] }
 0x275   : > { %4389 = vst [vmem:[#allocation2 + $0x50] sm:$0x1] %v4388_v30  ;;  %4379 = vst [vmem:[#allocation2 + $0x40] sm:$0xf] %v4111_v1  ;;  %v3912_v49 = vmax.f32 %v3880_v11, 0.0  ;;  %v3883_v36 = vadd.f32 %v11305_v9, %v3844_v18  ;;  %v3747_v2 = vadd.f32 %v3746_v33, %v11341_v4  ;;  %v3768_v0 = vadd.f32 %v9235_v53, %v11349_v25  ;;  %v9675_v33 = vld [vmem:[#allocation8 + $0x1f0] sm:$0xff]  }
 0x276   : > { %4382 = vst [vmem:[#allocation2 + $0x44] sm:$0x1] %v4381_v38  ;;  %v4524_v3 = vld [vmem:[#allocation2 + $0xc] sm:$0xf]  ;;  %v11468_v58 = vrot.slane %v4148_v52, 7  ;;  %v4151_v14 = vshll.u32 %v8238_v35, 16  ;;  %v3760_v61 = vadd.f32 %v3759_v46, %v11352_v16  ;;  %v8683_v25 = vadd.f32 %v11395_v8, %v11384_v55  ;;  %v11490_v8 = vpop.f32.mrf.mxu1 }
 0x277   : > { %v11471_v26 = vcombine.low %v4524_v3, %v4525_v43  ;;  %v8236_v48 = vpack.c.bf16 %v3912_v49, %v3912_v49  ;;  %v3915_v6 = vmax.f32 %v3883_v36, 0.0  ;;  %v3842_v50 = vmul.f32 %v11280_v29, %v3747_v2  ;;  %v13122_v16 = vld [vmem:[#allocation35_spill] sm:$0xff]  ;;  %v13125_v11 = vld [vmem:[#allocation37_spill] sm:$0xff]  ;;  %v9691_v30 = vld [vmem:[#allocation8 + $0x148] sm:$0xff]  }
 0x278   : > { %v3847_v4 = vmul.f32 %v11280_v29, %v3768_v0  ;;  %v4153_v53 = vor.u32 %v4151_v14, %v11468_v58  ;;  %v3845_v47 = vmul.f32 %v11280_v29, %v3760_v61  ;;  %v11482_v23 = vadd.f32 %v11361_v24, %v13122_v16  ;;  %v9676_v56 = vld [vmem:[#allocation8 + $0x1b0] sm:$0xff]   ;;  %v9689_v1 = vld [vmem:[#allocation8 + $0x1e8] sm:$0xff]   ;;  %v4390_v38 = vld [vmem:[#allocation2 + $0x54] sm:$0xf]  ;;  %8965 = vmatprep.subr.bf16.mxu1 %v9691_v30  ;;  %v3762_v61 = vpop.f32.mrf.mxu0 }
 0x279   : > { %6813 = vmatprep.mubr.bf16.mxu0 %v11471_v26  ;;  %v4131_v7 = vshrl.u32 %v8236_v48, 16  ;;  %v8239_v12 = vpack.c.bf16 %v3915_v6, %v3915_v6  ;;  %v3881_v32 = vadd.f32 %v11305_v9, %v3842_v50  ;;  %v11488_v55 = vadd.f32 %v11371_v15, %v13124_v45  ;;  %v9695_v16 = vld [vmem:[#allocation8 + $0x108] sm:$0xff]  }
 0x27a   : > { %6814 = vmatmul.mubr.bf16.vlgmr.msra.gmra.mxu0 %v13123_v63  ;;  %v4398_v40 = vsel %vm10242_vm7, %v4153_v53, %v4397_v57  ;;  %v3886_v35 = vadd.f32 %v11305_v9, %v3847_v4  ;;  %v3884_v24 = vadd.f32 %v11305_v9, %v3845_v47  ;;  %v11497_v22 = vadd.f32 %v8680_v17, %v13125_v11  ;;  %v4527_v47 = vld [vmem:[#allocation2 + $0x1c] sm:$0xf] }
 0x27b   : > { %9066 = vmatpush3.bf16.msra.mxu0 %v9662_v13  ;;  %4399 = vst [vmem:[#allocation2 + $0x60] sm:$0xf] %v4398_v40  ;;  %v11499_v18 = vrot.slane %v4131_v7, 7  ;;  %v4134_v15 = vshll.u32 %v8236_v48, 16  ;;  %v4156_v46 = vshrl.u32 %v8239_v12, 16  ;;  %v3913_v43 = vmax.f32 %v3881_v32, 0.0  ;;  %v8694_v13 = vpop.f32.mrf.mxu1  ;;  %8966 = vmatpush3.bf16.msra.mxu1 %v9695_v16 }
 0x27c   : > { %9067 = vmatprep.subr.bf16.mxu0 %v9675_v33  ;;  %v3918_v52 = vmax.f32 %v3886_v35, 0.0  ;;  %v3916_v49 = vmax.f32 %v3884_v24, 0.0  ;;  %v3771_v36 = vadd.f32 %v9236_v42, %v11366_v51  ;;  %v11503_v2 = vadd.f32 %v8683_v25, %v11216_v41  ;;  %v4401_v48 = vld [vmem:[#allocation2 + $0x68] sm:$0x1]  ;;  %v9690_v51 = vld [vmem:[#allocation8 + $0x1a8] sm:$0xff]   ;;  %v9239_v24 = vpop.f32.mrf.mxu0 }
 0x27d   : > { %v4136_v17 = vor.u32 %v4134_v15, %v11499_v18  ;;  %v4158_v0 = vrot.slane %v4156_v46, 7  ;;  %v4159_v3 = vshll.u32 %v8239_v12, 16  ;;  %v8237_v14 = vpack.c.bf16 %v3913_v43, %v3913_v43  ;;  %v4526_v35 = vld [vmem:[#allocation2 + $0x18] sm:$0xf]  ;;  %v11514_v11 = vpop.f32.mrf.mxu1 }
 0x27e   : > { %v4154_v57 = vrot.slane %v11468_v58, 4  ;;  %v8242_v6 = vpack.c.bf16 %v3918_v52, %v3918_v52  ;;  %v8240_v50 = vpack.c.bf16 %v3916_v49, %v3916_v49  ;;  %v3848_v4 = vmul.f32 %v11280_v29, %v3771_v36  ;;  %v4411_v49 = vld [vmem:[#allocation2 + $0x78] sm:$0xf]  ;;  %v4404_v36 = vld [vmem:[#allocation2 + $0x6c] sm:$0xf] }
 0x27f   : > { %9068 = vmatpush3.bf16.msra.mxu0 %v9676_v56  ;;  %v4391_v41 = vsel %vm10242_vm7, %v4136_v17, %v4390_v38  ;;  %v4161_v33 = vor.u32 %v4159_v3, %v4158_v0  ;;  %v4163_v25 = vrot.slane %v4158_v0, 4  ;;  %v4139_v53 = vshrl.u32 %v8237_v14, 16  ;;  %v4394_v56 = vld [vmem:[#allocation2 + $0x5c] sm:$0x1] }
 0x280   : > { %9069 = vmatprep.subr.bf16.mxu0 %v9689_v1  ;;  %4392 = vst [vmem:[#allocation2 + $0x54] sm:$0xf] %v4391_v41  ;;  %v4142_v7 = vshll.u32 %v8237_v14, 16  ;;  %v4182_v12 = vshrl.u32 %v8242_v6, 16  ;;  %v4185_v58 = vshll.u32 %v8242_v6, 16  ;;  %v4165_v32 = vshrl.u32 %v8240_v50, 16 }
 0x281   : > { %v4162_v63 = vsel %vm10236_vm6, %v4154_v57, %v4161_v33  ;;  %v4402_v42 = vsel %vm10248_vm8, %v4163_v25, %v4401_v48  ;;  %v4141_v45 = vrot.slane %v4139_v53, 7  ;;  %v4168_v40 = vshll.u32 %v8240_v50, 16  ;;  %v11553_v50 = vpop.f32.mrf.mxu1  ;;  %v4464_v25 = vld [vmem:[#allocation2 + $0x18] sm:$0xf] }
 0x282   : > { %4400 = vst [vmem:[#allocation2 + $0x64] sm:$0xf] %v4162_v63  ;;  %4403 = vst [vmem:[#allocation2 + $0x68] sm:$0x1] %v4402_v42  ;;  %v11516_v30 = vrot.slane %v4182_v12, 7  ;;  %v11518_v15 = vrot.slane %v4165_v32, 7  ;;  %v3887_v46 = vadd.f32 %v11305_v9, %v3848_v4  ;;  %v11521_v43 = vcombine.low %v4526_v35, %v4527_v47 }
 0x283   : > { %9070 = vmatpush3.bf16.msra.mxu0 %v9690_v51  ;;  %v4137_v1 = vrot.slane %v11499_v18, 4  ;;  %v4144_v38 = vor.u32 %v4142_v7, %v4141_v45  ;;  %v4146_v52 = vrot.slane %v4141_v45, 4  ;;  %v3763_v17 = vadd.f32 %v3762_v61, %v11355_v10  ;;  %v11536_v18 = vld [vmem:[#allocation2 + $0x10] sm:$0xf]  ;;  %v11548_v61 = vld [vmem:[#allocation2 + $0x1c] sm:$0xf]  ;;  %v11577_v35 = vpop.f32.mrf.mxu1 }
 0x284   : > { %v11527_v0 = vadd.f32 %v11423_v59, %v11407_v39  ;;  %v11531_v3 = vadd.f32 %v11437_v20, %v11433_v27  ;;  %v4187_v14 = vor.u32 %v4185_v58, %v11516_v30  ;;  %v4170_v57 = vor.u32 %v4168_v40, %v11518_v15  ;;  %6821 = vmatprep.mubr.bf16.mxu0 %v11521_v43  ;;  %v11546_v27 = vld [vmem:[#allocation2 + $0x14] ss:$0 sps:$4 sm:$0x11]   ;;  %v3775_v20 = vpop.f32.mrf.mxu0  ;;  %v4462_v51 = vld [vmem:[#allocation2 + $0xc] sm:$0xf]  ;;  %v9703_v53 = vld [vmem:[#allocation8 + $0x1e0] sm:$0xff]  }
 0x285   : > { %v11540_v48 = vadd.f32 %v11466_v44, %v11447_v21  ;;  %v4145_v10 = vsel %vm10236_vm6, %v4137_v1, %v4144_v38  ;;  %v4395_v39 = vsel %vm10248_vm8, %v4146_v52, %v4394_v56  ;;  %v3919_v59 = vmax.f32 %v3887_v46, 0.0  ;;  %v11571_v58 = vld [vmem:[#allocation2 + $0x20] ss:$0 sps:$4 sm:$0x11]   ;;  %v9704_v32 = vld [vmem:[#allocation8 + $0x1a0] sm:$0xff]   ;;  %9071 = vmatprep.subr.bf16.mxu0 %v9703_v53 }
 0x286   : > { %v11551_v6 = vadd.f32 %v8694_v13, %v11490_v8  ;;  %4393 = vst [vmem:[#allocation2 + $0x58] sm:$0xf] %v4145_v10  ;;  %4396 = vst [vmem:[#allocation2 + $0x5c] sm:$0x1] %v4395_v39  ;;  %v4412_v21 = vsel %vm10242_vm7, %v4187_v14, %v4411_v49  ;;  %v4405_v44 = vsel %vm10242_vm7, %v4170_v57, %v4404_v36  ;;  %v4188_v41 = vrot.slane %v11516_v30, 4  ;;  %v11575_v40 = vpop.f32.mrf.mxu0  ;;  %v9705_v46 = vld [vmem:[#allocation8 + $0x140] sm:$0xff]  }
 0x287   : > { %v3846_v4 = vmul.f32 %v11280_v29, %v3763_v17  ;;  %4413 = vst [vmem:[#allocation2 + $0x78] sm:$0xf] %v4412_v21  ;;  %4406 = vst [vmem:[#allocation2 + $0x6c] sm:$0xf] %v4405_v44  ;;  %v8243_v33 = vpack.c.bf16 %v3919_v59, %v3919_v59  ;;  %v3784_v8 = vadd.f32 %v9239_v24, %v11488_v55  ;;  %v4171_v47 = vrot.slane %v11518_v15, 4  ;;  %v9709_v53 = vld [vmem:[#allocation8 + $0x100] sm:$0xff]  }
 0x288   : > { %v11563_v13 = vcombine.low %v4462_v51, %v11536_v18  ;;  %v3776_v7 = vadd.f32 %v3775_v20, %v11369_v54  ;;  %v11569_v12 = vcombine.low %v4464_v25, %v11548_v61  ;;  %v4816_v45 = vshll.u32 %v11546_v27, 16  ;;  %9072 = vmatpush3.bf16.msra.mxu0 %v9704_v32  ;;  %v4415_v36 = vld [vmem:[#allocation2 + $0x80] sm:$0x1]  ;;  %8967 = vmatprep.subr.bf16.mxu1 %v9705_v46  ;;  %v11587_v44 = vpop.f32.mrf.mxu0 }
 0x289   : > { %v3885_v16 = vadd.f32 %v11305_v9, %v3846_v4  ;;  %v4190_v63 = vshrl.u32 %v8243_v33, 16  ;;  %v4193_v42 = vshll.u32 %v8243_v33, 16  ;;  %v3851_v55 = vmul.f32 %v11280_v29, %v3784_v8  ;;  %v11589_v4 = vpop.f32.mrf.mxu1  ;;  %8968 = vmatpush3.bf16.msra.mxu1 %v9709_v53  ;;  %v4528_v53 = vld [vmem:[#allocation2 + $0x24] sm:$0xf] }
 0x28a   : > { %v4809_v54 = vshrl.u32 %v11563_v13, 16  ;;  %v4811_v56 = vshll.u32 %v11563_v13, 16  ;;  %v3849_v30 = vmul.f32 %v11280_v29, %v3776_v7  ;;  %v4821_v52 = vshrl.u32 %v11569_v12, 16 }
 0x28b   : > { %v3917_v24 = vmax.f32 %v3885_v16, 0.0  ;;  %v4192_v1 = vrot.slane %v4190_v63, 7  ;;  %v3890_v38 = vadd.f32 %v11305_v9, %v3851_v55  ;;  %v4823_v49 = vshll.u32 %v11569_v12, 16 }
 0x28c   : > { %v4813_v14 = vrot.slane %v4811_v56, 1  ;;  %v3888_v57 = vadd.f32 %v11305_v9, %v3849_v30  ;;  %v4828_v10 = vshll.u32 %v11571_v58, 16  ;;  %v4818_v8 = vrot.slane %v4816_v45, 1  ;;  %v4408_v45 = vld [vmem:[#allocation2 + $0x74] sm:$0x1] }
 0x28d   : > { %v8241_v17 = vpack.c.bf16 %v3917_v24, %v3917_v24  ;;  %v4195_v39 = vor.u32 %v4193_v42, %v4192_v1  ;;  %v4197_v59 = vrot.slane %v4192_v1, 4  ;;  %v3922_v20 = vmax.f32 %v3890_v38, 0.0  ;;  %v9710_v42 = vld [vmem:[#allocation8 + $0x1d8] sm:$0xff]  }
 0x28e   : > { %v4825_v21 = vrot.slane %v4823_v49, 1  ;;  %v4814_v33 = vor.u32 %v4813_v14, %v4809_v54  ;;  %v3920_v25 = vmax.f32 %v3888_v57, 0.0  ;;  %v4509_v54 = vld [vmem:[#allocation2 + $0xc] sm:$0xe]  ;;  %v4830_v1 = vrot.slane %v4828_v10, 1  ;;  %v9243_v49 = vpop.f32.mrf.mxu0  ;;  %9073 = vmatprep.subr.bf16.mxu0 %v9710_v42 }
 0x28f   : > { %v4173_v51 = vshrl.u32 %v8241_v17, 16  ;;  %v4196_v16 = vsel %vm10236_vm6, %v4188_v41, %v4195_v39  ;;  %v4416_v7 = vsel %vm10248_vm8, %v4197_v59, %v4415_v36  ;;  %v8246_v32 = vpack.c.bf16 %v3922_v20, %v3922_v20  ;;  %v8702_v36 = vpop.f32.mrf.mxu1  ;;  %v4529_v59 = vld [vmem:[#allocation2 + $0x28] sm:$0xf] }
 0x290   : > { %v4826_v63 = vor.u32 %v4825_v21, %v4821_v52  ;;  %4414 = vst [vmem:[#allocation2 + $0x7c] sm:$0xf] %v4196_v16  ;;  %4417 = vst [vmem:[#allocation2 + $0x80] sm:$0x1] %v4416_v7  ;;  %v4176_v24 = vshll.u32 %v8241_v17, 16  ;;  %v4819_v56 = vsel %vm1191_vm3, %v4814_v33, %v4818_v8  ;;  %v8244_v30 = vpack.c.bf16 %v3920_v25, %v3920_v25  ;;  %v9713_v52 = vld [vmem:[#allocation8 + $0x198] sm:$0xff]  }
 0x291   : > { %v4175_v55 = vrot.slane %v4173_v51, 7  ;;  %v4216_v46 = vshrl.u32 %v8246_v32, 16  ;;  %6660 = vmatprep.mubr.bf16.mxu1 %v4819_v56  ;;  %v8033_v41 = vcombine.low %v4509_v54, %v11536_v18  ;;  %v5056_v38 = vrot.slane %v11546_v27, 1  ;;  %v9714_v20 = vld [vmem:[#allocation8 + $0x1d0] sm:$0xff]   ;;  %v4425_v51 = vld [vmem:[#allocation2 + $0x90] sm:$0xf]  ;;  %9074 = vmatpush3.bf16.msra.mxu0 %v9713_v52 }
 0x292   : > { %v4219_v17 = vshll.u32 %v8246_v32, 16  ;;  %v4199_v39 = vshrl.u32 %v8244_v30, 16  ;;  %6661 = vmatmul.mubr.bf16.gmra.mxu1 %v11563_v13  ;;  %v4831_v10 = vsel %vm1191_vm3, %v4826_v63, %v4830_v1  ;;  %v3787_v27 = vadd.f32 %v11575_v40, %v11497_v22  ;;  %9075 = vmatprep.subr.bf16.mxu0 %v9714_v20  ;;  %v9715_v16 = vld [vmem:[#allocation8 + $0x190] sm:$0xff]   ;;  %v4418_v40 = vld [vmem:[#allocation2 + $0x84] sm:$0xf]  ;;  %v3791_v32 = vpop.f32.mrf.mxu0  ;;  %v8703_v63 = vpop.f32.mrf.mxu1 }
 0x293   : > { %v4178_v14 = vor.u32 %v4176_v24, %v4175_v55  ;;  %v4180_v57 = vrot.slane %v4175_v55, 4  ;;  %v11599_v21 = vrot.slane %v4216_v46, 7  ;;  %v5055_v18 = vrot.slane %v8033_v41, 1  ;;  %6668 = vmatprep.mubr.bf16.mxu1 %v4831_v10  ;;  %v13126_v55 = vld [vmem:[#allocation39_spill] sm:$0xff]  ;;  %v13127_v54 = vld [vmem:[#allocation38_spill] sm:$0xff] }
 0x294   : > { %v11610_v8 = vrot.slane %v4199_v39, 7  ;;  %v4202_v25 = vshll.u32 %v8244_v30, 16  ;;  %v3852_v7 = vmul.f32 %v11280_v29, %v3787_v27  ;;  %v3639_v24 = vadd.f32 %v11531_v3, %v13126_v55  ;;  %v11620_v56 = vld [vmem:[#allocation2 + $0x28] sm:$0xf]  ;;  %v9718_v29 = vld [vmem:[#allocation8 + $0x1c8] sm:$0xff]   ;;  %v9244_v39 = vpop.f32.mrf.mxu0 }
 0x295   : > { %v4179_v33 = vsel %vm10236_vm6, %v4171_v47, %v4178_v14  ;;  %v4409_v13 = vsel %vm10248_vm8, %v4180_v57, %v4408_v45  ;;  %v4221_v22 = vor.u32 %v4219_v17, %v11599_v21  ;;  %v5057_v15 = vsel %vm1448_vm9, %v5055_v18, %v5056_v38  ;;  %v11634_v41 = vld [vmem:[#allocation2 + $0x2c] ss:$0 sps:$4 sm:$0x11]   ;;  %v4466_v52 = vld [vmem:[#allocation2 + $0x24] sm:$0xf]  ;;  %9076 = vmatpush3.bf16.msra.mxu0 %v9715_v16 }
 0x296   : > { %4407 = vst [vmem:[#allocation2 + $0x70] sm:$0xf] %v4179_v33  ;;  %4410 = vst [vmem:[#allocation2 + $0x74] sm:$0x1] %v4409_v13  ;;  %v11615_v47 = vcombine.low %v4528_v53, %v4529_v59  ;;  %v4204_v42 = vor.u32 %v4202_v25, %v11610_v8  ;;  %6822 = vmatmul.mubr.bf16.gmra.mxu0 %v5057_v15  ;;  %v3642_v30 = vadd.f32 %v11540_v48, %v11231_v19  ;;  %v9724_v59 = vld [vmem:[#allocation8 + $0x238] sm:$0xff]   ;;  %v9723_v25 = vld [vmem:[#allocation8 + $0x180] sm:$0xff]   ;;  %v3794_v55 = vpop.f32.mrf.mxu0 }
 0x297   : > { %v11626_v45 = vadd.f32 %v11527_v0, %v13127_v54  ;;  %v4426_v46 = vsel %vm10242_vm7, %v4221_v22, %v4425_v51  ;;  %v3891_v1 = vadd.f32 %v11305_v9, %v3852_v7  ;;  %v3779_v3 = vadd.f32 %v11587_v44, %v11482_v23  ;;  %v9719_v23 = vld [vmem:[#allocation8 + $0x188] sm:$0xff]   ;;  %9077 = vmatprep.subr.bf16.mxu0 %v9718_v29  ;;  %v4531_v13 = vld [vmem:[#allocation2 + $0x34] sm:$0xf] }
 0x298   : > { %6829 = vmatprep.mubr.bf16.mxu0 %v11615_v47  ;;  %v11638_v19 = vadd.f32 %v11551_v6, %v11236_v5  ;;  %v11642_v0 = vadd.f32 %v11589_v4, %v11577_v35  ;;  %4427 = vst [vmem:[#allocation2 + $0x90] sm:$0xf] %v4426_v46  ;;  %v4419_v48 = vsel %vm10242_vm7, %v4204_v42, %v4418_v40  ;;  %v11652_v5 = vld [vmem:[%s13010_s2] ss:$0 sm:$0xff]  ;;  %v4510_v4 = vld [vmem:[#allocation2 + $0x18] sm:$0xe] }
 0x299   : > { %v3800_v9 = vadd.f32 %v9243_v49, %v3639_v24  ;;  %v3792_v38 = vadd.f32 %v3791_v32, %v11503_v2  ;;  %v11647_v44 = vadd.f32 %v8703_v63, %v8702_v36  ;;  %4420 = vst [vmem:[#allocation2 + $0x84] sm:$0xf] %v4419_v48  ;;  %v3923_v14 = vmax.f32 %v3891_v1, 0.0  ;;  %v9722_v2 = vld [vmem:[#allocation8 + $0x1c0] sm:$0xff]   ;;  %v11666_v51 = vld [vmem:[%s13011_s3] ss:$0 sm:$0xff]  ;;  %9078 = vmatpush3.bf16.msra.mxu0 %v9719_v23 }
 0x29a   : > { %v3850_v6 = vmul.f32 %v11652_v5, %v3779_v3  ;;  %v11656_v35 = vcombine.low %v4466_v52, %v11620_v56  ;;  %6669 = vmatmul.mubr.bf16.gmra.mxu1 %v11569_v12  ;;  %v8034_v57 = vcombine.low %v4510_v4, %v11548_v61  ;;  %v5059_v17 = vrot.slane %v11571_v58, 1  ;;  %9249 = vmatprep.subr.bf16.mxu1 %v9724_v59  ;;  %v4530_v42 = vld [vmem:[#allocation2 + $0x30] sm:$0xf]  ;;  %v4429_v3 = vld [vmem:[#allocation2 + $0x98] sm:$0x1] }
 0x29b   : > { %v3855_v49 = vmul.f32 %v11652_v5, %v3800_v9  ;;  %v3853_v36 = vmul.f32 %v11652_v5, %v3792_v38  ;;  %v8247_v20 = vpack.c.bf16 %v3923_v14, %v3923_v14  ;;  %v4840_v27 = vshll.u32 %v11634_v41, 16  ;;  %9079 = vmatprep.subr.bf16.mxu0 %v9722_v2 }
 0x29c   : > { %v3889_v10 = vadd.f32 %v11666_v51, %v3850_v6  ;;  %v4835_v18 = vshll.u32 %v11656_v35, 16  ;;  %v4833_v58 = vshrl.u32 %v11656_v35, 16  ;;  %v5058_v33 = vrot.slane %v8034_v57, 1 }
 0x29d   : > { %v3894_v12 = vadd.f32 %v11666_v51, %v3855_v49  ;;  %v3892_v61 = vadd.f32 %v11666_v51, %v3853_v36  ;;  %v4224_v53 = vshrl.u32 %v8247_v20, 16  ;;  %v4227_v16 = vshll.u32 %v8247_v20, 16  ;;  %9080 = vmatpush3.bf16.msra.mxu0 %v9723_v25  ;;  %v9247_v36 = vpop.f32.mrf.mxu0 }
 0x29e   : > { %v3921_v22 = vmax.f32 %v3889_v10, 0.0  ;;  %v4837_v40 = vrot.slane %v4835_v18, 1  ;;  %v5060_v32 = vsel %vm1448_vm9, %v5058_v33, %v5059_v17  ;;  %v3803_v63 = vadd.f32 %v9244_v39, %v3642_v30  ;;  %v4422_v39 = vld [vmem:[#allocation2 + $0x8c] sm:$0x1]  ;;  %v4439_v10 = vld [vmem:[#allocation2 + $0xa8] sm:$0xf] }
 0x29f   : > { %v3926_v15 = vmax.f32 %v3894_v12, 0.0  ;;  %v3924_v7 = vmax.f32 %v3892_v61, 0.0  ;;  %v4226_v24 = vrot.slane %v4224_v53, 7  ;;  %6830 = vmatmul.mubr.bf16.gmra.mxu0 %v5060_v32  ;;  %v11675_v46 = vcombine.low %v4530_v42, %v4531_v13  ;;  %v4432_v13 = vld [vmem:[#allocation2 + $0x9c] sm:$0xf] }
 0x2a0   : > { %v8245_v54 = vpack.c.bf16 %v3921_v22, %v3921_v22  ;;  %v4838_v29 = vor.u32 %v4837_v40, %v4833_v58  ;;  %v4222_v1 = vrot.slane %v11599_v21, 4  ;;  %v3856_v38 = vmul.f32 %v11652_v5, %v3803_v63  ;;  %v4468_v42 = vld [vmem:[#allocation2 + $0x30] sm:$0xf] }
 0x2a1   : > { %v8250_v48 = vpack.c.bf16 %v3926_v15, %v3926_v15  ;;  %v8248_v9 = vpack.c.bf16 %v3924_v7, %v3924_v7  ;;  %v4229_v52 = vor.u32 %v4227_v16, %v4226_v24  ;;  %v4231_v23 = vrot.slane %v4226_v24, 4  ;;  %6837 = vmatprep.mubr.bf16.mxu0 %v11675_v46  ;;  %v3807_v15 = vpop.f32.mrf.mxu0  ;;  %v11703_v7 = vld [vmem:[#allocation2 + $0x38] ss:$0 sps:$4 sm:$0x11]  }
 0x2a2   : > { %v4207_v14 = vshrl.u32 %v8245_v54, 16  ;;  %v4842_v30 = vrot.slane %v4840_v27, 1  ;;  %v4210_v6 = vshll.u32 %v8245_v54, 16  ;;  %v3895_v12 = vadd.f32 %v11666_v51, %v3856_v38 }
 0x2a3   : > { %v4250_v4 = vshrl.u32 %v8250_v48, 16  ;;  %v4253_v2 = vshll.u32 %v8250_v48, 16  ;;  %v4233_v49 = vshrl.u32 %v8248_v9, 16  ;;  %v4230_v21 = vsel %vm10236_vm6, %v4222_v1, %v4229_v52 }
 0x2a4   : > { %v4430_v57 = vsel %vm10248_vm8, %v4231_v23, %v4429_v3  ;;  %v4209_v17 = vrot.slane %v4207_v14, 7  ;;  %v4843_v59 = vsel %vm1191_vm3, %v4838_v29, %v4842_v30  ;;  %4428 = vst [vmem:[#allocation2 + $0x94] sm:$0xf] %v4230_v21  ;;  %v4236_v27 = vshll.u32 %v8248_v9, 16  ;;  %v9248_v9 = vpop.f32.mrf.mxu0  ;;  %v11725_v30 = vld [vmem:[#allocation2 + $0x40] sm:$0xf] }
 0x2a5   : > { %4431 = vst [vmem:[#allocation2 + $0x98] sm:$0x1] %v4430_v57  ;;  %v11685_v20 = vrot.slane %v4250_v4, 7  ;;  %v11687_v18 = vrot.slane %v4233_v49, 7  ;;  %6676 = vmatprep.mubr.bf16.mxu1 %v4843_v59  ;;  %v4205_v61 = vrot.slane %v11610_v8, 4  ;;  %v3795_v25 = vadd.f32 %v3794_v55, %v11626_v45 }
 0x2a6   : > { %v4212_v58 = vor.u32 %v4210_v6, %v4209_v17  ;;  %v4214_v33 = vrot.slane %v4209_v17, 4  ;;  %6677 = vmatmul.mubr.bf16.gmra.mxu1 %v11656_v35  ;;  %v11695_v53 = vadd.f32 %v11553_v50, %v11514_v11  ;;  %v3655_v40 = vadd.f32 %v11642_v0, %v11262_v37  ;;  %v11701_v8 = vld [vmem:[#allocation2 + $0x34] sm:$0xf]  ;;  %v4443_v17 = vld [vmem:[#allocation2 + $0xb0] sm:$0x1] }
 0x2a7   : > { %v4255_v16 = vor.u32 %v4253_v2, %v11685_v20  ;;  %v4238_v22 = vor.u32 %v4236_v27, %v11687_v18  ;;  %v3927_v11 = vmax.f32 %v3895_v12, 0.0  ;;  %v3658_v50 = vadd.f32 %v11647_v44, %v11293_v28  ;;  %v4511_v44 = vld [vmem:[#allocation2 + $0x24] sm:$0xe] }
 0x2a8   : > { %v4213_v45 = vsel %vm10236_vm6, %v4205_v61, %v4212_v58  ;;  %v4423_v35 = vsel %vm10248_vm8, %v4214_v33, %v4422_v39  ;;  %v3854_v32 = vmul.f32 %v11652_v5, %v3795_v25  ;;  %v3816_v63 = vadd.f32 %v9247_v36, %v3655_v40 }
 0x2a9   : > { %4421 = vst [vmem:[#allocation2 + $0x88] sm:$0xf] %v4213_v45  ;;  %4424 = vst [vmem:[#allocation2 + $0x8c] sm:$0x1] %v4423_v35  ;;  %v4440_v37 = vsel %vm10242_vm7, %v4255_v16, %v4439_v10  ;;  %v4433_v0 = vsel %vm10242_vm7, %v4238_v22, %v4432_v13  ;;  %v4256_v55 = vrot.slane %v11685_v20, 4  ;;  %v8251_v24 = vpack.c.bf16 %v3927_v11, %v3927_v11 }
 0x2aa   : > { %4441 = vst [vmem:[#allocation2 + $0xa8] sm:$0xf] %v4440_v37  ;;  %4434 = vst [vmem:[#allocation2 + $0x9c] sm:$0xf] %v4433_v0  ;;  %v3808_v54 = vadd.f32 %v3807_v15, %v11638_v19  ;;  %v8004_v28 = vcombine.low %v4468_v42, %v11701_v8  ;;  %v3893_v29 = vadd.f32 %v11666_v51, %v3854_v32  ;;  %v4852_v3 = vshll.u32 %v11703_v7, 16  ;;  %v3810_v37 = vpop.f32.mrf.mxu0 }
 0x2ab   : > { %v3859_v1 = vmul.f32 %v11652_v5, %v3816_v63  ;;  %v8035_v48 = vcombine.low %v4511_v44, %v11620_v56  ;;  %v4258_v38 = vshrl.u32 %v8251_v24, 16  ;;  %v4261_v52 = vshll.u32 %v8251_v24, 16  ;;  %v4532_v56 = vld [vmem:[#allocation2 + $0x3c] sm:$0xf]  ;;  %v4436_v32 = vld [vmem:[#allocation2 + $0xa4] sm:$0x1] }
 0x2ac   : > { %v3857_v23 = vmul.f32 %v11652_v5, %v3808_v54  ;;  %v5062_v14 = vrot.slane %v11634_v41, 1  ;;  %v3925_v19 = vmax.f32 %v3893_v29, 0.0  ;;  %v4845_v4 = vshrl.u32 %v8004_v28, 16 }
 0x2ad   : > { %v3898_v6 = vadd.f32 %v11666_v51, %v3859_v1  ;;  %v4847_v2 = vshll.u32 %v8004_v28, 16  ;;  %v4260_v49 = vrot.slane %v4258_v38, 7  ;;  %v5061_v21 = vrot.slane %v8035_v48, 1  ;;  %v4453_v1 = vld [vmem:[#allocation2 + $0xc0] sm:$0xf] }
 0x2ae   : > { %v3896_v36 = vadd.f32 %v11666_v51, %v3857_v23  ;;  %v3819_v57 = vadd.f32 %v9248_v9, %v3658_v50  ;;  %v8249_v39 = vpack.c.bf16 %v3925_v19, %v3925_v19  ;;  %v11730_v10 = vcombine.low %v4532_v56, %v11725_v30 }
 0x2af   : > { %v3930_v59 = vmax.f32 %v3898_v6, 0.0  ;;  %v4849_v20 = vrot.slane %v4847_v2, 1  ;;  %v4263_v41 = vor.u32 %v4261_v52, %v4260_v49  ;;  %v4265_v27 = vrot.slane %v4260_v49, 4  ;;  %v4470_v6 = vld [vmem:[#allocation2 + $0x3c] sm:$0xf] }
 0x2b0   : > { %v3928_v12 = vmax.f32 %v3896_v36, 0.0  ;;  %v5063_v61 = vsel %vm1448_vm9, %v5061_v21, %v5062_v14  ;;  %v4241_v58 = vshrl.u32 %v8249_v39, 16  ;;  %v4854_v25 = vrot.slane %v4852_v3, 1  ;;  %v11752_v14 = vld [vmem:[#allocation2 + $0x44] ss:$0 sps:$4 sm:$0x11]  }
 0x2b1   : > { %v8254_v33 = vpack.c.bf16 %v3930_v59, %v3930_v59  ;;  %v4850_v13 = vor.u32 %v4849_v20, %v4845_v4  ;;  %6838 = vmatmul.mubr.bf16.gmra.mxu0 %v5063_v61  ;;  %v4264_v16 = vsel %vm10236_vm6, %v4256_v55, %v4263_v41  ;;  %v4444_v22 = vsel %vm10248_vm8, %v4265_v27, %v4443_v17  ;;  %v4512_v36 = vld [vmem:[#allocation2 + $0x30] sm:$0xe]  ;;  %v11759_v21 = vld [vmem:[#allocation2 + $0x4c] sm:$0xf]  ;;  %v4457_v41 = vld [vmem:[#allocation2 + $0xc8] sm:$0x1] }
 0x2b2   : > { %v8252_v40 = vpack.c.bf16 %v3928_v12, %v3928_v12  ;;  %v3860_v15 = vmul.f32 %v11652_v5, %v3819_v57  ;;  %6845 = vmatprep.mubr.bf16.mxu0 %v11730_v10  ;;  %4442 = vst [vmem:[#allocation2 + $0xac] sm:$0xf] %v4264_v16  ;;  %4445 = vst [vmem:[#allocation2 + $0xb0] sm:$0x1] %v4444_v22  ;;  %v4243_v45 = vrot.slane %v4241_v58, 7  ;;  %v4244_v35 = vshll.u32 %v8249_v39, 16 }
 0x2b3   : > { %v4284_v11 = vshrl.u32 %v8254_v33, 16  ;;  %v4855_v50 = vsel %vm1191_vm3, %v4850_v13, %v4854_v25  ;;  %v4239_v0 = vrot.slane %v11687_v18, 4  ;;  %v3650_v55 = vadd.f32 %v11695_v53, %v11241_v31  ;;  %v11746_v18 = vld [vmem:[#allocation2 + $0x40] sm:$0xf]  ;;  %v4446_v53 = vld [vmem:[#allocation2 + $0xb4] sm:$0xf] }
 0x2b4   : > { %v4267_v63 = vshrl.u32 %v8252_v40, 16  ;;  %6684 = vmatprep.mubr.bf16.mxu1 %v4855_v50  ;;  %v3899_v42 = vadd.f32 %v11666_v51, %v3860_v15  ;;  %v4246_v24 = vor.u32 %v4244_v35, %v4243_v45  ;;  %v4248_v54 = vrot.slane %v4243_v45, 4  ;;  %v11764_v39 = vld [vmem:[#allocation2 + $0x4c] sm:$0xf]  ;;  %v4472_v13 = vld [vmem:[#allocation2 + $0x48] sm:$0xf] }
 0x2b5   : > { %v4286_v44 = vrot.slane %v4284_v11, 7  ;;  %v4287_v29 = vshll.u32 %v8254_v33, 16  ;;  %6685 = vmatmul.mubr.bf16.gmra.mxu1 %v8004_v28  ;;  %v4270_v48 = vshll.u32 %v8252_v40, 16  ;;  %v3811_v38 = vadd.f32 %v3810_v37, %v3650_v55  ;;  %v11766_v59 = vld [vmem:[#allocation2 + $0x50] ss:$0 sps:$4 sm:$0x11]  }
 0x2b6   : > { %v11744_v3 = vrot.slane %v4267_v63, 7  ;;  %v3931_v9 = vmax.f32 %v3899_v42, 0.0  ;;  %v4247_v52 = vsel %vm10236_vm6, %v4239_v0, %v4246_v24  ;;  %v4437_v23 = vsel %vm10248_vm8, %v4248_v54, %v4436_v32  ;;  %v4534_v22 = vld [vmem:[#allocation2 + $0x48] sm:$0xf]  ;;  %v11778_v0 = vld [vmem:[#allocation2 + $0x58] sm:$0xf] }
 0x2b7   : > { %v4289_v31 = vor.u32 %v4287_v29, %v4286_v44  ;;  %4435 = vst [vmem:[#allocation2 + $0xa0] sm:$0xf] %v4247_v52  ;;  %4438 = vst [vmem:[#allocation2 + $0xa4] sm:$0x1] %v4437_v23  ;;  %v3858_v2 = vmul.f32 %v11652_v5, %v3811_v38  ;;  %v8005_v49 = vcombine.low %v4470_v6, %v11746_v18  ;;  %v4290_v20 = vrot.slane %v4286_v44, 4 }
 0x2b8   : > { %v4272_v28 = vor.u32 %v4270_v48, %v11744_v3  ;;  %v8255_v19 = vpack.c.bf16 %v3931_v9, %v3931_v9  ;;  %v8036_v17 = vcombine.low %v4512_v36, %v11701_v8  ;;  %v4864_v12 = vshll.u32 %v11752_v14, 16  ;;  %v4474_v44 = vld [vmem:[#allocation2 + $0x54] sm:$0xf]  ;;  %v11788_v29 = vld [vmem:[#allocation2 + $0x5c] ss:$0 sps:$4 sm:$0x11]  }
 0x2b9   : > { %v4454_v4 = vsel %vm10242_vm7, %v4289_v31, %v4453_v1  ;;  %v3897_v5 = vadd.f32 %v11666_v51, %v3858_v2  ;;  %v4859_v27 = vshll.u32 %v8005_v49, 16  ;;  %v5065_v62 = vrot.slane %v11703_v7, 1  ;;  %v4513_v7 = vld [vmem:[#allocation2 + $0x3c] sm:$0xe]  ;;  %v4537_v52 = vld [vmem:[#allocation2 + $0x58] sm:$0xf] }
 0x2ba   : > { %4455 = vst [vmem:[#allocation2 + $0xc0] sm:$0xf] %v4454_v4  ;;  %v4447_v57 = vsel %vm10242_vm7, %v4272_v28, %v4446_v53  ;;  %v4292_v56 = vshrl.u32 %v8255_v19, 16  ;;  %v4295_v58 = vshll.u32 %v8255_v19, 16  ;;  %v5064_v33 = vrot.slane %v8036_v17, 1 }
 0x2bb   : > { %4448 = vst [vmem:[#allocation2 + $0xb4] sm:$0xf] %v4447_v57  ;;  %v3929_v25 = vmax.f32 %v3897_v5, 0.0  ;;  %v4857_v8 = vshrl.u32 %v8005_v49, 16  ;;  %v4861_v16 = vrot.slane %v4859_v27, 1  ;;  %v11772_v40 = vcombine.low %v4472_v13, %v11764_v39 }
 0x2bc   : > { %v4294_v61 = vrot.slane %v4292_v56, 7  ;;  %v5066_v51 = vsel %vm1448_vm9, %v5064_v33, %v5065_v62  ;;  %v11776_v35 = vcombine.low %v4534_v22, %v11759_v21  ;;  %v4866_v37 = vrot.slane %v4864_v12, 1  ;;  %v4450_v53 = vld [vmem:[#allocation2 + $0xbc] sm:$0x1]  ;;  %v4536_v36 = vld [vmem:[#allocation2 + $0x54] sm:$0xf] }
 0x2bd   : > { %v8253_v11 = vpack.c.bf16 %v3929_v25, %v3929_v25  ;;  %v4862_v50 = vor.u32 %v4861_v16, %v4857_v8  ;;  %6846 = vmatmul.mubr.bf16.gmra.mxu0 %v5066_v51  ;;  %v4871_v42 = vshll.u32 %v11772_v40, 16  ;;  %v4876_v55 = vshll.u32 %v11766_v59, 16  ;;  %v11801_v27 = vld [vmem:[#allocation2 + $0x64] sm:$0xf]  ;;  %v4476_v33 = vld [vmem:[#allocation2 + $0x60] sm:$0xf] }
 0x2be   : > { %v4297_v15 = vor.u32 %v4295_v58, %v4294_v61  ;;  %v4299_v45 = vrot.slane %v4294_v61, 4  ;;  %6853 = vmatprep.mubr.bf16.mxu0 %v11776_v35  ;;  %v4869_v1 = vshrl.u32 %v11772_v40, 16  ;;  %v8037_v9 = vcombine.low %v4513_v7, %v11746_v18  ;;  %v11809_v13 = vld [vmem:[#allocation2 + $0x68] ss:$0 sps:$4 sm:$0x11]  }
 0x2bf   : > { %v4275_v24 = vshrl.u32 %v8253_v11, 16  ;;  %v4867_v54 = vsel %vm1191_vm3, %v4862_v50, %v4866_v37  ;;  %v4873_v48 = vrot.slane %v4871_v42, 1  ;;  %v5068_v38 = vrot.slane %v11752_v14, 1  ;;  %v4514_v14 = vld [vmem:[#allocation2 + $0x48] sm:$0xe] }
 0x2c0   : > { %v4298_v32 = vsel %vm10236_vm6, %v4290_v20, %v4297_v15  ;;  %v4458_v63 = vsel %vm10248_vm8, %v4299_v45, %v4457_v41  ;;  %6692 = vmatprep.mubr.bf16.mxu1 %v4867_v54  ;;  %v4278_v31 = vshll.u32 %v8253_v11, 16  ;;  %v8007_v28 = vcombine.low %v4474_v44, %v11778_v0  ;;  %v11811_v25 = vld [vmem:[#allocation2 + $0x70] sm:$0xf]  ;;  %v4539_v16 = vld [vmem:[#allocation2 + $0x64] sm:$0xf] }
 0x2c1   : > { %4456 = vst [vmem:[#allocation2 + $0xc4] sm:$0xf] %v4298_v32  ;;  %4459 = vst [vmem:[#allocation2 + $0xc8] sm:$0x1] %v4458_v63  ;;  %v4277_v23 = vrot.slane %v4275_v24, 7  ;;  %6693 = vmatmul.mubr.bf16.gmra.mxu1 %v8005_v49  ;;  %v4273_v19 = vrot.slane %v11744_v3, 4  ;;  %v4874_v6 = vor.u32 %v4873_v48, %v4869_v1  ;;  %v11795_v17 = vcombine.low %v4536_v36, %v4537_v52 }
 0x2c2   : > { %v4878_v4 = vrot.slane %v4876_v55, 1  ;;  %v5067_v2 = vrot.slane %v8037_v9, 1  ;;  %v4888_v18 = vshll.u32 %v11788_v29, 16  ;;  %v4883_v49 = vshll.u32 %v8007_v28, 16  ;;  %v4538_v45 = vld [vmem:[#allocation2 + $0x60] sm:$0xf] }
 0x2c3   : > { %v4280_v57 = vor.u32 %v4278_v31, %v4277_v23  ;;  %v4282_v56 = vrot.slane %v4277_v23, 4  ;;  %v8038_v5 = vcombine.low %v4514_v14, %v11764_v39  ;;  %v4881_v61 = vshrl.u32 %v8007_v28, 16  ;;  %v4478_v51 = vld [vmem:[#allocation2 + $0x6c] sm:$0xf]  ;;  %v4515_v7 = vld [vmem:[#allocation2 + $0x54] sm:$0xe] }
 0x2c4   : > { %v4879_v20 = vsel %vm1191_vm3, %v4874_v6, %v4878_v4  ;;  %v5069_v41 = vsel %vm1448_vm9, %v5067_v2, %v5068_v38  ;;  %v4885_v58 = vrot.slane %v4883_v49, 1  ;;  %v4890_v62 = vrot.slane %v4888_v18, 1  ;;  %v11823_v24 = vld [vmem:[#allocation2 + $0x7c] sm:$0xf]  ;;  %v4480_v9 = vld [vmem:[#allocation2 + $0x78] sm:$0xf] }
 0x2c5   : > { %v4281_v3 = vsel %vm10236_vm6, %v4273_v19, %v4280_v57  ;;  %v4451_v12 = vsel %vm10248_vm8, %v4282_v56, %v4450_v53  ;;  %6700 = vmatprep.mubr.bf16.mxu1 %v4879_v20  ;;  %6854 = vmatmul.mubr.bf16.gmra.mxu0 %v5069_v41  ;;  %v8008_v39 = vcombine.low %v4476_v33, %v11801_v27  ;;  %v5070_v8 = vrot.slane %v8038_v5, 1  ;;  %v9665_v44 = vld [vmem:[#allocation2 + $0x74] ss:$0 sps:$4 sm:$0x11]   ;;  %v4541_v52 = vld [vmem:[#allocation2 + $0x70] sm:$0xf] }
 0x2c6   : > { %4449 = vst [vmem:[#allocation2 + $0xb8] sm:$0xf] %v4281_v3  ;;  %4452 = vst [vmem:[#allocation2 + $0xbc] sm:$0x1] %v4451_v12  ;;  %6861 = vmatprep.mubr.bf16.mxu0 %v11795_v17  ;;  %v4886_v60 = vor.u32 %v4885_v58, %v4881_v61  ;;  %v5071_v34 = vrot.slane %v11766_v59, 1  ;;  %v4900_v37 = vshll.u32 %v11809_v13, 16  ;;  %v8009_v32 = vcombine.low %v4478_v51, %v11811_v25 }
 0x2c7   : > { %v4895_v22 = vshll.u32 %v8008_v39, 16  ;;  %v4893_v11 = vshrl.u32 %v8008_v39, 16  ;;  %v11819_v42 = vcombine.low %v4538_v45, %v4539_v16  ;;  %v8039_v59 = vcombine.low %v4515_v7, %v11778_v0  ;;  %v4540_v31 = vld [vmem:[#allocation2 + $0x6c] sm:$0xf]  ;;  %v4516_v6 = vld [vmem:[#allocation2 + $0x60] sm:$0xe] }
 0x2c8   : > { %v4891_v15 = vsel %vm1191_vm3, %v4886_v60, %v4890_v62  ;;  %v5072_v63 = vsel %vm1448_vm9, %v5070_v8, %v5071_v34  ;;  %v4907_v55 = vshll.u32 %v8009_v32, 16  ;;  %v4902_v54 = vrot.slane %v4900_v37, 1  ;;  %v11836_v57 = vld [vmem:[#allocation2 + $0x88] sm:$0xf]  ;;  %v4482_v41 = vld [vmem:[#allocation2 + $0x84] sm:$0xf] }
 0x2c9   : > { %6701 = vmatmul.mubr.bf16.gmra.mxu1 %v11772_v40  ;;  %v4897_v50 = vrot.slane %v4895_v22, 1  ;;  %v5073_v1 = vrot.slane %v8039_v59, 1  ;;  %v5074_v48 = vrot.slane %v11788_v29, 1  ;;  %v11828_v0 = vcombine.low %v4480_v9, %v11823_v24  ;;  %v9671_v18 = vld [vmem:[#allocation2 + $0x80] ss:$0 sps:$4 sm:$0x11]  }
 0x2ca   : > { %6708 = vmatprep.mubr.bf16.mxu1 %v4891_v15  ;;  %v4909_v23 = vrot.slane %v4907_v55, 1  ;;  %v4905_v53 = vshrl.u32 %v8009_v32, 16  ;;  %v4912_v19 = vshll.u32 %v9665_v44, 16  ;;  %v11831_v2 = vcombine.low %v4540_v31, %v4541_v52  ;;  %v4543_v5 = vld [vmem:[#allocation2 + $0x7c] sm:$0xf] }
 0x2cb   : > { %v4898_v40 = vor.u32 %v4897_v50, %v4893_v11  ;;  %v5075_v4 = vsel %vm1448_vm9, %v5073_v1, %v5074_v48  ;;  %v8040_v29 = vcombine.low %v4516_v6, %v11801_v27  ;;  %v4919_v36 = vshll.u32 %v11828_v0, 16  ;;  %v4542_v12 = vld [vmem:[#allocation2 + $0x78] sm:$0xf]  ;;  %v4517_v33 = vld [vmem:[#allocation2 + $0x6c] sm:$0xe] }
 0x2cc   : > { %v4914_v56 = vrot.slane %v4912_v19, 1  ;;  %v5077_v20 = vrot.slane %v11809_v13, 1  ;;  %v11841_v27 = vcombine.low %v4482_v41, %v11836_v57  ;;  %v4917_v61 = vshrl.u32 %v11828_v0, 16  ;;  %v11850_v34 = vld [vmem:[#allocation2 + $0x94] sm:$0xf] }
 0x2cd   : > { %6862 = vmatmul.mubr.bf16.gmra.mxu0 %v5072_v63  ;;  %v4903_v38 = vsel %vm1191_vm3, %v4898_v40, %v4902_v54  ;;  %v5076_v14 = vrot.slane %v8040_v29, 1  ;;  %v4921_v3 = vrot.slane %v4919_v36, 1  ;;  %v4924_v58 = vshll.u32 %v9671_v18, 16  ;;  %v9679_v22 = vld [vmem:[#allocation2 + $0x8c] ss:$0 sps:$4 sm:$0x11]  }
 0x2ce   : > { %6869 = vmatprep.mubr.bf16.mxu0 %v11819_v42  ;;  %v11845_v60 = vcombine.low %v4542_v12, %v4543_v5  ;;  %v8041_v13 = vcombine.low %v4517_v33, %v11811_v25  ;;  %v4931_v8 = vshll.u32 %v11841_v27, 16  ;;  %v5080_v45 = vrot.slane %v9665_v44, 1  ;;  %v4484_v51 = vld [vmem:[#allocation2 + $0x90] sm:$0xf]  ;;  %v4545_v50 = vld [vmem:[#allocation2 + $0x88] sm:$0xf] }
 0x2cf   : > { %v5078_v62 = vsel %vm1448_vm9, %v5076_v14, %v5077_v20  ;;  %v4926_v16 = vrot.slane %v4924_v58, 1  ;;  %v11854_v25 = vcombine.low %v4484_v51, %v11850_v34  ;;  %v4518_v7 = vld [vmem:[#allocation2 + $0x78] sm:$0xe]  ;;  %v4544_v63 = vld [vmem:[#allocation2 + $0x84] sm:$0xf]  ;;  %v4929_v59 = vshrl.u32 %v11841_v27, 16 }
 0x2d0   : > { %v5079_v15 = vrot.slane %v8041_v13, 1  ;;  %v4933_v37 = vrot.slane %v4931_v8, 1  ;;  %v4936_v40 = vshll.u32 %v9679_v22, 16  ;;  %v11858_v54 = vcombine.low %v4544_v63, %v4545_v50  ;;  %v11863_v48 = vld [vmem:[#allocation2 + $0xa0] sm:$0xf] }
 0x2d1   : > { %6709 = vmatmul.mubr.bf16.gmra.mxu1 %v8007_v28  ;;  %v4910_v28 = vor.u32 %v4909_v23, %v4905_v53  ;;  %v8042_v44 = vcombine.low %v4518_v7, %v11823_v24  ;;  %v4943_v1 = vshll.u32 %v11854_v25, 16  ;;  %v5083_v23 = vrot.slane %v9671_v18, 1  ;;  %v4486_v31 = vld [vmem:[#allocation2 + $0x9c] sm:$0xf]  ;;  %v4547_v19 = vld [vmem:[#allocation2 + $0x94] sm:$0xf] }
 0x2d2   : > { %6716 = vmatprep.mubr.bf16.mxu1 %v4903_v38  ;;  %v5081_v55 = vsel %vm1448_vm9, %v5079_v15, %v5080_v45  ;;  %v4938_v9 = vrot.slane %v4936_v40, 1  ;;  %v9685_v38 = vld [vmem:[#allocation2 + $0x98] ss:$0 sps:$4 sm:$0x11]   ;;  %v8013_v24 = vcombine.low %v4486_v31, %v11863_v48  ;;  %v4941_v29 = vshrl.u32 %v11854_v25, 16 }
 0x2d3   : > { %v4915_v49 = vsel %vm1191_vm3, %v4910_v28, %v4914_v56  ;;  %v5082_v52 = vrot.slane %v8042_v44, 1  ;;  %v4945_v6 = vrot.slane %v4943_v1, 1  ;;  %v4948_v28 = vshll.u32 %v9685_v38, 16  ;;  %v4519_v36 = vld [vmem:[#allocation2 + $0x84] sm:$0xe] }
 0x2d4   : > { %v8043_v18 = vcombine.low %v4519_v36, %v11836_v57  ;;  %v4955_v20 = vshll.u32 %v8013_v24, 16  ;;  %v11874_v41 = vld [vmem:[#allocation2 + $0xac] sm:$0xf]  ;;  %v9693_v5 = vld [vmem:[#allocation2 + $0xa4] ss:$0 sps:$4 sm:$0x11]  }
 0x2d5   : > { %6870 = vmatmul.mubr.bf16.gmra.mxu0 %v5075_v4  ;;  %v4546_v4 = vld [vmem:[#allocation2 + $0x90] sm:$0xf]  ;;  %v5084_v56 = vsel %vm1448_vm9, %v5082_v52, %v5083_v23  ;;  %v5086_v12 = vrot.slane %v9679_v22, 1  ;;  %v4549_v33 = vld [vmem:[#allocation2 + $0xa0] sm:$0xf]  ;;  %v4960_v8 = vshll.u32 %v9693_v5, 16 }
 0x2d6   : > { %6877 = vmatprep.mubr.bf16.mxu0 %v11831_v2  ;;  %v11870_v14 = vcombine.low %v4546_v4, %v4547_v19  ;;  %v4548_v13 = vld [vmem:[#allocation2 + $0x9c] sm:$0xf]  ;;  %v5089_v63 = vrot.slane %v9685_v38, 1  ;;  %v4553_v36 = vld [vmem:[#allocation2 + $0xb8] sm:$0xf] }
 0x2d7   : > { %v11882_v45 = vcombine.low %v4548_v13, %v4549_v33  ;;  %v4962_v50 = vrot.slane %v4960_v8, 1  ;;  %v4521_v52 = vld [vmem:[#allocation2 + $0x9c] sm:$0xe]  ;;  %v8745_v33 = vpop.f32.mrf.mxu1  ;;  %v4572_v13 = vld [vmem:[#allocation2 + $0xc] sm:$0xe] }
 0x2d9   : > { %6717 = vmatmul.mubr.bf16.gmra.mxu1 %v8008_v39  ;;  %v4922_v39 = vor.u32 %v4921_v3, %v4917_v61  ;;  %v5085_v3 = vrot.slane %v8043_v18, 1  ;;  %v4488_v61 = vld [vmem:[#allocation2 + $0xa8] sm:$0xf]  ;;  %v11907_v18 = vld [vmem:[#allocation2 + $0x1c] sm:$0xf] }
 0x2da   : > { %6724 = vmatprep.mubr.bf16.mxu1 %v4915_v49  ;;  %v4950_v49 = vrot.slane %v4948_v28, 1  ;;  %v11879_v57 = vcombine.low %v4488_v61, %v11874_v41 }
 0x2db   : > { %v4927_v11 = vsel %vm1191_vm3, %v4922_v39, %v4926_v16  ;;  %v4953_v39 = vshrl.u32 %v8013_v24, 16  ;;  %v4520_v16 = vld [vmem:[#allocation2 + $0x90] sm:$0xe]  ;;  %v5087_v15 = vsel %vm1448_vm9, %v5085_v3, %v5086_v12 }
 0x2dc   : > { %v8044_v22 = vcombine.low %v4520_v16, %v11850_v34  ;;  %v4967_v51 = vshll.u32 %v11879_v57, 16  ;;  %v4965_v1 = vshrl.u32 %v11879_v57, 16  ;;  %v9833_v16 = vld [vmem:[#allocation2 + $0x10] sm:$0xf] }
 0x2dd   : > { %6878 = vmatmul.mubr.bf16.gmra.mxu0 %v5078_v62  ;;  %v4957_v62 = vrot.slane %v4955_v20, 1 }
 0x2de   : > { %6885 = vmatprep.mubr.bf16.mxu0 %v11845_v60  ;;  %v5088_v7 = vrot.slane %v8044_v22, 1  ;;  %v4969_v34 = vrot.slane %v4967_v51, 1  ;;  %v4555_v22 = vld [vmem:[#allocation2 + $0xc4] sm:$0xf] }
 0x2e0   : > { %v5090_v23 = vsel %vm1448_vm9, %v5088_v7, %v5089_v63  ;;  %v4970_v31 = vor.u32 %v4969_v34, %v4965_v1  ;;  %v11923_v7 = vld [vmem:[#allocation2 + $0x20] ss:$0 sps:$4 sm:$0x11]   ;;  %v11925_v63 = vld [vmem:[#allocation2 + $0x28] sm:$0xf] }
 0x2e1   : > { %6725 = vmatmul.mubr.bf16.gmra.mxu1 %v8009_v32  ;;  %v4934_v32 = vor.u32 %v4933_v37, %v4929_v59  ;;  %v11889_v37 = vld [vmem:[#allocation2 + $0xb0] ss:$0 sps:$4 sm:$0x11]   ;;  %v4490_v59 = vld [vmem:[#allocation2 + $0xb4] sm:$0xf] }
 0x2e2   : > { %6732 = vmatprep.mubr.bf16.mxu1 %v4927_v11  ;;  %v11887_v11 = vld [vmem:[#allocation2 + $0xb8] sm:$0xf]  ;;  %v5095_v8 = vrot.slane %v11889_v37, 1  ;;  %v4590_v1 = vld [vmem:[#allocation2 + $0x24] sm:$0xf] }
 0x2e3   : > { %v4939_v53 = vsel %vm1191_vm3, %v4934_v32, %v4938_v9  ;;  %v11894_v44 = vcombine.low %v4490_v59, %v11887_v11  ;;  %v4550_v32 = vld [vmem:[#allocation2 + $0xa8] sm:$0xf]  ;;  %v4972_v9 = vshll.u32 %v11889_v37, 16  ;;  %v5263_v37 = vshll.u32 %v11471_v26, 16 }
 0x2e5   : > { %6886 = vmatmul.mubr.bf16.gmra.mxu0 %v5081_v55  ;;  %v4551_v55 = vld [vmem:[#allocation2 + $0xac] sm:$0xf]  ;;  %v4974_v19 = vrot.slane %v4972_v9, 1 }
 0x2e6   : > { %6893 = vmatprep.mubr.bf16.mxu0 %v11858_v54  ;;  %v11899_v38 = vcombine.low %v4550_v32, %v4551_v55  ;;  %v4523_v55 = vld [vmem:[#allocation2 + $0xb4] sm:$0xe] }
 0x2e7   : > { %v4975_v28 = vsel %vm1191_vm3, %v4970_v31, %v4974_v19  ;;  %v8047_v32 = vcombine.low %v4523_v55, %v11887_v11  ;;  %v5265_v31 = vrot.slane %v5263_v37, 1  ;;  %v5732_v19 = vshll.u32 %v11923_v7, 16 }
 0x2e8   : > { %v5275_v11 = vshll.u32 %v11521_v43, 16 }
 0x2e9   : > { %6733 = vmatmul.mubr.bf16.gmra.mxu1 %v11828_v0  ;;  %v4946_v0 = vor.u32 %v4945_v6, %v4941_v29  ;;  %v11904_v6 = vld [vmem:[#allocation2 + $0xbc] ss:$0 sps:$4 sm:$0x11]   ;;  %v5092_v29 = vrot.slane %v9693_v5, 1 }
 0x2ea   : > { %6740 = vmatprep.mubr.bf16.mxu1 %v4939_v53  ;;  %v4979_v53 = vshll.u32 %v11894_v44, 16  ;;  %v4984_v20 = vshll.u32 %v11904_v6, 16 }
 0x2eb   : > { %v4951_v58 = vsel %vm1191_vm3, %v4946_v0, %v4950_v49  ;;  %v4977_v0 = vshrl.u32 %v11894_v44, 16  ;;  %v4522_v49 = vld [vmem:[#allocation2 + $0xa8] sm:$0xe] }
 0x2ec   : > { %v8046_v5 = vcombine.low %v4522_v49, %v11874_v41  ;;  %v11945_v49 = vld [vmem:[#allocation2 + $0x20] ss:$0 sps:$4 sm:$0x11]  }
 0x2ed   : > { %6894 = vmatmul.mubr.bf16.gmra.mxu0 %v5084_v56  ;;  %v4981_v56 = vrot.slane %v4979_v53, 1 }
 0x2ee   : > { %6901 = vmatprep.mubr.bf16.mxu0 %v11870_v14 }
 0x2ef   : > { %v4982_v61 = vor.u32 %v4981_v56, %v4977_v0  ;;  %v9834_v56 = vld [vmem:[#allocation2 + $0x1c] sm:$0xf] }
 0x2f1   : > { %6741 = vmatmul.mubr.bf16.gmra.mxu1 %v11841_v27  ;;  %v4958_v27 = vor.u32 %v4957_v62, %v4953_v39  ;;  %v4986_v62 = vrot.slane %v4984_v20, 1  ;;  %v5094_v39 = vrot.slane %v8046_v5, 1  ;;  %v11948_v5 = vld [vmem:[#allocation2 + $0x34] sm:$0xf] }
 0x2f2   : > { %6748 = vmatprep.mubr.bf16.mxu1 %v4951_v58 }
 0x2f3   : > { %v4963_v40 = vsel %vm1191_vm3, %v4958_v27, %v4962_v50  ;;  %v4987_v41 = vsel %vm1191_vm3, %v4982_v61, %v4986_v62  ;;  %v9717_v27 = vld [vmem:[#allocation2 + $0x14] ss:$0 sps:$4 sm:$0x11]   ;;  %v8746_v50 = vpop.f32.mrf.mxu1  ;;  %v11952_v62 = vld [vmem:[#allocation2 + $0x2c] ss:$0 sps:$4 sm:$0x11]  }
 0x2f4   : > { %v11927_v59 = vadd.f32 %v8746_v50, %v8745_v33  ;;  %v5268_v61 = vshll.u32 %v9717_v27, 16  ;;  %v5734_v33 = vrot.slane %v5732_v19, 1  ;;  %v11963_v50 = vld [vmem:[#allocation2 + $0x40] sm:$0xf]  ;;  %v9836_v19 = vld [vmem:[#allocation2 + $0x34] sm:$0xf] }
 0x2f5   : > { %6902 = vmatmul.mubr.bf16.gmra.mxu0 %v5087_v15  ;;  %v8080_v15 = vcombine.low %v4572_v13, %v9833_v16  ;;  %v5277_v13 = vrot.slane %v5275_v11, 1  ;;  %v11973_v11 = vld [vmem:[#allocation2 + $0x38] ss:$0 sps:$4 sm:$0x11]  }
 0x2f6   : > { %6909 = vmatprep.mubr.bf16.mxu0 %v11882_v45 }
 0x2f7   : > { %v5516_v9 = vrot.slane %v8080_v15, 1 }
 0x2f9   : > { %6749 = vmatmul.mubr.bf16.gmra.mxu1 %v11854_v25  ;;  %v8045_v25 = vcombine.low %v4521_v52, %v11863_v48  ;;  %v4552_v48 = vld [vmem:[#allocation2 + $0xb4] sm:$0xf]  ;;  %v5517_v52 = vrot.slane %v9717_v27, 1  ;;  %v5520_v27 = vrot.slane %v11945_v49, 1 }
 0x2fa   : > { %6756 = vmatprep.mubr.bf16.mxu1 %v4963_v40  ;;  %v11912_v12 = vcombine.low %v4552_v48, %v4553_v36  ;;  %v4554_v40 = vld [vmem:[#allocation2 + $0xc0] sm:$0xf]  ;;  %v5098_v36 = vrot.slane %v11904_v6, 1 }
 0x2fb   : > { %v5091_v4 = vrot.slane %v8045_v25, 1  ;;  %v11931_v34 = vcombine.low %v4554_v40, %v4555_v22  ;;  %v11935_v25 = vcombine.low %v4590_v1, %v11925_v63  ;;  %v5518_v0 = vsel %vm1448_vm9, %v5516_v9, %v5517_v52  ;;  %v9835_v40 = vld [vmem:[#allocation2 + $0x28] sm:$0xf]  ;;  %v11966_v1 = vld [vmem:[#allocation2 + $0x2c] ss:$0 sps:$4 sm:$0x11]  }
 0x2fc   : > { %v5311_v9 = vshll.u32 %v11730_v10, 16 }
 0x2fd   : > { %6910 = vmatmul.mubr.bf16.gmra.mxu0 %v5090_v23  ;;  %v5093_v3 = vsel %vm1448_vm9, %v5091_v4, %v5092_v29  ;;  %v5261_v4 = vshrl.u32 %v11471_v26, 16  ;;  %v4573_v29 = vld [vmem:[#allocation2 + $0x18] sm:$0xe]  ;;  %v5273_v26 = vshrl.u32 %v11521_v43, 16  ;;  %v5737_v52 = vshrl.u32 %v11935_v25, 16 }
 0x2fe   : > { %6917 = vmatprep.mubr.bf16.mxu0 %v11899_v38  ;;  %v8081_v48 = vcombine.low %v4573_v29, %v9834_v56  ;;  %v5297_v56 = vshrl.u32 %v11675_v46, 16 }
 0x2ff   : > { %v5266_v6 = vor.u32 %v5265_v31, %v5261_v4  ;;  %v9731_v31 = vld [vmem:[#allocation8 + $0x230] sm:$0xff]  }
 0x300   : > { %v5519_v22 = vrot.slane %v8081_v48, 1  ;;  %v11980_v48 = vld [vmem:[#allocation2 + $0x48] sm:$0xe] }
 0x301   : > { %6757 = vmatmul.mubr.bf16.gmra.mxu1 %v8013_v24  ;;  %v4588_v24 = vld [vmem:[#allocation2 + $0x18] sm:$0xf] }
 0x302   : > { %6764 = vmatprep.mubr.bf16.mxu1 %v4975_v28  ;;  %v11916_v58 = vcombine.low %v4588_v24, %v11907_v18  ;;  %v5097_v28 = vrot.slane %v8047_v32, 1  ;;  %v5287_v24 = vshll.u32 %v11615_v47, 16  ;;  %v5270_v32 = vrot.slane %v5268_v61, 1  ;;  %v11984_v61 = vld [vmem:[#allocation2 + $0x4c] sm:$0xf] }
 0x304   : > { %v5727_v51 = vshll.u32 %v11916_v58, 16  ;;  %v5725_v53 = vshrl.u32 %v11916_v58, 16  ;;  %v5099_v16 = vsel %vm1448_vm9, %v5097_v28, %v5098_v36  ;;  %v5289_v37 = vrot.slane %v5287_v24, 1  ;;  %v9732_v24 = vld [vmem:[#allocation2 + $0x38] ss:$0 sps:$4 sm:$0x11]  }
 0x305   : > { %6918 = vmatmul.mubr.bf16.gmra.mxu0 %v5093_v3  ;;  %v5739_v3 = vshll.u32 %v11935_v25, 16  ;;  %v5271_v29 = vsel %vm1191_vm3, %v5266_v6, %v5270_v32  ;;  %v11993_v32 = vld [vmem:[#allocation2 + $0x44] ss:$0 sps:$4 sm:$0x11]  }
 0x306   : > { %6925 = vmatprep.mubr.bf16.mxu0 %v11912_v12  ;;  %v5729_v23 = vrot.slane %v5727_v51, 1 }
 0x307   : > { %v5741_v51 = vrot.slane %v5739_v3, 1  ;;  %v5280_v3 = vshll.u32 %v11945_v49, 16  ;;  %v4596_v49 = vld [vmem:[#allocation2 + $0x48] sm:$0xf] }
 0x308   : > { %v5730_v20 = vor.u32 %v5729_v23, %v5725_v53  ;;  %v5744_v23 = vshll.u32 %v11952_v62, 16  ;;  %v4594_v53 = vld [vmem:[#allocation2 + $0x3c] sm:$0xf] }
 0x309   : > { %6765 = vmatmul.mubr.bf16.gmra.mxu1 %v11879_v57  ;;  %v5096_v57 = vsel %vm1448_vm9, %v5094_v39, %v5095_v8  ;;  %v4574_v39 = vld [vmem:[#allocation2 + $0x24] sm:$0xe]  ;;  %v5285_v8 = vshrl.u32 %v11615_v47, 16  ;;  %v11977_v36 = vcombine.low %v4594_v53, %v11963_v50 }
 0x30a   : > { %6772 = vmatprep.mubr.bf16.mxu1 %v4987_v41  ;;  %v11959_v41 = vld [vmem:[#allocation2 + $0x30] sm:$0xe]  ;;  %v5735_v43 = vsel %vm1191_vm3, %v5730_v20, %v5734_v33  ;;  %v8082_v55 = vcombine.low %v4574_v39, %v9835_v40  ;;  %v5742_v20 = vor.u32 %v5741_v51, %v5737_v52  ;;  %v4576_v33 = vld [vmem:[#allocation2 + $0x3c] sm:$0xe]  ;;  %v9738_v51 = vld [vmem:[#allocation8 + $0x228] sm:$0xff]   ;;  %v8085_v40 = vcombine.low %v11980_v48, %v11759_v21 }
 0x30b   : > { %v8083_v4 = vcombine.low %v11959_v41, %v9836_v19  ;;  %v9837_v39 = vld [vmem:[#allocation8 + $0x238] sm:$0xff]   ;;  %v11988_v41 = vrot.slane %v5311_v9, 1  ;;  %v5763_v52 = vshll.u32 %v11977_v36, 16  ;;  %v4644_v21 = vld [vmem:[#allocation2 + $0x78] sm:$0xe] }
 0x30c   : > { %v12064_v48 = vld [vmem:[#allocation2 + $0x74] ss:$0 sps:$4 sm:$0x11]  }
 0x30d   : > { %6926 = vmatmul.mubr.bf16.gmra.mxu0 %v5096_v57  ;;  %v5299_v57 = vshll.u32 %v11675_v46, 16  ;;  %v5523_v46 = vrot.slane %v11966_v1, 1 }
 0x30e   : > { %6933 = vmatprep.mubr.bf16.mxu0 %v11931_v34 }
 0x30f   : > { %v5301_v6 = vrot.slane %v5299_v57, 1 }
 0x311   : > { %6773 = vmatmul.mubr.bf16.gmra.mxu1 %v11894_v44  ;;  %v4592_v44 = vld [vmem:[#allocation2 + $0x30] sm:$0xf] }
 0x312   : > { %6974 = vmatprep.mubr.bf16.mxu1 %v5518_v0  ;;  %v11957_v15 = vcombine.low %v4592_v44, %v11948_v5  ;;  %v5521_v0 = vsel %vm1448_vm9, %v5519_v22, %v5520_v27  ;;  %v5309_v44 = vshrl.u32 %v11730_v10, 16  ;;  %v5746_v22 = vrot.slane %v5744_v23, 1  ;;  %v12003_v23 = vld [vmem:[#allocation2 + $0x44] ss:$0 sps:$4 sm:$0x11]  }
 0x313   : > { %v5278_v27 = vor.u32 %v5277_v13, %v5273_v26  ;;  %v5282_v26 = vrot.slane %v5280_v3, 1  ;;  %v5292_v13 = vshll.u32 %v11966_v1, 16  ;;  %v5526_v3 = vrot.slane %v9732_v24, 1 }
 0x314   : > { %v5751_v28 = vshll.u32 %v11957_v15, 16  ;;  %v5749_v19 = vshrl.u32 %v11957_v15, 16  ;;  %v5304_v1 = vshll.u32 %v9732_v24, 16  ;;  %v5761_v24 = vshrl.u32 %v11977_v36, 16 }
 0x315   : > { %6934 = vmatmul.mubr.bf16.gmra.mxu0 %v5099_v16  ;;  %v5522_v16 = vrot.slane %v8082_v55, 1  ;;  %v11997_v55 = vcombine.low %v4596_v49, %v11984_v61  ;;  %v5294_v47 = vrot.slane %v5292_v13, 1  ;;  %v9752_v13 = vld [vmem:[#allocation8 + $0x218] sm:$0xff]   ;;  %v12052_v10 = vrot.slane %v8085_v40, 1 }
 0x316   : > { %7135 = vmatprep.mubr.bf16.mxu0 %v5735_v43  ;;  %v8084_v43 = vcombine.low %v4576_v33, %v11725_v30  ;;  %v5753_v57 = vrot.slane %v5751_v28, 1  ;;  %v5747_v30 = vsel %vm1191_vm3, %v5742_v20, %v5746_v22  ;;  %v5290_v28 = vor.u32 %v5289_v37, %v5285_v8  ;;  %v12013_v33 = vld [vmem:[#allocation2 + $0x58] sm:$0xf] }
 0x317   : > { %v5524_v53 = vsel %vm1448_vm9, %v5522_v16, %v5523_v46  ;;  %v5525_v20 = vrot.slane %v8083_v4, 1  ;;  %v5765_v46 = vrot.slane %v5763_v52, 1  ;;  %v5768_v22 = vshll.u32 %v11993_v32, 16 }
 0x318   : > { %v5754_v16 = vor.u32 %v5753_v57, %v5749_v19  ;;  %v5775_v49 = vshll.u32 %v11997_v55, 16  ;;  %v5302_v8 = vor.u32 %v5301_v6, %v5297_v56  ;;  %v5528_v37 = vrot.slane %v8084_v43, 1  ;;  %v12026_v43 = vld [vmem:[#allocation2 + $0x50] ss:$0 sps:$4 sm:$0x11]  }
 0x319   : > { %6975 = vmatmul.mubr.bf16.vlgmr.msra.gmra.mxu1 %v5271_v29  ;;  %v5756_v29 = vshll.u32 %v11973_v11, 16  ;;  %v5984_v52 = vrot.slane %v11952_v62, 1  ;;  %v5527_v56 = vsel %vm1448_vm9, %v5525_v20, %v5526_v3  ;;  %v5306_v6 = vrot.slane %v5304_v1, 1 }
 0x31a   : > { %6982 = vmatprep.mubr.bf16.mxu1 %v5521_v0  ;;  %9250 = vmatpush3.bf16.msra.mxu1 %v9837_v39  ;;  %v12010_v0 = vld [vmem:[#allocation2 + $0x50] ss:$0 sps:$4 sm:$0x11]   ;;  %v9745_v39 = vld [vmem:[#allocation8 + $0x220] sm:$0xff]   ;;  %v5766_v19 = vor.u32 %v5765_v46, %v5761_v24  ;;  %v12039_v20 = vor.u32 %v11988_v41, %v5309_v44  ;;  %v5773_v1 = vshrl.u32 %v11997_v55, 16  ;;  %v9759_v41 = vld [vmem:[#allocation8 + $0x210] sm:$0xff]  }
 0x31b   : > { %9251 = vmatprep.subr.bf16.mxu1 %v9731_v31  ;;  %v5758_v4 = vrot.slane %v5756_v29, 1  ;;  %v5770_v29 = vrot.slane %v5768_v22, 1  ;;  %v12046_v46 = vld [vmem:[#allocation2 + $0x5c] ss:$0 sps:$4 sm:$0x11]  }
 0x31c   : > { %v12054_v44 = vld [vmem:[#allocation2 + $0x64] sm:$0xf]  ;;  %v4639_v24 = vld [vmem:[#allocation2 + $0x3c] sm:$0xe]  ;;  %v5996_v62 = vrot.slane %v12046_v46, 1 }
 0x31d   : > { %7136 = vmatmul.mubr.bf16.vlgmr.msra.gmra.mxu0 %v11916_v58  ;;  %v5283_v58 = vsel %vm1191_vm3, %v5278_v27, %v5282_v26  ;;  %v4598_v27 = vld [vmem:[#allocation2 + $0x54] sm:$0xf]  ;;  %v5295_v26 = vsel %vm1191_vm3, %v5290_v28, %v5294_v47 }
 0x31e   : > { %7143 = vmatprep.mubr.bf16.mxu0 %v5747_v30  ;;  %9252 = vmatpush3.bf16.msra.mxu1 %v9731_v31  ;;  %v5529_v31 = vrot.slane %v12003_v23, 1  ;;  %v5780_v30 = vshll.u32 %v12010_v0, 16  ;;  %v12021_v57 = vcombine.low %v4598_v27, %v12013_v33  ;;  %v12031_v27 = vsel %vm1191_vm3, %v5302_v8, %v5306_v6  ;;  %v12067_v6 = vld [vmem:[#allocation2 + $0x70] sm:$0xf] }
 0x31f   : > { %9253 = vmatprep.subr.bf16.mxu1 %v9738_v51  ;;  %v5981_v8 = vrot.slane %v11923_v7, 1  ;;  %v12071_v7 = vld [vmem:[#allocation2 + $0x80] ss:$0 sps:$4 sm:$0x11]  }
 0x320   : > { %v12034_v28 = vsel %vm1448_vm9, %v5528_v37, %v5529_v31  ;;  %v5787_v22 = vshll.u32 %v12021_v57, 16  ;;  %v4638_v31 = vld [vmem:[#allocation2 + $0x30] sm:$0xe] }
 0x321   : > { %6983 = vmatmul.mubr.bf16.gmra.mxu1 %v5283_v58  ;;  %v5777_v58 = vrot.slane %v5775_v49, 1  ;;  %v4637_v49 = vld [vmem:[#allocation2 + $0x24] sm:$0xe]  ;;  %v8130_v40 = vcombine.low %v4638_v31, %v11948_v5 }
 0x322   : > { %6990 = vmatprep.mubr.bf16.mxu1 %v5524_v53  ;;  %9254 = vmatpush3.bf16.msra.mxu1 %v9738_v51  ;;  %v5759_v53 = vsel %vm1191_vm3, %v5754_v16, %v5758_v4  ;;  %v4636_v51 = vld [vmem:[#allocation2 + $0x18] sm:$0xe]  ;;  %v12043_v16 = vrot.slane %v5780_v30, 1  ;;  %v8129_v37 = vcombine.low %v4637_v49, %v11925_v63  ;;  %v4600_v30 = vld [vmem:[#allocation2 + $0x60] sm:$0xf]  ;;  %v12078_v5 = vrot.slane %v5787_v22, 1 }
 0x323   : > { %9255 = vmatprep.subr.bf16.mxu1 %v9745_v39  ;;  %v8128_v3 = vcombine.low %v4636_v51, %v11907_v18  ;;  %v12056_v18 = vld [vmem:[#allocation2 + $0x68] ss:$0 sps:$4 sm:$0x11]   ;;  %v12061_v4 = vor.u32 %v5777_v58, %v5773_v1  ;;  %v8131_v58 = vcombine.low %v4639_v24, %v11963_v50  ;;  %v4640_v51 = vld [vmem:[#allocation2 + $0x48] sm:$0xe]  ;;  %v5986_v1 = vrot.slane %v8130_v40, 1 }
 0x324   : > { %v5990_v49 = vrot.slane %v11993_v32, 1  ;;  %v9766_v50 = vld [vmem:[#allocation8 + $0x208] sm:$0xff]   ;;  %v5993_v22 = vrot.slane %v12010_v0, 1  ;;  %v12098_v32 = vcombine.low %v4600_v30, %v12054_v44 }
 0x325   : > { %7144 = vmatmul.mubr.bf16.gmra.mxu0 %v11935_v25  ;;  %v5980_v47 = vrot.slane %v8128_v3, 1  ;;  %v12082_v3 = vld [vmem:[#allocation2 + $0x8c] ss:$0 sps:$4 sm:$0x11]  }
 0x326   : > { %7151 = vmatprep.mubr.bf16.mxu0 %v5759_v53  ;;  %9256 = vmatpush3.bf16.msra.mxu1 %v9745_v39  ;;  %v5771_v39 = vsel %vm1191_vm3, %v5766_v19, %v5770_v29  ;;  %v12069_v53 = vld [vmem:[#allocation2 + $0x7c] sm:$0xf]  ;;  %v5983_v19 = vrot.slane %v8129_v37, 1  ;;  %v5987_v29 = vrot.slane %v11973_v11, 1  ;;  %v12086_v37 = vld [vmem:[#allocation2 + $0x94] sm:$0xf] }
 0x327   : > { %9257 = vmatprep.subr.bf16.mxu1 %v9752_v13  ;;  %v12074_v63 = vsel %vm1448_vm9, %v5980_v47, %v5981_v8  ;;  %v8132_v47 = vcombine.low %v4640_v51, %v11984_v61  ;;  %v4641_v8 = vld [vmem:[#allocation2 + $0x54] sm:$0xe]  ;;  %v12088_v11 = vld [vmem:[#allocation2 + $0x98] ss:$0 sps:$4 sm:$0x11]  }
 0x328   : > { %v8133_v31 = vcombine.low %v4641_v8, %v12013_v33  ;;  %v12100_v61 = vld [vmem:[#allocation2 + $0xa0] sm:$0xf]  ;;  %v12102_v40 = vld [vmem:[#allocation2 + $0xa4] ss:$0 sps:$4 sm:$0x11]   ;;  %v12105_v24 = vsel %vm1448_vm9, %v5986_v1, %v5987_v29 }
 0x329   : > { %6991 = vmatmul.mubr.bf16.gmra.mxu1 %v5295_v26  ;;  %v12080_v26 = vld [vmem:[#allocation2 + $0x88] sm:$0xf]  ;;  %13129 = vst [vmem:[#allocation20_spill] sm:$0xff] %v12105_v24  ;;  %v5992_v51 = vrot.slane %v8132_v47, 1  ;;  %v4643_v8 = vld [vmem:[#allocation2 + $0x6c] sm:$0xe] }
 0x32a   : > { %6998 = vmatprep.mubr.bf16.mxu1 %v5527_v56  ;;  %9258 = vmatpush3.bf16.msra.mxu1 %v9752_v13  ;;  %v12093_v56 = vsel %vm1448_vm9, %v5983_v19, %v5984_v52  ;;  %v5989_v13 = vrot.slane %v8131_v58, 1  ;;  %v4642_v52 = vld [vmem:[#allocation2 + $0x60] sm:$0xe]  ;;  %v12109_v19 = vld [vmem:[#allocation2 + $0xb0] ss:$0 sps:$4 sm:$0x11]   ;;  %v8135_v47 = vcombine.low %v4643_v8, %v12067_v6 }
 0x32b   : > { %9259 = vmatprep.subr.bf16.mxu1 %v9759_v41  ;;  %13128 = vst [vmem:[#allocation17_spill] sm:$0xff] %v12093_v56  ;;  %v5995_v33 = vrot.slane %v8133_v31, 1  ;;  %v8134_v30 = vcombine.low %v4642_v52, %v12054_v44  ;;  %v5999_v58 = vrot.slane %v12056_v18, 1  ;;  %v12116_v29 = vld [vmem:[#allocation2 + $0xac] sm:$0xf] }
 0x32c   : > { %v12112_v0 = vsel %vm1448_vm9, %v5989_v13, %v5990_v49  ;;  %v12118_v1 = vld [vmem:[#allocation2 + $0xbc] ss:$0 sps:$4 sm:$0x11]   ;;  %v6002_v49 = vrot.slane %v12064_v48, 1  ;;  %v8136_v13 = vcombine.low %v4644_v21, %v12069_v53  ;;  %v4645_v44 = vld [vmem:[#allocation2 + $0x84] sm:$0xe] }
 0x32d   : > { %7152 = vmatmul.mubr.bf16.gmra.mxu0 %v11957_v15  ;;  %13130 = vst [vmem:[#allocation18_spill] sm:$0xff] %v12112_v0  ;;  %v12121_v15 = vsel %vm1448_vm9, %v5992_v51, %v5993_v22  ;;  %v12126_v31 = vld [vmem:[#allocation2 + $0xb8] sm:$0xf]  ;;  %v12128_v52 = vld [vmem:[#allocation2 + $0xc4] sm:$0xf]  ;;  %v5998_v9 = vrot.slane %v8134_v30, 1  ;;  %v8137_v51 = vcombine.low %v4645_v44, %v12080_v26 }
 0x32e   : > { %7159 = vmatprep.mubr.bf16.mxu0 %v5771_v39  ;;  %9260 = vmatpush3.bf16.msra.mxu1 %v9759_v41  ;;  %13131 = vst [vmem:[#allocation19_spill] sm:$0xff] %v12121_v15  ;;  %v9773_v41 = vld [vmem:[#allocation8 + $0x200] sm:$0xff]   ;;  %v12131_v39 = vsel %vm1448_vm9, %v5995_v33, %v5996_v62  ;;  %v6005_v22 = vrot.slane %v12071_v7, 1  ;;  %v4646_v8 = vld [vmem:[#allocation2 + $0x90] sm:$0xe]  ;;  %v6001_v25 = vrot.slane %v8135_v47, 1 }
 0x32f   : > { %9261 = vmatprep.subr.bf16.mxu1 %v9766_v50  ;;  %13132 = vst [vmem:[#allocation16_spill] sm:$0xff] %v12131_v39  ;;  %v6004_v15 = vrot.slane %v8136_v13, 1  ;;  %v6008_v21 = vrot.slane %v12082_v3, 1  ;;  %v8138_v0 = vcombine.low %v4646_v8, %v12086_v37  ;;  %v4647_v24 = vld [vmem:[#allocation2 + $0x9c] sm:$0xe]  ;;  %v12141_v62 = vsel %vm1448_vm9, %v5998_v9, %v5999_v58 }
 0x330   : > { %v12138_v56 = vld [vmem:[#allocation2 + $0xc8] ss:$0 sps:$4 sm:$0x11]   ;;  %v6007_v33 = vrot.slane %v8137_v51, 1  ;;  %v6011_v30 = vrot.slane %v12088_v11, 1  ;;  %v8139_v44 = vcombine.low %v4647_v24, %v12100_v61  ;;  %v12147_v47 = vsel %vm1448_vm9, %v6001_v25, %v6002_v49 }
 0x331   : > { %6999 = vmatmul.mubr.bf16.gmra.mxu1 %v12031_v27  ;;  %v12150_v13 = vsel %vm1448_vm9, %v6004_v15, %v6005_v22  ;;  %v6010_v27 = vrot.slane %v8138_v0, 1  ;;  %v6014_v8 = vrot.slane %v12102_v40, 1  ;;  %v4648_v39 = vld [vmem:[#allocation2 + $0xa8] sm:$0xe]  ;;  %v4650_v51 = vld [vmem:[#allocation2 + $0xc0] sm:$0xe]  ;;  %v5783_v22 = vsel %vm1191_vm3, %v12061_v4, %v12043_v16 }
 0x332   : > { %7006 = vmatprep.mubr.bf16.mxu1 %v12034_v28  ;;  %9262 = vmatpush3.bf16.msra.mxu1 %v9766_v50  ;;  %v12154_v9 = vsel %vm1448_vm9, %v6007_v33, %v6008_v21  ;;  %v6013_v58 = vrot.slane %v8139_v44, 1  ;;  %v8140_v24 = vcombine.low %v4648_v39, %v12116_v29  ;;  %v6017_v28 = vrot.slane %v12109_v19, 1  ;;  %v4649_v50 = vld [vmem:[#allocation2 + $0xb4] sm:$0xe] }
 0x333   : > { %9263 = vmatprep.subr.bf16.mxu1 %v9773_v41  ;;  %13133 = vst [vmem:[#allocation21_spill] sm:$0xff] %v12154_v9  ;;  %v12159_v25 = vsel %vm1448_vm9, %v6010_v27, %v6011_v30  ;;  %v8141_v15 = vcombine.low %v4649_v50, %v12126_v31  ;;  %v6020_v0 = vrot.slane %v12118_v1, 1  ;;  %v8142_v49 = vcombine.low %v4650_v51, %v12128_v52 }
 0x334   : > { %13134 = vst [vmem:[#allocation22_spill] sm:$0xff] %v12159_v25  ;;  %v12169_v39 = vsel %vm1448_vm9, %v6013_v58, %v6014_v8  ;;  %v6016_v21 = vrot.slane %v8140_v24, 1  ;;  %v6023_v33 = vrot.slane %v12138_v56, 1  ;;  %v13135_v30 = vshll.u32 %v12003_v23, 16  ;;  %v4578_v25 = vld [vmem:[#allocation2 + $0x54] sm:$0xe] }
 0x335   : > { %7160 = vmatmul.mubr.bf16.gmra.mxu0 %v11977_v36  ;;  %v6019_v27 = vrot.slane %v8141_v15, 1  ;;  %v6022_v50 = vrot.slane %v8142_v49, 1  ;;  %v13136_v51 = vshll.u32 %v11776_v35, 16  ;;  %v5785_v9 = vshrl.u32 %v12021_v57, 16  ;;  %v9838_v8 = vld [vmem:[#allocation2 + $0x58] sm:$0xf] }
 0x336   : > { %7167 = vmatprep.mubr.bf16.mxu0 %v5783_v22  ;;  %v5318_v44 = vrot.slane %v13135_v30, 1  ;;  %9264 = vmatpush3.bf16.msra.mxu1 %v9773_v41  ;;  %v5792_v16 = vshll.u32 %v12046_v46, 16  ;;  %v12179_v4 = vsel %vm1448_vm9, %v6016_v21, %v6017_v28  ;;  %v8086_v58 = vcombine.low %v4578_v25, %v9838_v8  ;;  %v9742_v24 = vld [vmem:[#allocation2 + $0x5c] ss:$0 sps:$4 sm:$0x11]   ;;  %v8748_v41 = vpop.f32.mrf.mxu1 }
 0x337   : > { %v5325_v36 = vrot.slane %v13136_v51, 1  ;;  %v12184_v49 = vsel %vm1448_vm9, %v6019_v27, %v6020_v0  ;;  %v12187_v22 = vsel %vm1448_vm9, %v6022_v50, %v6023_v33  ;;  %v13138_v46 = vrot.slane %v12026_v43, 1 }
 0x338   : > { %v5319_v23 = vsel %vm1191_vm3, %v12039_v20, %v5318_v44  ;;  %13137 = vst [vmem:[#allocation23_spill] sm:$0xff] %v12187_v22  ;;  %v5790_v25 = vor.u32 %v12078_v5, %v5785_v9  ;;  %v5799_v21 = vshll.u32 %v12098_v32, 16  ;;  %v5321_v20 = vshrl.u32 %v11776_v35, 16  ;;  %v8749_v22 = vpop.f32.mrf.mxu1 }
 0x339   : > { %7007 = vmatmul.mubr.bf16.gmra.mxu1 %v5319_v23  ;;  %v5533_v28 = vsel %vm1448_vm9, %v12052_v10, %v13138_v46  ;;  %v5328_v30 = vshll.u32 %v12026_v43, 16  ;;  %v5794_v44 = vrot.slane %v5792_v16, 1  ;;  %v5335_v33 = vshll.u32 %v11795_v17, 16  ;;  %v4602_v23 = vld [vmem:[#allocation2 + $0x6c] sm:$0xf] }
 0x33a   : > { %v8857_v15 = vpop.f32.mrf.mxu0  ;;  %7014 = vmatprep.mubr.bf16.mxu1 %v5533_v28  ;;  %v5326_v50 = vor.u32 %v5325_v36, %v5321_v20  ;;  %v5534_v51 = vrot.slane %v8086_v58, 1  ;;  %v5535_v8 = vrot.slane %v9742_v24, 1  ;;  %v5801_v9 = vrot.slane %v5799_v21, 1  ;;  %v4579_v36 = vld [vmem:[#allocation2 + $0x60] sm:$0xe] }
 0x33b   : > { %v5795_v5 = vsel %vm1191_vm3, %v5790_v25, %v5794_v44  ;;  %v12201_v35 = vcombine.low %v4602_v23, %v12067_v6  ;;  %v5330_v16 = vrot.slane %v5328_v30, 1  ;;  %v5797_v58 = vshrl.u32 %v12098_v32, 16  ;;  %v9746_v44 = vld [vmem:[#allocation2 + $0x68] ss:$0 sps:$4 sm:$0x11]  }
 0x33c   : > { %v8858_v0 = vpop.f32.mrf.mxu0  ;;  %v5804_v46 = vshll.u32 %v12056_v18, 16  ;;  %v8750_v28 = vadd.f32 %v8749_v22, %v8748_v41  ;;  %v5536_v6 = vsel %vm1448_vm9, %v5534_v51, %v5535_v8  ;;  %v5333_v23 = vshrl.u32 %v11795_v17, 16  ;;  %v4580_v17 = vld [vmem:[#allocation2 + $0x6c] sm:$0xe] }
 0x33d   : > { %v8859_v27 = vadd.f32 %v8858_v0, %v8857_v15  ;;  %7168 = vmatmul.mubr.bf16.gmra.mxu0 %v11997_v55  ;;  %v5337_v55 = vrot.slane %v5335_v33, 1  ;;  %v9839_v0 = vld [vmem:[#allocation2 + $0x64] sm:$0xf]  ;;  %v5331_v21 = vsel %vm1191_vm3, %v5326_v50, %v5330_v16  ;;  %v5811_v30 = vshll.u32 %v12201_v35, 16 }
 0x33e   : > { %v8860_v10 = vpop.f32.mrf.mxu0  ;;  %7175 = vmatprep.mubr.bf16.mxu0 %v5795_v5  ;;  %v8087_v25 = vcombine.low %v4579_v36, %v9839_v0  ;;  %v5340_v18 = vshll.u32 %v9742_v24, 16  ;;  %v5806_v41 = vrot.slane %v5804_v46, 1  ;;  %v5347_v22 = vshll.u32 %v11819_v42, 16  ;;  %v4604_v5 = vld [vmem:[#allocation2 + $0x78] sm:$0xf] }
 0x33f   : > { %v12204_v43 = vadd.f32 %v8859_v27, %v11927_v59  ;;  %v5802_v59 = vor.u32 %v5801_v9, %v5797_v58  ;;  %v5338_v33 = vor.u32 %v5337_v55, %v5333_v23  ;;  %v5538_v51 = vrot.slane %v9746_v44, 1  ;;  %v9840_v58 = vld [vmem:[#allocation2 + $0x70] sm:$0xf]  ;;  %v9749_v55 = vld [vmem:[#allocation2 + $0x74] ss:$0 sps:$4 sm:$0x11]  }
 0x340   : > { %v8861_v15 = vpop.f32.mrf.mxu0  ;;  %v5813_v8 = vrot.slane %v5811_v30, 1  ;;  %v12218_v9 = vcombine.low %v4604_v5, %v12069_v53  ;;  %v5342_v16 = vrot.slane %v5340_v18, 1  ;;  %v5809_v24 = vshrl.u32 %v12201_v35, 16  ;;  %v4606_v30 = vld [vmem:[#allocation2 + $0x84] sm:$0xf] }
 0x341   : > { %v8862_v20 = vadd.f32 %v8861_v15, %v8860_v10  ;;  %7015 = vmatmul.mubr.bf16.gmra.mxu1 %v5331_v21  ;;  %v5537_v10 = vrot.slane %v8087_v25, 1  ;;  %v5807_v50 = vsel %vm1191_vm3, %v5802_v59, %v5806_v41  ;;  %v5816_v15 = vshll.u32 %v12064_v48, 16 }
 0x342   : > { %7022 = vmatprep.mubr.bf16.mxu1 %v5536_v6  ;;  %v5349_v36 = vrot.slane %v5347_v22, 1  ;;  %v8088_v46 = vcombine.low %v4580_v17, %v9840_v58  ;;  %v5823_v53 = vshll.u32 %v12218_v9, 16  ;;  %v5345_v0 = vshrl.u32 %v11819_v42, 16  ;;  %v4581_v42 = vld [vmem:[#allocation2 + $0x78] sm:$0xe] }
 0x343   : > { %v12211_v27 = vadd.f32 %v8862_v20, %v8750_v28  ;;  %v5343_v28 = vsel %vm1191_vm3, %v5338_v33, %v5342_v16  ;;  %v5814_v20 = vor.u32 %v5813_v8, %v5809_v24  ;;  %v5352_v25 = vshll.u32 %v9746_v44, 16  ;;  %v12236_v17 = vld [vmem:[#allocation2 + $0x80] ss:$0 sps:$4 sm:$0x11]  }
 0x344   : > { %v5818_v21 = vrot.slane %v5816_v15, 1  ;;  %v5359_v6 = vshll.u32 %v11831_v2, 16  ;;  %v5350_v48 = vor.u32 %v5349_v36, %v5345_v0  ;;  %v5540_v59 = vrot.slane %v8088_v46, 1 }
 0x345   : > { %7176 = vmatmul.mubr.bf16.gmra.mxu0 %v12021_v57  ;;  %v5539_v57 = vsel %vm1448_vm9, %v5537_v10, %v5538_v51  ;;  %v5541_v18 = vrot.slane %v9749_v55, 1  ;;  %v5825_v41 = vrot.slane %v5823_v53, 1  ;;  %v12230_v22 = vcombine.low %v4606_v30, %v12080_v26  ;;  %v4608_v53 = vld [vmem:[#allocation2 + $0x90] sm:$0xf] }
 0x346   : > { %7183 = vmatprep.mubr.bf16.mxu0 %v5807_v50  ;;  %v5819_v23 = vsel %vm1191_vm3, %v5814_v20, %v5818_v21  ;;  %v5354_v33 = vrot.slane %v5352_v25, 1  ;;  %v5821_v44 = vshrl.u32 %v12218_v9, 16  ;;  %v5828_v10 = vshll.u32 %v12071_v7, 16  ;;  %v9841_v50 = vld [vmem:[#allocation2 + $0x7c] sm:$0xf] }
 0x347   : > { %v5361_v5 = vrot.slane %v5359_v6, 1  ;;  %v8089_v51 = vcombine.low %v4581_v42, %v9841_v50  ;;  %v5835_v26 = vshll.u32 %v12230_v22, 16  ;;  %v5357_v15 = vshrl.u32 %v11831_v2, 16 }
 0x348   : > { %v5355_v8 = vsel %vm1191_vm3, %v5350_v48, %v5354_v33  ;;  %v5826_v16 = vor.u32 %v5825_v41, %v5821_v44  ;;  %v5371_v36 = vshll.u32 %v11845_v60, 16  ;;  %v5364_v7 = vshll.u32 %v9749_v55, 16  ;;  %v4582_v41 = vld [vmem:[#allocation2 + $0x84] sm:$0xe] }
 0x349   : > { %7023 = vmatmul.mubr.bf16.gmra.mxu1 %v5343_v28  ;;  %v5830_v58 = vrot.slane %v5828_v10, 1  ;;  %v5362_v28 = vor.u32 %v5361_v5, %v5357_v15  ;;  %v5544_v25 = vrot.slane %v12236_v17, 1  ;;  %v5837_v21 = vrot.slane %v5835_v26, 1  ;;  %v9842_v5 = vld [vmem:[#allocation2 + $0x88] sm:$0xf] }
 0x34a   : > { %7030 = vmatprep.mubr.bf16.mxu1 %v5539_v57  ;;  %v5543_v57 = vrot.slane %v8089_v51, 1  ;;  %v12245_v2 = vcombine.low %v4608_v53, %v12086_v37  ;;  %v5373_v55 = vrot.slane %v5371_v36, 1  ;;  %v5366_v30 = vrot.slane %v5364_v7, 1 }
 0x34b   : > { %v5831_v0 = vsel %vm1191_vm3, %v5826_v16, %v5830_v58  ;;  %v5840_v33 = vshll.u32 %v12082_v3, 16  ;;  %v8090_v50 = vcombine.low %v4582_v41, %v9842_v5  ;;  %v5369_v58 = vshrl.u32 %v11845_v60, 16  ;;  %v4610_v41 = vld [vmem:[#allocation2 + $0x9c] sm:$0xf] }
 0x34c   : > { %v5367_v51 = vsel %vm1191_vm3, %v5362_v28, %v5366_v30  ;;  %v5545_v16 = vsel %vm1448_vm9, %v5543_v57, %v5544_v25  ;;  %v5847_v3 = vshll.u32 %v12245_v2, 16  ;;  %v5383_v28 = vshll.u32 %v11858_v54, 16 }
 0x34d   : > { %7184 = vmatmul.mubr.bf16.gmra.mxu0 %v12098_v32  ;;  %v5542_v32 = vsel %vm1448_vm9, %v5540_v59, %v5541_v18  ;;  %v12247_v59 = vld [vmem:[#allocation2 + $0xd4] ss:$0 sps:$4 sm:$0x11]   ;;  %v4651_v18 = vld [vmem:[#allocation2 + $0xcc] sm:$0xe]  ;;  %v5852_v5 = vshll.u32 %v12088_v11, 16 }
 0x34e   : > { %7191 = vmatprep.mubr.bf16.mxu0 %v5819_v23  ;;  %v12249_v23 = vld [vmem:[#allocation2 + $0xd0] sm:$0xf]  ;;  %v6026_v37 = vrot.slane %v12247_v59, 1 }
 0x34f   : > { %v8143_v10 = vcombine.low %v4651_v18, %v12249_v23 }
 0x351   : > { %7031 = vmatmul.mubr.bf16.gmra.mxu1 %v5355_v8  ;;  %v6025_v7 = vrot.slane %v8143_v10, 1  ;;  %v4583_v10 = vld [vmem:[#allocation2 + $0x90] sm:$0xe] }
 0x352   : > { %v8751_v24 = vpop.f32.mrf.mxu1  ;;  %7038 = vmatprep.mubr.bf16.mxu1 %v5542_v32 }
 0x353   : > { %v12266_v25 = vsel %vm1448_vm9, %v6025_v7, %v6026_v37  ;;  %v5845_v37 = vshrl.u32 %v12245_v2, 16 }
 0x354   : > { %v8752_v46 = vpop.f32.mrf.mxu1 }
 0x355   : > { %v8753_v20 = vadd.f32 %v8752_v46, %v8751_v24  ;;  %7192 = vmatmul.mubr.bf16.gmra.mxu0 %v12201_v35  ;;  %v5833_v35 = vshrl.u32 %v12230_v22, 16  ;;  %v12257_v24 = vld [vmem:[#allocation2 + $0x8c] ss:$0 sps:$4 sm:$0x11]   ;;  %v5376_v46 = vshll.u32 %v12236_v17, 16 }
 0x356   : > { %v8863_v6 = vpop.f32.mrf.mxu0  ;;  %v8754_v48 = vpop.f32.mrf.mxu1  ;;  %7199 = vmatprep.mubr.bf16.mxu0 %v5831_v0  ;;  %v5842_v0 = vrot.slane %v5840_v33, 1  ;;  %v5547_v17 = vrot.slane %v12257_v24, 1  ;;  %v5388_v11 = vshll.u32 %v12257_v24, 16 }
 0x357   : > { %v5838_v26 = vor.u32 %v5837_v21, %v5833_v35  ;;  %v5374_v21 = vor.u32 %v5373_v55, %v5369_v58  ;;  %v12272_v35 = vcombine.low %v4610_v41, %v12100_v61  ;;  %v5381_v58 = vshrl.u32 %v11858_v54, 16 }
 0x358   : > { %v8864_v42 = vpop.f32.mrf.mxu0  ;;  %v8755_v44 = vpop.f32.mrf.mxu1 }
 0x359   : > { %v8865_v8 = vadd.f32 %v8864_v42, %v8863_v6  ;;  %v8756_v32 = vadd.f32 %v8755_v44, %v8754_v48  ;;  %7039 = vmatmul.mubr.bf16.gmra.mxu1 %v5367_v51  ;;  %v5546_v48 = vrot.slane %v8090_v50, 1  ;;  %v5843_v60 = vsel %vm1191_vm3, %v5838_v26, %v5842_v0  ;;  %v9843_v51 = vld [vmem:[#allocation2 + $0x94] sm:$0xf]  ;;  %v9760_v26 = vld [vmem:[#allocation2 + $0x98] ss:$0 sps:$4 sm:$0x11]  }
 0x35a   : > { %v8866_v15 = vpop.f32.mrf.mxu0  ;;  %v8757_v36 = vpop.f32.mrf.mxu1  ;;  %7046 = vmatprep.mubr.bf16.mxu1 %v5545_v16  ;;  %v5378_v42 = vrot.slane %v5376_v46, 1  ;;  %v5385_v50 = vrot.slane %v5383_v28, 1  ;;  %v5854_v28 = vrot.slane %v5852_v5, 1 }
 0x35b   : > { %v12262_v53 = vadd.f32 %v8865_v8, %v8753_v20  ;;  %v5849_v20 = vrot.slane %v5847_v3, 1  ;;  %v8091_v8 = vcombine.low %v4583_v10, %v9843_v51  ;;  %v5864_v10 = vshll.u32 %v12102_v40, 16 }
 0x35c   : > { %v8867_v6 = vpop.f32.mrf.mxu0  ;;  %v8758_v57 = vpop.f32.mrf.mxu1  ;;  %v5379_v16 = vsel %vm1191_vm3, %v5374_v21, %v5378_v42  ;;  %v4584_v42 = vld [vmem:[#allocation2 + $0x9c] sm:$0xe]  ;;  %v5400_v40 = vshll.u32 %v9760_v26, 16 }
 0x35d   : > { %v8868_v30 = vadd.f32 %v8867_v6, %v8866_v15  ;;  %v8759_v18 = vadd.f32 %v8758_v57, %v8757_v36  ;;  %7200 = vmatmul.mubr.bf16.gmra.mxu0 %v12218_v9  ;;  %v5548_v15 = vsel %vm1448_vm9, %v5546_v48, %v5547_v17  ;;  %v5859_v36 = vshll.u32 %v12272_v35, 16 }
 0x35e   : > { %v8760_v33 = vpop.f32.mrf.mxu1  ;;  %7207 = vmatprep.mubr.bf16.mxu0 %v5843_v60  ;;  %v5395_v6 = vshll.u32 %v11870_v14, 16  ;;  %v5386_v57 = vor.u32 %v5385_v50, %v5381_v58  ;;  %v5549_v21 = vrot.slane %v8091_v8, 1  ;;  %v4612_v60 = vld [vmem:[#allocation2 + $0xa8] sm:$0xf]  ;;  %v5407_v58 = vshll.u32 %v11882_v45, 16 }
 0x35f   : > { %v12274_v44 = vadd.f32 %v8868_v30, %v8756_v32  ;;  %v8869_v55 = vpop.f32.mrf.mxu0  ;;  %v5850_v32 = vor.u32 %v5849_v20, %v5845_v37  ;;  %v5550_v30 = vrot.slane %v9760_v26, 1  ;;  %v5861_v54 = vrot.slane %v5859_v36, 1  ;;  %v4585_v26 = vld [vmem:[#allocation2 + $0xa8] sm:$0xe] }
 0x360   : > { %v8761_v9 = vpop.f32.mrf.mxu1  ;;  %v12289_v24 = vcombine.low %v4612_v60, %v12116_v29  ;;  %v5866_v36 = vrot.slane %v5864_v10, 1  ;;  %v5876_v60 = vshll.u32 %v12109_v19, 16  ;;  %v5405_v10 = vshrl.u32 %v11882_v45, 16 }
 0x361   : > { %v8870_v61 = vpop.f32.mrf.mxu0  ;;  %v8762_v3 = vadd.f32 %v8761_v9, %v8760_v33  ;;  %7047 = vmatmul.mubr.bf16.gmra.mxu1 %v5379_v16  ;;  %v5855_v17 = vsel %vm1191_vm3, %v5850_v32, %v5854_v28  ;;  %v5397_v9 = vrot.slane %v5395_v6, 1  ;;  %v5551_v29 = vsel %vm1448_vm9, %v5549_v21, %v5550_v30  ;;  %v4614_v28 = vld [vmem:[#allocation2 + $0xb4] sm:$0xf] }
 0x362   : > { %v8871_v7 = vadd.f32 %v8870_v61, %v8869_v55  ;;  %7054 = vmatprep.mubr.bf16.mxu1 %v5548_v15  ;;  %v5857_v55 = vshrl.u32 %v12272_v35, 16  ;;  %v9763_v61 = vld [vmem:[#allocation2 + $0xa4] ss:$0 sps:$4 sm:$0x11]   ;;  %v5871_v15 = vshll.u32 %v12289_v24, 16  ;;  %v5393_v32 = vshrl.u32 %v11870_v14, 16 }
 0x363   : > { %v8872_v46 = vpop.f32.mrf.mxu0  ;;  %v12303_v30 = vcombine.low %v4614_v28, %v12126_v31  ;;  %v5402_v14 = vrot.slane %v5400_v40, 1  ;;  %v9767_v31 = vld [vmem:[#allocation2 + $0xb0] ss:$0 sps:$4 sm:$0x11]  }
 0x364   : > { %v12283_v0 = vadd.f32 %v8871_v7, %v8759_v18  ;;  %v5390_v18 = vrot.slane %v5388_v11, 1  ;;  %v5862_v16 = vor.u32 %v5861_v54, %v5857_v55  ;;  %v5398_v11 = vor.u32 %v5397_v9, %v5393_v32  ;;  %v9845_v54 = vld [vmem:[#allocation2 + $0xac] sm:$0xf]  ;;  %v4616_v32 = vld [vmem:[#allocation2 + $0xc0] sm:$0xf] }
 0x365   : > { %v8873_v41 = vpop.f32.mrf.mxu0  ;;  %7208 = vmatmul.mubr.bf16.gmra.mxu0 %v12230_v22  ;;  %v9844_v22 = vld [vmem:[#allocation2 + $0xa0] sm:$0xf]  ;;  %v5873_v21 = vrot.slane %v5871_v15, 1  ;;  %v5883_v55 = vshll.u32 %v12303_v30, 16 }
 0x366   : > { %v8763_v48 = vpop.f32.mrf.mxu1  ;;  %v8874_v20 = vadd.f32 %v8873_v41, %v8872_v46  ;;  %7215 = vmatprep.mubr.bf16.mxu0 %v5855_v17  ;;  %v8092_v50 = vcombine.low %v4584_v42, %v9844_v22  ;;  %v5391_v51 = vsel %vm1191_vm3, %v5386_v57, %v5390_v18  ;;  %v5867_v6 = vsel %vm1191_vm3, %v5862_v16, %v5866_v36 }
 0x367   : > { %v5553_v57 = vrot.slane %v9763_v61, 1  ;;  %v5409_v17 = vrot.slane %v5407_v58, 1  ;;  %v5412_v22 = vshll.u32 %v9763_v61, 16  ;;  %v5556_v36 = vrot.slane %v9767_v31, 1 }
 0x368   : > { %v8764_v33 = vpop.f32.mrf.mxu1  ;;  %v12293_v37 = vadd.f32 %v8874_v20, %v8762_v3  ;;  %v5552_v46 = vrot.slane %v8092_v50, 1  ;;  %v8093_v20 = vcombine.low %v4585_v26, %v9845_v54  ;;  %v5878_v50 = vrot.slane %v5876_v60, 1 }
 0x369   : > { %v8765_v5 = vadd.f32 %v8764_v33, %v8763_v48  ;;  %7055 = vmatmul.mubr.bf16.gmra.mxu1 %v5391_v51  ;;  %v5869_v48 = vshrl.u32 %v12289_v24, 16  ;;  %v5410_v16 = vor.u32 %v5409_v17, %v5405_v10  ;;  %v5885_v58 = vrot.slane %v5883_v55, 1 }
 0x36a   : > { %v8766_v8 = vpop.f32.mrf.mxu1  ;;  %7062 = vmatprep.mubr.bf16.mxu1 %v5551_v29  ;;  %v5554_v18 = vsel %vm1448_vm9, %v5552_v46, %v5553_v57  ;;  %v5555_v15 = vrot.slane %v8093_v20, 1  ;;  %v12317_v61 = vcombine.low %v4616_v32, %v12128_v52  ;;  %v5414_v46 = vrot.slane %v5412_v22, 1  ;;  %v9770_v20 = vld [vmem:[#allocation2 + $0xbc] ss:$0 sps:$4 sm:$0x11]  }
 0x36b   : > { %v5874_v33 = vor.u32 %v5873_v21, %v5869_v48  ;;  %v9846_v48 = vld [vmem:[#allocation2 + $0xb8] sm:$0xf]  ;;  %v5431_v55 = vshll.u32 %v11912_v12, 16  ;;  %v4587_v32 = vld [vmem:[#allocation2 + $0xc0] sm:$0xe] }
 0x36c   : > { %v8767_v3 = vpop.f32.mrf.mxu1  ;;  %v5415_v26 = vsel %vm1191_vm3, %v5410_v16, %v5414_v46  ;;  %v5557_v52 = vsel %vm1448_vm9, %v5555_v15, %v5556_v36  ;;  %v5900_v16 = vshll.u32 %v12138_v56, 16  ;;  %v5436_v56 = vshll.u32 %v9770_v20, 16 }
 0x36d   : > { %v8768_v7 = vadd.f32 %v8767_v3, %v8766_v8  ;;  %7216 = vmatmul.mubr.bf16.gmra.mxu0 %v12245_v2  ;;  %v5403_v2 = vsel %vm1191_vm3, %v5398_v11, %v5402_v14  ;;  %v5419_v8 = vshll.u32 %v11899_v38, 16  ;;  %v5879_v40 = vsel %vm1191_vm3, %v5874_v33, %v5878_v50 }
 0x36e   : > { %7223 = vmatprep.mubr.bf16.mxu0 %v5867_v6  ;;  %v5888_v6 = vshll.u32 %v12118_v1, 16  ;;  %v5417_v1 = vshrl.u32 %v11899_v38, 16  ;;  %v5424_v33 = vshll.u32 %v9767_v31, 16  ;;  %v5893_v31 = vshrl.u32 %v12317_v61, 16 }
 0x36f   : > { %v5421_v21 = vrot.slane %v5419_v8, 1  ;;  %v5433_v15 = vrot.slane %v5431_v55, 1  ;;  %v5438_v55 = vrot.slane %v5436_v56, 1 }
 0x370   : > { %v5426_v38 = vrot.slane %v5424_v33, 1 }
 0x371   : > { %v8875_v41 = vpop.f32.mrf.mxu0  ;;  %7063 = vmatmul.mubr.bf16.gmra.mxu1 %v5403_v2  ;;  %v5895_v2 = vshll.u32 %v12317_v61, 16  ;;  %v5422_v10 = vor.u32 %v5421_v21, %v5417_v1 }
 0x372   : > { %7070 = vmatprep.mubr.bf16.mxu1 %v5554_v18 }
 0x373   : > { %v8876_v42 = vpop.f32.mrf.mxu0 }
 0x374   : > { %v8877_v9 = vadd.f32 %v8876_v42, %v8875_v41  ;;  %v4618_v41 = vld [vmem:[#allocation2 + $0xcc] sm:$0xf] }
 0x375   : > { %v8878_v19 = vpop.f32.mrf.mxu0  ;;  %v8769_v51 = vpop.f32.mrf.mxu1  ;;  %7224 = vmatmul.mubr.bf16.gmra.mxu0 %v12272_v35  ;;  %v4586_v35 = vld [vmem:[#allocation2 + $0xb4] sm:$0xe]  ;;  %v12328_v42 = vcombine.low %v4618_v41, %v12249_v23 }
 0x376   : > { %v12312_v29 = vadd.f32 %v8877_v9, %v8765_v5  ;;  %7231 = vmatprep.mubr.bf16.mxu0 %v5879_v40  ;;  %v5881_v5 = vshrl.u32 %v12303_v30, 16  ;;  %v8094_v60 = vcombine.low %v4586_v35, %v9846_v48 }
 0x377   : > { %v8879_v3 = vpop.f32.mrf.mxu0  ;;  %v8770_v45 = vpop.f32.mrf.mxu1  ;;  %v5907_v23 = vshll.u32 %v12328_v42, 16  ;;  %v5905_v41 = vshrl.u32 %v12328_v42, 16 }
 0x378   : > { %v8880_v11 = vadd.f32 %v8879_v3, %v8878_v19  ;;  %v8771_v28 = vadd.f32 %v8770_v45, %v8769_v51  ;;  %v5886_v17 = vor.u32 %v5885_v58, %v5881_v5  ;;  %v5558_v50 = vrot.slane %v8094_v60, 1  ;;  %v9774_v5 = vld [vmem:[#allocation2 + $0xc8] ss:$0 sps:$4 sm:$0x11]  }
 0x379   : > { %v8772_v57 = vpop.f32.mrf.mxu1  ;;  %7071 = vmatmul.mubr.bf16.gmra.mxu1 %v5415_v26  ;;  %v5559_v19 = vrot.slane %v9770_v20, 1  ;;  %v5897_v51 = vrot.slane %v5895_v2, 1  ;;  %v5427_v3 = vsel %vm1191_vm3, %v5422_v10, %v5426_v38  ;;  %v5902_v26 = vrot.slane %v5900_v16, 1 }
 0x37a   : > { %v12321_v14 = vadd.f32 %v8880_v11, %v8768_v7  ;;  %7078 = vmatprep.mubr.bf16.mxu1 %v5557_v52  ;;  %v5890_v7 = vrot.slane %v5888_v6, 1  ;;  %v5429_v6 = vshrl.u32 %v11912_v12, 16  ;;  %v5909_v48 = vrot.slane %v5907_v23, 1 }
 0x37b   : > { %v8773_v54 = vpop.f32.mrf.mxu1  ;;  %v5560_v11 = vsel %vm1448_vm9, %v5558_v50, %v5559_v19  ;;  %v5898_v46 = vor.u32 %v5897_v51, %v5893_v31  ;;  %v5912_v60 = vshll.u32 %v12247_v59, 16  ;;  %v5443_v52 = vshll.u32 %v11931_v34, 16 }
 0x37c   : > { %v8774_v18 = vadd.f32 %v8773_v54, %v8772_v57  ;;  %v5891_v22 = vsel %vm1191_vm3, %v5886_v17, %v5890_v7  ;;  %v5434_v2 = vor.u32 %v5433_v15, %v5429_v6  ;;  %v5562_v33 = vrot.slane %v9774_v5, 1 }
 0x37d   : > { %v8881_v9 = vpop.f32.mrf.mxu0  ;;  %7232 = vmatmul.mubr.bf16.gmra.mxu0 %v12289_v24  ;;  %v9847_v24 = vld [vmem:[#allocation2 + $0xc4] sm:$0xf]  ;;  %v5903_v12 = vsel %vm1191_vm3, %v5898_v46, %v5902_v26  ;;  %v5910_v59 = vor.u32 %v5909_v48, %v5905_v41  ;;  %v5445_v50 = vrot.slane %v5443_v52, 1  ;;  %v5441_v16 = vshrl.u32 %v11931_v34, 16 }
 0x37e   : > { %7239 = vmatprep.mubr.bf16.mxu0 %v5891_v22  ;;  %v8095_v36 = vcombine.low %v4587_v32, %v9847_v24  ;;  %v5914_v22 = vrot.slane %v5912_v60, 1  ;;  %v5439_v38 = vsel %vm1191_vm3, %v5434_v2, %v5438_v55  ;;  %v5448_v23 = vshll.u32 %v9774_v5, 16 }
 0x37f   : > { %v8882_v8 = vpop.f32.mrf.mxu0 }
 0x380   : > { %v8883_v40 = vadd.f32 %v8882_v8, %v8881_v9  ;;  %v5561_v20 = vrot.slane %v8095_v36, 1  ;;  %v5446_v36 = vor.u32 %v5445_v50, %v5441_v16  ;;  %v5450_v46 = vrot.slane %v5448_v23, 1 }
 0x381   : > { %v8884_v45 = vpop.f32.mrf.mxu0  ;;  %v8775_v58 = vpop.f32.mrf.mxu1  ;;  %7079 = vmatmul.mubr.bf16.gmra.mxu1 %v5427_v3 }
 0x382   : > { %v12339_v57 = vadd.f32 %v8883_v40, %v8771_v28  ;;  %7086 = vmatprep.mubr.bf16.mxu1 %v5560_v11  ;;  %v5563_v31 = vsel %vm1448_vm9, %v5561_v20, %v5562_v33  ;;  %v5915_v40 = vsel %vm1191_vm3, %v5910_v59, %v5914_v22  ;;  %v5451_v5 = vsel %vm1191_vm3, %v5446_v36, %v5450_v46 }
 0x383   : > { %v8885_v21 = vpop.f32.mrf.mxu0  ;;  %v8776_v35 = vpop.f32.mrf.mxu1 }
 0x384   : > { %v8886_v17 = vadd.f32 %v8885_v21, %v8884_v45  ;;  %v8777_v54 = vadd.f32 %v8776_v35, %v8775_v58 }
 0x385   : > { %v8887_v1 = vpop.f32.mrf.mxu0  ;;  %7240 = vmatmul.mubr.bf16.gmra.mxu0 %v12303_v30  ;;  %v8778_v28 = vpop.f32.mrf.mxu1 }
 0x386   : > { %v12346_v7 = vadd.f32 %v8886_v17, %v8774_v18  ;;  %7247 = vmatprep.mubr.bf16.mxu0 %v5903_v12 }
 0x387   : > { %v8888_v10 = vpop.f32.mrf.mxu0  ;;  %v8779_v9 = vpop.f32.mrf.mxu1 }
 0x388   : > { %v8889_v19 = vadd.f32 %v8888_v10, %v8887_v1  ;;  %v8780_v51 = vadd.f32 %v8779_v9, %v8778_v28  ;;  %v13139_v10 = vld [vmem:[#allocation17_spill] sm:$0xff] }
 0x389   : > { %v8890_v8 = vpop.f32.mrf.mxu0  ;;  %v8781_v30 = vpop.f32.mrf.mxu1  ;;  %7087 = vmatmul.mubr.bf16.gmra.mxu1 %v5439_v38 }
 0x38a   : > { %v12351_v18 = vadd.f32 %v8889_v19, %v8777_v54  ;;  %7094 = vmatprep.mubr.bf16.mxu1 %v5563_v31 }
 0x38b   : > { %v8891_v15 = vpop.f32.mrf.mxu0  ;;  %v8782_v32 = vpop.f32.mrf.mxu1 }
 0x38c   : > { %v8892_v3 = vadd.f32 %v8891_v15, %v8890_v8  ;;  %v8783_v24 = vadd.f32 %v8782_v32, %v8781_v30  ;;  %v13141_v32 = vld [vmem:[#allocation18_spill] sm:$0xff] }
 0x38d   : > { %v8893_v45 = vpop.f32.mrf.mxu0  ;;  %7248 = vmatmul.mubr.bf16.gmra.mxu0 %v12317_v61  ;;  %v8784_v58 = vpop.f32.mrf.mxu1 }
 0x38e   : > { %v12355_v11 = vadd.f32 %v8892_v3, %v8780_v51  ;;  %7255 = vmatprep.mubr.bf16.mxu0 %v5915_v40  ;;  %v13142_v3 = vld [vmem:[#allocation19_spill] sm:$0xff] }
 0x38f   : > { %v8894_v34 = vpop.f32.mrf.mxu0  ;;  %v8785_v6 = vpop.f32.mrf.mxu1 }
 0x390   : > { %v8895_v56 = vadd.f32 %v8894_v34, %v8893_v45  ;;  %v8786_v21 = vadd.f32 %v8785_v6, %v8784_v58 }
 0x391   : > { %v8896_v35 = vpop.f32.mrf.mxu0  ;;  %v8787_v26 = vpop.f32.mrf.mxu1  ;;  %7095 = vmatmul.mubr.bf16.gmra.mxu1 %v5451_v5 }
 0x392   : > { %v12358_v41 = vadd.f32 %v8895_v56, %v8783_v24  ;;  %9265 = vmatprep.mubr.bf16.mxu1 %v12074_v63  ;;  %v13140_v63 = vld [vmem:[#allocation20_spill] sm:$0xff] }
 0x393   : > { %v8897_v48 = vpop.f32.mrf.mxu0  ;;  %v8788_v61 = vpop.f32.mrf.mxu1 }
 0x394   : > { %v8898_v60 = vadd.f32 %v8897_v48, %v8896_v35  ;;  %v8789_v52 = vadd.f32 %v8788_v61, %v8787_v26  ;;  %v13143_v61 = vld [vmem:[#allocation16_spill] sm:$0xff] }
 0x395   : > { %v8899_v17 = vpop.f32.mrf.mxu0  ;;  %7256 = vmatmul.mubr.bf16.gmra.mxu0 %v12328_v42  ;;  %v8790_v54 = vpop.f32.mrf.mxu1 }
 0x396   : > { %v12362_v2 = vadd.f32 %v8898_v60, %v8786_v21 }
 0x397   : > { %v8900_v1 = vpop.f32.mrf.mxu0  ;;  %v8791_v12 = vpop.f32.mrf.mxu1 }
 0x398   : > { %v8901_v28 = vadd.f32 %v8900_v1, %v8899_v17  ;;  %v8792_v20 = vadd.f32 %v8791_v12, %v8790_v54 }
 0x399   : > { %v8902_v33 = vpop.f32.mrf.mxu0  ;;  %v8793_v55 = vpop.f32.mrf.mxu1  ;;  %9266 = vmatmul.mubr.bf16.vlgmr.msra.gmra.mxu1 %v13139_v10 }
 0x39a   : > { %v12365_v9 = vadd.f32 %v8901_v28, %v8789_v52  ;;  %9269 = vmatprep.mubr.bf16.mxu1 %v13140_v63 }
 0x39b   : > { %v8903_v59 = vpop.f32.mrf.mxu0  ;;  %v8794_v22 = vpop.f32.mrf.mxu1 }
 0x39c   : > { %v8904_v50 = vadd.f32 %v8903_v59, %v8902_v33  ;;  %v8795_v19 = vadd.f32 %v8794_v22, %v8793_v55 }
 0x39d   : > { %v8905_v42 = vpop.f32.mrf.mxu0  ;;  %v8796_v51 = vpop.f32.mrf.mxu1 }
 0x39e   : > { %v12368_v38 = vadd.f32 %v8904_v50, %v8792_v20 }
 0x39f   : > { %v8906_v8 = vpop.f32.mrf.mxu0  ;;  %v8797_v30 = vpop.f32.mrf.mxu1 }
 0x3a0   : > { %v8907_v31 = vadd.f32 %v8906_v8, %v8905_v42  ;;  %v8798_v16 = vadd.f32 %v8797_v30, %v8796_v51 }
 0x3a1   : > { %v8908_v23 = vpop.f32.mrf.mxu0  ;;  %v8799_v15 = vpop.f32.mrf.mxu1  ;;  %9270 = vmatmul.mubr.bf16.gmra.mxu1 %v13141_v32 }
 0x3a2   : > { %v12371_v40 = vadd.f32 %v8907_v31, %v8795_v19  ;;  %9273 = vmatprep.mubr.bf16.mxu1 %v13142_v3 }
 0x3a3   : > { %v8909_v24 = vpop.f32.mrf.mxu0  ;;  %v8800_v36 = vpop.f32.mrf.mxu1 }
 0x3a4   : > { %v8910_v45 = vadd.f32 %v8909_v24, %v8908_v23  ;;  %v8801_v58 = vadd.f32 %v8800_v36, %v8799_v15  ;;  %v13144_v36 = vld [vmem:[#allocation21_spill] sm:$0xff] }
 0x3a5   : > { %v8911_v46 = vpop.f32.mrf.mxu0  ;;  %v8802_v34 = vpop.f32.mrf.mxu1 }
 0x3a6   : > { %v12374_v6 = vadd.f32 %v8910_v45, %v8798_v16  ;;  %v13145_v45 = vld [vmem:[#allocation22_spill] sm:$0xff] }
 0x3a7   : > { %v8912_v56 = vpop.f32.mrf.mxu0  ;;  %v8803_v21 = vpop.f32.mrf.mxu1 }
 0x3a8   : > { %v8913_v5 = vadd.f32 %v8912_v56, %v8911_v46  ;;  %v8804_v35 = vadd.f32 %v8803_v21, %v8802_v34 }
 0x3a9   : > { %v8914_v26 = vpop.f32.mrf.mxu0  ;;  %v8805_v48 = vpop.f32.mrf.mxu1  ;;  %9274 = vmatmul.mubr.bf16.gmra.mxu1 %v13143_v61 }
 0x3aa   : > { %v12377_v60 = vadd.f32 %v8913_v5, %v8801_v58  ;;  %9277 = vmatprep.mubr.bf16.mxu1 %v12141_v62 }
 0x3ab   : > { %v8915_v52 = vpop.f32.mrf.mxu0  ;;  %v8806_v17 = vpop.f32.mrf.mxu1 }
 0x3ac   : > { %v8916_v54 = vadd.f32 %v8915_v52, %v8914_v26  ;;  %v8807_v1 = vadd.f32 %v8806_v17, %v8805_v48 }
 0x3ad   : > { %v8917_v12 = vpop.f32.mrf.mxu0  ;;  %v8808_v28 = vpop.f32.mrf.mxu1 }
 0x3ae   : > { %v12380_v20 = vadd.f32 %v8916_v54, %v8804_v35 }
 0x3af   : > { %v8918_v33 = vpop.f32.mrf.mxu0  ;;  %v8809_v55 = vpop.f32.mrf.mxu1 }
 0x3b0   : > { %v8919_v10 = vadd.f32 %v8918_v33, %v8917_v12  ;;  %v8810_v63 = vadd.f32 %v8809_v55, %v8808_v28 }
 0x3b1   : > { %v8920_v59 = vpop.f32.mrf.mxu0  ;;  %v8811_v22 = vpop.f32.mrf.mxu1  ;;  %9278 = vmatmul.mubr.bf16.gmra.mxu1 %v12147_v47 }
 0x3b2   : > { %v12383_v50 = vadd.f32 %v8919_v10, %v8807_v1  ;;  %9281 = vmatprep.mubr.bf16.mxu1 %v12150_v13 }
 0x3b3   : > { %v8921_v62 = vpop.f32.mrf.mxu0  ;;  %v8812_v19 = vpop.f32.mrf.mxu1 }
 0x3b4   : > { %v8922_v42 = vadd.f32 %v8921_v62, %v8920_v59  ;;  %v8813_v51 = vadd.f32 %v8812_v19, %v8811_v22 }
 0x3b5   : > { %v8923_v8 = vpop.f32.mrf.mxu0  ;;  %v8814_v30 = vpop.f32.mrf.mxu1 }
 0x3b6   : > { %v12386_v31 = vadd.f32 %v8922_v42, %v8810_v63 }
 0x3b7   : > { %v8924_v16 = vpop.f32.mrf.mxu0  ;;  %v8815_v23 = vpop.f32.mrf.mxu1 }
 0x3b8   : > { %v8925_v15 = vadd.f32 %v8924_v16, %v8923_v8  ;;  %v8816_v32 = vadd.f32 %v8815_v23, %v8814_v30  ;;  %v13146_v8 = vld [vmem:[#allocation23_spill] sm:$0xff] }
 0x3b9   : > { %v8926_v3 = vpop.f32.mrf.mxu0  ;;  %v8817_v24 = vpop.f32.mrf.mxu1  ;;  %9282 = vmatmul.mubr.bf16.gmra.mxu1 %v13144_v36 }
 0x3ba   : > { %v12389_v47 = vadd.f32 %v8925_v15, %v8813_v51  ;;  %9285 = vmatprep.mubr.bf16.mxu1 %v13145_v45 }
 0x3bb   : > { %v8927_v13 = vpop.f32.mrf.mxu0  ;;  %v8818_v58 = vpop.f32.mrf.mxu1 }
 0x3bc   : > { %v8928_v46 = vadd.f32 %v8927_v13, %v8926_v3  ;;  %v8819_v34 = vadd.f32 %v8818_v58, %v8817_v24 }
 0x3bd   : > { %v8929_v56 = vpop.f32.mrf.mxu0  ;;  %v8820_v21 = vpop.f32.mrf.mxu1 }
 0x3be   : > { %v12392_v5 = vadd.f32 %v8928_v46, %v8816_v32 }
 0x3bf   : > { %v8930_v35 = vpop.f32.mrf.mxu0  ;;  %v8821_v26 = vpop.f32.mrf.mxu1 }
 0x3c0   : > { %v8931_v48 = vadd.f32 %v8930_v35, %v8929_v56  ;;  %v8822_v61 = vadd.f32 %v8821_v26, %v8820_v21 }
 0x3c1   : > { %v8932_v52 = vpop.f32.mrf.mxu0  ;;  %v8823_v17 = vpop.f32.mrf.mxu1  ;;  %9286 = vmatmul.mubr.bf16.gmra.mxu1 %v12169_v39 }
 0x3c2   : > { %v12395_v54 = vadd.f32 %v8931_v48, %v8819_v34  ;;  %9289 = vmatprep.mubr.bf16.mxu1 %v12179_v4 }
 0x3c3   : > { %v8933_v1 = vpop.f32.mrf.mxu0  ;;  %v8824_v12 = vpop.f32.mrf.mxu1 }
 0x3c4   : > { %v8934_v28 = vadd.f32 %v8933_v1, %v8932_v52  ;;  %v8825_v33 = vadd.f32 %v8824_v12, %v8823_v17 }
 0x3c5   : > { %v8935_v55 = vpop.f32.mrf.mxu0  ;;  %v8826_v10 = vpop.f32.mrf.mxu1 }
 0x3c6   : > { %v12398_v63 = vadd.f32 %v8934_v28, %v8822_v61 }
 0x3c7   : > { %v8936_v59 = vpop.f32.mrf.mxu0  ;;  %v8827_v22 = vpop.f32.mrf.mxu1 }
 0x3c8   : > { %v8937_v62 = vadd.f32 %v8936_v59, %v8935_v55  ;;  %v8828_v19 = vadd.f32 %v8827_v22, %v8826_v10 }
 0x3c9   : > { %v8938_v42 = vpop.f32.mrf.mxu0  ;;  %v8829_v51 = vpop.f32.mrf.mxu1  ;;  %9290 = vmatmul.mubr.bf16.gmra.mxu1 %v12184_v49 }
 0x3ca   : > { %v12401_v39 = vadd.f32 %v8937_v62, %v8825_v33  ;;  %9293 = vmatprep.mubr.bf16.mxu1 %v13146_v8 }
 0x3cb   : > { %v8939_v4 = vpop.f32.mrf.mxu0  ;;  %v8830_v30 = vpop.f32.mrf.mxu1 }
 0x3cc   : > { %v8940_v16 = vadd.f32 %v8939_v4, %v8938_v42  ;;  %v8831_v23 = vadd.f32 %v8830_v30, %v8829_v51 }
 0x3cd   : > { %v8941_v15 = vpop.f32.mrf.mxu0  ;;  %v8832_v32 = vpop.f32.mrf.mxu1 }
 0x3ce   : > { %v12404_v3 = vadd.f32 %v8940_v16, %v8828_v19 }
 0x3cf   : > { %v8942_v24 = vpop.f32.mrf.mxu0  ;;  %v8833_v36 = vpop.f32.mrf.mxu1 }
 0x3d0   : > { %v8943_v45 = vadd.f32 %v8942_v24, %v8941_v15  ;;  %v8834_v13 = vadd.f32 %v8833_v36, %v8832_v32 }
 0x3d1   : > { %v8944_v58 = vpop.f32.mrf.mxu0  ;;  %v8835_v46 = vpop.f32.mrf.mxu1  ;;  %9294 = vmatmul.mubr.bf16.gmra.mxu1 %v12266_v25 }
 0x3d2   : > { %v12407_v49 = vadd.f32 %v8943_v45, %v8831_v23 }
 0x3d3   : > { %v8945_v34 = vpop.f32.mrf.mxu0  ;;  %v8836_v56 = vpop.f32.mrf.mxu1 }
 0x3d4   : > { %v8946_v21 = vadd.f32 %v8945_v34, %v8944_v58  ;;  %v8837_v35 = vadd.f32 %v8836_v56, %v8835_v46 }
 0x3d5   : > { %v8947_v26 = vpop.f32.mrf.mxu0  ;;  %v8838_v48 = vpop.f32.mrf.mxu1 }
 0x3d6   : > { %v12409_v61 = vadd.f32 %v8946_v21, %v8834_v13 }
 0x3d7   : > { %v8948_v52 = vpop.f32.mrf.mxu0  ;;  %v8839_v17 = vpop.f32.mrf.mxu1 }
 0x3d8   : > { %v8949_v1 = vadd.f32 %v8948_v52, %v8947_v26  ;;  %v8840_v12 = vadd.f32 %v8839_v17, %v8838_v48 }
 0x3d9   : > { %v8950_v28 = vpop.f32.mrf.mxu0  ;;  %v8969_v33 = vpop.f32.mrf.mxu1 }
 0x3da   : > { %v12411_v55 = vadd.f32 %v8949_v1, %v8837_v35 }
 0x3db   : > { %v8951_v10 = vpop.f32.mrf.mxu0  ;;  %v8970_v25 = vpop.f32.mrf.mxu1 }
 0x3dc   : > { %13147 = vst [vmem:[#allocation24_spill] sm:$0xff] %v12411_v55  ;;  %v8952_v59 = vadd.f32 %v8951_v10, %v8950_v28  ;;  %v8971_v22 = vadd.f32 %v8970_v25, %v8969_v33 }
 0x3dd   : > { %v9081_v62 = vpop.f32.mrf.mxu0  ;;  %v8972_v19 = vpop.f32.mrf.mxu1 }
 0x3de   : > { %v12413_v42 = vadd.f32 %v8952_v59, %v8840_v12  ;;  %v6977_v51 = vadd.f32 %v8971_v22, %v12204_v43 }
 0x3df   : > { %v9082_v8 = vpop.f32.mrf.mxu0  ;;  %v8973_v4 = vpop.f32.mrf.mxu1 }
 0x3e0   : > { %13148 = vst [vmem:[#allocation26_spill] sm:$0xff] %v12413_v42  ;;  %v9083_v30 = vadd.f32 %v9082_v8, %v9081_v62  ;;  %v8974_v16 = vadd.f32 %v8973_v4, %v8972_v19 }
 0x3e1   : > { %v9084_v23 = vpop.f32.mrf.mxu0  ;;  %v8975_v15 = vpop.f32.mrf.mxu1 }
 0x3e2   : > { %v6980_v32 = vadd.f32 %v8974_v16, %v12211_v27  ;;  %v12417_v58 = vadd.f32 %v9083_v30, %v6977_v51 }
 0x3e3   : > { %v9085_v24 = vpop.f32.mrf.mxu0  ;;  %v8976_v36 = vpop.f32.mrf.mxu1 }
 0x3e4   : > { %v9086_v45 = vadd.f32 %v9085_v24, %v9084_v23  ;;  %v8977_v13 = vadd.f32 %v8976_v36, %v8975_v15 }
 0x3e5   : > { %v12419_v46 = vpop.f32.mrf.mxu0  ;;  %v8978_v34 = vpop.f32.mrf.mxu1 }
 0x3e6   : > { %v12422_v56 = vadd.f32 %v8977_v13, %v12262_v53  ;;  %v12426_v26 = vadd.f32 %v9086_v45, %v6980_v32 }
 0x3e7   : > { %v12424_v43 = vpop.f32.mrf.mxu0  ;;  %v8979_v21 = vpop.f32.mrf.mxu1 }
 0x3e8   : > { %v8980_v35 = vadd.f32 %v8979_v21, %v8978_v34 }
 0x3e9   : > { %v12428_v48 = vpop.f32.mrf.mxu0  ;;  %v8981_v27 = vpop.f32.mrf.mxu1 }
 0x3ea   : > { %v12431_v52 = vadd.f32 %v8980_v35, %v12274_v44 }
 0x3eb   : > { %v12433_v17 = vpop.f32.mrf.mxu0  ;;  %v8982_v1 = vpop.f32.mrf.mxu1 }
 0x3ec   : > { %v8983_v12 = vadd.f32 %v8982_v1, %v8981_v27 }
 0x3ed   : > { %v12435_v28 = vpop.f32.mrf.mxu0  ;;  %v8984_v53 = vpop.f32.mrf.mxu1 }
 0x3ee   : > { %v12438_v33 = vadd.f32 %v8983_v12, %v12283_v0 }
 0x3ef   : > { %v12440_v10 = vpop.f32.mrf.mxu0  ;;  %v8985_v25 = vpop.f32.mrf.mxu1 }
 0x3f0   : > { %v8986_v59 = vadd.f32 %v8985_v25, %v8984_v53 }
 0x3f1   : > { %v12442_v22 = vpop.f32.mrf.mxu0  ;;  %v8987_v62 = vpop.f32.mrf.mxu1 }
 0x3f2   : > { %v12445_v44 = vadd.f32 %v8986_v59, %v12293_v37 }
 0x3f3   : > { %v12447_v19 = vpop.f32.mrf.mxu0  ;;  %v8988_v51 = vpop.f32.mrf.mxu1 }
 0x3f4   : > { %v8989_v8 = vadd.f32 %v8988_v51, %v8987_v62 }
 0x3f5   : > { %v12449_v4 = vpop.f32.mrf.mxu0  ;;  %v8990_v30 = vpop.f32.mrf.mxu1 }
 0x3f6   : > { %v12452_v0 = vadd.f32 %v8989_v8, %v12312_v29 }
 0x3f7   : > { %v12454_v16 = vpop.f32.mrf.mxu0  ;;  %v8991_v23 = vpop.f32.mrf.mxu1 }
 0x3f8   : > { %v8992_v15 = vadd.f32 %v8991_v23, %v8990_v30 }
 0x3f9   : > { %v12456_v32 = vpop.f32.mrf.mxu0  ;;  %v8993_v24 = vpop.f32.mrf.mxu1 }
 0x3fa   : > { %v12459_v37 = vadd.f32 %v8992_v15, %v12321_v14 }
 0x3fb   : > { %v12461_v36 = vpop.f32.mrf.mxu0  ;;  %v8994_v45 = vpop.f32.mrf.mxu1 }
 0x3fc   : > { %v8995_v13 = vadd.f32 %v8994_v45, %v8993_v24 }
 0x3fd   : > { %v12463_v34 = vpop.f32.mrf.mxu0  ;;  %v8996_v21 = vpop.f32.mrf.mxu1 }
 0x3fe   : > { %v12466_v29 = vadd.f32 %v8995_v13, %v12339_v57 }
 0x3ff   : > { %v12468_v35 = vpop.f32.mrf.mxu0  ;;  %v8997_v27 = vpop.f32.mrf.mxu1 }
 0x400   : > { %v8998_v1 = vadd.f32 %v8997_v27, %v8996_v21 }
 0x401   : > { %v12470_v12 = vpop.f32.mrf.mxu0  ;;  %v8999_v53 = vpop.f32.mrf.mxu1 }
 0x402   : > { %v12473_v14 = vadd.f32 %v8998_v1, %v12346_v7 }
 0x403   : > { %v12475_v25 = vpop.f32.mrf.mxu0  ;;  %v9000_v59 = vpop.f32.mrf.mxu1 }
 0x404   : > { %13149 = vst [vmem:[#allocation28_spill] sm:$0xff] %v12473_v14  ;;  %v9001_v62 = vadd.f32 %v9000_v59, %v8999_v53 }
 0x405   : > { %v12477_v51 = vpop.f32.mrf.mxu0  ;;  %v9002_v8 = vpop.f32.mrf.mxu1 }
 0x406   : > { %v12480_v57 = vadd.f32 %v9001_v62, %v12351_v18 }
 0x407   : > { %v12482_v30 = vpop.f32.mrf.mxu0  ;;  %v9003_v23 = vpop.f32.mrf.mxu1 }
 0x408   : > { %v9004_v15 = vadd.f32 %v9003_v23, %v9002_v8 }
 0x409   : > { %v12484_v24 = vpop.f32.mrf.mxu0  ;;  %v9005_v45 = vpop.f32.mrf.mxu1 }
 0x40a   : > { %v12487_v7 = vadd.f32 %v9004_v15, %v12355_v11 }
 0x40b   : > { %v12489_v13 = vpop.f32.mrf.mxu0  ;;  %v9006_v21 = vpop.f32.mrf.mxu1 }
 0x40c   : > { %v9007_v27 = vadd.f32 %v9006_v21, %v9005_v45 }
 0x40d   : > { %v12491_v1 = vpop.f32.mrf.mxu0  ;;  %v9008_v53 = vpop.f32.mrf.mxu1 }
 0x40e   : > { %v12494_v18 = vadd.f32 %v9007_v27, %v12358_v41 }
 0x40f   : > { %v12496_v59 = vpop.f32.mrf.mxu0  ;;  %v9009_v62 = vpop.f32.mrf.mxu1 }
 0x410   : > { %13150 = vst [vmem:[#allocation27_spill] sm:$0xff] %v12494_v18  ;;  %v9010_v8 = vadd.f32 %v9009_v62, %v9008_v53 }
 0x411   : > { %v12498_v23 = vpop.f32.mrf.mxu0  ;;  %v9011_v42 = vpop.f32.mrf.mxu1 }
 0x412   : > { %13151 = vst [vmem:[#allocation29_spill] sm:$0xff] %v12498_v23  ;;  %v12501_v11 = vadd.f32 %v9010_v8, %v12362_v2 }
 0x413   : > { %v12503_v15 = vpop.f32.mrf.mxu0  ;;  %v9012_v55 = vpop.f32.mrf.mxu1 }
 0x414   : > { %13152 = vst [vmem:[#allocation32_spill] sm:$0xff] %v12501_v11  ;;  %13153 = vst [vmem:[#allocation30_spill] sm:$0xff] %v12503_v15  ;;  %v9013_v45 = vadd.f32 %v9012_v55, %v9011_v42 }
 0x415   : > { %v12505_v21 = vpop.f32.mrf.mxu0  ;;  %v9014_v14 = vpop.f32.mrf.mxu1 }
 0x416   : > { %v12508_v41 = vadd.f32 %v9013_v45, %v12365_v9 }
 0x417   : > { %v12510_v27 = vpop.f32.mrf.mxu0  ;;  %v9015_v18 = vpop.f32.mrf.mxu1 }
 0x418   : > { %13154 = vst [vmem:[#allocation31_spill] sm:$0xff] %v12508_v41  ;;  %v9016_v53 = vadd.f32 %v9015_v18, %v9014_v14 }
 0x419   : > { %v12512_v62 = vpop.f32.mrf.mxu0  ;;  %v9017_v23 = vpop.f32.mrf.mxu1 }
 0x41a   : > { %13155 = vst [vmem:[#allocation33_spill] sm:$0xff] %v12512_v62  ;;  %v12515_v2 = vadd.f32 %v9016_v53, %v12368_v38 }
 0x41b   : > { %v12517_v8 = vpop.f32.mrf.mxu0  ;;  %v9018_v11 = vpop.f32.mrf.mxu1 }
 0x41c   : > { %13156 = vst [vmem:[#allocation34_spill] sm:$0xff] %v12515_v2  ;;  %v9019_v55 = vadd.f32 %v9018_v11, %v9017_v23 }
 0x41d   : > { %v12519_v42 = vpop.f32.mrf.mxu0  ;;  %v9020_v15 = vpop.f32.mrf.mxu1 }
 0x41e   : > { %13157 = vst [vmem:[#allocation14_spill] sm:$0xff] %v12519_v42  ;;  %v12522_v9 = vadd.f32 %v9019_v55, %v12371_v40 }
 0x41f   : > { %v12524_v45 = vpop.f32.mrf.mxu0  ;;  %v9021_v41 = vpop.f32.mrf.mxu1 }
 0x420   : > { %13158 = vst [vmem:[#allocation13_spill] sm:$0xff] %v12522_v9  ;;  %13159 = vst [vmem:[#allocation15_spill] sm:$0xff] %v12524_v45  ;;  %v9022_v14 = vadd.f32 %v9021_v41, %v9020_v15 }
 0x421   : > { %v12526_v18 = vpop.f32.mrf.mxu0  ;;  %v9023_v62 = vpop.f32.mrf.mxu1 }
 0x422   : > { %13160 = vst [vmem:[#allocation35_spill] sm:$0xff] %v12526_v18  ;;  %v12529_v38 = vadd.f32 %v9022_v14, %v12374_v6 }
 0x423   : > { %v12531_v53 = vpop.f32.mrf.mxu0  ;;  %v9024_v2 = vpop.f32.mrf.mxu1 }
 0x424   : > { %13161 = vst [vmem:[#allocation25_spill] sm:$0xff] %v12529_v38  ;;  %13162 = vst [vmem:[#allocation36_spill] sm:$0xff] %v12531_v53  ;;  %v9025_v23 = vadd.f32 %v9024_v2, %v9023_v62 }
 0x425   : > { %v12533_v11 = vpop.f32.mrf.mxu0  ;;  %v9026_v42 = vpop.f32.mrf.mxu1 }
 0x426   : > { %v12536_v40 = vadd.f32 %v9025_v23, %v12377_v60 }
 0x427   : > { %v12538_v55 = vpop.f32.mrf.mxu0  ;;  %v9027_v9 = vpop.f32.mrf.mxu1 }
 0x428   : > { %13163 = vst [vmem:[#allocation37_spill] sm:$0xff] %v12536_v40  ;;  %v9028_v15 = vadd.f32 %v9027_v9, %v9026_v42 }
 0x429   : > { %v12540_v41 = vpop.f32.mrf.mxu0  ;;  %v9029_v18 = vpop.f32.mrf.mxu1 }
 0x42a   : > { %13164 = vst [vmem:[#allocation39_spill] sm:$0xff] %v12540_v41  ;;  %v12543_v6 = vadd.f32 %v9028_v15, %v12380_v20 }
 0x42b   : > { %v9030_v14 = vpop.f32.mrf.mxu1  ;;  %v12545_v38 = vpop.f32.mrf.mxu0 }
 0x42c   : > { %13165 = vst [vmem:[#allocation38_spill] sm:$0xff] %v12543_v6  ;;  %v9031_v62 = vadd.f32 %v9030_v14, %v9029_v18 }
 0x42d   : > { %v9032_v2 = vpop.f32.mrf.mxu1  ;;  %v12550_v23 = vpop.f32.mrf.mxu0 }
 0x42e   : > { %v12548_v53 = vadd.f32 %v9031_v62, %v12383_v50 }
 0x42f   : > { %v9033_v60 = vpop.f32.mrf.mxu1  ;;  %v12555_v41 = vpop.f32.mrf.mxu0 }
 0x430   : > { %13166 = vst [vmem:[#allocation17_spill] sm:$0xff] %v12548_v53  ;;  %v9034_v40 = vadd.f32 %v9033_v60, %v9032_v2 }
 0x431   : > { %v9035_v45 = vpop.f32.mrf.mxu1  ;;  %v12560_v14 = vpop.f32.mrf.mxu0 }
 0x432   : > { %v12553_v42 = vadd.f32 %v9034_v40, %v12386_v31  ;;  %13168 = vst [vmem:[#allocation18_spill] sm:$0xff] %v12560_v14 }
 0x433   : > { %v9036_v9 = vpop.f32.mrf.mxu1  ;;  %v12565_v60 = vpop.f32.mrf.mxu0 }
 0x434   : > { %13167 = vst [vmem:[#allocation20_spill] sm:$0xff] %v12553_v42  ;;  %v9037_v20 = vadd.f32 %v9036_v9, %v9035_v45 }
 0x435   : > { %v9038_v15 = vpop.f32.mrf.mxu1  ;;  %v12570_v9 = vpop.f32.mrf.mxu0 }
 0x436   : > { %v12558_v6 = vadd.f32 %v9037_v20, %v12389_v47 }
 0x437   : > { %v9039_v18 = vpop.f32.mrf.mxu1 }
 0x438   : > { %v9040_v50 = vadd.f32 %v9039_v18, %v9038_v15  ;;  %v12575_v18 = vpop.f32.mrf.mxu0 }
 0x439   : > { %v9041_v62 = vpop.f32.mrf.mxu1 }
 0x43a   : > { %v12563_v53 = vadd.f32 %v9040_v50, %v12392_v5 }
 0x43b   : > { %v9042_v2 = vpop.f32.mrf.mxu1 }
 0x43c   : > { %13169 = vst [vmem:[#allocation19_spill] sm:$0xff] %v12563_v53  ;;  %v9043_v31 = vadd.f32 %v9042_v2, %v9041_v62  ;;  %v12580_v2 = vpop.f32.mrf.mxu0 }
 0x43d   : > { %v9044_v40 = vpop.f32.mrf.mxu1 }
 0x43e   : > { %v12568_v42 = vadd.f32 %v9043_v31, %v12395_v54 }
 0x43f   : > { %v9045_v45 = vpop.f32.mrf.mxu1 }
 0x440   : > { %13170 = vst [vmem:[#allocation16_spill] sm:$0xff] %v12568_v42  ;;  %v9046_v47 = vadd.f32 %v9045_v45, %v9044_v40  ;;  %v12585_v45 = vpop.f32.mrf.mxu0 }
 0x441   : > { %v9047_v20 = vpop.f32.mrf.mxu1 }
 0x442   : > { %v12573_v14 = vadd.f32 %v9046_v47, %v12398_v63 }
 0x443   : > { %v9048_v15 = vpop.f32.mrf.mxu1 }
 0x444   : > { %13171 = vst [vmem:[#allocation21_spill] sm:$0xff] %v12573_v14  ;;  %v9049_v5 = vadd.f32 %v9048_v15, %v9047_v20  ;;  %v12590_v15 = vpop.f32.mrf.mxu0 }
 0x445   : > { %v9050_v50 = vpop.f32.mrf.mxu1 }
 0x446   : > { %v12578_v53 = vadd.f32 %v9049_v5, %v12401_v39 }
 0x447   : > { %v9051_v62 = vpop.f32.mrf.mxu1 }
 0x448   : > { %13172 = vst [vmem:[#allocation22_spill] sm:$0xff] %v12578_v53  ;;  %v9052_v54 = vadd.f32 %v9051_v62, %v9050_v50  ;;  %v9089_v62 = vadd.f32 %v12424_v43, %v12419_v46  ;;  %v12615_v46 = vld [vmem:[%s13013_s5] ss:$0 sm:$0xff] }
 0x449   : > { %v9053_v31 = vpop.f32.mrf.mxu1 }
 0x44a   : > { %v12583_v42 = vadd.f32 %v9052_v54, %v12404_v3  ;;  %v12601_v54 = vpop.f32.mrf.mxu0 }
 0x44b   : > { %v9054_v40 = vpop.f32.mrf.mxu1 }
 0x44c   : > { %13173 = vst [vmem:[#allocation23_spill] sm:$0xff] %v12583_v42  ;;  %v9055_v63 = vadd.f32 %v9054_v40, %v9053_v31  ;;  %v9092_v40 = vadd.f32 %v12433_v17, %v12428_v48 }
 0x44d   : > { %v9056_v47 = vpop.f32.mrf.mxu1 }
 0x44e   : > { %v12588_v14 = vadd.f32 %v9055_v63, %v12407_v49  ;;  %v12609_v63 = vpop.f32.mrf.mxu0 }
 0x44f   : > { %v9057_v20 = vpop.f32.mrf.mxu1  ;;  %13179 = vst [vmem:[#allocation45_spill] sm:$0xff] %v12609_v63 }
 0x450   : > { %13174 = vst [vmem:[#allocation40_spill] sm:$0xff] %v12588_v14  ;;  %v9058_v39 = vadd.f32 %v9057_v20, %v9056_v47  ;;  %v12620_v20 = vld [vmem:[%s13014_s6] ss:$0 sm:$0xff]  ;;  %v12622_v17 = vpop.f32.mrf.mxu0  ;;  %v7149_v14 = vadd.f32 %v9092_v40, %v12431_v52  ;;  %v9851_v40 = vld [vmem:[%s10219_s19 + $0x4] sm:$0xf] }
 0x451   : > { %v12592_v5 = vpop.f32.mrf.mxu1  ;;  %13180 = vst [vmem:[#allocation46_spill] sm:$0xff] %v12622_v17 }
 0x452   : > { %v12595_v50 = vadd.f32 %v9058_v39, %v12409_v61  ;;  %v7146_v61 = vadd.f32 %v9089_v62, %v12422_v56  ;;  %v9848_v56 = vld [vmem:[%s10219_s19 + $0x8] sm:$0xf]  ;;  %v12649_v63 = vpop.f32.mrf.mxu0 }
 0x453   : > { %v12597_v3 = vpop.f32.mrf.mxu1  ;;  %v7505_v62 = vunpack.c.l.bf16 %v9848_v56 }
 0x454   : > { %13175 = vst [vmem:[#allocation41_spill] sm:$0xff] %v12595_v50  ;;  %13176 = vst [vmem:[#allocation42_spill] sm:$0xff] %v12597_v3 }
 0x455   : > { %v12603_v31 = vpop.f32.mrf.mxu1 }
 0x456   : > { %13177 = vst [vmem:[#allocation43_spill] sm:$0xff] %v12603_v31 }
 0x457   : > { %v12605_v49 = vpop.f32.mrf.mxu1 }
 0x458   : > { %13178 = vst [vmem:[#allocation44_spill] sm:$0xff] %v12605_v49  ;;  %v9849_v49 = vld [vmem:[%s10219_s19] sm:$0xf] }
 0x459   : > { %v9267_v47 = vpop.f32.mrf.mxu1  ;;  %v7503_v31 = vunpack.c.l.bf16 %v9849_v49  ;;  %v12642_v49 = vld [vmem:[%s10219_s19 + $0x10] sm:$0xf] }
 0x45a   : > { %v7307_v43 = vadd.f32 %v9267_v47, %v7146_v61  ;;  %v9095_v61 = vadd.f32 %v12440_v10, %v12435_v28  ;;  %v9101_v47 = vadd.f32 %v12454_v16, %v12449_v4  ;;  %v9104_v28 = vadd.f32 %v12461_v36, %v12456_v32  ;;  %v9852_v4 = vld [vmem:[%s10219_s19 + $0x18] sm:$0xf] }
 0x45b   : > { %v7298_v48 = vpop.f32.mrf.mxu1  ;;  %v7509_v16 = vunpack.c.l.bf16 %v9852_v4  ;;  %v7507_v17 = vunpack.c.l.bf16 %v12642_v49  ;;  %v9098_v36 = vadd.f32 %v12447_v19, %v12442_v22 }
 0x45c   : > { %v7434_v39 = vmul.f32 %v12615_v46, %v7307_v43  ;;  %v7299_v50 = vadd.f32 %v7298_v48, %v12417_v58  ;;  %v9850_v43 = vld [vmem:[%s10219_s19 + $0xc] sm:$0xf]  ;;  %v7504_v48 = vunpack.c.l.bf16 %v9851_v40  ;;  %v7162_v40 = vadd.f32 %v9101_v47, %v12452_v0  ;;  %v12671_v47 = vpop.f32.mrf.mxu0 }
 0x45d   : > { %v9268_v42 = vpop.f32.mrf.mxu1  ;;  %v7506_v53 = vunpack.c.l.bf16 %v9850_v43  ;;  %v12646_v43 = vld [vmem:[%s10219_s19 + $0x1c] sm:$0xf]  ;;  %v7154_v49 = vadd.f32 %v9095_v61, %v12438_v33  ;;  %v7165_v0 = vadd.f32 %v9104_v28, %v12459_v37  ;;  %v12668_v33 = vld [vmem:[%s10219_s19 + $0x28] sm:$0xf]  ;;  %v7157_v28 = vadd.f32 %v9098_v36, %v12445_v44 }
 0x45e   : > { %v7473_v56 = vadd.f32 %v12620_v20, %v7434_v39  ;;  %v7432_v58 = vmul.f32 %v12615_v46, %v7299_v50  ;;  %v7310_v52 = vadd.f32 %v9268_v42, %v7149_v14  ;;  %v12659_v39 = vld [vmem:[%s10219_s19 + $0x14] sm:$0xf]  ;;  %v7513_v61 = vunpack.c.l.bf16 %v12668_v33 }
 0x45f   : > { %v7301_v10 = vpop.f32.mrf.mxu1  ;;  %v9116_v44 = vadd.f32 %v12489_v13, %v12484_v24  ;;  %v12705_v13 = vld [vmem:[%s10219_s19 + $0x24] sm:$0xf] }
 0x460   : > { %v7537_v42 = vadd.f32 %v7505_v62, %v7473_v56  ;;  %v7471_v14 = vadd.f32 %v12620_v20, %v7432_v58  ;;  %v7435_v50 = vmul.f32 %v12615_v46, %v7310_v52  ;;  %v7302_v32 = vadd.f32 %v7301_v10, %v12426_v26 }
 0x461   : > { %v9271_v4 = vpop.f32.mrf.mxu1  ;;  %v7508_v62 = vunpack.c.l.bf16 %v12659_v39  ;;  %v9113_v26 = vadd.f32 %v12482_v30, %v12477_v51 }
 0x462   : > { %v7569_v56 = vmax.f32 %v7537_v42, 0.0  ;;  %v7535_v58 = vadd.f32 %v7503_v31, %v7471_v14  ;;  %v7474_v52 = vadd.f32 %v12620_v20, %v7435_v50  ;;  %v7433_v3 = vmul.f32 %v12615_v46, %v7302_v32  ;;  %v12682_v14 = vld [vmem:[%s10219_s19 + $0x20] sm:$0xf]  ;;  %v12686_v32 = vld [vmem:[%s10219_s19 + $0x2c] sm:$0xf] }
 0x463   : > { %v7323_v22 = vadd.f32 %v9271_v4, %v7162_v40  ;;  %v7314_v19 = vpop.f32.mrf.mxu1  ;;  %v7511_v50 = vunpack.c.l.bf16 %v12682_v14  ;;  %v7514_v40 = vunpack.c.l.bf16 %v12686_v32 }
 0x464   : > { %7601 = vst [vmem:[%s12675_s30 + $0x10] sm:$0xff] %v7569_v56  ;;  %v7567_v31 = vmax.f32 %v7535_v58, 0.0  ;;  %v7538_v51 = vadd.f32 %v7506_v53, %v7474_v52  ;;  %v7472_v30 = vadd.f32 %v12620_v20, %v7433_v3  ;;  %v7315_v10 = vadd.f32 %v7314_v19, %v7154_v49 }
 0x465   : > { %v7438_v42 = vmul.f32 %v12615_v46, %v7323_v22  ;;  %v9272_v37 = vpop.f32.mrf.mxu1  ;;  %v9107_v56 = vadd.f32 %v12468_v35, %v12463_v34  ;;  %v7178_v52 = vadd.f32 %v9113_v26, %v12480_v57  ;;  %v12697_v22 = vpop.f32.mrf.mxu0  ;;  %v9110_v34 = vadd.f32 %v12475_v25, %v12470_v12 }
 0x466   : > { %7599 = vst [vmem:[%s12675_s30] sm:$0xff] %v7567_v31  ;;  %v7570_v4 = vmax.f32 %v7538_v51, 0.0  ;;  %v7536_v53 = vadd.f32 %v7504_v48, %v7472_v30  ;;  %v7436_v3 = vmul.f32 %v12615_v46, %v7315_v10  ;;  %v7326_v49 = vadd.f32 %v9272_v37, %v7165_v0  ;;  %v12709_v30 = vld [vmem:[%s10219_s19 + $0x38] sm:$0xf] }
 0x467   : > { %v7477_v36 = vadd.f32 %v12620_v20, %v7438_v42  ;;  %v7317_v58 = vpop.f32.mrf.mxu1  ;;  %v7512_v51 = vunpack.c.l.bf16 %v12705_v13  ;;  %v7517_v57 = vunpack.c.l.bf16 %v12709_v30  ;;  %v9125_v12 = vadd.f32 %v12510_v27, %v12505_v21 }
 0x468   : > { %7602 = vst [vmem:[%s12675_s30 + $0x18] sm:$0xff] %v7570_v4  ;;  %v7568_v48 = vmax.f32 %v7536_v53, 0.0  ;;  %v7475_v19 = vadd.f32 %v12620_v20, %v7436_v3  ;;  %v7439_v0 = vmul.f32 %v12615_v46, %v7326_v49  ;;  %v7318_v31 = vadd.f32 %v7317_v58, %v7157_v28  ;;  %v12719_v53 = vpop.f32.mrf.mxu0 }
 0x469   : > { %v7541_v35 = vadd.f32 %v7509_v16, %v7477_v36  ;;  %v9275_v24 = vpop.f32.mrf.mxu1  ;;  %v7170_v16 = vadd.f32 %v9107_v56, %v12466_v29  ;;  %v7181_v4 = vadd.f32 %v9116_v44, %v12487_v7  ;;  %v9119_v21 = vadd.f32 %v12496_v59, %v12491_v1  ;;  %v13182_v56 = vld [vmem:[#allocation28_spill] sm:$0xff]  ;;  %v12730_v44 = vld [vmem:[%s10219_s19 + $0x30] sm:$0xf] }
 0x46a   : > { %7600 = vst [vmem:[%s12675_s30 + $0x8] sm:$0xff] %v7568_v48  ;;  %v7539_v26 = vadd.f32 %v7507_v17, %v7475_v19  ;;  %v7478_v10 = vadd.f32 %v12620_v20, %v7439_v0  ;;  %v7437_v42 = vmul.f32 %v12615_v46, %v7318_v31  ;;  %v7339_v37 = vadd.f32 %v9275_v24, %v7178_v52  ;;  %v13183_v31 = vld [vmem:[#allocation31_spill] sm:$0xff] }
 0x46b   : > { %v7573_v25 = vmax.f32 %v7541_v35, 0.0  ;;  %v7330_v28 = vpop.f32.mrf.mxu1  ;;  %v13181_v17 = vunpack.c.l.bf16 %v12646_v43  ;;  %v7173_v7 = vadd.f32 %v9110_v34, %v13182_v56  ;;  %v7515_v43 = vunpack.c.l.bf16 %v12730_v44  ;;  %v12740_v34 = vld [vmem:[%s10219_s19 + $0x3c] sm:$0xf] }
 0x46c   : > { %v7571_v3 = vmax.f32 %v7539_v26, 0.0  ;;  %v7476_v36 = vadd.f32 %v12620_v20, %v7437_v42  ;;  %v7442_v58 = vmul.f32 %v12615_v46, %v7339_v37  ;;  %v7331_v29 = vadd.f32 %v7330_v28, %v7170_v16  ;;  %v12744_v26 = vld [vmem:[%s10219_s19 + $0x34] sm:$0xf]  ;;  %v12747_v42 = vpop.f32.mrf.mxu0  ;;  %v13185_v16 = vld [vmem:[#allocation30_spill] sm:$0xff] }
 0x46d   : > { %v7542_v49 = vadd.f32 %v13181_v17, %v7478_v10  ;;  %7605 = vst [vmem:[%s12675_s30 + $0x30] sm:$0xff] %v7573_v25  ;;  %v9276_v27 = vpop.f32.mrf.mxu1  ;;  %v7194_v35 = vadd.f32 %v9125_v12, %v13183_v31  ;;  %v7518_v24 = vunpack.c.l.bf16 %v12740_v34  ;;  %v7516_v10 = vunpack.c.l.bf16 %v12744_v26  ;;  %v13184_v25 = vld [vmem:[#allocation29_spill] sm:$0xff] }
 0x46e   : > { %7603 = vst [vmem:[%s12675_s30 + $0x20] sm:$0xff] %v7571_v3  ;;  %v7540_v48 = vadd.f32 %v7508_v62, %v7476_v36  ;;  %v7481_v19 = vadd.f32 %v12620_v20, %v7442_v58  ;;  %v7342_v0 = vadd.f32 %v9276_v27, %v7181_v4  ;;  %v7440_v1 = vmul.f32 %v12615_v46, %v7331_v29  ;;  %v13186_v4 = vld [vmem:[#allocation33_spill] sm:$0xff]  ;;  %v13187_v36 = vld [vmem:[#allocation27_spill] sm:$0xff] }
 0x46f   : > { %v7574_v52 = vmax.f32 %v7542_v49, 0.0  ;;  %v7333_v59 = vpop.f32.mrf.mxu1  ;;  %v9122_v28 = vadd.f32 %v13185_v16, %v13184_v25  ;;  %v9128_v3 = vadd.f32 %v12517_v8, %v13186_v4  ;;  %v7186_v58 = vadd.f32 %v9119_v21, %v13187_v36 }
 0x470   : > { %v7572_v39 = vmax.f32 %v7540_v48, 0.0  ;;  %v7545_v62 = vadd.f32 %v7513_v61, %v7481_v19  ;;  %v7443_v37 = vmul.f32 %v12615_v46, %v7342_v0  ;;  %v7334_v12 = vadd.f32 %v7333_v59, %v7173_v7  ;;  %v12771_v19 = vld [vmem:[%s10219_s19 + $0x40] sm:$0xf]  ;;  %v12774_v0 = vpop.f32.mrf.mxu0  ;;  %v13189_v59 = vld [vmem:[#allocation15_spill] sm:$0xff] }
 0x471   : > { %7606 = vst [vmem:[%s12675_s30 + $0x38] sm:$0xff] %v7574_v52  ;;  %v7479_v17 = vadd.f32 %v12620_v20, %v7440_v1  ;;  %v9279_v49 = vpop.f32.mrf.mxu1  ;;  %v9137_v56 = vadd.f32 %v12538_v55, %v12533_v11  ;;  %v12767_v52 = vld [vmem:[%s10219_s19 + $0x48] sm:$0xf]  ;;  %v7519_v21 = vunpack.c.l.bf16 %v12771_v19  ;;  %v9152_v34 = vadd.f32 %v12585_v45, %v12580_v2 }
 0x472   : > { %7604 = vst [vmem:[%s12675_s30 + $0x28] sm:$0xff] %v7572_v39  ;;  %v7577_v33 = vmax.f32 %v7545_v62, 0.0  ;;  %v7482_v61 = vadd.f32 %v12620_v20, %v7443_v37  ;;  %v7441_v29 = vmul.f32 %v12615_v46, %v7334_v12  ;;  %v7355_v27 = vadd.f32 %v9279_v49, %v7194_v35  ;;  %v13190_v39 = vld [vmem:[#allocation34_spill] sm:$0xff]  ;;  %v13191_v12 = vld [vmem:[#allocation32_spill] sm:$0xff] }
 0x473   : > { %v7543_v7 = vadd.f32 %v7511_v50, %v7479_v17  ;;  %v7346_v8 = vpop.f32.mrf.mxu1  ;;  %v7521_v48 = vunpack.c.l.bf16 %v12767_v52  ;;  %v13188_v50 = vld [vmem:[#allocation14_spill] sm:$0xff]  ;;  %v7197_v62 = vadd.f32 %v9128_v3, %v13190_v39  ;;  %v7189_v25 = vadd.f32 %v9122_v28, %v13191_v12  ;;  %v13192_v17 = vld [vmem:[#allocation39_spill] sm:$0xff]  ;;  %v13193_v3 = vld [vmem:[#allocation37_spill] sm:$0xff] }
 0x474   : > { %7609 = vst [vmem:[%s12675_s30 + $0x50] sm:$0xff] %v7577_v33  ;;  %v7546_v1 = vadd.f32 %v7514_v40, %v7482_v61  ;;  %v7480_v11 = vadd.f32 %v12620_v20, %v7441_v29  ;;  %v7446_v55 = vmul.f32 %v12615_v46, %v7355_v27  ;;  %v7347_v14 = vadd.f32 %v7346_v8, %v7186_v58  ;;  %v12794_v28 = vld [vmem:[%s10219_s19 + $0x4c] sm:$0xf]  ;;  %v13195_v39 = vld [vmem:[#allocation35_spill] sm:$0xff] }
 0x475   : > { %v9131_v31 = vadd.f32 %v13189_v59, %v13188_v50  ;;  %v7575_v35 = vmax.f32 %v7543_v7, 0.0  ;;  %v9280_v37 = vpop.f32.mrf.mxu1  ;;  %v9140_v49 = vadd.f32 %v12545_v38, %v13192_v17  ;;  %v7210_v33 = vadd.f32 %v9137_v56, %v13193_v3  ;;  %v12837_v3 = vld [vmem:[%s10219_s19 + $0x5c] sm:$0xf] }
 0x476   : > { %v7578_v16 = vmax.f32 %v7546_v1, 0.0  ;;  %v7544_v32 = vadd.f32 %v7512_v51, %v7480_v11  ;;  %v7485_v40 = vadd.f32 %v12620_v20, %v7446_v55  ;;  %v7444_v4 = vmul.f32 %v12615_v46, %v7347_v14  ;;  %v12797_v51 = vpop.f32.mrf.mxu0  ;;  %v13194_v1 = vld [vmem:[#allocation13_spill] sm:$0xff]  ;;  %v12810_v14 = vld [vmem:[%s10219_s19 + $0x58] sm:$0xf] }
 0x477   : > { %7607 = vst [vmem:[%s12675_s30 + $0x40] sm:$0xff] %v7575_v35  ;;  %v7358_v36 = vadd.f32 %v9280_v37, %v7197_v62  ;;  %v7349_v58 = vpop.f32.mrf.mxu1  ;;  %v7522_v13 = vunpack.c.l.bf16 %v12794_v28  ;;  %v7202_v56 = vadd.f32 %v9131_v31, %v13194_v1  ;;  %v12806_v11 = vld [vmem:[%s10219_s19 + $0x44] sm:$0xf]  ;;  %v7525_v50 = vunpack.c.l.bf16 %v12810_v14  ;;  %v13196_v31 = vld [vmem:[#allocation36_spill] sm:$0xff] }
 0x478   : > { %7610 = vst [vmem:[%s12675_s30 + $0x58] sm:$0xff] %v7578_v16  ;;  %v7576_v61 = vmax.f32 %v7544_v32, 0.0  ;;  %v7549_v29 = vadd.f32 %v7517_v57, %v7485_v40  ;;  %v7483_v38 = vadd.f32 %v12620_v20, %v7444_v4  ;;  %v7350_v27 = vadd.f32 %v7349_v58, %v7189_v25  ;;  %v13197_v16 = vld [vmem:[#allocation38_spill] sm:$0xff]  ;;  %v12823_v40 = vpop.f32.mrf.mxu0  ;;  %v12833_v58 = vld [vmem:[%s10219_s19 + $0x50] sm:$0xf] }
 0x479   : > { %v7447_v7 = vmul.f32 %v12615_v46, %v7358_v36  ;;  %v9283_v8 = vpop.f32.mrf.mxu1  ;;  %v7520_v55 = vunpack.c.l.bf16 %v12806_v11  ;;  %v9134_v62 = vadd.f32 %v13196_v31, %v13195_v39  ;;  %v9149_v37 = vadd.f32 %v12575_v18, %v12570_v9 }
 0x47a   : > { %7608 = vst [vmem:[%s12675_s30 + $0x48] sm:$0xff] %v7576_v61  ;;  %v7581_v30 = vmax.f32 %v7549_v29, 0.0  ;;  %v7547_v57 = vadd.f32 %v7515_v43, %v7483_v38  ;;  %v7445_v59 = vmul.f32 %v12615_v46, %v7350_v27  ;;  %v7371_v35 = vadd.f32 %v9283_v8, %v7210_v33  ;;  %v13198_v38 = vld [vmem:[#allocation25_spill] sm:$0xff]  ;;  %v9171_v1 = vpop.f32.mrf.mxu0 }
 0x47b   : > { %v7486_v12 = vadd.f32 %v12620_v20, %v7447_v7  ;;  %v7362_v25 = vpop.f32.mrf.mxu1  ;;  %v7213_v32 = vadd.f32 %v9140_v49, %v13197_v16  ;;  %v9143_v36 = vadd.f32 %v12555_v41, %v12550_v23  ;;  %v7523_v49 = vunpack.c.l.bf16 %v12833_v58  ;;  %v13201_v16 = vld [vmem:[#allocation19_spill] sm:$0xff] }
 0x47c   : > { %7613 = vst [vmem:[%s12675_s30 + $0x70] sm:$0xff] %v7581_v30  ;;  %v7579_v44 = vmax.f32 %v7547_v57, 0.0  ;;  %v7484_v43 = vadd.f32 %v12620_v20, %v7445_v59  ;;  %v7450_v4 = vmul.f32 %v12615_v46, %v7371_v35  ;;  %v7363_v17 = vadd.f32 %v7362_v25, %v7202_v56  ;;  %v13199_v57 = vld [vmem:[#allocation18_spill] sm:$0xff]  ;;  %v13200_v35 = vld [vmem:[#allocation17_spill] sm:$0xff] }
 0x47d   : > { %v7550_v9 = vadd.f32 %v7518_v24, %v7486_v12  ;;  %v9284_v18 = vpop.f32.mrf.mxu1  ;;  %v7526_v33 = vunpack.c.l.bf16 %v12837_v3  ;;  %v7205_v27 = vadd.f32 %v9134_v62, %v13198_v38  ;;  %v7226_v8 = vadd.f32 %v9149_v37, %v12558_v6  ;;  %v12858_v6 = vld [vmem:[%s10219_s19 + $0x54] sm:$0xf]  ;;  %v9873_v38 = vld [vmem:[%s10219_s19 + $0x60] sm:$0xf] }
 0x47e   : > { %7611 = vst [vmem:[%s12675_s30 + $0x60] sm:$0xff] %v7579_v44  ;;  %v7548_v61 = vadd.f32 %v7516_v10, %v7484_v43  ;;  %v7489_v29 = vadd.f32 %v12620_v20, %v7450_v4  ;;  %v7448_v41 = vmul.f32 %v12615_v46, %v7363_v17  ;;  %v7374_v23 = vadd.f32 %v9284_v18, %v7213_v32  ;;  %v12870_v44 = vld [vmem:[%s10219_s19 + $0x68] sm:$0xf]  ;;  %v9172_v4 = vpop.f32.mrf.mxu0 }
 0x47f   : > { %v7582_v24 = vmax.f32 %v7550_v9, 0.0  ;;  %v7365_v7 = vpop.f32.mrf.mxu1  ;;  %v9146_v59 = vadd.f32 %v12565_v60, %v13199_v57  ;;  %v7218_v39 = vadd.f32 %v9143_v36, %v13200_v35  ;;  %v7524_v31 = vunpack.c.l.bf16 %v12858_v6  ;;  %v13207_v57 = vld [vmem:[#allocation22_spill] sm:$0xff] }
 0x480   : > { %v7580_v26 = vmax.f32 %v7548_v61, 0.0  ;;  %v7553_v10 = vadd.f32 %v7521_v48, %v7489_v29  ;;  %v7487_v56 = vadd.f32 %v12620_v20, %v7448_v41  ;;  %v7451_v30 = vmul.f32 %v12615_v46, %v7374_v23  ;;  %v13202_v61 = vld [vmem:[#allocation20_spill] sm:$0xff] }
 0x481   : > { %7614 = vst [vmem:[%s12675_s30 + $0x78] sm:$0xff] %v7582_v24  ;;  %v7366_v2 = vadd.f32 %v7365_v7, %v7205_v27  ;;  %v9287_v45 = vpop.f32.mrf.mxu1  ;;  %v9155_v60 = vadd.f32 %v12601_v54, %v12590_v15  ;;  %v7229_v32 = vadd.f32 %v9152_v34, %v13201_v16  ;;  %v7529_v43 = vunpack.c.l.bf16 %v12870_v44  ;;  %v13203_v34 = vld [vmem:[#allocation42_spill] sm:$0xff]  ;;  %v9174_v7 = vpop.f32.mrf.mxu0 }
 0x482   : > { %7612 = vst [vmem:[%s12675_s30 + $0x68] sm:$0xff] %v7580_v26  ;;  %v7585_v52 = vmax.f32 %v7553_v10, 0.0  ;;  %v7551_v48 = vadd.f32 %v7519_v21, %v7487_v56  ;;  %v7490_v62 = vadd.f32 %v12620_v20, %v7451_v30  ;;  %v7387_v37 = vadd.f32 %v9287_v45, %v7226_v8  ;;  %v13206_v30 = vld [vmem:[#allocation46_spill] sm:$0xff]  ;;  %v13208_v45 = vld [vmem:[#allocation23_spill] sm:$0xff] }
 0x483   : > { %v7449_v12 = vmul.f32 %v12615_v46, %v7366_v2  ;;  %v7378_v25 = vpop.f32.mrf.mxu1  ;;  %v9161_v54 = vadd.f32 %v12671_v47, %v12649_v63  ;;  %v9164_v36 = vadd.f32 %v12719_v53, %v12697_v22  ;;  %v7221_v29 = vadd.f32 %v9146_v59, %v13202_v61  ;;  %v13204_v22 = vld [vmem:[#allocation16_spill] sm:$0xff] }
 0x484   : > { %7617 = vst [vmem:[%s12675_s30 + $0x90] sm:$0xff] %v7585_v52  ;;  %v7583_v19 = vmax.f32 %v7551_v48, 0.0  ;;  %v7554_v21 = vadd.f32 %v7522_v13, %v7490_v62  ;;  %v7454_v17 = vmul.f32 %v12615_v46, %v7387_v37  ;;  %v7379_v15 = vadd.f32 %v7378_v25, %v7218_v39  ;;  %v13209_v48 = vld [vmem:[#allocation24_spill] sm:$0xff] }
 0x485   : > { %v7488_v9 = vadd.f32 %v12620_v20, %v7449_v12  ;;  %v9288_v18 = vpop.f32.mrf.mxu1  ;;  %v9061_v24 = vadd.f32 %v13203_v34, %v12592_v5  ;;  %v7234_v53 = vadd.f32 %v9155_v60, %v13204_v22  ;;  %v7527_v27 = vunpack.c.l.bf16 %v9873_v38  ;;  %v13205_v5 = vld [vmem:[#allocation45_spill] sm:$0xff]  ;;  %v13210_v60 = vld [vmem:[#allocation43_spill] sm:$0xff]  ;;  %v13211_v12 = vld [vmem:[#allocation44_spill] sm:$0xff] }
 0x486   : > { %7615 = vst [vmem:[%s12675_s30 + $0x80] sm:$0xff] %v7583_v19  ;;  %v7586_v41 = vmax.f32 %v7554_v21, 0.0  ;;  %v7493_v28 = vadd.f32 %v12620_v20, %v7454_v17  ;;  %v7452_v13 = vmul.f32 %v12615_v46, %v7379_v15  ;;  %v7390_v23 = vadd.f32 %v9288_v18, %v7229_v32  ;;  %v9175_v19 = vpop.f32.mrf.mxu0  ;;  %v9875_v22 = vld [vmem:[%s10219_s19 + $0x64] sm:$0xf] }
 0x487   : > { %v7552_v63 = vadd.f32 %v7520_v55, %v7488_v9  ;;  %v7381_v47 = vpop.f32.mrf.mxu1  ;;  %v9158_v11 = vadd.f32 %v13206_v30, %v13205_v5  ;;  %v7242_v59 = vadd.f32 %v9161_v54, %v13207_v57  ;;  %v7245_v35 = vadd.f32 %v9164_v36, %v13208_v45  ;;  %v9874_v54 = vld [vmem:[%s10219_s19 + $0x6c] sm:$0xf]  ;;  %v13212_v9 = vld [vmem:[#allocation21_spill] sm:$0xff]  ;;  %v9876_v5 = vld [vmem:[%s10219_s19 + $0x78] sm:$0xf] }
 0x488   : > { %7618 = vst [vmem:[%s12675_s30 + $0x98] sm:$0xff] %v7586_v41  ;;  %v7557_v8 = vadd.f32 %v7525_v50, %v7493_v28  ;;  %v7491_v26 = vadd.f32 %v12620_v20, %v7452_v13  ;;  %v7455_v10 = vmul.f32 %v12615_v46, %v7390_v23  ;;  %v7382_v56 = vadd.f32 %v7381_v47, %v7221_v29  ;;  %v13213_v41 = vld [vmem:[#allocation26_spill] sm:$0xff]  ;;  %v13215_v45 = vld [vmem:[#allocation41_spill] sm:$0xff] }
 0x489   : > { %v7584_v55 = vmax.f32 %v7552_v63, 0.0  ;;  %v9291_v2 = vpop.f32.mrf.mxu1  ;;  %v7097_v62 = vadd.f32 %v9061_v24, %v13209_v48  ;;  %v9173_v37 = vadd.f32 %v9172_v4, %v9171_v1  ;;  %v9064_v25 = vadd.f32 %v13211_v12, %v13210_v60  ;;  %v9878_v60 = vld [vmem:[%s10219_s19 + $0x7c] sm:$0xf] }
 0x48a   : > { %v7589_v39 = vmax.f32 %v7557_v8, 0.0  ;;  %v7555_v14 = vadd.f32 %v7523_v49, %v7491_v26  ;;  %v7494_v50 = vadd.f32 %v12620_v20, %v7455_v10  ;;  %v7453_v52 = vmul.f32 %v12615_v46, %v7382_v56 }
 0x48b   : > { %7616 = vst [vmem:[%s12675_s30 + $0x88] sm:$0xff] %v7584_v55  ;;  %v7403_v16 = vadd.f32 %v9291_v2, %v7242_v59  ;;  %v7394_v32 = vpop.f32.mrf.mxu1  ;;  %v9167_v15 = vadd.f32 %v12774_v0, %v12747_v42  ;;  %v7530_v36 = vunpack.c.l.bf16 %v9874_v54  ;;  %v7237_v18 = vadd.f32 %v9158_v11, %v13212_v9  ;;  %v13214_v11 = vld [vmem:[#allocation40_spill] sm:$0xff] }
 0x48c   : > { %7621 = vst [vmem:[%s12675_s30 + $0xb0] sm:$0xff] %v7589_v39  ;;  %v7587_v21 = vmax.f32 %v7555_v14, 0.0  ;;  %v7558_v58 = vadd.f32 %v7526_v33, %v7494_v50  ;;  %v7492_v49 = vadd.f32 %v12620_v20, %v7453_v52  ;;  %v7395_v17 = vadd.f32 %v7394_v32, %v7234_v53 }
 0x48d   : > { %v7458_v1 = vmul.f32 %v12615_v46, %v7403_v16  ;;  %v9292_v4 = vpop.f32.mrf.mxu1  ;;  %v7100_v42 = vadd.f32 %v9064_v25, %v13213_v41  ;;  %v9176_v0 = vadd.f32 %v9175_v19, %v9174_v7  ;;  %v7258_v23 = vadd.f32 %v9173_v37, %v7097_v62  ;;  %v9877_v62 = vld [vmem:[%s10219_s19 + $0x70] sm:$0xf] }
 0x48e   : > { %7619 = vst [vmem:[%s12675_s30 + $0xa0] sm:$0xff] %v7587_v21  ;;  %v7590_v61 = vmax.f32 %v7558_v58, 0.0  ;;  %v7556_v3 = vadd.f32 %v7524_v31, %v7492_v49  ;;  %v7456_v33 = vmul.f32 %v12615_v46, %v7395_v17  ;;  %v7406_v29 = vadd.f32 %v9292_v4, %v7245_v35 }
 0x48f   : > { %v7497_v28 = vadd.f32 %v12620_v20, %v7458_v1  ;;  %v7397_v13 = vpop.f32.mrf.mxu1  ;;  %v9170_v31 = vadd.f32 %v12823_v40, %v12797_v51  ;;  %v7528_v53 = vunpack.c.l.bf16 %v9875_v22  ;;  %v7533_v30 = vunpack.c.l.bf16 %v9876_v5  ;;  %v9879_v1 = vld [vmem:[%s10219_s19 + $0x74] sm:$0xf]  ;;  %s7632_s19 = scalar_lea.sflag [#allocation5], %s10215_s17 }
 0x490   : > { %7622 = vst [vmem:[%s12675_s30 + $0xb8] sm:$0xff] %v7590_v61  ;;  %v7588_v34 = vmax.f32 %v7556_v3, 0.0  ;;  %v7495_v24 = vadd.f32 %v12620_v20, %v7456_v33  ;;  %v7459_v6 = vmul.f32 %v12615_v46, %v7406_v29  ;;  %v7398_v63 = vadd.f32 %v7397_v13, %v7237_v18 }
 0x491   : > { %v7561_v47 = vadd.f32 %v7529_v43, %v7497_v28  ;;  %v9295_v38 = vpop.f32.mrf.mxu1  ;;  %v7250_v51 = vadd.f32 %v9167_v15, %v13214_v11  ;;  %v7261_v44 = vadd.f32 %v9176_v0, %v7100_v42  ;;  %v7253_v35 = vadd.f32 %v9170_v31, %v13215_v45 }
 0x492   : > { %7620 = vst [vmem:[%s12675_s30 + $0xa8] sm:$0xff] %v7588_v34  ;;  %v7559_v7 = vadd.f32 %v7527_v27, %v7495_v24  ;;  %v7498_v8 = vadd.f32 %v12620_v20, %v7459_v6  ;;  %v7457_v26 = vmul.f32 %v12615_v46, %v7398_v63  ;;  %v7419_v10 = vadd.f32 %v9295_v38, %v7258_v23 }
 0x493   : > { %v7593_v56 = vmax.f32 %v7561_v47, 0.0  ;;  %v7410_v40 = vpop.f32.mrf.mxu1  ;;  %v7531_v37 = vunpack.c.l.bf16 %v9877_v62  ;;  %v7534_v12 = vunpack.c.l.bf16 %v9878_v60  ;;  %v7532_v4 = vunpack.c.l.bf16 %v9879_v1 }
 0x494   : > { %v7591_v43 = vmax.f32 %v7559_v7, 0.0  ;;  %v7562_v55 = vadd.f32 %v7530_v36, %v7498_v8  ;;  %v7496_v57 = vadd.f32 %v12620_v20, %v7457_v26  ;;  %v7462_v27 = vmul.f32 %v12615_v46, %v7419_v10 }
 0x495   : > { %7625 = vst [vmem:[%s12675_s30 + $0xd0] sm:$0xff] %v7593_v56  ;;  %v7411_v59 = vadd.f32 %v7410_v40, %v7250_v51  ;;  %v9296_v2 = vpop.f32.mrf.mxu1 }
 0x496   : > { %7623 = vst [vmem:[%s12675_s30 + $0xc0] sm:$0xff] %v7591_v43  ;;  %v7594_v39 = vmax.f32 %v7562_v55, 0.0  ;;  %v7560_v14 = vadd.f32 %v7528_v53, %v7496_v57  ;;  %v7501_v50 = vadd.f32 %v12620_v20, %v7462_v27  ;;  %v7422_v52 = vadd.f32 %v9296_v2, %v7261_v44 }
 0x497   : > { %v7460_v48 = vmul.f32 %v12615_v46, %v7411_v59  ;;  %v7413_v25 = vpop.f32.mrf.mxu1 }
 0x498   : > { %7626 = vst [vmem:[%s12675_s30 + $0xd8] sm:$0xff] %v7594_v39  ;;  %v7592_v16 = vmax.f32 %v7560_v14, 0.0  ;;  %v7565_v32 = vadd.f32 %v7533_v30, %v7501_v50  ;;  %v7463_v19 = vmul.f32 %v12615_v46, %v7422_v52  ;;  %v7414_v21 = vadd.f32 %v7413_v25, %v7253_v35 }
 0x499   : > { %v7499_v58 = vadd.f32 %v12620_v20, %v7460_v48 }
 0x49a   : > { %7624 = vst [vmem:[%s12675_s30 + $0xc8] sm:$0xff] %v7592_v16  ;;  %v7597_v49 = vmax.f32 %v7565_v32, 0.0  ;;  %v7502_v17 = vadd.f32 %v12620_v20, %v7463_v19  ;;  %v7461_v15 = vmul.f32 %v12615_v46, %v7414_v21 }
 0x49b   : > { %v7563_v54 = vadd.f32 %v7531_v37, %v7499_v58 }
 0x49c   : > { %7629 = vst [vmem:[%s12675_s30 + $0xf0] sm:$0xff] %v7597_v49  ;;  %v7566_v36 = vadd.f32 %v7534_v12, %v7502_v17  ;;  %v7500_v9 = vadd.f32 %v12620_v20, %v7461_v15 }
 0x49d   : > { %v7595_v18 = vmax.f32 %v7563_v54, 0.0 }
 0x49e   : > { %v7598_v61 = vmax.f32 %v7566_v36, 0.0  ;;  %v7564_v3 = vadd.f32 %v7532_v4, %v7500_v9 }
 0x49f   : > { %7627 = vst [vmem:[%s12675_s30 + $0xe0] sm:$0xff] %v7595_v18 }
 0x4a0   : > { %7630 = vst [vmem:[%s12675_s30 + $0xf8] sm:$0xff] %v7598_v61  ;;  %v7596_v46 = vmax.f32 %v7564_v3, 0.0 }
 0x4a2   : > { %7628 = vst [vmem:[%s12675_s30 + $0xe8] sm:$0xff] %v7596_v46 }
 0x4a3   : > { %9973 = shalt.err (!%p9970_p3)
}
 0x4a4   : > { %s9974_s16 = scalar_lea.hbm %s12961_s29, 4096  ;;  %s9978_s15 = scalar_lea.hbm %s13015_s7, 8192 }
 0x4a5   : > { %p9975_p11 = scmp.ne.s32.totalorder %s12961_s29, %s9974_s16  ;;  %p9979_p4 = scmp.lt.s32.totalorder %s12961_s29, %s13015_s7 }
 0x4a6   : > { %p9980_p6 = scmp.lt.s32.totalorder %s9978_s15, %s9974_s16 }
 0x4a7   : > { %p9976_p9 = pnand %p9975_p11, %p13216_p2 }
 0x4a8   : > { %p9981_p8 = por %p9980_p6, %p9979_p4 }
 0x4a9   : > { %p9977_p1 = pneg %p9976_p9 }
 0x4ab   : > { %p9982_p5 = pnand %p9981_p8, %p9977_p1 }
 0x4ad   : > { %9985 = shalt.err (!%p9982_p5)
}
 0x4ae   : > { %s10037_s22 = smov 128   ;;  %s10038_s10 = smov 8  }
 0x4af   : > { %9307 = dma.vmem_to_hbm [thread:$0]  (%p13216_p2), %s12963_s20, 4096, %s12961_s29, %s7632_s19, %s10037_s22, %s10037_s22, %s10038_s10  }
 0x4b0 PF: > { %s7660_s28 = sand.u32 1, %s10016_s24   ;;  %p13217_p7 = scmp.ne.s32.totalorder %s13031_s8, 0 }
 0x4b1   : > { %p13218_p12 = scmp.ge.s32.totalorder %s10028_s27, 2  ;;  %s7661_s21 = scalar_lea.sflag [#allocation5], %s7660_s28 }
 0x4b3   : > { %p9321_p13 = pnand %p13218_p12, %p13217_p7 }
 0x4b5   : > { %p9322_p0 = pneg %p9321_p13 }
 0x4b7   : > { %10011 = dma.done.wait (%p9322_p0), %s7661_s21, 4096  }
 0x4b8   : > { %10013 = vsyncadd (%p9322_p0), %s7661_s21, 4294963200  ;;  %p21_p10 = scmp.ge.s32.totalorder %s10157_s23, 4   ;;  %s13219_s24 = smov %s10020_s25 }
 0x4b9   : > { %s13220_s25 = smov %s10024_s26  ;;  %s13221_s26 = smov %s10173_s12 }
 0x4ba   : > { %s13222_s27 = smov %s10157_s23  ;;  %23 = sbr.rel (!%p21_p10) target bundleno = 8 (0x8), region = 103 }
 0x4bf   :  { %7666 = vsyncpa [#allocation4], 1 }
 0x4c0   :  { %7668 = vsyncpa [#allocation4 + $0x1], 1 }
 0x4c1   :  { %7669 = vsyncpa [#allocation7], 1 }
 0x4c2   :  { %7670 = vsyncpa [#allocation5], 1 }
 0x4c3   :  { %7672 = vsyncpa [#allocation5 + $0x1], 1 }

</bundles_post_ra>
